<compile_context>
chip_gen: v7x
topology: tpu7x:2x2x1
jax: 0.10.0
libtpu: 0.0.40
codegen_flags: <defaults>
</compile_context>

<pallas_src>
import math

import jax
import jax.numpy as jnp
from jax.experimental import pallas as pl
from jax.experimental.pallas import tpu as pltpu


VMEM_LIMIT = 32 * 1024 * 1024     # fits the scoped VMEM budget on v5e/v6e/v7x
ROW_TILE = 512                    # flattened-pixel tile for the matmul kernels


def _round_up(n, m):
    return ((n + m - 1) // m) * m


def _mosaic_params():
    # All grids in this file are rank-1 and fully parallel (distinct output
    # blocks per step) -> lets v7x shard steps across its two TensorCores.
    return pltpu.CompilerParams(dimension_semantics=("parallel",),
                                vmem_limit_bytes=VMEM_LIMIT)


# ----------------------------- Pallas kernels ------------------------------

def _make_mm_kernel(relu, n_add):
    """y = [relu](x @ w + b) (+ add_0 + ... + add_{n_add-1})."""
    def kernel(*refs):
        x_ref, w_ref, b_ref = refs[0], refs[1], refs[2]
        add_refs = refs[3:3 + n_add]
        o_ref = refs[3 + n_add]
        y = jnp.dot(x_ref[...], w_ref[...], preferred_element_type=jnp.float32)
        y = y + b_ref[...]
        if relu:
            y = jnp.maximum(y, 0.0)
        for a_ref in add_refs:
            y = y + a_ref[...].astype(jnp.float32)
        o_ref[...] = y.astype(o_ref.dtype)
    return kernel


def mm_conv(x2d, w, b, adds=(), relu=False, out_dtype=jnp.bfloat16):
    """Pointwise (1x1) conv as a row-tiled matmul kernel with fused epilogue."""
    n, cin = x2d.shape
    cout = w.shape[-1]
    rt = min(ROW_TILE, _round_up(n, 16))
    in_specs = [pl.BlockSpec((rt, cin), lambda i: (i, 0)),
                pl.BlockSpec((cin, cout), lambda i: (0, 0)),
                pl.BlockSpec((1, cout), lambda i: (0, 0))]
    in_specs += [pl.BlockSpec((rt, cout), lambda i: (i, 0)) for _ in adds]
    return pl.pallas_call(
        _make_mm_kernel(relu, len(adds)),
        out_shape=jax.ShapeDtypeStruct((n, cout), out_dtype),
        grid=(pl.cdiv(n, rt),),
        in_specs=in_specs,
        out_specs=pl.BlockSpec((rt, cout), lambda i: (i, 0)),
        compiler_params=_mosaic_params(),
    )(x2d, w, b.reshape(1, cout), *adds)


def _res_tail_kernel(h_ref, w_ref, b_ref, x_ref, ws_ref, bs_ref, o_ref):
    """out = relu(h @ w + b) + (x @ ws + bs)   (conv-group tail + proj. skip)."""
    y = jnp.dot(h_ref[...], w_ref[...], preferred_element_type=jnp.float32)
    y = jnp.maximum(y + b_ref[...], 0.0)
    s = jnp.dot(x_ref[...], ws_ref[...], preferred_element_type=jnp.float32)
    o_ref[...] = (y + s + bs_ref[...]).astype(o_ref.dtype)


def res_tail_proj(h2d_flat, w, b, x2d, ws, bs):
    n, cin = h2d_flat.shape
    cskip = x2d.shape[1]
    cout = w.shape[-1]
    rt = min(ROW_TILE, _round_up(n, 16))
    return pl.pallas_call(
        _res_tail_kernel,
        out_shape=jax.ShapeDtypeStruct((n, cout), jnp.bfloat16),
        grid=(pl.cdiv(n, rt),),
        in_specs=[pl.BlockSpec((rt, cin), lambda i: (i, 0)),
                  pl.BlockSpec((cin, cout), lambda i: (0, 0)),
                  pl.BlockSpec((1, cout), lambda i: (0, 0)),
                  pl.BlockSpec((rt, cskip), lambda i: (i, 0)),
                  pl.BlockSpec((cskip, cout), lambda i: (0, 0)),
                  pl.BlockSpec((1, cout), lambda i: (0, 0))],
        out_specs=pl.BlockSpec((rt, cout), lambda i: (i, 0)),
        compiler_params=_mosaic_params(),
    )(h2d_flat, w, b.reshape(1, cout), x2d, ws, bs.reshape(1, cout))


def _head_kernel(x_ref, w1_ref, b1_ref, w2_ref, b2_ref, orig_ref, hm_ref):
    """origin = relu(x @ w1 + b1);  heatmap = origin @ w2 + b2 (both outputs)."""
    y = jnp.dot(x_ref[...], w1_ref[...], preferred_element_type=jnp.float32)
    y = jnp.maximum(y + b1_ref[...], 0.0)
    orig_ref[...] = y.astype(orig_ref.dtype)
    hm = jnp.dot(y.astype(w2_ref.dtype), w2_ref[...],
                 preferred_element_type=jnp.float32)
    hm_ref[...] = (hm + b2_ref[...]).astype(hm_ref.dtype)


def head_1x1_and_o2h(x2d, w1, b1, w2, b2):
    n, cin = x2d.shape
    c1, c2 = w1.shape[-1], w2.shape[-1]
    rt = min(ROW_TILE, _round_up(n, 16))
    return pl.pallas_call(
        _head_kernel,
        out_shape=(jax.ShapeDtypeStruct((n, c1), jnp.bfloat16),
                   jax.ShapeDtypeStruct((n, c2), jnp.float32)),
        grid=(pl.cdiv(n, rt),),
        in_specs=[pl.BlockSpec((rt, cin), lambda i: (i, 0)),
                  pl.BlockSpec((cin, c1), lambda i: (0, 0)),
                  pl.BlockSpec((1, c1), lambda i: (0, 0)),
                  pl.BlockSpec((c1, c2), lambda i: (0, 0)),
                  pl.BlockSpec((1, c2), lambda i: (0, 0))],
        out_specs=[pl.BlockSpec((rt, c1), lambda i: (i, 0)),
                   pl.BlockSpec((rt, c2), lambda i: (i, 0))],
        compiler_params=_mosaic_params(),
    )(x2d, w1, b1.reshape(1, c1), w2, b2.reshape(1, c2))


def _make_conv_kernel(kh, kw):
    """Stride-1 'valid' kh x kw conv + bias + ReLU, one image per grid step."""
    def kernel(x_ref, w_ref, b_ref, o_ref):
        # x_ref: (1, Hout+kh-1, Wp+kw-1, Cin) bf16 ; w_ref: (kh*kw, Cin, Cout) f32
        # b_ref: (1, Cout) f32 ; o_ref: (1, Hout, Wp, Cout) bf16  (Wp % 8 == 0)
        _, hout, wout_p, cout = o_ref.shape
        cin = x_ref.shape[3]
        m = hout * wout_p
        acc = jnp.zeros((m, cout), jnp.float32)
        for dy in range(kh):
            # slice on the (non-layout) H axis, cast up once per dy
            slab = x_ref[0, pl.ds(dy, hout), :, :].astype(jnp.float32)
            for dx in range(kw):
                tap = jax.lax.slice(slab, (0, dx, 0), (hout, dx + wout_p, cin))
                acc = acc + jnp.dot(tap.reshape(m, cin), w_ref[dy * kw + dx],
                                    preferred_element_type=jnp.float32)
        y = jnp.maximum(acc + b_ref[...], 0.0)
        o_ref[0] = y.reshape(hout, wout_p, cout).astype(o_ref.dtype)
    return kernel


def conv2d_relu(x_pad, w, b, hout, wout, kh, kw):
    """x_pad: (B, hout+kh-1, Wp+kw-1, Cin) NHWC, already zero padded with
    Wp = round_up(wout, 8).  Returns (B, hout, wout, Cout) bf16."""
    bsz, hin, win, cin = x_pad.shape
    cout = w.shape[-1]
    wp = _round_up(wout, 8)
    assert hin == hout + kh - 1 and win == wp + kw - 1, (x_pad.shape, hout, wout)
    y = pl.pallas_call(
        _make_conv_kernel(kh, kw),
        out_shape=jax.ShapeDtypeStruct((bsz, hout, wp, cout), jnp.bfloat16),
        grid=(bsz,),
        in_specs=[
            pl.BlockSpec((1, hin, win, cin), lambda bb: (bb, 0, 0, 0)),
            pl.BlockSpec((kh * kw, cin, cout), lambda bb: (0, 0, 0)),
            pl.BlockSpec((1, cout), lambda bb: (0, 0)),
        ],
        out_specs=pl.BlockSpec((1, hout, wp, cout), lambda bb: (bb, 0, 0, 0)),
        compiler_params=_mosaic_params(),
    )(x_pad, w, b.reshape(1, cout))
    return y if wp == wout else y[:, :, :wout, :]


def conv3x3_relu(x, w, b):
    """3x3 conv, stride 1, pad 1, + bias + ReLU.  x: (B, H, W, Cin) NHWC."""
    _, h, wd, _ = x.shape
    wp = _round_up(wd, 8)
    # pad 1 each side, plus extra zero columns so the padded-width output is
    # sublane-aligned (garbage columns are sliced off in conv2d_relu).
    xp = jnp.pad(x, ((0, 0), (1, 1), (1, 1 + wp - wd), (0, 0)))
    return conv2d_relu(xp, w, b, hout=h, wout=wd, kh=3, kw=3)


def _maxpool_kernel(x_ref, o_ref):
    # x_ref: (1, H/2, 2, W/2, 2C) (free repack of the NHWC input); one pass.
    c = o_ref.shape[3]
    x = x_ref[...]
    m = jnp.maximum(x[:, :, 0], x[:, :, 1])          # max over the H phase
    o_ref[...] = jnp.maximum(m[..., :c], m[..., c:]).astype(o_ref.dtype)


def maxpool2x2(x):
    bsz, h, wd, c = x.shape
    xr = x.reshape(bsz, h // 2, 2, wd // 2, 2 * c)   # free (contiguous) reshape
    return pl.pallas_call(
        _maxpool_kernel,
        out_shape=jax.ShapeDtypeStruct((bsz, h // 2, wd // 2, c), x.dtype),
        grid=(bsz,),
        in_specs=[pl.BlockSpec((1, h // 2, 2, wd // 2, 2 * c),
                               lambda bb: (bb, 0, 0, 0, 0))],
        out_specs=pl.BlockSpec((1, h // 2, wd // 2, c),
                               lambda bb: (bb, 0, 0, 0)),
        compiler_params=_mosaic_params(),
    )(xr)


# ------------------------- parameter initialization ------------------------

class KeyGen:
    def __init__(self, key):
        self._key = key

    def __call__(self):
        self._key, sub = jax.random.split(self._key)
        return sub


def _repack_stem_weight(w7):
    """(7,7,3,Cout) stride-2 weights -> (16,12,Cout) weights of the equivalent
    4x4 stride-1 conv over a 2x2 space-to-channel repacked input."""
    cout = w7.shape[-1]
    w4 = jnp.zeros((4, 4, 12, cout), jnp.float32)
    for dy in range(7):
        for dx in range(7):
            m0 = (dy % 2) * 6 + (dx % 2) * 3
            w4 = w4.at[dy // 2, dx // 2, m0:m0 + 3, :].set(w7[dy, dx])
    return w4.reshape(16, 12, cout)


def init_conv1x1(key, cin, cout):
    """make_channel_controller / plain Conv2d(1x1): w (cin, cout), b (cout,)."""
    k1, k2 = jax.random.split(key)
    w = jax.random.normal(k1, (cin, cout), jnp.float32) * (1.0 / math.sqrt(cin))
    b = jax.random.normal(k2, (cout,), jnp.float32) * 0.05
    return {'w': w.astype(jnp.bfloat16), 'b': b}


def init_relu_conv(key, cin, cout, k):
    """make_relu_conv: BatchNorm2d(cin) -> Conv2d(cin,cout,k) -> ReLU, BN folded."""
    ks = jax.random.split(key, 6)
    w = jax.random.normal(ks[0], (k, k, cin, cout), jnp.float32) * (1.0 / math.sqrt(k * k * cin))
    b = jax.random.normal(ks[1], (cout,), jnp.float32) * 0.05
    gamma = 1.0 + 0.1 * jax.random.normal(ks[2], (cin,), jnp.float32)
    beta = 0.1 * jax.random.normal(ks[3], (cin,), jnp.float32)
    mean = 0.1 * jax.random.normal(ks[4], (cin,), jnp.float32)
    var = 1.0 + 0.1 * jnp.abs(jax.random.normal(ks[5], (cin,), jnp.float32))
    s = gamma / jnp.sqrt(var + 1e-5)          # eval-mode BN scale
    t = beta - mean * s                       # eval-mode BN shift
    wf = w * s[None, None, :, None]           # fold BN into the conv (linear)
    bf = b + jnp.einsum('hwio,i->o', w, t)
    if k == 1:
        wk = wf.reshape(cin, cout).astype(jnp.bfloat16)   # bf16 matmul path
    elif k == 3:
        wk = wf.reshape(9, cin, cout)                     # conv kernel runs f32
    elif k == 7:
        wk = _repack_stem_weight(wf)                      # -> (16, 12, cout) f32
    else:
        raise ValueError(f"unsupported kernel size {k}")
    return {'w': wk, 'b': bf}


def init_res_block(key, cin, cout):
    mid = max(cout // 2, 1)
    kg = KeyGen(key)
    return {
        'rc1': init_relu_conv(kg(), cin, mid, 1),
        'rc2': init_relu_conv(kg(), mid, mid, 3),
        'rc3': init_relu_conv(kg(), mid, cout, 1),
        'skip': None if cin == cout else init_conv1x1(kg(), cin, cout),
    }


def init_params(key, channels, stack_num, group_res_num, heatmap_dims):
    kg = KeyGen(key)
    params = {
        'stem': init_relu_conv(kg(), 3, 64, 7),          # relu_conv(3, 64, 7, 2, 3)
        'top_rb1': init_res_block(kg(), 64, 128),
        'top_rb2': init_res_block(kg(), 128, 128),
        'top_rb3': init_res_block(kg(), 128, channels),
        'loop_head': [],
        'o2h': [],
        'h2d': [],
    }
    for _ in range(stack_num):
        params['loop_head'].append({
            'res': [init_res_block(kg(), channels, channels) for _ in range(group_res_num)],
            'rc': init_relu_conv(kg(), channels, channels, 1),
        })
        params['o2h'].append(None if heatmap_dims == channels
                             else init_conv1x1(kg(), channels, heatmap_dims))
    for _ in range(stack_num - 1):
        params['h2d'].append(None if heatmap_dims == channels
                             else init_conv1x1(kg(), heatmap_dims, channels))
    return params


# ------------------------------ forward pass --------------------------------

def _flat(x):
    b, h, w, c = x.shape
    return x.reshape(b * h * w, c)


def apply_1x1(p, x, adds=(), relu=False, out_dtype=jnp.bfloat16):
    b, h, w, _ = x.shape
    cout = p['w'].shape[-1]
    y = mm_conv(_flat(x), p['w'], p['b'],
                adds=tuple(_flat(a) for a in adds), relu=relu, out_dtype=out_dtype)
    return y.reshape(b, h, w, cout)


def apply_res_block(p, x):
    """res block: relu_conv(1x1) -> relu_conv(3x3) -> relu_conv(1x1), + skip(x)."""
    b, hh, ww, _ = x.shape
    h = apply_1x1(p['rc1'], x, relu=True)                 # 1x1 BN+conv+ReLU
    h = conv3x3_relu(h, p['rc2']['w'], p['rc2']['b'])     # 3x3 BN+conv+ReLU
    cout = p['rc3']['w'].shape[-1]
    if p['skip'] is None:
        # identity skip fused as a residual add into the tail 1x1 kernel
        y = mm_conv(_flat(h), p['rc3']['w'], p['rc3']['b'],
                    adds=(_flat(x),), relu=True)
    else:
        # projection skip (plain 1x1 conv) fused into the same kernel
        y = res_tail_proj(_flat(h), p['rc3']['w'], p['rc3']['b'],
                          _flat(x), p['skip']['w'], p['skip']['b'])
    return y.reshape(b, hh, ww, cout)


def apply_stem(p, x):
    """relu_conv(3, 64, 7, stride 2, pad 3), recast as a 4x4/stride-1 conv on a
    2x2 space-to-channel repacked input (no HBM im2col expansion)."""
    b, h, wd, cin = x.shape
    hout, wout = h // 2, wd // 2
    xp = jnp.pad(x, ((0, 0), (3, 3), (3, 3), (0, 0)))          # (B, H+6, W+6, 3)
    hp, wp_full = h + 6, wd + 6
    xq = xp.reshape(b, hp // 2, 2, wp_full // 2, 2, cin)        # free reshape
    xq = jnp.transpose(xq, (0, 1, 3, 2, 4, 5)).reshape(b, hp // 2, wp_full // 2, 4 * cin)
    need_w = _round_up(wout, 8) + 3                             # packed cols needed
    if xq.shape[2] < need_w:
        xq = jnp.pad(xq, ((0, 0), (0, 0), (0, need_w - xq.shape[2]), (0, 0)))
    return conv2d_relu(xq, p['w'], p['b'], hout=hout, wout=wout, kh=4, kw=4)


def forward(params, x_nchw):
    x = jnp.transpose(x_nchw, (0, 2, 3, 1)).astype(jnp.bfloat16)   # NCHW -> NHWC

    # top: relu_conv(3,64,7,2,3) -> res(64,128) -> maxpool(2,2) -> res(128,128) -> res(128,C)
    x = apply_stem(params['stem'], x)
    x = apply_res_block(params['top_rb1'], x)
    x = maxpool2x2(x)
    x = apply_res_block(params['top_rb2'], x)
    x = apply_res_block(params['top_rb3'], x)

    stack_num = len(params['loop_head'])
    outs = []
    for i in range(stack_num):
        # TODO(synk): the `hourglass` submodule is injected via __init__ and not
        # defined in model.py; it is treated as an identity Sequential here.
        origin = x
        for rb in params['loop_head'][i]['res']:
            origin = apply_res_block(rb, origin)

        b, hh, ww, _ = origin.shape
        rc = params['loop_head'][i]['rc']
        o2h = params['o2h'][i]
        if o2h is None:
            origin = apply_1x1(rc, origin, relu=True)
            heatmap = origin.astype(jnp.float32)
        else:
            # relu_conv(channels,channels,1) and origin->heatmap 1x1 fused
            of, hf = head_1x1_and_o2h(_flat(origin), rc['w'], rc['b'],
                                      o2h['w'], o2h['b'])
            origin = of.reshape(b, hh, ww, -1)
            heatmap = hf.reshape(b, hh, ww, -1)
        outs.append(jnp.transpose(heatmap, (0, 3, 1, 2)))          # NHWC -> NCHW

        if i < stack_num - 1:
            # x = x + origin_to_data_chc(origin) + heatmap_to_data_chc(heatmap);
            # origin_to_data_chc(channels, channels) is an identity Sequential.
            h2d = params['h2d'][i]
            if h2d is None:
                x = x + origin + heatmap.astype(x.dtype)
            else:
                xf = mm_conv(_flat(heatmap).astype(jnp.bfloat16), h2d['w'], h2d['b'],
                             adds=(_flat(x), _flat(origin)), relu=False)
                x = xf.reshape(b, hh, ww, -1)
    return outs


# ----------------------------------- main -----------------------------------

if __name__ == "__main__":
    CHANNELS = 32
    HEATMAP_DIMS = 8
    STACK_NUM = 2
    GROUP_RES_NUM = 1

    key = jax.random.PRNGKey(0)
    pkey, xkey = jax.random.split(key)
    params = init_params(pkey, CHANNELS, STACK_NUM, GROUP_RES_NUM, HEATMAP_DIMS)

    # PyTorch-style NCHW input: (batch=2, C=3, H=16, W=16)
    x = jax.random.normal(xkey, (2, 3, 16, 16), jnp.float32)

    fwd = jax.jit(forward)
    outs = fwd(params, x)
    outs = jax.block_until_ready(outs)

    assert len(outs) == STACK_NUM
    for o in outs:
        assert o.shape == (2, HEATMAP_DIMS, 4, 4), o.shape
        assert bool(jnp.all(jnp.isfinite(o)))
    print("KERNEL_OK")
</pallas_src>

<mosaic_0001>
module attributes {stable_mosaic.version = 11 : i64} {
  func.func @kernel(%arg0: i32, %arg1: memref<1x11x11x12xbf16, #tpu.memory_space<vmem>>, %arg2: memref<16x12x64xf32, #tpu.memory_space<vmem>>, %arg3: memref<1x64xf32, #tpu.memory_space<vmem>>, %arg4: memref<1x8x8x64xbf16, #tpu.memory_space<vmem>>) attributes {dimension_semantics = [#tpu.dimension_semantics<parallel>], iteration_bounds = array<i64: 2>, scalar_prefetch = 0 : i64, scratch_operands = 0 : i64, tpu.core_type = #tpu.core_type<tc>, window_params = [{transform_indices = @transform_0, window_bounds = array<i64: 1, 11, 11, 12>}, {pipeline_mode = #tpu.pipeline_mode<synchronous>, transform_indices = @transform_1, window_bounds = array<i64: 16, 12, 64>}, {pipeline_mode = #tpu.pipeline_mode<synchronous>, transform_indices = @transform_2, window_bounds = array<i64: 1, 64>}, {transform_indices = @transform_3, window_bounds = array<i64: 1, 8, 8, 64>}]} {
    %cst = arith.constant 0.000000e+00 : f32
    %0 = vector.broadcast %cst : f32 to vector<64x64xf32>
    %c0 = arith.constant 0 : index
    %c0_0 = arith.constant 0 : index
    %c0_1 = arith.constant 0 : index
    %c0_2 = arith.constant 0 : index
    %1 = vector.load %arg1[%c0, %c0_0, %c0_1, %c0_2] : memref<1x11x11x12xbf16, #tpu.memory_space<vmem>>, vector<1x8x11x12xbf16>
    %2 = vector.shape_cast %1 : vector<1x8x11x12xbf16> to vector<8x11x12xbf16>
    %3 = arith.extf %2 : vector<8x11x12xbf16> to vector<8x11x12xf32>
    %4 = vector.extract_strided_slice %3 {offsets = [0, 0, 0], sizes = [8, 8, 12], strides = [1, 1, 1]} : vector<8x11x12xf32> to vector<8x8x12xf32>
    %5 = vector.shape_cast %4 : vector<8x8x12xf32> to vector<64x12xf32>
    %c0_3 = arith.constant 0 : index
    %c0_4 = arith.constant 0 : index
    %c0_5 = arith.constant 0 : index
    %6 = vector.load %arg2[%c0_3, %c0_4, %c0_5] : memref<16x12x64xf32, #tpu.memory_space<vmem>>, vector<1x12x64xf32>
    %7 = vector.shape_cast %6 : vector<1x12x64xf32> to vector<12x64xf32>
    %cst_6 = arith.constant dense<0.000000e+00> : vector<64x64xf32>
    %8 = tpu.matmul %5, %7, %cst_6 {dimension_numbers = #tpu.dot_dimension_numbers<[1], [0], [0], [1], [0, 0, 1, 1], [], []>} : vector<64x12xf32>, vector<12x64xf32>, vector<64x64xf32> -> vector<64x64xf32>
    %9 = arith.addf %0, %8 : vector<64x64xf32>
    %10 = vector.extract_strided_slice %3 {offsets = [0, 1, 0], sizes = [8, 8, 12], strides = [1, 1, 1]} : vector<8x11x12xf32> to vector<8x8x12xf32>
    %11 = vector.shape_cast %10 : vector<8x8x12xf32> to vector<64x12xf32>
    %c1 = arith.constant 1 : index
    %c0_7 = arith.constant 0 : index
    %c0_8 = arith.constant 0 : index
    %12 = vector.load %arg2[%c1, %c0_7, %c0_8] : memref<16x12x64xf32, #tpu.memory_space<vmem>>, vector<1x12x64xf32>
    %13 = vector.shape_cast %12 : vector<1x12x64xf32> to vector<12x64xf32>
    %cst_9 = arith.constant dense<0.000000e+00> : vector<64x64xf32>
    %14 = tpu.matmul %11, %13, %cst_9 {dimension_numbers = #tpu.dot_dimension_numbers<[1], [0], [0], [1], [0, 0, 1, 1], [], []>} : vector<64x12xf32>, vector<12x64xf32>, vector<64x64xf32> -> vector<64x64xf32>
    %15 = arith.addf %9, %14 : vector<64x64xf32>
    %16 = vector.extract_strided_slice %3 {offsets = [0, 2, 0], sizes = [8, 8, 12], strides = [1, 1, 1]} : vector<8x11x12xf32> to vector<8x8x12xf32>
    %17 = vector.shape_cast %16 : vector<8x8x12xf32> to vector<64x12xf32>
    %c2 = arith.constant 2 : index
    %c0_10 = arith.constant 0 : index
    %c0_11 = arith.constant 0 : index
    %18 = vector.load %arg2[%c2, %c0_10, %c0_11] : memref<16x12x64xf32, #tpu.memory_space<vmem>>, vector<1x12x64xf32>
    %19 = vector.shape_cast %18 : vector<1x12x64xf32> to vector<12x64xf32>
    %cst_12 = arith.constant dense<0.000000e+00> : vector<64x64xf32>
    %20 = tpu.matmul %17, %19, %cst_12 {dimension_numbers = #tpu.dot_dimension_numbers<[1], [0], [0], [1], [0, 0, 1, 1], [], []>} : vector<64x12xf32>, vector<12x64xf32>, vector<64x64xf32> -> vector<64x64xf32>
    %21 = arith.addf %15, %20 : vector<64x64xf32>
    %22 = vector.extract_strided_slice %3 {offsets = [0, 3, 0], sizes = [8, 8, 12], strides = [1, 1, 1]} : vector<8x11x12xf32> to vector<8x8x12xf32>
    %23 = vector.shape_cast %22 : vector<8x8x12xf32> to vector<64x12xf32>
    %c3 = arith.constant 3 : index
    %c0_13 = arith.constant 0 : index
    %c0_14 = arith.constant 0 : index
    %24 = vector.load %arg2[%c3, %c0_13, %c0_14] : memref<16x12x64xf32, #tpu.memory_space<vmem>>, vector<1x12x64xf32>
    %25 = vector.shape_cast %24 : vector<1x12x64xf32> to vector<12x64xf32>
    %cst_15 = arith.constant dense<0.000000e+00> : vector<64x64xf32>
    %26 = tpu.matmul %23, %25, %cst_15 {dimension_numbers = #tpu.dot_dimension_numbers<[1], [0], [0], [1], [0, 0, 1, 1], [], []>} : vector<64x12xf32>, vector<12x64xf32>, vector<64x64xf32> -> vector<64x64xf32>
    %27 = arith.addf %21, %26 : vector<64x64xf32>
    %c0_16 = arith.constant 0 : index
    %c1_17 = arith.constant 1 : index
    %c0_18 = arith.constant 0 : index
    %c0_19 = arith.constant 0 : index
    %28 = vector.load %arg1[%c0_16, %c1_17, %c0_18, %c0_19] : memref<1x11x11x12xbf16, #tpu.memory_space<vmem>>, vector<1x8x11x12xbf16>
    %29 = vector.shape_cast %28 : vector<1x8x11x12xbf16> to vector<8x11x12xbf16>
    %30 = arith.extf %29 : vector<8x11x12xbf16> to vector<8x11x12xf32>
    %31 = vector.extract_strided_slice %30 {offsets = [0, 0, 0], sizes = [8, 8, 12], strides = [1, 1, 1]} : vector<8x11x12xf32> to vector<8x8x12xf32>
    %32 = vector.shape_cast %31 : vector<8x8x12xf32> to vector<64x12xf32>
    %c4 = arith.constant 4 : index
    %c0_20 = arith.constant 0 : index
    %c0_21 = arith.constant 0 : index
    %33 = vector.load %arg2[%c4, %c0_20, %c0_21] : memref<16x12x64xf32, #tpu.memory_space<vmem>>, vector<1x12x64xf32>
    %34 = vector.shape_cast %33 : vector<1x12x64xf32> to vector<12x64xf32>
    %cst_22 = arith.constant dense<0.000000e+00> : vector<64x64xf32>
    %35 = tpu.matmul %32, %34, %cst_22 {dimension_numbers = #tpu.dot_dimension_numbers<[1], [0], [0], [1], [0, 0, 1, 1], [], []>} : vector<64x12xf32>, vector<12x64xf32>, vector<64x64xf32> -> vector<64x64xf32>
    %36 = arith.addf %27, %35 : vector<64x64xf32>
    %37 = vector.extract_strided_slice %30 {offsets = [0, 1, 0], sizes = [8, 8, 12], strides = [1, 1, 1]} : vector<8x11x12xf32> to vector<8x8x12xf32>
    %38 = vector.shape_cast %37 : vector<8x8x12xf32> to vector<64x12xf32>
    %c5 = arith.constant 5 : index
    %c0_23 = arith.constant 0 : index
    %c0_24 = arith.constant 0 : index
    %39 = vector.load %arg2[%c5, %c0_23, %c0_24] : memref<16x12x64xf32, #tpu.memory_space<vmem>>, vector<1x12x64xf32>
    %40 = vector.shape_cast %39 : vector<1x12x64xf32> to vector<12x64xf32>
    %cst_25 = arith.constant dense<0.000000e+00> : vector<64x64xf32>
    %41 = tpu.matmul %38, %40, %cst_25 {dimension_numbers = #tpu.dot_dimension_numbers<[1], [0], [0], [1], [0, 0, 1, 1], [], []>} : vector<64x12xf32>, vector<12x64xf32>, vector<64x64xf32> -> vector<64x64xf32>
    %42 = arith.addf %36, %41 : vector<64x64xf32>
    %43 = vector.extract_strided_slice %30 {offsets = [0, 2, 0], sizes = [8, 8, 12], strides = [1, 1, 1]} : vector<8x11x12xf32> to vector<8x8x12xf32>
    %44 = vector.shape_cast %43 : vector<8x8x12xf32> to vector<64x12xf32>
    %c6 = arith.constant 6 : index
    %c0_26 = arith.constant 0 : index
    %c0_27 = arith.constant 0 : index
    %45 = vector.load %arg2[%c6, %c0_26, %c0_27] : memref<16x12x64xf32, #tpu.memory_space<vmem>>, vector<1x12x64xf32>
    %46 = vector.shape_cast %45 : vector<1x12x64xf32> to vector<12x64xf32>
    %cst_28 = arith.constant dense<0.000000e+00> : vector<64x64xf32>
    %47 = tpu.matmul %44, %46, %cst_28 {dimension_numbers = #tpu.dot_dimension_numbers<[1], [0], [0], [1], [0, 0, 1, 1], [], []>} : vector<64x12xf32>, vector<12x64xf32>, vector<64x64xf32> -> vector<64x64xf32>
    %48 = arith.addf %42, %47 : vector<64x64xf32>
    %49 = vector.extract_strided_slice %30 {offsets = [0, 3, 0], sizes = [8, 8, 12], strides = [1, 1, 1]} : vector<8x11x12xf32> to vector<8x8x12xf32>
    %50 = vector.shape_cast %49 : vector<8x8x12xf32> to vector<64x12xf32>
    %c7 = arith.constant 7 : index
    %c0_29 = arith.constant 0 : index
    %c0_30 = arith.constant 0 : index
    %51 = vector.load %arg2[%c7, %c0_29, %c0_30] : memref<16x12x64xf32, #tpu.memory_space<vmem>>, vector<1x12x64xf32>
    %52 = vector.shape_cast %51 : vector<1x12x64xf32> to vector<12x64xf32>
    %cst_31 = arith.constant dense<0.000000e+00> : vector<64x64xf32>
    %53 = tpu.matmul %50, %52, %cst_31 {dimension_numbers = #tpu.dot_dimension_numbers<[1], [0], [0], [1], [0, 0, 1, 1], [], []>} : vector<64x12xf32>, vector<12x64xf32>, vector<64x64xf32> -> vector<64x64xf32>
    %54 = arith.addf %48, %53 : vector<64x64xf32>
    %c0_32 = arith.constant 0 : index
    %c2_33 = arith.constant 2 : index
    %c0_34 = arith.constant 0 : index
    %c0_35 = arith.constant 0 : index
    %55 = vector.load %arg1[%c0_32, %c2_33, %c0_34, %c0_35] : memref<1x11x11x12xbf16, #tpu.memory_space<vmem>>, vector<1x8x11x12xbf16>
    %56 = vector.shape_cast %55 : vector<1x8x11x12xbf16> to vector<8x11x12xbf16>
    %57 = arith.extf %56 : vector<8x11x12xbf16> to vector<8x11x12xf32>
    %58 = vector.extract_strided_slice %57 {offsets = [0, 0, 0], sizes = [8, 8, 12], strides = [1, 1, 1]} : vector<8x11x12xf32> to vector<8x8x12xf32>
    %59 = vector.shape_cast %58 : vector<8x8x12xf32> to vector<64x12xf32>
    %c8 = arith.constant 8 : index
    %c0_36 = arith.constant 0 : index
    %c0_37 = arith.constant 0 : index
    %60 = vector.load %arg2[%c8, %c0_36, %c0_37] : memref<16x12x64xf32, #tpu.memory_space<vmem>>, vector<1x12x64xf32>
    %61 = vector.shape_cast %60 : vector<1x12x64xf32> to vector<12x64xf32>
    %cst_38 = arith.constant dense<0.000000e+00> : vector<64x64xf32>
    %62 = tpu.matmul %59, %61, %cst_38 {dimension_numbers = #tpu.dot_dimension_numbers<[1], [0], [0], [1], [0, 0, 1, 1], [], []>} : vector<64x12xf32>, vector<12x64xf32>, vector<64x64xf32> -> vector<64x64xf32>
    %63 = arith.addf %54, %62 : vector<64x64xf32>
    %64 = vector.extract_strided_slice %57 {offsets = [0, 1, 0], sizes = [8, 8, 12], strides = [1, 1, 1]} : vector<8x11x12xf32> to vector<8x8x12xf32>
    %65 = vector.shape_cast %64 : vector<8x8x12xf32> to vector<64x12xf32>
    %c9 = arith.constant 9 : index
    %c0_39 = arith.constant 0 : index
    %c0_40 = arith.constant 0 : index
    %66 = vector.load %arg2[%c9, %c0_39, %c0_40] : memref<16x12x64xf32, #tpu.memory_space<vmem>>, vector<1x12x64xf32>
    %67 = vector.shape_cast %66 : vector<1x12x64xf32> to vector<12x64xf32>
    %cst_41 = arith.constant dense<0.000000e+00> : vector<64x64xf32>
    %68 = tpu.matmul %65, %67, %cst_41 {dimension_numbers = #tpu.dot_dimension_numbers<[1], [0], [0], [1], [0, 0, 1, 1], [], []>} : vector<64x12xf32>, vector<12x64xf32>, vector<64x64xf32> -> vector<64x64xf32>
    %69 = arith.addf %63, %68 : vector<64x64xf32>
    %70 = vector.extract_strided_slice %57 {offsets = [0, 2, 0], sizes = [8, 8, 12], strides = [1, 1, 1]} : vector<8x11x12xf32> to vector<8x8x12xf32>
    %71 = vector.shape_cast %70 : vector<8x8x12xf32> to vector<64x12xf32>
    %c10 = arith.constant 10 : index
    %c0_42 = arith.constant 0 : index
    %c0_43 = arith.constant 0 : index
    %72 = vector.load %arg2[%c10, %c0_42, %c0_43] : memref<16x12x64xf32, #tpu.memory_space<vmem>>, vector<1x12x64xf32>
    %73 = vector.shape_cast %72 : vector<1x12x64xf32> to vector<12x64xf32>
    %cst_44 = arith.constant dense<0.000000e+00> : vector<64x64xf32>
    %74 = tpu.matmul %71, %73, %cst_44 {dimension_numbers = #tpu.dot_dimension_numbers<[1], [0], [0], [1], [0, 0, 1, 1], [], []>} : vector<64x12xf32>, vector<12x64xf32>, vector<64x64xf32> -> vector<64x64xf32>
    %75 = arith.addf %69, %74 : vector<64x64xf32>
    %76 = vector.extract_strided_slice %57 {offsets = [0, 3, 0], sizes = [8, 8, 12], strides = [1, 1, 1]} : vector<8x11x12xf32> to vector<8x8x12xf32>
    %77 = vector.shape_cast %76 : vector<8x8x12xf32> to vector<64x12xf32>
    %c11 = arith.constant 11 : index
    %c0_45 = arith.constant 0 : index
    %c0_46 = arith.constant 0 : index
    %78 = vector.load %arg2[%c11, %c0_45, %c0_46] : memref<16x12x64xf32, #tpu.memory_space<vmem>>, vector<1x12x64xf32>
    %79 = vector.shape_cast %78 : vector<1x12x64xf32> to vector<12x64xf32>
    %cst_47 = arith.constant dense<0.000000e+00> : vector<64x64xf32>
    %80 = tpu.matmul %77, %79, %cst_47 {dimension_numbers = #tpu.dot_dimension_numbers<[1], [0], [0], [1], [0, 0, 1, 1], [], []>} : vector<64x12xf32>, vector<12x64xf32>, vector<64x64xf32> -> vector<64x64xf32>
    %81 = arith.addf %75, %80 : vector<64x64xf32>
    %c0_48 = arith.constant 0 : index
    %c3_49 = arith.constant 3 : index
    %c0_50 = arith.constant 0 : index
    %c0_51 = arith.constant 0 : index
    %82 = vector.load %arg1[%c0_48, %c3_49, %c0_50, %c0_51] : memref<1x11x11x12xbf16, #tpu.memory_space<vmem>>, vector<1x8x11x12xbf16>
    %83 = vector.shape_cast %82 : vector<1x8x11x12xbf16> to vector<8x11x12xbf16>
    %84 = arith.extf %83 : vector<8x11x12xbf16> to vector<8x11x12xf32>
    %85 = vector.extract_strided_slice %84 {offsets = [0, 0, 0], sizes = [8, 8, 12], strides = [1, 1, 1]} : vector<8x11x12xf32> to vector<8x8x12xf32>
    %86 = vector.shape_cast %85 : vector<8x8x12xf32> to vector<64x12xf32>
    %c12 = arith.constant 12 : index
    %c0_52 = arith.constant 0 : index
    %c0_53 = arith.constant 0 : index
    %87 = vector.load %arg2[%c12, %c0_52, %c0_53] : memref<16x12x64xf32, #tpu.memory_space<vmem>>, vector<1x12x64xf32>
    %88 = vector.shape_cast %87 : vector<1x12x64xf32> to vector<12x64xf32>
    %cst_54 = arith.constant dense<0.000000e+00> : vector<64x64xf32>
    %89 = tpu.matmul %86, %88, %cst_54 {dimension_numbers = #tpu.dot_dimension_numbers<[1], [0], [0], [1], [0, 0, 1, 1], [], []>} : vector<64x12xf32>, vector<12x64xf32>, vector<64x64xf32> -> vector<64x64xf32>
    %90 = arith.addf %81, %89 : vector<64x64xf32>
    %91 = vector.extract_strided_slice %84 {offsets = [0, 1, 0], sizes = [8, 8, 12], strides = [1, 1, 1]} : vector<8x11x12xf32> to vector<8x8x12xf32>
    %92 = vector.shape_cast %91 : vector<8x8x12xf32> to vector<64x12xf32>
    %c13 = arith.constant 13 : index
    %c0_55 = arith.constant 0 : index
    %c0_56 = arith.constant 0 : index
    %93 = vector.load %arg2[%c13, %c0_55, %c0_56] : memref<16x12x64xf32, #tpu.memory_space<vmem>>, vector<1x12x64xf32>
    %94 = vector.shape_cast %93 : vector<1x12x64xf32> to vector<12x64xf32>
    %cst_57 = arith.constant dense<0.000000e+00> : vector<64x64xf32>
    %95 = tpu.matmul %92, %94, %cst_57 {dimension_numbers = #tpu.dot_dimension_numbers<[1], [0], [0], [1], [0, 0, 1, 1], [], []>} : vector<64x12xf32>, vector<12x64xf32>, vector<64x64xf32> -> vector<64x64xf32>
    %96 = arith.addf %90, %95 : vector<64x64xf32>
    %97 = vector.extract_strided_slice %84 {offsets = [0, 2, 0], sizes = [8, 8, 12], strides = [1, 1, 1]} : vector<8x11x12xf32> to vector<8x8x12xf32>
    %98 = vector.shape_cast %97 : vector<8x8x12xf32> to vector<64x12xf32>
    %c14 = arith.constant 14 : index
    %c0_58 = arith.constant 0 : index
    %c0_59 = arith.constant 0 : index
    %99 = vector.load %arg2[%c14, %c0_58, %c0_59] : memref<16x12x64xf32, #tpu.memory_space<vmem>>, vector<1x12x64xf32>
    %100 = vector.shape_cast %99 : vector<1x12x64xf32> to vector<12x64xf32>
    %cst_60 = arith.constant dense<0.000000e+00> : vector<64x64xf32>
    %101 = tpu.matmul %98, %100, %cst_60 {dimension_numbers = #tpu.dot_dimension_numbers<[1], [0], [0], [1], [0, 0, 1, 1], [], []>} : vector<64x12xf32>, vector<12x64xf32>, vector<64x64xf32> -> vector<64x64xf32>
    %102 = arith.addf %96, %101 : vector<64x64xf32>
    %103 = vector.extract_strided_slice %84 {offsets = [0, 3, 0], sizes = [8, 8, 12], strides = [1, 1, 1]} : vector<8x11x12xf32> to vector<8x8x12xf32>
    %104 = vector.shape_cast %103 : vector<8x8x12xf32> to vector<64x12xf32>
    %c15 = arith.constant 15 : index
    %c0_61 = arith.constant 0 : index
    %c0_62 = arith.constant 0 : index
    %105 = vector.load %arg2[%c15, %c0_61, %c0_62] : memref<16x12x64xf32, #tpu.memory_space<vmem>>, vector<1x12x64xf32>
    %106 = vector.shape_cast %105 : vector<1x12x64xf32> to vector<12x64xf32>
    %cst_63 = arith.constant dense<0.000000e+00> : vector<64x64xf32>
    %107 = tpu.matmul %104, %106, %cst_63 {dimension_numbers = #tpu.dot_dimension_numbers<[1], [0], [0], [1], [0, 0, 1, 1], [], []>} : vector<64x12xf32>, vector<12x64xf32>, vector<64x64xf32> -> vector<64x64xf32>
    %108 = arith.addf %102, %107 : vector<64x64xf32>
    %c0_64 = arith.constant 0 : index
    %c0_65 = arith.constant 0 : index
    %109 = vector.load %arg3[%c0_64, %c0_65] : memref<1x64xf32, #tpu.memory_space<vmem>>, vector<1x64xf32>
    %110 = vector.broadcast %109 : vector<1x64xf32> to vector<64x64xf32>
    %111 = arith.addf %108, %110 : vector<64x64xf32>
    %cst_66 = arith.constant 0.000000e+00 : f32
    %112 = vector.broadcast %cst_66 : f32 to vector<64x64xf32>
    %113 = arith.maximumf %111, %112 : vector<64x64xf32>
    %114 = vector.shape_cast %113 : vector<64x64xf32> to vector<8x8x64xf32>
    %115 = arith.truncf %114 : vector<8x8x64xf32> to vector<8x8x64xbf16>
    %c0_67 = arith.constant 0 : index
    %c0_68 = arith.constant 0 : index
    %c0_69 = arith.constant 0 : index
    %c0_70 = arith.constant 0 : index
    %116 = vector.load %arg4[%c0_67, %c0_68, %c0_69, %c0_70] : memref<1x8x8x64xbf16, #tpu.memory_space<vmem>>, vector<1x8x8x64xbf16>
    %117 = vector.shape_cast %116 : vector<1x8x8x64xbf16> to vector<8x8x64xbf16>
    %118 = vector.shape_cast %115 : vector<8x8x64xbf16> to vector<1x8x8x64xbf16>
    tpu.vector_store %arg4[%c0_67, %c0_68, %c0_69, %c0_70], %118 {strides = array<i32>} : memref<1x8x8x64xbf16, #tpu.memory_space<vmem>>, vector<1x8x8x64xbf16>,
    return
  }
  func.func @transform_0(%arg0: i32) -> (i32, i32, i32, i32) {
    %c0_i32 = arith.constant 0 : i32
    %c0_i32_0 = arith.constant 0 : i32
    %c0_i32_1 = arith.constant 0 : i32
    %c0_i32_2 = arith.constant 0 : i32
    return %arg0, %c0_i32, %c0_i32_0, %c0_i32_1 : i32, i32, i32, i32
  }
  func.func @transform_1(%arg0: i32) -> (i32, i32, i32) {
    %c0_i32 = arith.constant 0 : i32
    %c0_i32_0 = arith.constant 0 : i32
    %c0_i32_1 = arith.constant 0 : i32
    %c0_i32_2 = arith.constant 0 : i32
    return %c0_i32, %c0_i32_0, %c0_i32_1 : i32, i32, i32
  }
  func.func @transform_2(%arg0: i32) -> (i32, i32) {
    %c0_i32 = arith.constant 0 : i32
    %c0_i32_0 = arith.constant 0 : i32
    %c0_i32_1 = arith.constant 0 : i32
    return %c0_i32, %c0_i32_0 : i32, i32
  }
  func.func @transform_3(%arg0: i32) -> (i32, i32, i32, i32) {
    %c0_i32 = arith.constant 0 : i32
    %c0_i32_0 = arith.constant 0 : i32
    %c0_i32_1 = arith.constant 0 : i32
    %c0_i32_2 = arith.constant 0 : i32
    return %arg0, %c0_i32, %c0_i32_0, %c0_i32_1 : i32, i32, i32, i32
  }
}

module attributes {stable_mosaic.version = 11 : i64} {
  func.func @kernel(%arg0: i32, %arg1: memref<128x64xbf16, #tpu.memory_space<vmem>>, %arg2: memref<64x64xbf16, #tpu.memory_space<vmem>>, %arg3: memref<1x64xf32, #tpu.memory_space<vmem>>, %arg4: memref<128x64xbf16, #tpu.memory_space<vmem>>) attributes {dimension_semantics = [#tpu.dimension_semantics<parallel>], iteration_bounds = array<i64: 1>, scalar_prefetch = 0 : i64, scratch_operands = 0 : i64, tpu.core_type = #tpu.core_type<tc>, window_params = [{transform_indices = @transform_0, window_bounds = array<i64: 128, 64>}, {pipeline_mode = #tpu.pipeline_mode<synchronous>, transform_indices = @transform_1, window_bounds = array<i64: 64, 64>}, {pipeline_mode = #tpu.pipeline_mode<synchronous>, transform_indices = @transform_2, window_bounds = array<i64: 1, 64>}, {transform_indices = @transform_3, window_bounds = array<i64: 128, 64>}]} {
    %c0 = arith.constant 0 : index
    %c0_0 = arith.constant 0 : index
    %0 = vector.load %arg1[%c0, %c0_0] : memref<128x64xbf16, #tpu.memory_space<vmem>>, vector<128x64xbf16>
    %c0_1 = arith.constant 0 : index
    %c0_2 = arith.constant 0 : index
    %1 = vector.load %arg2[%c0_1, %c0_2] : memref<64x64xbf16, #tpu.memory_space<vmem>>, vector<64x64xbf16>
    %cst = arith.constant dense<0.000000e+00> : vector<128x64xf32>
    %2 = tpu.matmul %0, %1, %cst {dimension_numbers = #tpu.dot_dimension_numbers<[1], [0], [0], [1], [0, 0, 1, 1], [], []>} : vector<128x64xbf16>, vector<64x64xbf16>, vector<128x64xf32> -> vector<128x64xf32>
    %c0_3 = arith.constant 0 : index
    %c0_4 = arith.constant 0 : index
    %3 = vector.load %arg3[%c0_3, %c0_4] : memref<1x64xf32, #tpu.memory_space<vmem>>, vector<1x64xf32>
    %4 = vector.broadcast %3 : vector<1x64xf32> to vector<128x64xf32>
    %5 = arith.addf %2, %4 : vector<128x64xf32>
    %cst_5 = arith.constant 0.000000e+00 : f32
    %6 = vector.broadcast %cst_5 : f32 to vector<128x64xf32>
    %7 = arith.maximumf %5, %6 : vector<128x64xf32>
    %8 = arith.truncf %7 : vector<128x64xf32> to vector<128x64xbf16>
    %c0_6 = arith.constant 0 : index
    %c0_7 = arith.constant 0 : index
    %9 = vector.load %arg4[%c0_6, %c0_7] : memref<128x64xbf16, #tpu.memory_space<vmem>>, vector<128x64xbf16>
    tpu.vector_store %arg4[%c0_6, %c0_7], %8 {strides = array<i32>} : memref<128x64xbf16, #tpu.memory_space<vmem>>, vector<128x64xbf16>,
    return
  }
  func.func @transform_0(%arg0: i32) -> (i32, i32) {
    %c0_i32 = arith.constant 0 : i32
    %c0_i32_0 = arith.constant 0 : i32
    return %arg0, %c0_i32 : i32, i32
  }
  func.func @transform_1(%arg0: i32) -> (i32, i32) {
    %c0_i32 = arith.constant 0 : i32
    %c0_i32_0 = arith.constant 0 : i32
    %c0_i32_1 = arith.constant 0 : i32
    return %c0_i32, %c0_i32_0 : i32, i32
  }
  func.func @transform_2(%arg0: i32) -> (i32, i32) {
    %c0_i32 = arith.constant 0 : i32
    %c0_i32_0 = arith.constant 0 : i32
    %c0_i32_1 = arith.constant 0 : i32
    return %c0_i32, %c0_i32_0 : i32, i32
  }
  func.func @transform_3(%arg0: i32) -> (i32, i32) {
    %c0_i32 = arith.constant 0 : i32
    %c0_i32_0 = arith.constant 0 : i32
    return %arg0, %c0_i32 : i32, i32
  }
}

module attributes {stable_mosaic.version = 11 : i64} {
  func.func @kernel(%arg0: i32, %arg1: memref<1x10x10x64xbf16, #tpu.memory_space<vmem>>, %arg2: memref<9x64x64xf32, #tpu.memory_space<vmem>>, %arg3: memref<1x64xf32, #tpu.memory_space<vmem>>, %arg4: memref<1x8x8x64xbf16, #tpu.memory_space<vmem>>) attributes {dimension_semantics = [#tpu.dimension_semantics<parallel>], iteration_bounds = array<i64: 2>, scalar_prefetch = 0 : i64, scratch_operands = 0 : i64, tpu.core_type = #tpu.core_type<tc>, window_params = [{transform_indices = @transform_0, window_bounds = array<i64: 1, 10, 10, 64>}, {pipeline_mode = #tpu.pipeline_mode<synchronous>, transform_indices = @transform_1, window_bounds = array<i64: 9, 64, 64>}, {pipeline_mode = #tpu.pipeline_mode<synchronous>, transform_indices = @transform_2, window_bounds = array<i64: 1, 64>}, {transform_indices = @transform_3, window_bounds = array<i64: 1, 8, 8, 64>}]} {
    %cst = arith.constant 0.000000e+00 : f32
    %0 = vector.broadcast %cst : f32 to vector<64x64xf32>
    %c0 = arith.constant 0 : index
    %c0_0 = arith.constant 0 : index
    %c0_1 = arith.constant 0 : index
    %c0_2 = arith.constant 0 : index
    %1 = vector.load %arg1[%c0, %c0_0, %c0_1, %c0_2] : memref<1x10x10x64xbf16, #tpu.memory_space<vmem>>, vector<1x8x10x64xbf16>
    %2 = vector.shape_cast %1 : vector<1x8x10x64xbf16> to vector<8x10x64xbf16>
    %3 = arith.extf %2 : vector<8x10x64xbf16> to vector<8x10x64xf32>
    %4 = vector.extract_strided_slice %3 {offsets = [0, 0, 0], sizes = [8, 8, 64], strides = [1, 1, 1]} : vector<8x10x64xf32> to vector<8x8x64xf32>
    %5 = vector.shape_cast %4 : vector<8x8x64xf32> to vector<64x64xf32>
    %c0_3 = arith.constant 0 : index
    %c0_4 = arith.constant 0 : index
    %c0_5 = arith.constant 0 : index
    %6 = vector.load %arg2[%c0_3, %c0_4, %c0_5] : memref<9x64x64xf32, #tpu.memory_space<vmem>>, vector<1x64x64xf32>
    %7 = vector.shape_cast %6 : vector<1x64x64xf32> to vector<64x64xf32>
    %cst_6 = arith.constant dense<0.000000e+00> : vector<64x64xf32>
    %8 = tpu.matmul %5, %7, %cst_6 {dimension_numbers = #tpu.dot_dimension_numbers<[1], [0], [0], [1], [0, 0, 1, 1], [], []>} : vector<64x64xf32>, vector<64x64xf32>, vector<64x64xf32> -> vector<64x64xf32>
    %9 = arith.addf %0, %8 : vector<64x64xf32>
    %10 = vector.extract_strided_slice %3 {offsets = [0, 1, 0], sizes = [8, 8, 64], strides = [1, 1, 1]} : vector<8x10x64xf32> to vector<8x8x64xf32>
    %11 = vector.shape_cast %10 : vector<8x8x64xf32> to vector<64x64xf32>
    %c1 = arith.constant 1 : index
    %c0_7 = arith.constant 0 : index
    %c0_8 = arith.constant 0 : index
    %12 = vector.load %arg2[%c1, %c0_7, %c0_8] : memref<9x64x64xf32, #tpu.memory_space<vmem>>, vector<1x64x64xf32>
    %13 = vector.shape_cast %12 : vector<1x64x64xf32> to vector<64x64xf32>
    %cst_9 = arith.constant dense<0.000000e+00> : vector<64x64xf32>
    %14 = tpu.matmul %11, %13, %cst_9 {dimension_numbers = #tpu.dot_dimension_numbers<[1], [0], [0], [1], [0, 0, 1, 1], [], []>} : vector<64x64xf32>, vector<64x64xf32>, vector<64x64xf32> -> vector<64x64xf32>
    %15 = arith.addf %9, %14 : vector<64x64xf32>
    %16 = vector.extract_strided_slice %3 {offsets = [0, 2, 0], sizes = [8, 8, 64], strides = [1, 1, 1]} : vector<8x10x64xf32> to vector<8x8x64xf32>
    %17 = vector.shape_cast %16 : vector<8x8x64xf32> to vector<64x64xf32>
    %c2 = arith.constant 2 : index
    %c0_10 = arith.constant 0 : index
    %c0_11 = arith.constant 0 : index
    %18 = vector.load %arg2[%c2, %c0_10, %c0_11] : memref<9x64x64xf32, #tpu.memory_space<vmem>>, vector<1x64x64xf32>
    %19 = vector.shape_cast %18 : vector<1x64x64xf32> to vector<64x64xf32>
    %cst_12 = arith.constant dense<0.000000e+00> : vector<64x64xf32>
    %20 = tpu.matmul %17, %19, %cst_12 {dimension_numbers = #tpu.dot_dimension_numbers<[1], [0], [0], [1], [0, 0, 1, 1], [], []>} : vector<64x64xf32>, vector<64x64xf32>, vector<64x64xf32> -> vector<64x64xf32>
    %21 = arith.addf %15, %20 : vector<64x64xf32>
    %c0_13 = arith.constant 0 : index
    %c1_14 = arith.constant 1 : index
    %c0_15 = arith.constant 0 : index
    %c0_16 = arith.constant 0 : index
    %22 = vector.load %arg1[%c0_13, %c1_14, %c0_15, %c0_16] : memref<1x10x10x64xbf16, #tpu.memory_space<vmem>>, vector<1x8x10x64xbf16>
    %23 = vector.shape_cast %22 : vector<1x8x10x64xbf16> to vector<8x10x64xbf16>
    %24 = arith.extf %23 : vector<8x10x64xbf16> to vector<8x10x64xf32>
    %25 = vector.extract_strided_slice %24 {offsets = [0, 0, 0], sizes = [8, 8, 64], strides = [1, 1, 1]} : vector<8x10x64xf32> to vector<8x8x64xf32>
    %26 = vector.shape_cast %25 : vector<8x8x64xf32> to vector<64x64xf32>
    %c3 = arith.constant 3 : index
    %c0_17 = arith.constant 0 : index
    %c0_18 = arith.constant 0 : index
    %27 = vector.load %arg2[%c3, %c0_17, %c0_18] : memref<9x64x64xf32, #tpu.memory_space<vmem>>, vector<1x64x64xf32>
    %28 = vector.shape_cast %27 : vector<1x64x64xf32> to vector<64x64xf32>
    %cst_19 = arith.constant dense<0.000000e+00> : vector<64x64xf32>
    %29 = tpu.matmul %26, %28, %cst_19 {dimension_numbers = #tpu.dot_dimension_numbers<[1], [0], [0], [1], [0, 0, 1, 1], [], []>} : vector<64x64xf32>, vector<64x64xf32>, vector<64x64xf32> -> vector<64x64xf32>
    %30 = arith.addf %21, %29 : vector<64x64xf32>
    %31 = vector.extract_strided_slice %24 {offsets = [0, 1, 0], sizes = [8, 8, 64], strides = [1, 1, 1]} : vector<8x10x64xf32> to vector<8x8x64xf32>
    %32 = vector.shape_cast %31 : vector<8x8x64xf32> to vector<64x64xf32>
    %c4 = arith.constant 4 : index
    %c0_20 = arith.constant 0 : index
    %c0_21 = arith.constant 0 : index
    %33 = vector.load %arg2[%c4, %c0_20, %c0_21] : memref<9x64x64xf32, #tpu.memory_space<vmem>>, vector<1x64x64xf32>
    %34 = vector.shape_cast %33 : vector<1x64x64xf32> to vector<64x64xf32>
    %cst_22 = arith.constant dense<0.000000e+00> : vector<64x64xf32>
    %35 = tpu.matmul %32, %34, %cst_22 {dimension_numbers = #tpu.dot_dimension_numbers<[1], [0], [0], [1], [0, 0, 1, 1], [], []>} : vector<64x64xf32>, vector<64x64xf32>, vector<64x64xf32> -> vector<64x64xf32>
    %36 = arith.addf %30, %35 : vector<64x64xf32>
    %37 = vector.extract_strided_slice %24 {offsets = [0, 2, 0], sizes = [8, 8, 64], strides = [1, 1, 1]} : vector<8x10x64xf32> to vector<8x8x64xf32>
    %38 = vector.shape_cast %37 : vector<8x8x64xf32> to vector<64x64xf32>
    %c5 = arith.constant 5 : index
    %c0_23 = arith.constant 0 : index
    %c0_24 = arith.constant 0 : index
    %39 = vector.load %arg2[%c5, %c0_23, %c0_24] : memref<9x64x64xf32, #tpu.memory_space<vmem>>, vector<1x64x64xf32>
    %40 = vector.shape_cast %39 : vector<1x64x64xf32> to vector<64x64xf32>
    %cst_25 = arith.constant dense<0.000000e+00> : vector<64x64xf32>
    %41 = tpu.matmul %38, %40, %cst_25 {dimension_numbers = #tpu.dot_dimension_numbers<[1], [0], [0], [1], [0, 0, 1, 1], [], []>} : vector<64x64xf32>, vector<64x64xf32>, vector<64x64xf32> -> vector<64x64xf32>
    %42 = arith.addf %36, %41 : vector<64x64xf32>
    %c0_26 = arith.constant 0 : index
    %c2_27 = arith.constant 2 : index
    %c0_28 = arith.constant 0 : index
    %c0_29 = arith.constant 0 : index
    %43 = vector.load %arg1[%c0_26, %c2_27, %c0_28, %c0_29] : memref<1x10x10x64xbf16, #tpu.memory_space<vmem>>, vector<1x8x10x64xbf16>
    %44 = vector.shape_cast %43 : vector<1x8x10x64xbf16> to vector<8x10x64xbf16>
    %45 = arith.extf %44 : vector<8x10x64xbf16> to vector<8x10x64xf32>
    %46 = vector.extract_strided_slice %45 {offsets = [0, 0, 0], sizes = [8, 8, 64], strides = [1, 1, 1]} : vector<8x10x64xf32> to vector<8x8x64xf32>
    %47 = vector.shape_cast %46 : vector<8x8x64xf32> to vector<64x64xf32>
    %c6 = arith.constant 6 : index
    %c0_30 = arith.constant 0 : index
    %c0_31 = arith.constant 0 : index
    %48 = vector.load %arg2[%c6, %c0_30, %c0_31] : memref<9x64x64xf32, #tpu.memory_space<vmem>>, vector<1x64x64xf32>
    %49 = vector.shape_cast %48 : vector<1x64x64xf32> to vector<64x64xf32>
    %cst_32 = arith.constant dense<0.000000e+00> : vector<64x64xf32>
    %50 = tpu.matmul %47, %49, %cst_32 {dimension_numbers = #tpu.dot_dimension_numbers<[1], [0], [0], [1], [0, 0, 1, 1], [], []>} : vector<64x64xf32>, vector<64x64xf32>, vector<64x64xf32> -> vector<64x64xf32>
    %51 = arith.addf %42, %50 : vector<64x64xf32>
    %52 = vector.extract_strided_slice %45 {offsets = [0, 1, 0], sizes = [8, 8, 64], strides = [1, 1, 1]} : vector<8x10x64xf32> to vector<8x8x64xf32>
    %53 = vector.shape_cast %52 : vector<8x8x64xf32> to vector<64x64xf32>
    %c7 = arith.constant 7 : index
    %c0_33 = arith.constant 0 : index
    %c0_34 = arith.constant 0 : index
    %54 = vector.load %arg2[%c7, %c0_33, %c0_34] : memref<9x64x64xf32, #tpu.memory_space<vmem>>, vector<1x64x64xf32>
    %55 = vector.shape_cast %54 : vector<1x64x64xf32> to vector<64x64xf32>
    %cst_35 = arith.constant dense<0.000000e+00> : vector<64x64xf32>
    %56 = tpu.matmul %53, %55, %cst_35 {dimension_numbers = #tpu.dot_dimension_numbers<[1], [0], [0], [1], [0, 0, 1, 1], [], []>} : vector<64x64xf32>, vector<64x64xf32>, vector<64x64xf32> -> vector<64x64xf32>
    %57 = arith.addf %51, %56 : vector<64x64xf32>
    %58 = vector.extract_strided_slice %45 {offsets = [0, 2, 0], sizes = [8, 8, 64], strides = [1, 1, 1]} : vector<8x10x64xf32> to vector<8x8x64xf32>
    %59 = vector.shape_cast %58 : vector<8x8x64xf32> to vector<64x64xf32>
    %c8 = arith.constant 8 : index
    %c0_36 = arith.constant 0 : index
    %c0_37 = arith.constant 0 : index
    %60 = vector.load %arg2[%c8, %c0_36, %c0_37] : memref<9x64x64xf32, #tpu.memory_space<vmem>>, vector<1x64x64xf32>
    %61 = vector.shape_cast %60 : vector<1x64x64xf32> to vector<64x64xf32>
    %cst_38 = arith.constant dense<0.000000e+00> : vector<64x64xf32>
    %62 = tpu.matmul %59, %61, %cst_38 {dimension_numbers = #tpu.dot_dimension_numbers<[1], [0], [0], [1], [0, 0, 1, 1], [], []>} : vector<64x64xf32>, vector<64x64xf32>, vector<64x64xf32> -> vector<64x64xf32>
    %63 = arith.addf %57, %62 : vector<64x64xf32>
    %c0_39 = arith.constant 0 : index
    %c0_40 = arith.constant 0 : index
    %64 = vector.load %arg3[%c0_39, %c0_40] : memref<1x64xf32, #tpu.memory_space<vmem>>, vector<1x64xf32>
    %65 = vector.broadcast %64 : vector<1x64xf32> to vector<64x64xf32>
    %66 = arith.addf %63, %65 : vector<64x64xf32>
    %cst_41 = arith.constant 0.000000e+00 : f32
    %67 = vector.broadcast %cst_41 : f32 to vector<64x64xf32>
    %68 = arith.maximumf %66, %67 : vector<64x64xf32>
    %69 = vector.shape_cast %68 : vector<64x64xf32> to vector<8x8x64xf32>
    %70 = arith.truncf %69 : vector<8x8x64xf32> to vector<8x8x64xbf16>
    %c0_42 = arith.constant 0 : index
    %c0_43 = arith.constant 0 : index
    %c0_44 = arith.constant 0 : index
    %c0_45 = arith.constant 0 : index
    %71 = vector.load %arg4[%c0_42, %c0_43, %c0_44, %c0_45] : memref<1x8x8x64xbf16, #tpu.memory_space<vmem>>, vector<1x8x8x64xbf16>
    %72 = vector.shape_cast %71 : vector<1x8x8x64xbf16> to vector<8x8x64xbf16>
    %73 = vector.shape_cast %70 : vector<8x8x64xbf16> to vector<1x8x8x64xbf16>
    tpu.vector_store %arg4[%c0_42, %c0_43, %c0_44, %c0_45], %73 {strides = array<i32>} : memref<1x8x8x64xbf16, #tpu.memory_space<vmem>>, vector<1x8x8x64xbf16>,
    return
  }
  func.func @transform_0(%arg0: i32) -> (i32, i32, i32, i32) {
    %c0_i32 = arith.constant 0 : i32
    %c0_i32_0 = arith.constant 0 : i32
    %c0_i32_1 = arith.constant 0 : i32
    %c0_i32_2 = arith.constant 0 : i32
    return %arg0, %c0_i32, %c0_i32_0, %c0_i32_1 : i32, i32, i32, i32
  }
  func.func @transform_1(%arg0: i32) -> (i32, i32, i32) {
    %c0_i32 = arith.constant 0 : i32
    %c0_i32_0 = arith.constant 0 : i32
    %c0_i32_1 = arith.constant 0 : i32
    %c0_i32_2 = arith.constant 0 : i32
    return %c0_i32, %c0_i32_0, %c0_i32_1 : i32, i32, i32
  }
  func.func @transform_2(%arg0: i32) -> (i32, i32) {
    %c0_i32 = arith.constant 0 : i32
    %c0_i32_0 = arith.constant 0 : i32
    %c0_i32_1 = arith.constant 0 : i32
    return %c0_i32, %c0_i32_0 : i32, i32
  }
  func.func @transform_3(%arg0: i32) -> (i32, i32, i32, i32) {
    %c0_i32 = arith.constant 0 : i32
    %c0_i32_0 = arith.constant 0 : i32
    %c0_i32_1 = arith.constant 0 : i32
    %c0_i32_2 = arith.constant 0 : i32
    return %arg0, %c0_i32, %c0_i32_0, %c0_i32_1 : i32, i32, i32, i32
  }
}

module attributes {stable_mosaic.version = 11 : i64} {
  func.func @_res_tail_kernel(%arg0: i32, %arg1: memref<128x64xbf16, #tpu.memory_space<vmem>>, %arg2: memref<64x128xbf16, #tpu.memory_space<vmem>>, %arg3: memref<1x128xf32, #tpu.memory_space<vmem>>, %arg4: memref<128x64xbf16, #tpu.memory_space<vmem>>, %arg5: memref<64x128xbf16, #tpu.memory_space<vmem>>, %arg6: memref<1x128xf32, #tpu.memory_space<vmem>>, %arg7: memref<128x128xbf16, #tpu.memory_space<vmem>>) attributes {dimension_semantics = [#tpu.dimension_semantics<parallel>], iteration_bounds = array<i64: 1>, scalar_prefetch = 0 : i64, scratch_operands = 0 : i64, tpu.core_type = #tpu.core_type<tc>, window_params = [{transform_indices = @transform_0, window_bounds = array<i64: 128, 64>}, {pipeline_mode = #tpu.pipeline_mode<synchronous>, transform_indices = @transform_1, window_bounds = array<i64: 64, 128>}, {pipeline_mode = #tpu.pipeline_mode<synchronous>, transform_indices = @transform_2, window_bounds = array<i64: 1, 128>}, {transform_indices = @transform_3, window_bounds = array<i64: 128, 64>}, {pipeline_mode = #tpu.pipeline_mode<synchronous>, transform_indices = @transform_4, window_bounds = array<i64: 64, 128>}, {pipeline_mode = #tpu.pipeline_mode<synchronous>, transform_indices = @transform_5, window_bounds = array<i64: 1, 128>}, {transform_indices = @transform_6, window_bounds = array<i64: 128, 128>}]} {
    %c0 = arith.constant 0 : index
    %c0_0 = arith.constant 0 : index
    %0 = vector.load %arg1[%c0, %c0_0] : memref<128x64xbf16, #tpu.memory_space<vmem>>, vector<128x64xbf16>
    %c0_1 = arith.constant 0 : index
    %c0_2 = arith.constant 0 : index
    %1 = vector.load %arg2[%c0_1, %c0_2] : memref<64x128xbf16, #tpu.memory_space<vmem>>, vector<64x128xbf16>
    %cst = arith.constant dense<0.000000e+00> : vector<128x128xf32>
    %2 = tpu.matmul %0, %1, %cst {dimension_numbers = #tpu.dot_dimension_numbers<[1], [0], [0], [1], [0, 0, 1, 1], [], []>} : vector<128x64xbf16>, vector<64x128xbf16>, vector<128x128xf32> -> vector<128x128xf32>
    %c0_3 = arith.constant 0 : index
    %c0_4 = arith.constant 0 : index
    %3 = vector.load %arg3[%c0_3, %c0_4] : memref<1x128xf32, #tpu.memory_space<vmem>>, vector<1x128xf32>
    %4 = vector.broadcast %3 : vector<1x128xf32> to vector<128x128xf32>
    %5 = arith.addf %2, %4 : vector<128x128xf32>
    %cst_5 = arith.constant 0.000000e+00 : f32
    %6 = vector.broadcast %cst_5 : f32 to vector<128x128xf32>
    %7 = arith.maximumf %5, %6 : vector<128x128xf32>
    %c0_6 = arith.constant 0 : index
    %c0_7 = arith.constant 0 : index
    %8 = vector.load %arg4[%c0_6, %c0_7] : memref<128x64xbf16, #tpu.memory_space<vmem>>, vector<128x64xbf16>
    %c0_8 = arith.constant 0 : index
    %c0_9 = arith.constant 0 : index
    %9 = vector.load %arg5[%c0_8, %c0_9] : memref<64x128xbf16, #tpu.memory_space<vmem>>, vector<64x128xbf16>
    %cst_10 = arith.constant dense<0.000000e+00> : vector<128x128xf32>
    %10 = tpu.matmul %8, %9, %cst_10 {dimension_numbers = #tpu.dot_dimension_numbers<[1], [0], [0], [1], [0, 0, 1, 1], [], []>} : vector<128x64xbf16>, vector<64x128xbf16>, vector<128x128xf32> -> vector<128x128xf32>
    %11 = arith.addf %7, %10 : vector<128x128xf32>
    %c0_11 = arith.constant 0 : index
    %c0_12 = arith.constant 0 : index
    %12 = vector.load %arg6[%c0_11, %c0_12] : memref<1x128xf32, #tpu.memory_space<vmem>>, vector<1x128xf32>
    %13 = vector.broadcast %12 : vector<1x128xf32> to vector<128x128xf32>
    %14 = arith.addf %11, %13 : vector<128x128xf32>
    %15 = arith.truncf %14 : vector<128x128xf32> to vector<128x128xbf16>
    %c0_13 = arith.constant 0 : index
    %c0_14 = arith.constant 0 : index
    %16 = vector.load %arg7[%c0_13, %c0_14] : memref<128x128xbf16, #tpu.memory_space<vmem>>, vector<128x128xbf16>
    tpu.vector_store %arg7[%c0_13, %c0_14], %15 {strides = array<i32>} : memref<128x128xbf16, #tpu.memory_space<vmem>>, vector<128x128xbf16>,
    return
  }
  func.func @transform_0(%arg0: i32) -> (i32, i32) {
    %c0_i32 = arith.constant 0 : i32
    %c0_i32_0 = arith.constant 0 : i32
    return %arg0, %c0_i32 : i32, i32
  }
  func.func @transform_1(%arg0: i32) -> (i32, i32) {
    %c0_i32 = arith.constant 0 : i32
    %c0_i32_0 = arith.constant 0 : i32
    %c0_i32_1 = arith.constant 0 : i32
    return %c0_i32, %c0_i32_0 : i32, i32
  }
  func.func @transform_2(%arg0: i32) -> (i32, i32) {
    %c0_i32 = arith.constant 0 : i32
    %c0_i32_0 = arith.constant 0 : i32
    %c0_i32_1 = arith.constant 0 : i32
    return %c0_i32, %c0_i32_0 : i32, i32
  }
  func.func @transform_3(%arg0: i32) -> (i32, i32) {
    %c0_i32 = arith.constant 0 : i32
    %c0_i32_0 = arith.constant 0 : i32
    return %arg0, %c0_i32 : i32, i32
  }
  func.func @transform_4(%arg0: i32) -> (i32, i32) {
    %c0_i32 = arith.constant 0 : i32
    %c0_i32_0 = arith.constant 0 : i32
    %c0_i32_1 = arith.constant 0 : i32
    return %c0_i32, %c0_i32_0 : i32, i32
  }
  func.func @transform_5(%arg0: i32) -> (i32, i32) {
    %c0_i32 = arith.constant 0 : i32
    %c0_i32_0 = arith.constant 0 : i32
    %c0_i32_1 = arith.constant 0 : i32
    return %c0_i32, %c0_i32_0 : i32, i32
  }
  func.func @transform_6(%arg0: i32) -> (i32, i32) {
    %c0_i32 = arith.constant 0 : i32
    %c0_i32_0 = arith.constant 0 : i32
    return %arg0, %c0_i32 : i32, i32
  }
}

module attributes {stable_mosaic.version = 11 : i64} {
  func.func @_maxpool_kernel(%arg0: i32, %arg1: memref<1x4x2x4x256xbf16, #tpu.memory_space<vmem>>, %arg2: memref<1x4x4x128xbf16, #tpu.memory_space<vmem>>) attributes {dimension_semantics = [#tpu.dimension_semantics<parallel>], iteration_bounds = array<i64: 2>, scalar_prefetch = 0 : i64, scratch_operands = 0 : i64, tpu.core_type = #tpu.core_type<tc>, window_params = [{transform_indices = @transform_0, window_bounds = array<i64: 1, 4, 2, 4, 256>}, {transform_indices = @transform_1, window_bounds = array<i64: 1, 4, 4, 128>}]} {
    %c0 = arith.constant 0 : index
    %c0_0 = arith.constant 0 : index
    %c0_1 = arith.constant 0 : index
    %c0_2 = arith.constant 0 : index
    %c0_3 = arith.constant 0 : index
    %0 = vector.load %arg1[%c0, %c0_0, %c0_1, %c0_2, %c0_3] : memref<1x4x2x4x256xbf16, #tpu.memory_space<vmem>>, vector<1x4x2x4x256xbf16>
    %1 = vector.extract_strided_slice %0 {offsets = [0, 0, 0, 0, 0], sizes = [1, 4, 1, 4, 256], strides = [1, 1, 1, 1, 1]} : vector<1x4x2x4x256xbf16> to vector<1x4x1x4x256xbf16>
    %2 = vector.shape_cast %1 : vector<1x4x1x4x256xbf16> to vector<1x4x4x256xbf16>
    %3 = vector.extract_strided_slice %0 {offsets = [0, 0, 1, 0, 0], sizes = [1, 4, 1, 4, 256], strides = [1, 1, 1, 1, 1]} : vector<1x4x2x4x256xbf16> to vector<1x4x1x4x256xbf16>
    %4 = vector.shape_cast %3 : vector<1x4x1x4x256xbf16> to vector<1x4x4x256xbf16>
    %5 = arith.maximumf %2, %4 : vector<1x4x4x256xbf16>
    %6 = vector.extract_strided_slice %5 {offsets = [0, 0, 0, 0], sizes = [1, 4, 4, 128], strides = [1, 1, 1, 1]} : vector<1x4x4x256xbf16> to vector<1x4x4x128xbf16>
    %7 = vector.extract_strided_slice %5 {offsets = [0, 0, 0, 128], sizes = [1, 4, 4, 128], strides = [1, 1, 1, 1]} : vector<1x4x4x256xbf16> to vector<1x4x4x128xbf16>
    %8 = arith.maximumf %6, %7 : vector<1x4x4x128xbf16>
    %c0_4 = arith.constant 0 : index
    %c0_5 = arith.constant 0 : index
    %c0_6 = arith.constant 0 : index
    %c0_7 = arith.constant 0 : index
    %9 = vector.load %arg2[%c0_4, %c0_5, %c0_6, %c0_7] : memref<1x4x4x128xbf16, #tpu.memory_space<vmem>>, vector<1x4x4x128xbf16>
    tpu.vector_store %arg2[%c0_4, %c0_5, %c0_6, %c0_7], %8 {strides = array<i32>} : memref<1x4x4x128xbf16, #tpu.memory_space<vmem>>, vector<1x4x4x128xbf16>,
    return
  }
  func.func @transform_0(%arg0: i32) -> (i32, i32, i32, i32, i32) {
    %c0_i32 = arith.constant 0 : i32
    %c0_i32_0 = arith.constant 0 : i32
    %c0_i32_1 = arith.constant 0 : i32
    %c0_i32_2 = arith.constant 0 : i32
    %c0_i32_3 = arith.constant 0 : i32
    return %arg0, %c0_i32, %c0_i32_0, %c0_i32_1, %c0_i32_2 : i32, i32, i32, i32, i32
  }
  func.func @transform_1(%arg0: i32) -> (i32, i32, i32, i32) {
    %c0_i32 = arith.constant 0 : i32
    %c0_i32_0 = arith.constant 0 : i32
    %c0_i32_1 = arith.constant 0 : i32
    %c0_i32_2 = arith.constant 0 : i32
    return %arg0, %c0_i32, %c0_i32_0, %c0_i32_1 : i32, i32, i32, i32
  }
}

module attributes {stable_mosaic.version = 11 : i64} {
  func.func @kernel(%arg0: i32, %arg1: memref<32x128xbf16, #tpu.memory_space<vmem>>, %arg2: memref<128x64xbf16, #tpu.memory_space<vmem>>, %arg3: memref<1x64xf32, #tpu.memory_space<vmem>>, %arg4: memref<32x64xbf16, #tpu.memory_space<vmem>>) attributes {dimension_semantics = [#tpu.dimension_semantics<parallel>], iteration_bounds = array<i64: 1>, scalar_prefetch = 0 : i64, scratch_operands = 0 : i64, tpu.core_type = #tpu.core_type<tc>, window_params = [{transform_indices = @transform_0, window_bounds = array<i64: 32, 128>}, {pipeline_mode = #tpu.pipeline_mode<synchronous>, transform_indices = @transform_1, window_bounds = array<i64: 128, 64>}, {pipeline_mode = #tpu.pipeline_mode<synchronous>, transform_indices = @transform_2, window_bounds = array<i64: 1, 64>}, {transform_indices = @transform_3, window_bounds = array<i64: 32, 64>}]} {
    %c0 = arith.constant 0 : index
    %c0_0 = arith.constant 0 : index
    %0 = vector.load %arg1[%c0, %c0_0] : memref<32x128xbf16, #tpu.memory_space<vmem>>, vector<32x128xbf16>
    %c0_1 = arith.constant 0 : index
    %c0_2 = arith.constant 0 : index
    %1 = vector.load %arg2[%c0_1, %c0_2] : memref<128x64xbf16, #tpu.memory_space<vmem>>, vector<128x64xbf16>
    %cst = arith.constant dense<0.000000e+00> : vector<32x64xf32>
    %2 = tpu.matmul %0, %1, %cst {dimension_numbers = #tpu.dot_dimension_numbers<[1], [0], [0], [1], [0, 0, 1, 1], [], []>} : vector<32x128xbf16>, vector<128x64xbf16>, vector<32x64xf32> -> vector<32x64xf32>
    %c0_3 = arith.constant 0 : index
    %c0_4 = arith.constant 0 : index
    %3 = vector.load %arg3[%c0_3, %c0_4] : memref<1x64xf32, #tpu.memory_space<vmem>>, vector<1x64xf32>
    %4 = vector.broadcast %3 : vector<1x64xf32> to vector<32x64xf32>
    %5 = arith.addf %2, %4 : vector<32x64xf32>
    %cst_5 = arith.constant 0.000000e+00 : f32
    %6 = vector.broadcast %cst_5 : f32 to vector<32x64xf32>
    %7 = arith.maximumf %5, %6 : vector<32x64xf32>
    %8 = arith.truncf %7 : vector<32x64xf32> to vector<32x64xbf16>
    %c0_6 = arith.constant 0 : index
    %c0_7 = arith.constant 0 : index
    %9 = vector.load %arg4[%c0_6, %c0_7] : memref<32x64xbf16, #tpu.memory_space<vmem>>, vector<32x64xbf16>
    tpu.vector_store %arg4[%c0_6, %c0_7], %8 {strides = array<i32>} : memref<32x64xbf16, #tpu.memory_space<vmem>>, vector<32x64xbf16>,
    return
  }
  func.func @transform_0(%arg0: i32) -> (i32, i32) {
    %c0_i32 = arith.constant 0 : i32
    %c0_i32_0 = arith.constant 0 : i32
    return %arg0, %c0_i32 : i32, i32
  }
  func.func @transform_1(%arg0: i32) -> (i32, i32) {
    %c0_i32 = arith.constant 0 : i32
    %c0_i32_0 = arith.constant 0 : i32
    %c0_i32_1 = arith.constant 0 : i32
    return %c0_i32, %c0_i32_0 : i32, i32
  }
  func.func @transform_2(%arg0: i32) -> (i32, i32) {
    %c0_i32 = arith.constant 0 : i32
    %c0_i32_0 = arith.constant 0 : i32
    %c0_i32_1 = arith.constant 0 : i32
    return %c0_i32, %c0_i32_0 : i32, i32
  }
  func.func @transform_3(%arg0: i32) -> (i32, i32) {
    %c0_i32 = arith.constant 0 : i32
    %c0_i32_0 = arith.constant 0 : i32
    return %arg0, %c0_i32 : i32, i32
  }
}

module attributes {stable_mosaic.version = 11 : i64} {
  func.func @kernel(%arg0: i32, %arg1: memref<32x64xbf16, #tpu.memory_space<vmem>>, %arg2: memref<64x128xbf16, #tpu.memory_space<vmem>>, %arg3: memref<1x128xf32, #tpu.memory_space<vmem>>, %arg4: memref<32x128xbf16, #tpu.memory_space<vmem>>, %arg5: memref<32x128xbf16, #tpu.memory_space<vmem>>) attributes {dimension_semantics = [#tpu.dimension_semantics<parallel>], iteration_bounds = array<i64: 1>, scalar_prefetch = 0 : i64, scratch_operands = 0 : i64, tpu.core_type = #tpu.core_type<tc>, window_params = [{transform_indices = @transform_0, window_bounds = array<i64: 32, 64>}, {pipeline_mode = #tpu.pipeline_mode<synchronous>, transform_indices = @transform_1, window_bounds = array<i64: 64, 128>}, {pipeline_mode = #tpu.pipeline_mode<synchronous>, transform_indices = @transform_2, window_bounds = array<i64: 1, 128>}, {transform_indices = @transform_3, window_bounds = array<i64: 32, 128>}, {transform_indices = @transform_4, window_bounds = array<i64: 32, 128>}]} {
    %c0 = arith.constant 0 : index
    %c0_0 = arith.constant 0 : index
    %0 = vector.load %arg1[%c0, %c0_0] : memref<32x64xbf16, #tpu.memory_space<vmem>>, vector<32x64xbf16>
    %c0_1 = arith.constant 0 : index
    %c0_2 = arith.constant 0 : index
    %1 = vector.load %arg2[%c0_1, %c0_2] : memref<64x128xbf16, #tpu.memory_space<vmem>>, vector<64x128xbf16>
    %cst = arith.constant dense<0.000000e+00> : vector<32x128xf32>
    %2 = tpu.matmul %0, %1, %cst {dimension_numbers = #tpu.dot_dimension_numbers<[1], [0], [0], [1], [0, 0, 1, 1], [], []>} : vector<32x64xbf16>, vector<64x128xbf16>, vector<32x128xf32> -> vector<32x128xf32>
    %c0_3 = arith.constant 0 : index
    %c0_4 = arith.constant 0 : index
    %3 = vector.load %arg3[%c0_3, %c0_4] : memref<1x128xf32, #tpu.memory_space<vmem>>, vector<1x128xf32>
    %4 = vector.broadcast %3 : vector<1x128xf32> to vector<32x128xf32>
    %5 = arith.addf %2, %4 : vector<32x128xf32>
    %cst_5 = arith.constant 0.000000e+00 : f32
    %6 = vector.broadcast %cst_5 : f32 to vector<32x128xf32>
    %7 = arith.maximumf %5, %6 : vector<32x128xf32>
    %c0_6 = arith.constant 0 : index
    %c0_7 = arith.constant 0 : index
    %8 = vector.load %arg4[%c0_6, %c0_7] : memref<32x128xbf16, #tpu.memory_space<vmem>>, vector<32x128xbf16>
    %9 = arith.extf %8 : vector<32x128xbf16> to vector<32x128xf32>
    %10 = arith.addf %7, %9 : vector<32x128xf32>
    %11 = arith.truncf %10 : vector<32x128xf32> to vector<32x128xbf16>
    %c0_8 = arith.constant 0 : index
    %c0_9 = arith.constant 0 : index
    %12 = vector.load %arg5[%c0_8, %c0_9] : memref<32x128xbf16, #tpu.memory_space<vmem>>, vector<32x128xbf16>
    tpu.vector_store %arg5[%c0_8, %c0_9], %11 {strides = array<i32>} : memref<32x128xbf16, #tpu.memory_space<vmem>>, vector<32x128xbf16>,
    return
  }
  func.func @transform_0(%arg0: i32) -> (i32, i32) {
    %c0_i32 = arith.constant 0 : i32
    %c0_i32_0 = arith.constant 0 : i32
    return %arg0, %c0_i32 : i32, i32
  }
  func.func @transform_1(%arg0: i32) -> (i32, i32) {
    %c0_i32 = arith.constant 0 : i32
    %c0_i32_0 = arith.constant 0 : i32
    %c0_i32_1 = arith.constant 0 : i32
    return %c0_i32, %c0_i32_0 : i32, i32
  }
  func.func @transform_2(%arg0: i32) -> (i32, i32) {
    %c0_i32 = arith.constant 0 : i32
    %c0_i32_0 = arith.constant 0 : i32
    %c0_i32_1 = arith.constant 0 : i32
    return %c0_i32, %c0_i32_0 : i32, i32
  }
  func.func @transform_3(%arg0: i32) -> (i32, i32) {
    %c0_i32 = arith.constant 0 : i32
    %c0_i32_0 = arith.constant 0 : i32
    return %arg0, %c0_i32 : i32, i32
  }
  func.func @transform_4(%arg0: i32) -> (i32, i32) {
    %c0_i32 = arith.constant 0 : i32
    %c0_i32_0 = arith.constant 0 : i32
    return %arg0, %c0_i32 : i32, i32
  }
}

module attributes {stable_mosaic.version = 11 : i64} {
  func.func @kernel(%arg0: i32, %arg1: memref<1x6x10x64xbf16, #tpu.memory_space<vmem>>, %arg2: memref<9x64x64xf32, #tpu.memory_space<vmem>>, %arg3: memref<1x64xf32, #tpu.memory_space<vmem>>, %arg4: memref<1x4x8x64xbf16, #tpu.memory_space<vmem>>) attributes {dimension_semantics = [#tpu.dimension_semantics<parallel>], iteration_bounds = array<i64: 2>, scalar_prefetch = 0 : i64, scratch_operands = 0 : i64, tpu.core_type = #tpu.core_type<tc>, window_params = [{transform_indices = @transform_0, window_bounds = array<i64: 1, 6, 10, 64>}, {pipeline_mode = #tpu.pipeline_mode<synchronous>, transform_indices = @transform_1, window_bounds = array<i64: 9, 64, 64>}, {pipeline_mode = #tpu.pipeline_mode<synchronous>, transform_indices = @transform_2, window_bounds = array<i64: 1, 64>}, {transform_indices = @transform_3, window_bounds = array<i64: 1, 4, 8, 64>}]} {
    %cst = arith.constant 0.000000e+00 : f32
    %0 = vector.broadcast %cst : f32 to vector<32x64xf32>
    %c0 = arith.constant 0 : index
    %c0_0 = arith.constant 0 : index
    %c0_1 = arith.constant 0 : index
    %c0_2 = arith.constant 0 : index
    %1 = vector.load %arg1[%c0, %c0_0, %c0_1, %c0_2] : memref<1x6x10x64xbf16, #tpu.memory_space<vmem>>, vector<1x4x10x64xbf16>
    %2 = vector.shape_cast %1 : vector<1x4x10x64xbf16> to vector<4x10x64xbf16>
    %3 = arith.extf %2 : vector<4x10x64xbf16> to vector<4x10x64xf32>
    %4 = vector.extract_strided_slice %3 {offsets = [0, 0, 0], sizes = [4, 8, 64], strides = [1, 1, 1]} : vector<4x10x64xf32> to vector<4x8x64xf32>
    %5 = vector.shape_cast %4 : vector<4x8x64xf32> to vector<32x64xf32>
    %c0_3 = arith.constant 0 : index
    %c0_4 = arith.constant 0 : index
    %c0_5 = arith.constant 0 : index
    %6 = vector.load %arg2[%c0_3, %c0_4, %c0_5] : memref<9x64x64xf32, #tpu.memory_space<vmem>>, vector<1x64x64xf32>
    %7 = vector.shape_cast %6 : vector<1x64x64xf32> to vector<64x64xf32>
    %cst_6 = arith.constant dense<0.000000e+00> : vector<32x64xf32>
    %8 = tpu.matmul %5, %7, %cst_6 {dimension_numbers = #tpu.dot_dimension_numbers<[1], [0], [0], [1], [0, 0, 1, 1], [], []>} : vector<32x64xf32>, vector<64x64xf32>, vector<32x64xf32> -> vector<32x64xf32>
    %9 = arith.addf %0, %8 : vector<32x64xf32>
    %10 = vector.extract_strided_slice %3 {offsets = [0, 1, 0], sizes = [4, 8, 64], strides = [1, 1, 1]} : vector<4x10x64xf32> to vector<4x8x64xf32>
    %11 = vector.shape_cast %10 : vector<4x8x64xf32> to vector<32x64xf32>
    %c1 = arith.constant 1 : index
    %c0_7 = arith.constant 0 : index
    %c0_8 = arith.constant 0 : index
    %12 = vector.load %arg2[%c1, %c0_7, %c0_8] : memref<9x64x64xf32, #tpu.memory_space<vmem>>, vector<1x64x64xf32>
    %13 = vector.shape_cast %12 : vector<1x64x64xf32> to vector<64x64xf32>
    %cst_9 = arith.constant dense<0.000000e+00> : vector<32x64xf32>
    %14 = tpu.matmul %11, %13, %cst_9 {dimension_numbers = #tpu.dot_dimension_numbers<[1], [0], [0], [1], [0, 0, 1, 1], [], []>} : vector<32x64xf32>, vector<64x64xf32>, vector<32x64xf32> -> vector<32x64xf32>
    %15 = arith.addf %9, %14 : vector<32x64xf32>
    %16 = vector.extract_strided_slice %3 {offsets = [0, 2, 0], sizes = [4, 8, 64], strides = [1, 1, 1]} : vector<4x10x64xf32> to vector<4x8x64xf32>
    %17 = vector.shape_cast %16 : vector<4x8x64xf32> to vector<32x64xf32>
    %c2 = arith.constant 2 : index
    %c0_10 = arith.constant 0 : index
    %c0_11 = arith.constant 0 : index
    %18 = vector.load %arg2[%c2, %c0_10, %c0_11] : memref<9x64x64xf32, #tpu.memory_space<vmem>>, vector<1x64x64xf32>
    %19 = vector.shape_cast %18 : vector<1x64x64xf32> to vector<64x64xf32>
    %cst_12 = arith.constant dense<0.000000e+00> : vector<32x64xf32>
    %20 = tpu.matmul %17, %19, %cst_12 {dimension_numbers = #tpu.dot_dimension_numbers<[1], [0], [0], [1], [0, 0, 1, 1], [], []>} : vector<32x64xf32>, vector<64x64xf32>, vector<32x64xf32> -> vector<32x64xf32>
    %21 = arith.addf %15, %20 : vector<32x64xf32>
    %c0_13 = arith.constant 0 : index
    %c1_14 = arith.constant 1 : index
    %c0_15 = arith.constant 0 : index
    %c0_16 = arith.constant 0 : index
    %22 = vector.load %arg1[%c0_13, %c1_14, %c0_15, %c0_16] : memref<1x6x10x64xbf16, #tpu.memory_space<vmem>>, vector<1x4x10x64xbf16>
    %23 = vector.shape_cast %22 : vector<1x4x10x64xbf16> to vector<4x10x64xbf16>
    %24 = arith.extf %23 : vector<4x10x64xbf16> to vector<4x10x64xf32>
    %25 = vector.extract_strided_slice %24 {offsets = [0, 0, 0], sizes = [4, 8, 64], strides = [1, 1, 1]} : vector<4x10x64xf32> to vector<4x8x64xf32>
    %26 = vector.shape_cast %25 : vector<4x8x64xf32> to vector<32x64xf32>
    %c3 = arith.constant 3 : index
    %c0_17 = arith.constant 0 : index
    %c0_18 = arith.constant 0 : index
    %27 = vector.load %arg2[%c3, %c0_17, %c0_18] : memref<9x64x64xf32, #tpu.memory_space<vmem>>, vector<1x64x64xf32>
    %28 = vector.shape_cast %27 : vector<1x64x64xf32> to vector<64x64xf32>
    %cst_19 = arith.constant dense<0.000000e+00> : vector<32x64xf32>
    %29 = tpu.matmul %26, %28, %cst_19 {dimension_numbers = #tpu.dot_dimension_numbers<[1], [0], [0], [1], [0, 0, 1, 1], [], []>} : vector<32x64xf32>, vector<64x64xf32>, vector<32x64xf32> -> vector<32x64xf32>
    %30 = arith.addf %21, %29 : vector<32x64xf32>
    %31 = vector.extract_strided_slice %24 {offsets = [0, 1, 0], sizes = [4, 8, 64], strides = [1, 1, 1]} : vector<4x10x64xf32> to vector<4x8x64xf32>
    %32 = vector.shape_cast %31 : vector<4x8x64xf32> to vector<32x64xf32>
    %c4 = arith.constant 4 : index
    %c0_20 = arith.constant 0 : index
    %c0_21 = arith.constant 0 : index
    %33 = vector.load %arg2[%c4, %c0_20, %c0_21] : memref<9x64x64xf32, #tpu.memory_space<vmem>>, vector<1x64x64xf32>
    %34 = vector.shape_cast %33 : vector<1x64x64xf32> to vector<64x64xf32>
    %cst_22 = arith.constant dense<0.000000e+00> : vector<32x64xf32>
    %35 = tpu.matmul %32, %34, %cst_22 {dimension_numbers = #tpu.dot_dimension_numbers<[1], [0], [0], [1], [0, 0, 1, 1], [], []>} : vector<32x64xf32>, vector<64x64xf32>, vector<32x64xf32> -> vector<32x64xf32>
    %36 = arith.addf %30, %35 : vector<32x64xf32>
    %37 = vector.extract_strided_slice %24 {offsets = [0, 2, 0], sizes = [4, 8, 64], strides = [1, 1, 1]} : vector<4x10x64xf32> to vector<4x8x64xf32>
    %38 = vector.shape_cast %37 : vector<4x8x64xf32> to vector<32x64xf32>
    %c5 = arith.constant 5 : index
    %c0_23 = arith.constant 0 : index
    %c0_24 = arith.constant 0 : index
    %39 = vector.load %arg2[%c5, %c0_23, %c0_24] : memref<9x64x64xf32, #tpu.memory_space<vmem>>, vector<1x64x64xf32>
    %40 = vector.shape_cast %39 : vector<1x64x64xf32> to vector<64x64xf32>
    %cst_25 = arith.constant dense<0.000000e+00> : vector<32x64xf32>
    %41 = tpu.matmul %38, %40, %cst_25 {dimension_numbers = #tpu.dot_dimension_numbers<[1], [0], [0], [1], [0, 0, 1, 1], [], []>} : vector<32x64xf32>, vector<64x64xf32>, vector<32x64xf32> -> vector<32x64xf32>
    %42 = arith.addf %36, %41 : vector<32x64xf32>
    %c0_26 = arith.constant 0 : index
    %c2_27 = arith.constant 2 : index
    %c0_28 = arith.constant 0 : index
    %c0_29 = arith.constant 0 : index
    %43 = vector.load %arg1[%c0_26, %c2_27, %c0_28, %c0_29] : memref<1x6x10x64xbf16, #tpu.memory_space<vmem>>, vector<1x4x10x64xbf16>
    %44 = vector.shape_cast %43 : vector<1x4x10x64xbf16> to vector<4x10x64xbf16>
    %45 = arith.extf %44 : vector<4x10x64xbf16> to vector<4x10x64xf32>
    %46 = vector.extract_strided_slice %45 {offsets = [0, 0, 0], sizes = [4, 8, 64], strides = [1, 1, 1]} : vector<4x10x64xf32> to vector<4x8x64xf32>
    %47 = vector.shape_cast %46 : vector<4x8x64xf32> to vector<32x64xf32>
    %c6 = arith.constant 6 : index
    %c0_30 = arith.constant 0 : index
    %c0_31 = arith.constant 0 : index
    %48 = vector.load %arg2[%c6, %c0_30, %c0_31] : memref<9x64x64xf32, #tpu.memory_space<vmem>>, vector<1x64x64xf32>
    %49 = vector.shape_cast %48 : vector<1x64x64xf32> to vector<64x64xf32>
    %cst_32 = arith.constant dense<0.000000e+00> : vector<32x64xf32>
    %50 = tpu.matmul %47, %49, %cst_32 {dimension_numbers = #tpu.dot_dimension_numbers<[1], [0], [0], [1], [0, 0, 1, 1], [], []>} : vector<32x64xf32>, vector<64x64xf32>, vector<32x64xf32> -> vector<32x64xf32>
    %51 = arith.addf %42, %50 : vector<32x64xf32>
    %52 = vector.extract_strided_slice %45 {offsets = [0, 1, 0], sizes = [4, 8, 64], strides = [1, 1, 1]} : vector<4x10x64xf32> to vector<4x8x64xf32>
    %53 = vector.shape_cast %52 : vector<4x8x64xf32> to vector<32x64xf32>
    %c7 = arith.constant 7 : index
    %c0_33 = arith.constant 0 : index
    %c0_34 = arith.constant 0 : index
    %54 = vector.load %arg2[%c7, %c0_33, %c0_34] : memref<9x64x64xf32, #tpu.memory_space<vmem>>, vector<1x64x64xf32>
    %55 = vector.shape_cast %54 : vector<1x64x64xf32> to vector<64x64xf32>
    %cst_35 = arith.constant dense<0.000000e+00> : vector<32x64xf32>
    %56 = tpu.matmul %53, %55, %cst_35 {dimension_numbers = #tpu.dot_dimension_numbers<[1], [0], [0], [1], [0, 0, 1, 1], [], []>} : vector<32x64xf32>, vector<64x64xf32>, vector<32x64xf32> -> vector<32x64xf32>
    %57 = arith.addf %51, %56 : vector<32x64xf32>
    %58 = vector.extract_strided_slice %45 {offsets = [0, 2, 0], sizes = [4, 8, 64], strides = [1, 1, 1]} : vector<4x10x64xf32> to vector<4x8x64xf32>
    %59 = vector.shape_cast %58 : vector<4x8x64xf32> to vector<32x64xf32>
    %c8 = arith.constant 8 : index
    %c0_36 = arith.constant 0 : index
    %c0_37 = arith.constant 0 : index
    %60 = vector.load %arg2[%c8, %c0_36, %c0_37] : memref<9x64x64xf32, #tpu.memory_space<vmem>>, vector<1x64x64xf32>
    %61 = vector.shape_cast %60 : vector<1x64x64xf32> to vector<64x64xf32>
    %cst_38 = arith.constant dense<0.000000e+00> : vector<32x64xf32>
    %62 = tpu.matmul %59, %61, %cst_38 {dimension_numbers = #tpu.dot_dimension_numbers<[1], [0], [0], [1], [0, 0, 1, 1], [], []>} : vector<32x64xf32>, vector<64x64xf32>, vector<32x64xf32> -> vector<32x64xf32>
    %63 = arith.addf %57, %62 : vector<32x64xf32>
    %c0_39 = arith.constant 0 : index
    %c0_40 = arith.constant 0 : index
    %64 = vector.load %arg3[%c0_39, %c0_40] : memref<1x64xf32, #tpu.memory_space<vmem>>, vector<1x64xf32>
    %65 = vector.broadcast %64 : vector<1x64xf32> to vector<32x64xf32>
    %66 = arith.addf %63, %65 : vector<32x64xf32>
    %cst_41 = arith.constant 0.000000e+00 : f32
    %67 = vector.broadcast %cst_41 : f32 to vector<32x64xf32>
    %68 = arith.maximumf %66, %67 : vector<32x64xf32>
    %69 = vector.shape_cast %68 : vector<32x64xf32> to vector<4x8x64xf32>
    %70 = arith.truncf %69 : vector<4x8x64xf32> to vector<4x8x64xbf16>
    %c0_42 = arith.constant 0 : index
    %c0_43 = arith.constant 0 : index
    %c0_44 = arith.constant 0 : index
    %c0_45 = arith.constant 0 : index
    %71 = vector.load %arg4[%c0_42, %c0_43, %c0_44, %c0_45] : memref<1x4x8x64xbf16, #tpu.memory_space<vmem>>, vector<1x4x8x64xbf16>
    %72 = vector.shape_cast %71 : vector<1x4x8x64xbf16> to vector<4x8x64xbf16>
    %73 = vector.shape_cast %70 : vector<4x8x64xbf16> to vector<1x4x8x64xbf16>
    tpu.vector_store %arg4[%c0_42, %c0_43, %c0_44, %c0_45], %73 {strides = array<i32>} : memref<1x4x8x64xbf16, #tpu.memory_space<vmem>>, vector<1x4x8x64xbf16>,
    return
  }
  func.func @transform_0(%arg0: i32) -> (i32, i32, i32, i32) {
    %c0_i32 = arith.constant 0 : i32
    %c0_i32_0 = arith.constant 0 : i32
    %c0_i32_1 = arith.constant 0 : i32
    %c0_i32_2 = arith.constant 0 : i32
    return %arg0, %c0_i32, %c0_i32_0, %c0_i32_1 : i32, i32, i32, i32
  }
  func.func @transform_1(%arg0: i32) -> (i32, i32, i32) {
    %c0_i32 = arith.constant 0 : i32
    %c0_i32_0 = arith.constant 0 : i32
    %c0_i32_1 = arith.constant 0 : i32
    %c0_i32_2 = arith.constant 0 : i32
    return %c0_i32, %c0_i32_0, %c0_i32_1 : i32, i32, i32
  }
  func.func @transform_2(%arg0: i32) -> (i32, i32) {
    %c0_i32 = arith.constant 0 : i32
    %c0_i32_0 = arith.constant 0 : i32
    %c0_i32_1 = arith.constant 0 : i32
    return %c0_i32, %c0_i32_0 : i32, i32
  }
  func.func @transform_3(%arg0: i32) -> (i32, i32, i32, i32) {
    %c0_i32 = arith.constant 0 : i32
    %c0_i32_0 = arith.constant 0 : i32
    %c0_i32_1 = arith.constant 0 : i32
    %c0_i32_2 = arith.constant 0 : i32
    return %arg0, %c0_i32, %c0_i32_0, %c0_i32_1 : i32, i32, i32, i32
  }
}

module attributes {stable_mosaic.version = 11 : i64} {
  func.func @kernel(%arg0: i32, %arg1: memref<32x128xbf16, #tpu.memory_space<vmem>>, %arg2: memref<128x16xbf16, #tpu.memory_space<vmem>>, %arg3: memref<1x16xf32, #tpu.memory_space<vmem>>, %arg4: memref<32x16xbf16, #tpu.memory_space<vmem>>) attributes {dimension_semantics = [#tpu.dimension_semantics<parallel>], iteration_bounds = array<i64: 1>, scalar_prefetch = 0 : i64, scratch_operands = 0 : i64, tpu.core_type = #tpu.core_type<tc>, window_params = [{transform_indices = @transform_0, window_bounds = array<i64: 32, 128>}, {pipeline_mode = #tpu.pipeline_mode<synchronous>, transform_indices = @transform_1, window_bounds = array<i64: 128, 16>}, {pipeline_mode = #tpu.pipeline_mode<synchronous>, transform_indices = @transform_2, window_bounds = array<i64: 1, 16>}, {transform_indices = @transform_3, window_bounds = array<i64: 32, 16>}]} {
    %c0 = arith.constant 0 : index
    %c0_0 = arith.constant 0 : index
    %0 = vector.load %arg1[%c0, %c0_0] : memref<32x128xbf16, #tpu.memory_space<vmem>>, vector<32x128xbf16>
    %c0_1 = arith.constant 0 : index
    %c0_2 = arith.constant 0 : index
    %1 = vector.load %arg2[%c0_1, %c0_2] : memref<128x16xbf16, #tpu.memory_space<vmem>>, vector<128x16xbf16>
    %cst = arith.constant dense<0.000000e+00> : vector<32x16xf32>
    %2 = tpu.matmul %0, %1, %cst {dimension_numbers = #tpu.dot_dimension_numbers<[1], [0], [0], [1], [0, 0, 1, 1], [], []>} : vector<32x128xbf16>, vector<128x16xbf16>, vector<32x16xf32> -> vector<32x16xf32>
    %c0_3 = arith.constant 0 : index
    %c0_4 = arith.constant 0 : index
    %3 = vector.load %arg3[%c0_3, %c0_4] : memref<1x16xf32, #tpu.memory_space<vmem>>, vector<1x16xf32>
    %4 = vector.broadcast %3 : vector<1x16xf32> to vector<32x16xf32>
    %5 = arith.addf %2, %4 : vector<32x16xf32>
    %cst_5 = arith.constant 0.000000e+00 : f32
    %6 = vector.broadcast %cst_5 : f32 to vector<32x16xf32>
    %7 = arith.maximumf %5, %6 : vector<32x16xf32>
    %8 = arith.truncf %7 : vector<32x16xf32> to vector<32x16xbf16>
    %c0_6 = arith.constant 0 : index
    %c0_7 = arith.constant 0 : index
    %9 = vector.load %arg4[%c0_6, %c0_7] : memref<32x16xbf16, #tpu.memory_space<vmem>>, vector<32x16xbf16>
    tpu.vector_store %arg4[%c0_6, %c0_7], %8 {strides = array<i32>} : memref<32x16xbf16, #tpu.memory_space<vmem>>, vector<32x16xbf16>,
    return
  }
  func.func @transform_0(%arg0: i32) -> (i32, i32) {
    %c0_i32 = arith.constant 0 : i32
    %c0_i32_0 = arith.constant 0 : i32
    return %arg0, %c0_i32 : i32, i32
  }
  func.func @transform_1(%arg0: i32) -> (i32, i32) {
    %c0_i32 = arith.constant 0 : i32
    %c0_i32_0 = arith.constant 0 : i32
    %c0_i32_1 = arith.constant 0 : i32
    return %c0_i32, %c0_i32_0 : i32, i32
  }
  func.func @transform_2(%arg0: i32) -> (i32, i32) {
    %c0_i32 = arith.constant 0 : i32
    %c0_i32_0 = arith.constant 0 : i32
    %c0_i32_1 = arith.constant 0 : i32
    return %c0_i32, %c0_i32_0 : i32, i32
  }
  func.func @transform_3(%arg0: i32) -> (i32, i32) {
    %c0_i32 = arith.constant 0 : i32
    %c0_i32_0 = arith.constant 0 : i32
    return %arg0, %c0_i32 : i32, i32
  }
}

module attributes {stable_mosaic.version = 11 : i64} {
  func.func @kernel(%arg0: i32, %arg1: memref<1x6x10x16xbf16, #tpu.memory_space<vmem>>, %arg2: memref<9x16x16xf32, #tpu.memory_space<vmem>>, %arg3: memref<1x16xf32, #tpu.memory_space<vmem>>, %arg4: memref<1x4x8x16xbf16, #tpu.memory_space<vmem>>) attributes {dimension_semantics = [#tpu.dimension_semantics<parallel>], iteration_bounds = array<i64: 2>, scalar_prefetch = 0 : i64, scratch_operands = 0 : i64, tpu.core_type = #tpu.core_type<tc>, window_params = [{transform_indices = @transform_0, window_bounds = array<i64: 1, 6, 10, 16>}, {pipeline_mode = #tpu.pipeline_mode<synchronous>, transform_indices = @transform_1, window_bounds = array<i64: 9, 16, 16>}, {pipeline_mode = #tpu.pipeline_mode<synchronous>, transform_indices = @transform_2, window_bounds = array<i64: 1, 16>}, {transform_indices = @transform_3, window_bounds = array<i64: 1, 4, 8, 16>}]} {
    %cst = arith.constant 0.000000e+00 : f32
    %0 = vector.broadcast %cst : f32 to vector<32x16xf32>
    %c0 = arith.constant 0 : index
    %c0_0 = arith.constant 0 : index
    %c0_1 = arith.constant 0 : index
    %c0_2 = arith.constant 0 : index
    %1 = vector.load %arg1[%c0, %c0_0, %c0_1, %c0_2] : memref<1x6x10x16xbf16, #tpu.memory_space<vmem>>, vector<1x4x10x16xbf16>
    %2 = vector.shape_cast %1 : vector<1x4x10x16xbf16> to vector<4x10x16xbf16>
    %3 = arith.extf %2 : vector<4x10x16xbf16> to vector<4x10x16xf32>
    %4 = vector.extract_strided_slice %3 {offsets = [0, 0, 0], sizes = [4, 8, 16], strides = [1, 1, 1]} : vector<4x10x16xf32> to vector<4x8x16xf32>
    %5 = vector.shape_cast %4 : vector<4x8x16xf32> to vector<32x16xf32>
    %c0_3 = arith.constant 0 : index
    %c0_4 = arith.constant 0 : index
    %c0_5 = arith.constant 0 : index
    %6 = vector.load %arg2[%c0_3, %c0_4, %c0_5] : memref<9x16x16xf32, #tpu.memory_space<vmem>>, vector<1x16x16xf32>
    %7 = vector.shape_cast %6 : vector<1x16x16xf32> to vector<16x16xf32>
    %cst_6 = arith.constant dense<0.000000e+00> : vector<32x16xf32>
    %8 = tpu.matmul %5, %7, %cst_6 {dimension_numbers = #tpu.dot_dimension_numbers<[1], [0], [0], [1], [0, 0, 1, 1], [], []>} : vector<32x16xf32>, vector<16x16xf32>, vector<32x16xf32> -> vector<32x16xf32>
    %9 = arith.addf %0, %8 : vector<32x16xf32>
    %10 = vector.extract_strided_slice %3 {offsets = [0, 1, 0], sizes = [4, 8, 16], strides = [1, 1, 1]} : vector<4x10x16xf32> to vector<4x8x16xf32>
    %11 = vector.shape_cast %10 : vector<4x8x16xf32> to vector<32x16xf32>
    %c1 = arith.constant 1 : index
    %c0_7 = arith.constant 0 : index
    %c0_8 = arith.constant 0 : index
    %12 = vector.load %arg2[%c1, %c0_7, %c0_8] : memref<9x16x16xf32, #tpu.memory_space<vmem>>, vector<1x16x16xf32>
    %13 = vector.shape_cast %12 : vector<1x16x16xf32> to vector<16x16xf32>
    %cst_9 = arith.constant dense<0.000000e+00> : vector<32x16xf32>
    %14 = tpu.matmul %11, %13, %cst_9 {dimension_numbers = #tpu.dot_dimension_numbers<[1], [0], [0], [1], [0, 0, 1, 1], [], []>} : vector<32x16xf32>, vector<16x16xf32>, vector<32x16xf32> -> vector<32x16xf32>
    %15 = arith.addf %9, %14 : vector<32x16xf32>
    %16 = vector.extract_strided_slice %3 {offsets = [0, 2, 0], sizes = [4, 8, 16], strides = [1, 1, 1]} : vector<4x10x16xf32> to vector<4x8x16xf32>
    %17 = vector.shape_cast %16 : vector<4x8x16xf32> to vector<32x16xf32>
    %c2 = arith.constant 2 : index
    %c0_10 = arith.constant 0 : index
    %c0_11 = arith.constant 0 : index
    %18 = vector.load %arg2[%c2, %c0_10, %c0_11] : memref<9x16x16xf32, #tpu.memory_space<vmem>>, vector<1x16x16xf32>
    %19 = vector.shape_cast %18 : vector<1x16x16xf32> to vector<16x16xf32>
    %cst_12 = arith.constant dense<0.000000e+00> : vector<32x16xf32>
    %20 = tpu.matmul %17, %19, %cst_12 {dimension_numbers = #tpu.dot_dimension_numbers<[1], [0], [0], [1], [0, 0, 1, 1], [], []>} : vector<32x16xf32>, vector<16x16xf32>, vector<32x16xf32> -> vector<32x16xf32>
    %21 = arith.addf %15, %20 : vector<32x16xf32>
    %c0_13 = arith.constant 0 : index
    %c1_14 = arith.constant 1 : index
    %c0_15 = arith.constant 0 : index
    %c0_16 = arith.constant 0 : index
    %22 = vector.load %arg1[%c0_13, %c1_14, %c0_15, %c0_16] : memref<1x6x10x16xbf16, #tpu.memory_space<vmem>>, vector<1x4x10x16xbf16>
    %23 = vector.shape_cast %22 : vector<1x4x10x16xbf16> to vector<4x10x16xbf16>
    %24 = arith.extf %23 : vector<4x10x16xbf16> to vector<4x10x16xf32>
    %25 = vector.extract_strided_slice %24 {offsets = [0, 0, 0], sizes = [4, 8, 16], strides = [1, 1, 1]} : vector<4x10x16xf32> to vector<4x8x16xf32>
    %26 = vector.shape_cast %25 : vector<4x8x16xf32> to vector<32x16xf32>
    %c3 = arith.constant 3 : index
    %c0_17 = arith.constant 0 : index
    %c0_18 = arith.constant 0 : index
    %27 = vector.load %arg2[%c3, %c0_17, %c0_18] : memref<9x16x16xf32, #tpu.memory_space<vmem>>, vector<1x16x16xf32>
    %28 = vector.shape_cast %27 : vector<1x16x16xf32> to vector<16x16xf32>
    %cst_19 = arith.constant dense<0.000000e+00> : vector<32x16xf32>
    %29 = tpu.matmul %26, %28, %cst_19 {dimension_numbers = #tpu.dot_dimension_numbers<[1], [0], [0], [1], [0, 0, 1, 1], [], []>} : vector<32x16xf32>, vector<16x16xf32>, vector<32x16xf32> -> vector<32x16xf32>
    %30 = arith.addf %21, %29 : vector<32x16xf32>
    %31 = vector.extract_strided_slice %24 {offsets = [0, 1, 0], sizes = [4, 8, 16], strides = [1, 1, 1]} : vector<4x10x16xf32> to vector<4x8x16xf32>
    %32 = vector.shape_cast %31 : vector<4x8x16xf32> to vector<32x16xf32>
    %c4 = arith.constant 4 : index
    %c0_20 = arith.constant 0 : index
    %c0_21 = arith.constant 0 : index
    %33 = vector.load %arg2[%c4, %c0_20, %c0_21] : memref<9x16x16xf32, #tpu.memory_space<vmem>>, vector<1x16x16xf32>
    %34 = vector.shape_cast %33 : vector<1x16x16xf32> to vector<16x16xf32>
    %cst_22 = arith.constant dense<0.000000e+00> : vector<32x16xf32>
    %35 = tpu.matmul %32, %34, %cst_22 {dimension_numbers = #tpu.dot_dimension_numbers<[1], [0], [0], [1], [0, 0, 1, 1], [], []>} : vector<32x16xf32>, vector<16x16xf32>, vector<32x16xf32> -> vector<32x16xf32>
    %36 = arith.addf %30, %35 : vector<32x16xf32>
    %37 = vector.extract_strided_slice %24 {offsets = [0, 2, 0], sizes = [4, 8, 16], strides = [1, 1, 1]} : vector<4x10x16xf32> to vector<4x8x16xf32>
    %38 = vector.shape_cast %37 : vector<4x8x16xf32> to vector<32x16xf32>
    %c5 = arith.constant 5 : index
    %c0_23 = arith.constant 0 : index
    %c0_24 = arith.constant 0 : index
    %39 = vector.load %arg2[%c5, %c0_23, %c0_24] : memref<9x16x16xf32, #tpu.memory_space<vmem>>, vector<1x16x16xf32>
    %40 = vector.shape_cast %39 : vector<1x16x16xf32> to vector<16x16xf32>
    %cst_25 = arith.constant dense<0.000000e+00> : vector<32x16xf32>
    %41 = tpu.matmul %38, %40, %cst_25 {dimension_numbers = #tpu.dot_dimension_numbers<[1], [0], [0], [1], [0, 0, 1, 1], [], []>} : vector<32x16xf32>, vector<16x16xf32>, vector<32x16xf32> -> vector<32x16xf32>
    %42 = arith.addf %36, %41 : vector<32x16xf32>
    %c0_26 = arith.constant 0 : index
    %c2_27 = arith.constant 2 : index
    %c0_28 = arith.constant 0 : index
    %c0_29 = arith.constant 0 : index
    %43 = vector.load %arg1[%c0_26, %c2_27, %c0_28, %c0_29] : memref<1x6x10x16xbf16, #tpu.memory_space<vmem>>, vector<1x4x10x16xbf16>
    %44 = vector.shape_cast %43 : vector<1x4x10x16xbf16> to vector<4x10x16xbf16>
    %45 = arith.extf %44 : vector<4x10x16xbf16> to vector<4x10x16xf32>
    %46 = vector.extract_strided_slice %45 {offsets = [0, 0, 0], sizes = [4, 8, 16], strides = [1, 1, 1]} : vector<4x10x16xf32> to vector<4x8x16xf32>
    %47 = vector.shape_cast %46 : vector<4x8x16xf32> to vector<32x16xf32>
    %c6 = arith.constant 6 : index
    %c0_30 = arith.constant 0 : index
    %c0_31 = arith.constant 0 : index
    %48 = vector.load %arg2[%c6, %c0_30, %c0_31] : memref<9x16x16xf32, #tpu.memory_space<vmem>>, vector<1x16x16xf32>
    %49 = vector.shape_cast %48 : vector<1x16x16xf32> to vector<16x16xf32>
    %cst_32 = arith.constant dense<0.000000e+00> : vector<32x16xf32>
    %50 = tpu.matmul %47, %49, %cst_32 {dimension_numbers = #tpu.dot_dimension_numbers<[1], [0], [0], [1], [0, 0, 1, 1], [], []>} : vector<32x16xf32>, vector<16x16xf32>, vector<32x16xf32> -> vector<32x16xf32>
    %51 = arith.addf %42, %50 : vector<32x16xf32>
    %52 = vector.extract_strided_slice %45 {offsets = [0, 1, 0], sizes = [4, 8, 16], strides = [1, 1, 1]} : vector<4x10x16xf32> to vector<4x8x16xf32>
    %53 = vector.shape_cast %52 : vector<4x8x16xf32> to vector<32x16xf32>
    %c7 = arith.constant 7 : index
    %c0_33 = arith.constant 0 : index
    %c0_34 = arith.constant 0 : index
    %54 = vector.load %arg2[%c7, %c0_33, %c0_34] : memref<9x16x16xf32, #tpu.memory_space<vmem>>, vector<1x16x16xf32>
    %55 = vector.shape_cast %54 : vector<1x16x16xf32> to vector<16x16xf32>
    %cst_35 = arith.constant dense<0.000000e+00> : vector<32x16xf32>
    %56 = tpu.matmul %53, %55, %cst_35 {dimension_numbers = #tpu.dot_dimension_numbers<[1], [0], [0], [1], [0, 0, 1, 1], [], []>} : vector<32x16xf32>, vector<16x16xf32>, vector<32x16xf32> -> vector<32x16xf32>
    %57 = arith.addf %51, %56 : vector<32x16xf32>
    %58 = vector.extract_strided_slice %45 {offsets = [0, 2, 0], sizes = [4, 8, 16], strides = [1, 1, 1]} : vector<4x10x16xf32> to vector<4x8x16xf32>
    %59 = vector.shape_cast %58 : vector<4x8x16xf32> to vector<32x16xf32>
    %c8 = arith.constant 8 : index
    %c0_36 = arith.constant 0 : index
    %c0_37 = arith.constant 0 : index
    %60 = vector.load %arg2[%c8, %c0_36, %c0_37] : memref<9x16x16xf32, #tpu.memory_space<vmem>>, vector<1x16x16xf32>
    %61 = vector.shape_cast %60 : vector<1x16x16xf32> to vector<16x16xf32>
    %cst_38 = arith.constant dense<0.000000e+00> : vector<32x16xf32>
    %62 = tpu.matmul %59, %61, %cst_38 {dimension_numbers = #tpu.dot_dimension_numbers<[1], [0], [0], [1], [0, 0, 1, 1], [], []>} : vector<32x16xf32>, vector<16x16xf32>, vector<32x16xf32> -> vector<32x16xf32>
    %63 = arith.addf %57, %62 : vector<32x16xf32>
    %c0_39 = arith.constant 0 : index
    %c0_40 = arith.constant 0 : index
    %64 = vector.load %arg3[%c0_39, %c0_40] : memref<1x16xf32, #tpu.memory_space<vmem>>, vector<1x16xf32>
    %65 = vector.broadcast %64 : vector<1x16xf32> to vector<32x16xf32>
    %66 = arith.addf %63, %65 : vector<32x16xf32>
    %cst_41 = arith.constant 0.000000e+00 : f32
    %67 = vector.broadcast %cst_41 : f32 to vector<32x16xf32>
    %68 = arith.maximumf %66, %67 : vector<32x16xf32>
    %69 = vector.shape_cast %68 : vector<32x16xf32> to vector<4x8x16xf32>
    %70 = arith.truncf %69 : vector<4x8x16xf32> to vector<4x8x16xbf16>
    %c0_42 = arith.constant 0 : index
    %c0_43 = arith.constant 0 : index
    %c0_44 = arith.constant 0 : index
    %c0_45 = arith.constant 0 : index
    %71 = vector.load %arg4[%c0_42, %c0_43, %c0_44, %c0_45] : memref<1x4x8x16xbf16, #tpu.memory_space<vmem>>, vector<1x4x8x16xbf16>
    %72 = vector.shape_cast %71 : vector<1x4x8x16xbf16> to vector<4x8x16xbf16>
    %73 = vector.shape_cast %70 : vector<4x8x16xbf16> to vector<1x4x8x16xbf16>
    tpu.vector_store %arg4[%c0_42, %c0_43, %c0_44, %c0_45], %73 {strides = array<i32>} : memref<1x4x8x16xbf16, #tpu.memory_space<vmem>>, vector<1x4x8x16xbf16>,
    return
  }
  func.func @transform_0(%arg0: i32) -> (i32, i32, i32, i32) {
    %c0_i32 = arith.constant 0 : i32
    %c0_i32_0 = arith.constant 0 : i32
    %c0_i32_1 = arith.constant 0 : i32
    %c0_i32_2 = arith.constant 0 : i32
    return %arg0, %c0_i32, %c0_i32_0, %c0_i32_1 : i32, i32, i32, i32
  }
  func.func @transform_1(%arg0: i32) -> (i32, i32, i32) {
    %c0_i32 = arith.constant 0 : i32
    %c0_i32_0 = arith.constant 0 : i32
    %c0_i32_1 = arith.constant 0 : i32
    %c0_i32_2 = arith.constant 0 : i32
    return %c0_i32, %c0_i32_0, %c0_i32_1 : i32, i32, i32
  }
  func.func @transform_2(%arg0: i32) -> (i32, i32) {
    %c0_i32 = arith.constant 0 : i32
    %c0_i32_0 = arith.constant 0 : i32
    %c0_i32_1 = arith.constant 0 : i32
    return %c0_i32, %c0_i32_0 : i32, i32
  }
  func.func @transform_3(%arg0: i32) -> (i32, i32, i32, i32) {
    %c0_i32 = arith.constant 0 : i32
    %c0_i32_0 = arith.constant 0 : i32
    %c0_i32_1 = arith.constant 0 : i32
    %c0_i32_2 = arith.constant 0 : i32
    return %arg0, %c0_i32, %c0_i32_0, %c0_i32_1 : i32, i32, i32, i32
  }
}

module attributes {stable_mosaic.version = 11 : i64} {
  func.func @_res_tail_kernel(%arg0: i32, %arg1: memref<32x16xbf16, #tpu.memory_space<vmem>>, %arg2: memref<16x32xbf16, #tpu.memory_space<vmem>>, %arg3: memref<1x32xf32, #tpu.memory_space<vmem>>, %arg4: memref<32x128xbf16, #tpu.memory_space<vmem>>, %arg5: memref<128x32xbf16, #tpu.memory_space<vmem>>, %arg6: memref<1x32xf32, #tpu.memory_space<vmem>>, %arg7: memref<32x32xbf16, #tpu.memory_space<vmem>>) attributes {dimension_semantics = [#tpu.dimension_semantics<parallel>], iteration_bounds = array<i64: 1>, scalar_prefetch = 0 : i64, scratch_operands = 0 : i64, tpu.core_type = #tpu.core_type<tc>, window_params = [{transform_indices = @transform_0, window_bounds = array<i64: 32, 16>}, {pipeline_mode = #tpu.pipeline_mode<synchronous>, transform_indices = @transform_1, window_bounds = array<i64: 16, 32>}, {pipeline_mode = #tpu.pipeline_mode<synchronous>, transform_indices = @transform_2, window_bounds = array<i64: 1, 32>}, {transform_indices = @transform_3, window_bounds = array<i64: 32, 128>}, {pipeline_mode = #tpu.pipeline_mode<synchronous>, transform_indices = @transform_4, window_bounds = array<i64: 128, 32>}, {pipeline_mode = #tpu.pipeline_mode<synchronous>, transform_indices = @transform_5, window_bounds = array<i64: 1, 32>}, {transform_indices = @transform_6, window_bounds = array<i64: 32, 32>}]} {
    %c0 = arith.constant 0 : index
    %c0_0 = arith.constant 0 : index
    %0 = vector.load %arg1[%c0, %c0_0] : memref<32x16xbf16, #tpu.memory_space<vmem>>, vector<32x16xbf16>
    %c0_1 = arith.constant 0 : index
    %c0_2 = arith.constant 0 : index
    %1 = vector.load %arg2[%c0_1, %c0_2] : memref<16x32xbf16, #tpu.memory_space<vmem>>, vector<16x32xbf16>
    %cst = arith.constant dense<0.000000e+00> : vector<32x32xf32>
    %2 = tpu.matmul %0, %1, %cst {dimension_numbers = #tpu.dot_dimension_numbers<[1], [0], [0], [1], [0, 0, 1, 1], [], []>} : vector<32x16xbf16>, vector<16x32xbf16>, vector<32x32xf32> -> vector<32x32xf32>
    %c0_3 = arith.constant 0 : index
    %c0_4 = arith.constant 0 : index
    %3 = vector.load %arg3[%c0_3, %c0_4] : memref<1x32xf32, #tpu.memory_space<vmem>>, vector<1x32xf32>
    %4 = vector.broadcast %3 : vector<1x32xf32> to vector<32x32xf32>
    %5 = arith.addf %2, %4 : vector<32x32xf32>
    %cst_5 = arith.constant 0.000000e+00 : f32
    %6 = vector.broadcast %cst_5 : f32 to vector<32x32xf32>
    %7 = arith.maximumf %5, %6 : vector<32x32xf32>
    %c0_6 = arith.constant 0 : index
    %c0_7 = arith.constant 0 : index
    %8 = vector.load %arg4[%c0_6, %c0_7] : memref<32x128xbf16, #tpu.memory_space<vmem>>, vector<32x128xbf16>
    %c0_8 = arith.constant 0 : index
    %c0_9 = arith.constant 0 : index
    %9 = vector.load %arg5[%c0_8, %c0_9] : memref<128x32xbf16, #tpu.memory_space<vmem>>, vector<128x32xbf16>
    %cst_10 = arith.constant dense<0.000000e+00> : vector<32x32xf32>
    %10 = tpu.matmul %8, %9, %cst_10 {dimension_numbers = #tpu.dot_dimension_numbers<[1], [0], [0], [1], [0, 0, 1, 1], [], []>} : vector<32x128xbf16>, vector<128x32xbf16>, vector<32x32xf32> -> vector<32x32xf32>
    %11 = arith.addf %7, %10 : vector<32x32xf32>
    %c0_11 = arith.constant 0 : index
    %c0_12 = arith.constant 0 : index
    %12 = vector.load %arg6[%c0_11, %c0_12] : memref<1x32xf32, #tpu.memory_space<vmem>>, vector<1x32xf32>
    %13 = vector.broadcast %12 : vector<1x32xf32> to vector<32x32xf32>
    %14 = arith.addf %11, %13 : vector<32x32xf32>
    %15 = arith.truncf %14 : vector<32x32xf32> to vector<32x32xbf16>
    %c0_13 = arith.constant 0 : index
    %c0_14 = arith.constant 0 : index
    %16 = vector.load %arg7[%c0_13, %c0_14] : memref<32x32xbf16, #tpu.memory_space<vmem>>, vector<32x32xbf16>
    tpu.vector_store %arg7[%c0_13, %c0_14], %15 {strides = array<i32>} : memref<32x32xbf16, #tpu.memory_space<vmem>>, vector<32x32xbf16>,
    return
  }
  func.func @transform_0(%arg0: i32) -> (i32, i32) {
    %c0_i32 = arith.constant 0 : i32
    %c0_i32_0 = arith.constant 0 : i32
    return %arg0, %c0_i32 : i32, i32
  }
  func.func @transform_1(%arg0: i32) -> (i32, i32) {
    %c0_i32 = arith.constant 0 : i32
    %c0_i32_0 = arith.constant 0 : i32
    %c0_i32_1 = arith.constant 0 : i32
    return %c0_i32, %c0_i32_0 : i32, i32
  }
  func.func @transform_2(%arg0: i32) -> (i32, i32) {
    %c0_i32 = arith.constant 0 : i32
    %c0_i32_0 = arith.constant 0 : i32
    %c0_i32_1 = arith.constant 0 : i32
    return %c0_i32, %c0_i32_0 : i32, i32
  }
  func.func @transform_3(%arg0: i32) -> (i32, i32) {
    %c0_i32 = arith.constant 0 : i32
    %c0_i32_0 = arith.constant 0 : i32
    return %arg0, %c0_i32 : i32, i32
  }
  func.func @transform_4(%arg0: i32) -> (i32, i32) {
    %c0_i32 = arith.constant 0 : i32
    %c0_i32_0 = arith.constant 0 : i32
    %c0_i32_1 = arith.constant 0 : i32
    return %c0_i32, %c0_i32_0 : i32, i32
  }
  func.func @transform_5(%arg0: i32) -> (i32, i32) {
    %c0_i32 = arith.constant 0 : i32
    %c0_i32_0 = arith.constant 0 : i32
    %c0_i32_1 = arith.constant 0 : i32
    return %c0_i32, %c0_i32_0 : i32, i32
  }
  func.func @transform_6(%arg0: i32) -> (i32, i32) {
    %c0_i32 = arith.constant 0 : i32
    %c0_i32_0 = arith.constant 0 : i32
    return %arg0, %c0_i32 : i32, i32
  }
}

module attributes {stable_mosaic.version = 11 : i64} {
  func.func @kernel(%arg0: i32, %arg1: memref<32x32xbf16, #tpu.memory_space<vmem>>, %arg2: memref<32x16xbf16, #tpu.memory_space<vmem>>, %arg3: memref<1x16xf32, #tpu.memory_space<vmem>>, %arg4: memref<32x16xbf16, #tpu.memory_space<vmem>>) attributes {dimension_semantics = [#tpu.dimension_semantics<parallel>], iteration_bounds = array<i64: 1>, scalar_prefetch = 0 : i64, scratch_operands = 0 : i64, tpu.core_type = #tpu.core_type<tc>, window_params = [{transform_indices = @transform_0, window_bounds = array<i64: 32, 32>}, {pipeline_mode = #tpu.pipeline_mode<synchronous>, transform_indices = @transform_1, window_bounds = array<i64: 32, 16>}, {pipeline_mode = #tpu.pipeline_mode<synchronous>, transform_indices = @transform_2, window_bounds = array<i64: 1, 16>}, {transform_indices = @transform_3, window_bounds = array<i64: 32, 16>}]} {
    %c0 = arith.constant 0 : index
    %c0_0 = arith.constant 0 : index
    %0 = vector.load %arg1[%c0, %c0_0] : memref<32x32xbf16, #tpu.memory_space<vmem>>, vector<32x32xbf16>
    %c0_1 = arith.constant 0 : index
    %c0_2 = arith.constant 0 : index
    %1 = vector.load %arg2[%c0_1, %c0_2] : memref<32x16xbf16, #tpu.memory_space<vmem>>, vector<32x16xbf16>
    %cst = arith.constant dense<0.000000e+00> : vector<32x16xf32>
    %2 = tpu.matmul %0, %1, %cst {dimension_numbers = #tpu.dot_dimension_numbers<[1], [0], [0], [1], [0, 0, 1, 1], [], []>} : vector<32x32xbf16>, vector<32x16xbf16>, vector<32x16xf32> -> vector<32x16xf32>
    %c0_3 = arith.constant 0 : index
    %c0_4 = arith.constant 0 : index
    %3 = vector.load %arg3[%c0_3, %c0_4] : memref<1x16xf32, #tpu.memory_space<vmem>>, vector<1x16xf32>
    %4 = vector.broadcast %3 : vector<1x16xf32> to vector<32x16xf32>
    %5 = arith.addf %2, %4 : vector<32x16xf32>
    %cst_5 = arith.constant 0.000000e+00 : f32
    %6 = vector.broadcast %cst_5 : f32 to vector<32x16xf32>
    %7 = arith.maximumf %5, %6 : vector<32x16xf32>
    %8 = arith.truncf %7 : vector<32x16xf32> to vector<32x16xbf16>
    %c0_6 = arith.constant 0 : index
    %c0_7 = arith.constant 0 : index
    %9 = vector.load %arg4[%c0_6, %c0_7] : memref<32x16xbf16, #tpu.memory_space<vmem>>, vector<32x16xbf16>
    tpu.vector_store %arg4[%c0_6, %c0_7], %8 {strides = array<i32>} : memref<32x16xbf16, #tpu.memory_space<vmem>>, vector<32x16xbf16>,
    return
  }
  func.func @transform_0(%arg0: i32) -> (i32, i32) {
    %c0_i32 = arith.constant 0 : i32
    %c0_i32_0 = arith.constant 0 : i32
    return %arg0, %c0_i32 : i32, i32
  }
  func.func @transform_1(%arg0: i32) -> (i32, i32) {
    %c0_i32 = arith.constant 0 : i32
    %c0_i32_0 = arith.constant 0 : i32
    %c0_i32_1 = arith.constant 0 : i32
    return %c0_i32, %c0_i32_0 : i32, i32
  }
  func.func @transform_2(%arg0: i32) -> (i32, i32) {
    %c0_i32 = arith.constant 0 : i32
    %c0_i32_0 = arith.constant 0 : i32
    %c0_i32_1 = arith.constant 0 : i32
    return %c0_i32, %c0_i32_0 : i32, i32
  }
  func.func @transform_3(%arg0: i32) -> (i32, i32) {
    %c0_i32 = arith.constant 0 : i32
    %c0_i32_0 = arith.constant 0 : i32
    return %arg0, %c0_i32 : i32, i32
  }
}

module attributes {stable_mosaic.version = 11 : i64} {
  func.func @kernel(%arg0: i32, %arg1: memref<32x16xbf16, #tpu.memory_space<vmem>>, %arg2: memref<16x32xbf16, #tpu.memory_space<vmem>>, %arg3: memref<1x32xf32, #tpu.memory_space<vmem>>, %arg4: memref<32x32xbf16, #tpu.memory_space<vmem>>, %arg5: memref<32x32xbf16, #tpu.memory_space<vmem>>) attributes {dimension_semantics = [#tpu.dimension_semantics<parallel>], iteration_bounds = array<i64: 1>, scalar_prefetch = 0 : i64, scratch_operands = 0 : i64, tpu.core_type = #tpu.core_type<tc>, window_params = [{transform_indices = @transform_0, window_bounds = array<i64: 32, 16>}, {pipeline_mode = #tpu.pipeline_mode<synchronous>, transform_indices = @transform_1, window_bounds = array<i64: 16, 32>}, {pipeline_mode = #tpu.pipeline_mode<synchronous>, transform_indices = @transform_2, window_bounds = array<i64: 1, 32>}, {transform_indices = @transform_3, window_bounds = array<i64: 32, 32>}, {transform_indices = @transform_4, window_bounds = array<i64: 32, 32>}]} {
    %c0 = arith.constant 0 : index
    %c0_0 = arith.constant 0 : index
    %0 = vector.load %arg1[%c0, %c0_0] : memref<32x16xbf16, #tpu.memory_space<vmem>>, vector<32x16xbf16>
    %c0_1 = arith.constant 0 : index
    %c0_2 = arith.constant 0 : index
    %1 = vector.load %arg2[%c0_1, %c0_2] : memref<16x32xbf16, #tpu.memory_space<vmem>>, vector<16x32xbf16>
    %cst = arith.constant dense<0.000000e+00> : vector<32x32xf32>
    %2 = tpu.matmul %0, %1, %cst {dimension_numbers = #tpu.dot_dimension_numbers<[1], [0], [0], [1], [0, 0, 1, 1], [], []>} : vector<32x16xbf16>, vector<16x32xbf16>, vector<32x32xf32> -> vector<32x32xf32>
    %c0_3 = arith.constant 0 : index
    %c0_4 = arith.constant 0 : index
    %3 = vector.load %arg3[%c0_3, %c0_4] : memref<1x32xf32, #tpu.memory_space<vmem>>, vector<1x32xf32>
    %4 = vector.broadcast %3 : vector<1x32xf32> to vector<32x32xf32>
    %5 = arith.addf %2, %4 : vector<32x32xf32>
    %cst_5 = arith.constant 0.000000e+00 : f32
    %6 = vector.broadcast %cst_5 : f32 to vector<32x32xf32>
    %7 = arith.maximumf %5, %6 : vector<32x32xf32>
    %c0_6 = arith.constant 0 : index
    %c0_7 = arith.constant 0 : index
    %8 = vector.load %arg4[%c0_6, %c0_7] : memref<32x32xbf16, #tpu.memory_space<vmem>>, vector<32x32xbf16>
    %9 = arith.extf %8 : vector<32x32xbf16> to vector<32x32xf32>
    %10 = arith.addf %7, %9 : vector<32x32xf32>
    %11 = arith.truncf %10 : vector<32x32xf32> to vector<32x32xbf16>
    %c0_8 = arith.constant 0 : index
    %c0_9 = arith.constant 0 : index
    %12 = vector.load %arg5[%c0_8, %c0_9] : memref<32x32xbf16, #tpu.memory_space<vmem>>, vector<32x32xbf16>
    tpu.vector_store %arg5[%c0_8, %c0_9], %11 {strides = array<i32>} : memref<32x32xbf16, #tpu.memory_space<vmem>>, vector<32x32xbf16>,
    return
  }
  func.func @transform_0(%arg0: i32) -> (i32, i32) {
    %c0_i32 = arith.constant 0 : i32
    %c0_i32_0 = arith.constant 0 : i32
    return %arg0, %c0_i32 : i32, i32
  }
  func.func @transform_1(%arg0: i32) -> (i32, i32) {
    %c0_i32 = arith.constant 0 : i32
    %c0_i32_0 = arith.constant 0 : i32
    %c0_i32_1 = arith.constant 0 : i32
    return %c0_i32, %c0_i32_0 : i32, i32
  }
  func.func @transform_2(%arg0: i32) -> (i32, i32) {
    %c0_i32 = arith.constant 0 : i32
    %c0_i32_0 = arith.constant 0 : i32
    %c0_i32_1 = arith.constant 0 : i32
    return %c0_i32, %c0_i32_0 : i32, i32
  }
  func.func @transform_3(%arg0: i32) -> (i32, i32) {
    %c0_i32 = arith.constant 0 : i32
    %c0_i32_0 = arith.constant 0 : i32
    return %arg0, %c0_i32 : i32, i32
  }
  func.func @transform_4(%arg0: i32) -> (i32, i32) {
    %c0_i32 = arith.constant 0 : i32
    %c0_i32_0 = arith.constant 0 : i32
    return %arg0, %c0_i32 : i32, i32
  }
}

module attributes {stable_mosaic.version = 11 : i64} {
  func.func @_head_kernel(%arg0: i32, %arg1: memref<32x32xbf16, #tpu.memory_space<vmem>>, %arg2: memref<32x32xbf16, #tpu.memory_space<vmem>>, %arg3: memref<1x32xf32, #tpu.memory_space<vmem>>, %arg4: memref<32x8xbf16, #tpu.memory_space<vmem>>, %arg5: memref<1x8xf32, #tpu.memory_space<vmem>>, %arg6: memref<32x32xbf16, #tpu.memory_space<vmem>>, %arg7: memref<32x8xf32, #tpu.memory_space<vmem>>) attributes {dimension_semantics = [#tpu.dimension_semantics<parallel>], iteration_bounds = array<i64: 1>, scalar_prefetch = 0 : i64, scratch_operands = 0 : i64, tpu.core_type = #tpu.core_type<tc>, window_params = [{transform_indices = @transform_0, window_bounds = array<i64: 32, 32>}, {pipeline_mode = #tpu.pipeline_mode<synchronous>, transform_indices = @transform_1, window_bounds = array<i64: 32, 32>}, {pipeline_mode = #tpu.pipeline_mode<synchronous>, transform_indices = @transform_2, window_bounds = array<i64: 1, 32>}, {pipeline_mode = #tpu.pipeline_mode<synchronous>, transform_indices = @transform_3, window_bounds = array<i64: 32, 8>}, {pipeline_mode = #tpu.pipeline_mode<synchronous>, transform_indices = @transform_4, window_bounds = array<i64: 1, 8>}, {transform_indices = @transform_5, window_bounds = array<i64: 32, 32>}, {transform_indices = @transform_6, window_bounds = array<i64: 32, 8>}]} {
    %c0 = arith.constant 0 : index
    %c0_0 = arith.constant 0 : index
    %0 = vector.load %arg1[%c0, %c0_0] : memref<32x32xbf16, #tpu.memory_space<vmem>>, vector<32x32xbf16>
    %c0_1 = arith.constant 0 : index
    %c0_2 = arith.constant 0 : index
    %1 = vector.load %arg2[%c0_1, %c0_2] : memref<32x32xbf16, #tpu.memory_space<vmem>>, vector<32x32xbf16>
    %cst = arith.constant dense<0.000000e+00> : vector<32x32xf32>
    %2 = tpu.matmul %0, %1, %cst {dimension_numbers = #tpu.dot_dimension_numbers<[1], [0], [0], [1], [0, 0, 1, 1], [], []>} : vector<32x32xbf16>, vector<32x32xbf16>, vector<32x32xf32> -> vector<32x32xf32>
    %c0_3 = arith.constant 0 : index
    %c0_4 = arith.constant 0 : index
    %3 = vector.load %arg3[%c0_3, %c0_4] : memref<1x32xf32, #tpu.memory_space<vmem>>, vector<1x32xf32>
    %4 = vector.broadcast %3 : vector<1x32xf32> to vector<32x32xf32>
    %5 = arith.addf %2, %4 : vector<32x32xf32>
    %cst_5 = arith.constant 0.000000e+00 : f32
    %6 = vector.broadcast %cst_5 : f32 to vector<32x32xf32>
    %7 = arith.maximumf %5, %6 : vector<32x32xf32>
    %8 = arith.truncf %7 : vector<32x32xf32> to vector<32x32xbf16>
    %c0_6 = arith.constant 0 : index
    %c0_7 = arith.constant 0 : index
    %9 = vector.load %arg6[%c0_6, %c0_7] : memref<32x32xbf16, #tpu.memory_space<vmem>>, vector<32x32xbf16>
    tpu.vector_store %arg6[%c0_6, %c0_7], %8 {strides = array<i32>} : memref<32x32xbf16, #tpu.memory_space<vmem>>, vector<32x32xbf16>,
    %10 = arith.truncf %7 : vector<32x32xf32> to vector<32x32xbf16>
    %c0_8 = arith.constant 0 : index
    %c0_9 = arith.constant 0 : index
    %11 = vector.load %arg4[%c0_8, %c0_9] : memref<32x8xbf16, #tpu.memory_space<vmem>>, vector<32x8xbf16>
    %cst_10 = arith.constant dense<0.000000e+00> : vector<32x8xf32>
    %12 = tpu.matmul %10, %11, %cst_10 {dimension_numbers = #tpu.dot_dimension_numbers<[1], [0], [0], [1], [0, 0, 1, 1], [], []>} : vector<32x32xbf16>, vector<32x8xbf16>, vector<32x8xf32> -> vector<32x8xf32>
    %c0_11 = arith.constant 0 : index
    %c0_12 = arith.constant 0 : index
    %13 = vector.load %arg5[%c0_11, %c0_12] : memref<1x8xf32, #tpu.memory_space<vmem>>, vector<1x8xf32>
    %14 = vector.broadcast %13 : vector<1x8xf32> to vector<32x8xf32>
    %15 = arith.addf %12, %14 : vector<32x8xf32>
    %c0_13 = arith.constant 0 : index
    %c0_14 = arith.constant 0 : index
    %16 = vector.load %arg7[%c0_13, %c0_14] : memref<32x8xf32, #tpu.memory_space<vmem>>, vector<32x8xf32>
    tpu.vector_store %arg7[%c0_13, %c0_14], %15 {strides = array<i32>} : memref<32x8xf32, #tpu.memory_space<vmem>>, vector<32x8xf32>,
    return
  }
  func.func @transform_0(%arg0: i32) -> (i32, i32) {
    %c0_i32 = arith.constant 0 : i32
    %c0_i32_0 = arith.constant 0 : i32
    return %arg0, %c0_i32 : i32, i32
  }
  func.func @transform_1(%arg0: i32) -> (i32, i32) {
    %c0_i32 = arith.constant 0 : i32
    %c0_i32_0 = arith.constant 0 : i32
    %c0_i32_1 = arith.constant 0 : i32
    return %c0_i32, %c0_i32_0 : i32, i32
  }
  func.func @transform_2(%arg0: i32) -> (i32, i32) {
    %c0_i32 = arith.constant 0 : i32
    %c0_i32_0 = arith.constant 0 : i32
    %c0_i32_1 = arith.constant 0 : i32
    return %c0_i32, %c0_i32_0 : i32, i32
  }
  func.func @transform_3(%arg0: i32) -> (i32, i32) {
    %c0_i32 = arith.constant 0 : i32
    %c0_i32_0 = arith.constant 0 : i32
    %c0_i32_1 = arith.constant 0 : i32
    return %c0_i32, %c0_i32_0 : i32, i32
  }
  func.func @transform_4(%arg0: i32) -> (i32, i32) {
    %c0_i32 = arith.constant 0 : i32
    %c0_i32_0 = arith.constant 0 : i32
    %c0_i32_1 = arith.constant 0 : i32
    return %c0_i32, %c0_i32_0 : i32, i32
  }
  func.func @transform_5(%arg0: i32) -> (i32, i32) {
    %c0_i32 = arith.constant 0 : i32
    %c0_i32_0 = arith.constant 0 : i32
    return %arg0, %c0_i32 : i32, i32
  }
  func.func @transform_6(%arg0: i32) -> (i32, i32) {
    %c0_i32 = arith.constant 0 : i32
    %c0_i32_0 = arith.constant 0 : i32
    return %arg0, %c0_i32 : i32, i32
  }
}

module attributes {stable_mosaic.version = 11 : i64} {
  func.func @_head_kernel(%arg0: i32, %arg1: memref<32x32xbf16, #tpu.memory_space<vmem>>, %arg2: memref<32x32xbf16, #tpu.memory_space<vmem>>, %arg3: memref<1x32xf32, #tpu.memory_space<vmem>>, %arg4: memref<32x8xbf16, #tpu.memory_space<vmem>>, %arg5: memref<1x8xf32, #tpu.memory_space<vmem>>, %arg6: memref<32x32xbf16, #tpu.memory_space<vmem>>, %arg7: memref<32x8xf32, #tpu.memory_space<vmem>>) attributes {dimension_semantics = [#tpu.dimension_semantics<parallel>], iteration_bounds = array<i64: 1>, scalar_prefetch = 0 : i64, scratch_operands = 0 : i64, tpu.core_type = #tpu.core_type<tc>, window_params = [{transform_indices = @transform_0, window_bounds = array<i64: 32, 32>}, {pipeline_mode = #tpu.pipeline_mode<synchronous>, transform_indices = @transform_1, window_bounds = array<i64: 32, 32>}, {pipeline_mode = #tpu.pipeline_mode<synchronous>, transform_indices = @transform_2, window_bounds = array<i64: 1, 32>}, {pipeline_mode = #tpu.pipeline_mode<synchronous>, transform_indices = @transform_3, window_bounds = array<i64: 32, 8>}, {pipeline_mode = #tpu.pipeline_mode<synchronous>, transform_indices = @transform_4, window_bounds = array<i64: 1, 8>}, {transform_indices = @transform_5, window_bounds = array<i64: 32, 32>}, {transform_indices = @transform_6, window_bounds = array<i64: 32, 8>}]} {
    %c0 = arith.constant 0 : index
    %c0_0 = arith.constant 0 : index
    %0 = vector.load %arg1[%c0, %c0_0] : memref<32x32xbf16, #tpu.memory_space<vmem>>, vector<32x32xbf16>
    %c0_1 = arith.constant 0 : index
    %c0_2 = arith.constant 0 : index
    %1 = vector.load %arg2[%c0_1, %c0_2] : memref<32x32xbf16, #tpu.memory_space<vmem>>, vector<32x32xbf16>
    %cst = arith.constant dense<0.000000e+00> : vector<32x32xf32>
    %2 = tpu.matmul %0, %1, %cst {dimension_numbers = #tpu.dot_dimension_numbers<[1], [0], [0], [1], [0, 0, 1, 1], [], []>} : vector<32x32xbf16>, vector<32x32xbf16>, vector<32x32xf32> -> vector<32x32xf32>
    %c0_3 = arith.constant 0 : index
    %c0_4 = arith.constant 0 : index
    %3 = vector.load %arg3[%c0_3, %c0_4] : memref<1x32xf32, #tpu.memory_space<vmem>>, vector<1x32xf32>
    %4 = vector.broadcast %3 : vector<1x32xf32> to vector<32x32xf32>
    %5 = arith.addf %2, %4 : vector<32x32xf32>
    %cst_5 = arith.constant 0.000000e+00 : f32
    %6 = vector.broadcast %cst_5 : f32 to vector<32x32xf32>
    %7 = arith.maximumf %5, %6 : vector<32x32xf32>
    %8 = arith.truncf %7 : vector<32x32xf32> to vector<32x32xbf16>
    %c0_6 = arith.constant 0 : index
    %c0_7 = arith.constant 0 : index
    %9 = vector.load %arg6[%c0_6, %c0_7] : memref<32x32xbf16, #tpu.memory_space<vmem>>, vector<32x32xbf16>
    tpu.vector_store %arg6[%c0_6, %c0_7], %8 {strides = array<i32>} : memref<32x32xbf16, #tpu.memory_space<vmem>>, vector<32x32xbf16>,
    %10 = arith.truncf %7 : vector<32x32xf32> to vector<32x32xbf16>
    %c0_8 = arith.constant 0 : index
    %c0_9 = arith.constant 0 : index
    %11 = vector.load %arg4[%c0_8, %c0_9] : memref<32x8xbf16, #tpu.memory_space<vmem>>, vector<32x8xbf16>
    %cst_10 = arith.constant dense<0.000000e+00> : vector<32x8xf32>
    %12 = tpu.matmul %10, %11, %cst_10 {dimension_numbers = #tpu.dot_dimension_numbers<[1], [0], [0], [1], [0, 0, 1, 1], [], []>} : vector<32x32xbf16>, vector<32x8xbf16>, vector<32x8xf32> -> vector<32x8xf32>
    %c0_11 = arith.constant 0 : index
    %c0_12 = arith.constant 0 : index
    %13 = vector.load %arg5[%c0_11, %c0_12] : memref<1x8xf32, #tpu.memory_space<vmem>>, vector<1x8xf32>
    %14 = vector.broadcast %13 : vector<1x8xf32> to vector<32x8xf32>
    %15 = arith.addf %12, %14 : vector<32x8xf32>
    %c0_13 = arith.constant 0 : index
    %c0_14 = arith.constant 0 : index
    %16 = vector.load %arg7[%c0_13, %c0_14] : memref<32x8xf32, #tpu.memory_space<vmem>>, vector<32x8xf32>
    tpu.vector_store %arg7[%c0_13, %c0_14], %15 {strides = array<i32>} : memref<32x8xf32, #tpu.memory_space<vmem>>, vector<32x8xf32>,
    return
  }
  func.func @transform_0(%arg0: i32) -> (i32, i32) {
    %c0_i32 = arith.constant 0 : i32
    %c0_i32_0 = arith.constant 0 : i32
    return %arg0, %c0_i32 : i32, i32
  }
  func.func @transform_1(%arg0: i32) -> (i32, i32) {
    %c0_i32 = arith.constant 0 : i32
    %c0_i32_0 = arith.constant 0 : i32
    %c0_i32_1 = arith.constant 0 : i32
    return %c0_i32, %c0_i32_0 : i32, i32
  }
  func.func @transform_2(%arg0: i32) -> (i32, i32) {
    %c0_i32 = arith.constant 0 : i32
    %c0_i32_0 = arith.constant 0 : i32
    %c0_i32_1 = arith.constant 0 : i32
    return %c0_i32, %c0_i32_0 : i32, i32
  }
  func.func @transform_3(%arg0: i32) -> (i32, i32) {
    %c0_i32 = arith.constant 0 : i32
    %c0_i32_0 = arith.constant 0 : i32
    %c0_i32_1 = arith.constant 0 : i32
    return %c0_i32, %c0_i32_0 : i32, i32
  }
  func.func @transform_4(%arg0: i32) -> (i32, i32) {
    %c0_i32 = arith.constant 0 : i32
    %c0_i32_0 = arith.constant 0 : i32
    %c0_i32_1 = arith.constant 0 : i32
    return %c0_i32, %c0_i32_0 : i32, i32
  }
  func.func @transform_5(%arg0: i32) -> (i32, i32) {
    %c0_i32 = arith.constant 0 : i32
    %c0_i32_0 = arith.constant 0 : i32
    return %arg0, %c0_i32 : i32, i32
  }
  func.func @transform_6(%arg0: i32) -> (i32, i32) {
    %c0_i32 = arith.constant 0 : i32
    %c0_i32_0 = arith.constant 0 : i32
    return %arg0, %c0_i32 : i32, i32
  }
}

module attributes {stable_mosaic.version = 11 : i64} {
  func.func @kernel(%arg0: i32, %arg1: memref<32x8xbf16, #tpu.memory_space<vmem>>, %arg2: memref<8x32xbf16, #tpu.memory_space<vmem>>, %arg3: memref<1x32xf32, #tpu.memory_space<vmem>>, %arg4: memref<32x32xbf16, #tpu.memory_space<vmem>>, %arg5: memref<32x32xbf16, #tpu.memory_space<vmem>>, %arg6: memref<32x32xbf16, #tpu.memory_space<vmem>>) attributes {dimension_semantics = [#tpu.dimension_semantics<parallel>], iteration_bounds = array<i64: 1>, scalar_prefetch = 0 : i64, scratch_operands = 0 : i64, tpu.core_type = #tpu.core_type<tc>, window_params = [{transform_indices = @transform_0, window_bounds = array<i64: 32, 8>}, {pipeline_mode = #tpu.pipeline_mode<synchronous>, transform_indices = @transform_1, window_bounds = array<i64: 8, 32>}, {pipeline_mode = #tpu.pipeline_mode<synchronous>, transform_indices = @transform_2, window_bounds = array<i64: 1, 32>}, {transform_indices = @transform_3, window_bounds = array<i64: 32, 32>}, {transform_indices = @transform_4, window_bounds = array<i64: 32, 32>}, {transform_indices = @transform_5, window_bounds = array<i64: 32, 32>}]} {
    %c0 = arith.constant 0 : index
    %c0_0 = arith.constant 0 : index
    %0 = vector.load %arg1[%c0, %c0_0] : memref<32x8xbf16, #tpu.memory_space<vmem>>, vector<32x8xbf16>
    %c0_1 = arith.constant 0 : index
    %c0_2 = arith.constant 0 : index
    %1 = vector.load %arg2[%c0_1, %c0_2] : memref<8x32xbf16, #tpu.memory_space<vmem>>, vector<8x32xbf16>
    %cst = arith.constant dense<0.000000e+00> : vector<32x32xf32>
    %2 = tpu.matmul %0, %1, %cst {dimension_numbers = #tpu.dot_dimension_numbers<[1], [0], [0], [1], [0, 0, 1, 1], [], []>} : vector<32x8xbf16>, vector<8x32xbf16>, vector<32x32xf32> -> vector<32x32xf32>
    %c0_3 = arith.constant 0 : index
    %c0_4 = arith.constant 0 : index
    %3 = vector.load %arg3[%c0_3, %c0_4] : memref<1x32xf32, #tpu.memory_space<vmem>>, vector<1x32xf32>
    %4 = vector.broadcast %3 : vector<1x32xf32> to vector<32x32xf32>
    %5 = arith.addf %2, %4 : vector<32x32xf32>
    %c0_5 = arith.constant 0 : index
    %c0_6 = arith.constant 0 : index
    %6 = vector.load %arg4[%c0_5, %c0_6] : memref<32x32xbf16, #tpu.memory_space<vmem>>, vector<32x32xbf16>
    %7 = arith.extf %6 : vector<32x32xbf16> to vector<32x32xf32>
    %8 = arith.addf %5, %7 : vector<32x32xf32>
    %c0_7 = arith.constant 0 : index
    %c0_8 = arith.constant 0 : index
    %9 = vector.load %arg5[%c0_7, %c0_8] : memref<32x32xbf16, #tpu.memory_space<vmem>>, vector<32x32xbf16>
    %10 = arith.extf %9 : vector<32x32xbf16> to vector<32x32xf32>
    %11 = arith.addf %8, %10 : vector<32x32xf32>
    %12 = arith.truncf %11 : vector<32x32xf32> to vector<32x32xbf16>
    %c0_9 = arith.constant 0 : index
    %c0_10 = arith.constant 0 : index
    %13 = vector.load %arg6[%c0_9, %c0_10] : memref<32x32xbf16, #tpu.memory_space<vmem>>, vector<32x32xbf16>
    tpu.vector_store %arg6[%c0_9, %c0_10], %12 {strides = array<i32>} : memref<32x32xbf16, #tpu.memory_space<vmem>>, vector<32x32xbf16>,
    return
  }
  func.func @transform_0(%arg0: i32) -> (i32, i32) {
    %c0_i32 = arith.constant 0 : i32
    %c0_i32_0 = arith.constant 0 : i32
    return %arg0, %c0_i32 : i32, i32
  }
  func.func @transform_1(%arg0: i32) -> (i32, i32) {
    %c0_i32 = arith.constant 0 : i32
    %c0_i32_0 = arith.constant 0 : i32
    %c0_i32_1 = arith.constant 0 : i32
    return %c0_i32, %c0_i32_0 : i32, i32
  }
  func.func @transform_2(%arg0: i32) -> (i32, i32) {
    %c0_i32 = arith.constant 0 : i32
    %c0_i32_0 = arith.constant 0 : i32
    %c0_i32_1 = arith.constant 0 : i32
    return %c0_i32, %c0_i32_0 : i32, i32
  }
  func.func @transform_3(%arg0: i32) -> (i32, i32) {
    %c0_i32 = arith.constant 0 : i32
    %c0_i32_0 = arith.constant 0 : i32
    return %arg0, %c0_i32 : i32, i32
  }
  func.func @transform_4(%arg0: i32) -> (i32, i32) {
    %c0_i32 = arith.constant 0 : i32
    %c0_i32_0 = arith.constant 0 : i32
    return %arg0, %c0_i32 : i32, i32
  }
  func.func @transform_5(%arg0: i32) -> (i32, i32) {
    %c0_i32 = arith.constant 0 : i32
    %c0_i32_0 = arith.constant 0 : i32
    return %arg0, %c0_i32 : i32, i32
  }
}

</mosaic_0001>

<bundles_post_ra>
// kernel: forward.21
= control target key start
LH: loop header
LB: loop body
LE: loop exit
PB: predicated region body
PF: predicated region fallthrough
CT: control target
= control target key end

     0   :  { %vm110_vm0 = vcmask 523264   ;;  %vm312_vm1 = vcmask 519168   ;;  %s573_s1 = inlined_call_operand.vmem [shape: bf16[64,64], index: 1, kind: input, shape index: {}]   ;;  %s574_s0 = inlined_call_operand.vmem [shape: bf16[128,64], index: 0, kind: input, shape index: {}]   ;;  %s575_s2 = inlined_call_operand.vmem [shape: f32[1,64], index: 2, kind: input, shape index: {}]   ;;  %s576_s3 = inlined_call_operand.vmem [shape: bf16[128,64], index: 3, kind: output, shape index: {}]  }
   0x1   :  { %v430_v0 = vld [vmem:[%s573_s1] sm:$0xff]   ;;  %v431_v1 = vld [vmem:[%s573_s1 + $0x8] sm:$0xff]   ;;  %v432_v2 = vld [vmem:[%s573_s1 + $0x10] sm:$0xff]  }
   0x2   :  { %398 = vmatprep.subr.bf16.mxu0 %v430_v0  ;;  %422 = vmatprep.subr.bf16.mxu1 %v430_v0  ;;  %v434_v3 = vld [vmem:[%s574_s0] sm:$0xff]   ;;  %v433_v5 = vld [vmem:[%s573_s1 + $0x18] sm:$0xff]   ;;  %v436_v6 = vld [vmem:[%s574_s0 + $0x8] sm:$0xff]  }
   0x3   :  { %399 = vmatpush3.bf16.msra.mxu0 %v430_v0  ;;  %426 = vmatpush3.bf16.msra.mxu1 %v430_v0  ;;  %v435_v4 = vld [vmem:[%s574_s0 + $0x20] sm:$0xff]   ;;  %v437_v7 = vld [vmem:[%s574_s0 + $0x28] sm:$0xff]   ;;  %v438_v8 = vld [vmem:[%s574_s0 + $0x10] sm:$0xff]  }
   0x4   :  { %400 = vmatprep.subr.bf16.mxu0 %v431_v1  ;;  %423 = vmatprep.subr.bf16.mxu1 %v431_v1  ;;  %v439_v9 = vld [vmem:[%s574_s0 + $0x30] sm:$0xff]   ;;  %v440_v10 = vld [vmem:[%s574_s0 + $0x18] sm:$0xff]   ;;  %v333_v12 = vld [vmem:[%s575_s2] ss:$0 sm:$0xff] }
   0x5   :  { %406 = vmatprep.mubr.msk.bf16.mxu0 %vm110_vm0, %v434_v3  ;;  %414 = vmatprep.mubr.msk.bf16.mxu1 %vm110_vm0, %v435_v4  ;;  %v441_v11 = vld [vmem:[%s574_s0 + $0x38] sm:$0xff]  }
   0x7   :  { %401 = vmatpush3.bf16.msra.mxu0 %v431_v1  ;;  %427 = vmatpush3.bf16.msra.mxu1 %v431_v1 }
   0x8   :  { %402 = vmatprep.subr.bf16.mxu0 %v432_v2  ;;  %424 = vmatprep.subr.bf16.mxu1 %v432_v2 }
   0xb   :  { %403 = vmatpush3.bf16.msra.mxu0 %v432_v2  ;;  %428 = vmatpush3.bf16.msra.mxu1 %v432_v2 }
   0xc   :  { %404 = vmatprep.subr.bf16.mxu0 %v433_v5  ;;  %425 = vmatprep.subr.bf16.mxu1 %v433_v5 }
   0xf   :  { %405 = vmatpush3.bf16.msra.mxu0 %v433_v5  ;;  %429 = vmatpush3.bf16.msra.mxu1 %v433_v5 }
  0x12   :  { %407 = vmatmul.mubr.msk.bf16.vlgmr.msra.gmra.mrb[0].mxu0 %vm110_vm0, %v436_v6  ;;  %415 = vmatmul.mubr.msk.bf16.vlgmr.msra.gmra.mrb[0].mxu1 %vm110_vm0, %v437_v7 }
  0x13   :  { %410 = vmatprep.mubr.msk.bf16.mxu0 %vm110_vm0, %v438_v8  ;;  %418 = vmatprep.mubr.msk.bf16.mxu1 %vm110_vm0, %v439_v9 }
  0x1a   :  { %411 = vmatmul.mubr.msk.bf16.gmra.mrb[4].mxu0 %vm110_vm0, %v440_v10  ;;  %419 = vmatmul.mubr.msk.bf16.gmra.mrb[4].mxu1 %vm110_vm0, %v441_v11 }
  0xe5   :  { %v408_v13 = vpop.f32.mrb[0].mxu0  ;;  %v416_v14 = vpop.f32.mrb[0].mxu1 }
  0xe6   :  { %v178_v15 = vadd.f32 %v408_v13, %v333_v12  ;;  %v210_v16 = vadd.f32 %v416_v14, %v333_v12  ;;  %v169_v17 = vpop.f32.mrb[1].mxu0  ;;  %v201_v18 = vpop.f32.mrb[1].mxu1 }
  0xe7   :  { %v170_v19 = vadd.f32 %v333_v12, %v169_v17  ;;  %v202_v20 = vadd.f32 %v333_v12, %v201_v18  ;;  %v409_v21 = vpop.f32.mrb[2].mxu0  ;;  %v417_v22 = vpop.f32.mrb[2].mxu1 }
  0xe8   :  { %v234_v23 = vmax.f32 %v178_v15, 0.0  ;;  %v242_v24 = vmax.f32 %v210_v16, 0.0  ;;  %v181_v25 = vadd.f32 %v409_v21, %v333_v12  ;;  %v213_v26 = vadd.f32 %v417_v22, %v333_v12  ;;  %v172_v27 = vpop.f32.mrb[3].mxu0  ;;  %v204_v28 = vpop.f32.mrb[3].mxu1 }
  0xe9   :  { %v232_v29 = vmax.f32 %v170_v19, 0.0  ;;  %v240_v30 = vmax.f32 %v202_v20, 0.0  ;;  %v173_v31 = vadd.f32 %v333_v12, %v172_v27  ;;  %v205_v32 = vadd.f32 %v333_v12, %v204_v28 }
  0xea   :  { %v372_v33 = vpack.c.bf16 %v234_v23, %v234_v23  ;;  %v380_v34 = vpack.c.bf16 %v242_v24, %v242_v24  ;;  %v235_v35 = vmax.f32 %v181_v25, 0.0  ;;  %v243_v36 = vmax.f32 %v213_v26, 0.0 }
  0xeb   :  { %v370_v37 = vpack.c.bf16 %v232_v29, %v232_v29  ;;  %v378_v38 = vpack.c.bf16 %v240_v30, %v240_v30  ;;  %v233_v39 = vmax.f32 %v173_v31, 0.0  ;;  %v241_v40 = vmax.f32 %v205_v32, 0.0 }
  0xec   :  { %315 = vst.msk [vmem:[%s576_s3 + $0x8] sm:$0xf] %vm312_vm1, %v372_v33  ;;  %323 = vst.msk [vmem:[%s576_s3 + $0x28] sm:$0xf] %vm312_vm1, %v380_v34  ;;  %v373_v41 = vpack.c.bf16 %v235_v35, %v235_v35  ;;  %v381_v42 = vpack.c.bf16 %v243_v36, %v243_v36 }
  0xed   :  { %313 = vst.msk [vmem:[%s576_s3] sm:$0xf] %vm312_vm1, %v370_v37  ;;  %321 = vst.msk [vmem:[%s576_s3 + $0x20] sm:$0xf] %vm312_vm1, %v378_v38  ;;  %v371_v43 = vpack.c.bf16 %v233_v39, %v233_v39  ;;  %v379_v44 = vpack.c.bf16 %v241_v40, %v241_v40  ;;  %v412_v45 = vpop.f32.mrb[4].mxu0  ;;  %v420_v46 = vpop.f32.mrb[4].mxu1 }
  0xee   :  { %316 = vst.msk [vmem:[%s576_s3 + $0xc] sm:$0xf] %vm312_vm1, %v373_v41  ;;  %324 = vst.msk [vmem:[%s576_s3 + $0x2c] sm:$0xf] %vm312_vm1, %v381_v42  ;;  %v194_v47 = vadd.f32 %v412_v45, %v333_v12  ;;  %v226_v48 = vadd.f32 %v420_v46, %v333_v12  ;;  %v185_v49 = vpop.f32.mrb[5].mxu0  ;;  %v217_v50 = vpop.f32.mrb[5].mxu1 }
  0xef   :  { %314 = vst.msk [vmem:[%s576_s3 + $0x4] sm:$0xf] %vm312_vm1, %v371_v43  ;;  %322 = vst.msk [vmem:[%s576_s3 + $0x24] sm:$0xf] %vm312_vm1, %v379_v44  ;;  %v186_v51 = vadd.f32 %v333_v12, %v185_v49  ;;  %v218_v52 = vadd.f32 %v333_v12, %v217_v50  ;;  %v413_v53 = vpop.f32.mrb[6].mxu0  ;;  %v421_v54 = vpop.f32.mrb[6].mxu1 }
  0xf0   :  { %v238_v55 = vmax.f32 %v194_v47, 0.0  ;;  %v246_v56 = vmax.f32 %v226_v48, 0.0  ;;  %v197_v57 = vadd.f32 %v413_v53, %v333_v12  ;;  %v229_v58 = vadd.f32 %v421_v54, %v333_v12  ;;  %v188_v59 = vpop.f32.mrb[7].mxu0  ;;  %v220_v60 = vpop.f32.mrb[7].mxu1 }
  0xf1   :  { %v236_v61 = vmax.f32 %v186_v51, 0.0  ;;  %v244_v62 = vmax.f32 %v218_v52, 0.0  ;;  %v189_v63 = vadd.f32 %v333_v12, %v188_v59  ;;  %v221_v0 = vadd.f32 %v333_v12, %v220_v60 }
  0xf2   :  { %v376_v1 = vpack.c.bf16 %v238_v55, %v238_v55  ;;  %v384_v2 = vpack.c.bf16 %v246_v56, %v246_v56  ;;  %v239_v3 = vmax.f32 %v197_v57, 0.0  ;;  %v247_v4 = vmax.f32 %v229_v58, 0.0 }
  0xf3   :  { %v374_v5 = vpack.c.bf16 %v236_v61, %v236_v61  ;;  %v382_v6 = vpack.c.bf16 %v244_v62, %v244_v62  ;;  %v237_v7 = vmax.f32 %v189_v63, 0.0  ;;  %v245_v8 = vmax.f32 %v221_v0, 0.0 }
  0xf4   :  { %319 = vst.msk [vmem:[%s576_s3 + $0x18] sm:$0xf] %vm312_vm1, %v376_v1  ;;  %327 = vst.msk [vmem:[%s576_s3 + $0x38] sm:$0xf] %vm312_vm1, %v384_v2  ;;  %v377_v9 = vpack.c.bf16 %v239_v3, %v239_v3  ;;  %v385_v10 = vpack.c.bf16 %v247_v4, %v247_v4 }
  0xf5   :  { %317 = vst.msk [vmem:[%s576_s3 + $0x10] sm:$0xf] %vm312_vm1, %v374_v5  ;;  %325 = vst.msk [vmem:[%s576_s3 + $0x30] sm:$0xf] %vm312_vm1, %v382_v6  ;;  %v375_v11 = vpack.c.bf16 %v237_v7, %v237_v7  ;;  %v383_v12 = vpack.c.bf16 %v245_v8, %v245_v8 }
  0xf6   :  { %320 = vst.msk [vmem:[%s576_s3 + $0x1c] sm:$0xf] %vm312_vm1, %v377_v9  ;;  %328 = vst.msk [vmem:[%s576_s3 + $0x3c] sm:$0xf] %vm312_vm1, %v385_v10 }
  0xf7   :  { %318 = vst.msk [vmem:[%s576_s3 + $0x14] sm:$0xf] %vm312_vm1, %v375_v11  ;;  %326 = vst.msk [vmem:[%s576_s3 + $0x34] sm:$0xf] %vm312_vm1, %v383_v12 }

// kernel: forward.20
= control target key start
LH: loop header
LB: loop body
LE: loop exit
PB: predicated region body
PF: predicated region fallthrough
CT: control target
= control target key end

     0   :  { %s3802_s12 = smov 0   ;;  %s4890_s0 = inlined_call_operand.vmem [shape: bf16[2,11,11,12], index: 0, kind: input, shape index: {}]   ;;  %s4891_s1 = inlined_call_operand.vmem [shape: f32[16,12,64], index: 1, kind: input, shape index: {}]   ;;  %s4892_s2 = inlined_call_operand.vmem [shape: f32[1,64], index: 2, kind: input, shape index: {}]   ;;  %s4893_s3 = inlined_call_operand.vmem [shape: bf16[2,8,8,64], index: 3, kind: output, shape index: {}]  }
   0x1 LB: > { %s2897_s13 = sadd.s32 4294967295, %s3779_s12   ;;  %p2901_p0 = scmp.ge.s32.totalorder %s3779_s12, 1  ;;  %s3779_s12 = sphi %s3802_s12, %s13_s12  }
   0x2   : > { %p137_p1 = scmp.lt.s32.totalorder %s3779_s12, 3 }
   0x4   : > { %p138_p2 = pnand %p2901_p0, %p137_p1 }
   0x6   : > { %141 = sbr.rel (%p138_p2) target bundleno = 374 (0x176), region = 32 }
   0xd   : > { %vm266_vm0 = vcmask 1043456   ;;  %v3023_v0 = vld [vmem:[%s4891_s1 + $0x80] sm:$0xff]  ;;  %v3024_v1 = vld [vmem:[%s4891_s1 + $0x88] sm:$0xf]  ;;  %v2905_v2 = vld [vmem:[%s4891_s1 + $0x10] sm:$0xff]  ;;  %vm3781_vm1 = vmmov 1  }
   0xe   : > { %vm3819_vm2 = vmpackc.low %vm266_vm0, %vm3781_vm1  ;;  %v3595_v4 = vpack.c.bf16 %v3024_v1, %v3023_v0  ;;  %v2906_v5 = vld [vmem:[%s4891_s1 + $0x18] sm:$0xf]  ;;  %p161_p3 = scmp.lt.s32.totalorder %s2897_s13, 1  ;;  %v203_v6 = vld [vmem:[%s4891_s1] sm:$0xff]  ;;  %vm249_vm3 = vcmask 97280   ;;  %vm221_vm4 = vcmask 1046528  }
   0xf   : > { %v3547_v7 = vpack.c.bf16 %v2906_v5, %v2905_v2  ;;  %v204_v8 = vld [vmem:[%s4891_s1 + $0x8] sm:$0xf]  ;;  %v3034_v9 = vld [vmem:[%s4891_s1 + $0x90] sm:$0xff]  ;;  %v3035_v10 = vld [vmem:[%s4891_s1 + $0x98] sm:$0xf]  ;;  %vm499_vm5 = vcmask 1045504  }
  0x10   : > { %3597 = vmatprep.subr.msk.bf16.mxu0 %vm3819_vm2, %v3595_v4  ;;  %s4929_s13 = smov (!%p161_p3, %s2897_s13), 1  ;;  %v3842_v11 = vpack.c.bf16 %v204_v8, %v203_v6  ;;  %v3601_v12 = vpack.c.bf16 %v3035_v10, %v3034_v9  ;;  %v2925_v13 = vld [vmem:[%s4891_s1 + $0x20] sm:$0xff]  ;;  %v2926_v14 = vld [vmem:[%s4891_s1 + $0x28] sm:$0xf]  ;;  %v2936_v17 = vld [vmem:[%s4891_s1 + $0x30] sm:$0xff]  ;;  %vm659_vm6 = vcmask 1044480  }
  0x11   : > { %v3045_v15 = vld [vmem:[%s4891_s1 + $0xa0] sm:$0xff]  ;;  %3600 = vmatpush3.bf16.msk.msra.mxu0 %vm3819_vm2, %v3595_v4  ;;  %3549 = vmatprep.subr.msk.bf16.mxu1 %vm3819_vm2, %v3547_v7  ;;  %v3046_v16 = vld [vmem:[%s4891_s1 + $0xa8] sm:$0xf]  ;;  %v2937_v18 = vld [vmem:[%s4891_s1 + $0x38] sm:$0xf]  ;;  %s3763_s17 = smul.u32 88, %s4929_s13  ;;  %v3897_v25 = vpack.c.bf16 %v2926_v14, %v2925_v13 }
  0x12   : > { %3552 = vmatpush3.bf16.msk.msra.mxu1 %vm3819_vm2, %v3547_v7  ;;  %3603 = vmatprep.subr.msk.bf16.mxu0 %vm3819_vm2, %v3601_v12  ;;  %v3056_v19 = vld [vmem:[%s4891_s1 + $0xb0] sm:$0xff]  ;;  %v3057_v20 = vld [vmem:[%s4891_s1 + $0xb8] sm:$0xf]  ;;  %v2963_v21 = vld [vmem:[%s4891_s1 + $0x40] sm:$0xff]  ;;  %v3899_v26 = vpack.c.bf16 %v3046_v16, %v3045_v15  ;;  %v3901_v27 = vpack.c.bf16 %v2937_v18, %v2936_v17  ;;  %s3130_s7 = sshll.u32 %s4929_s13, 5  ;;  %vm2833_vm7 = vcmask 519168  }
  0x13   : > { %3555 = vmatprep.subr.msk.bf16.mxu1 %vm3819_vm2, %v3842_v11  ;;  %v2964_v22 = vld [vmem:[%s4891_s1 + $0x48] sm:$0xf]  ;;  %v3083_v23 = vld [vmem:[%s4891_s1 + $0xc0] sm:$0xff]  ;;  %s3895_s5 = scalar_lea.vmem %s4890_s0, %s3763_s17  ;;  %v2974_v28 = vld [vmem:[%s4891_s1 + $0x50] sm:$0xff]  ;;  %v3912_v33 = vpack.c.bf16 %v3057_v20, %v3056_v19  ;;  %s4869_s10 = scalar_lea.vmem %s4893_s3, %s3130_s7 }
  0x14   : > { %v3084_v24 = vld [vmem:[%s4891_s1 + $0xc8] sm:$0xf]  ;;  %v2975_v29 = vld [vmem:[%s4891_s1 + $0x58] sm:$0xf]  ;;  %v172_v32 = vld [vmem:[%s3895_s5 + $0x4] sm:$0x3]  ;;  %v3914_v34 = vpack.c.bf16 %v2964_v22, %v2963_v21 }
  0x15   : > { %v3007_v30 = vld [vmem:[%s3895_s5 + $0x10] ss:$8 sps:$4 sm:$0xff]   ;;  %v171_v31 = vld [vmem:[%s3895_s5] ss:$8 sps:$4 sm:$0xff]   ;;  %v3916_v35 = vpack.c.bf16 %v3084_v24, %v3083_v23  ;;  %v3918_v36 = vpack.c.bf16 %v2975_v29, %v2974_v28  ;;  %v3926_v40 = vunpack.c.l.bf16 %v172_v32  ;;  %v174_v41 = vld [vmem:[%s3895_s5 + $0xc] sm:$0x3] }
  0x16   : > { %v3920_v37 = vunpack.c.l.bf16 %v3007_v30  ;;  %v3922_v38 = vunpack.c.h.bf16 %v3007_v30  ;;  %v3924_v39 = vunpack.c.l.bf16 %v171_v31  ;;  %v3011_v42 = vld [vmem:[%s3895_s5 + $0x20] ss:$8 sps:$4 sm:$0xff]   ;;  %v175_v43 = vld [vmem:[%s3895_s5 + $0x10] ss:$8 sps:$4 sm:$0xff]   ;;  %v3931_v44 = vunpack.c.h.bf16 %v171_v31  ;;  %v176_v48 = vld [vmem:[%s3895_s5 + $0x14] sm:$0x3] }
  0x17   : > { %v3933_v45 = vunpack.c.l.bf16 %v174_v41  ;;  %v3935_v46 = vunpack.c.l.bf16 %v3011_v42  ;;  %v3937_v47 = vunpack.c.h.bf16 %v3011_v42  ;;  %v178_v49 = vld [vmem:[%s3895_s5 + $0x1c] sm:$0x3]  ;;  %v3015_v50 = vld [vmem:[%s3895_s5 + $0x30] ss:$8 sps:$4 sm:$0xff]   ;;  %v223_v52 = vrot.slane %v3926_v40, 1 }
  0x18   : > { %3423 = vmatprep.mubr.msk.f32.mxu0 %vm249_vm3, %v3920_v37  ;;  %v222_v51 = vrot.slane %v3924_v39, 1  ;;  %v3946_v53 = vunpack.c.l.bf16 %v175_v43  ;;  %v3948_v54 = vunpack.c.l.bf16 %v176_v48  ;;  %v225_v55 = vrot.slane %v3931_v44, 1  ;;  %v179_v59 = vld [vmem:[%s3895_s5 + $0x20] ss:$8 sps:$4 sm:$0xff]   ;;  %v180_v60 = vld [vmem:[%s3895_s5 + $0x24] sm:$0x3] }
  0x19   : > { %3424 = vmatmul.mubr.msk.f32.vlgmr.msra.gmra.mrb[0].mxu0 %vm249_vm3, %v3922_v38  ;;  %v226_v56 = vrot.slane %v3933_v45, 1  ;;  %v3954_v57 = vunpack.c.h.bf16 %v175_v43  ;;  %v3956_v58 = vunpack.c.l.bf16 %v178_v49  ;;  %v3967_v0 = vunpack.c.l.bf16 %v3015_v50  ;;  %v182_v1 = vld [vmem:[%s3895_s5 + $0x2c] sm:$0x3]  ;;  %v3019_v2 = vld [vmem:[%s3895_s5 + $0x40] ss:$8 sps:$4 sm:$0xff]  }
  0x1a   : > { %v224_v61 = vsel %vm221_vm4, %v222_v51, %v223_v52  ;;  %3426 = vmatprep.mubr.msk.f32.mxu0 %vm249_vm3, %v3935_v46  ;;  %3606 = vmatpush3.bf16.msk.msra.mxu0 %vm3819_vm2, %v3601_v12  ;;  %v228_v62 = vrot.slane %v3946_v53, 1  ;;  %v229_v63 = vrot.slane %v3948_v54, 1  ;;  %v3975_v7 = vunpack.c.h.bf16 %v3015_v50  ;;  %v183_v8 = vld [vmem:[%s3895_s5 + $0x30] ss:$8 sps:$4 sm:$0xff]   ;;  %v184_v14 = vld [vmem:[%s3895_s5 + $0x34] sm:$0x3] }
  0x1b   : > { %3295 = vmatprep.mubr.msk.f32.mxu1 %vm249_vm3, %v224_v61  ;;  %v227_v4 = vsel %vm221_vm4, %v225_v55, %v226_v56  ;;  %v231_v5 = vrot.slane %v3954_v57, 1  ;;  %v232_v6 = vrot.slane %v3956_v58, 1  ;;  %3609 = vmatprep.subr.msk.bf16.mxu0 %vm3819_vm2, %v3899_v26  ;;  %v3983_v10 = vunpack.c.l.bf16 %v179_v59  ;;  %v186_v15 = vld [vmem:[%s3895_s5 + $0x3c] sm:$0x3]  ;;  %v3008_v20 = vld [vmem:[%s3895_s5 + $0x14] sm:$0x3] }
  0x1c   : > { %3296 = vmatmul.mubr.msk.f32.vlgmr.msra.gmra.mrb[0].mxu1 %vm249_vm3, %v227_v4  ;;  %v230_v9 = vsel %vm221_vm4, %v228_v62, %v229_v63  ;;  %v3985_v12 = vunpack.c.l.bf16 %v180_v60  ;;  %v3987_v13 = vunpack.c.h.bf16 %v179_v59  ;;  %v3997_v17 = vunpack.c.l.bf16 %v182_v1  ;;  %v3010_v31 = vld [vmem:[%s3895_s5 + $0x1c] sm:$0x3]  ;;  %v3012_v32 = vld [vmem:[%s3895_s5 + $0x24] sm:$0x3]  ;;  %v3014_v49 = vld [vmem:[%s3895_s5 + $0x2c] sm:$0x3] }
  0x1d   : > { %3558 = vmatpush3.bf16.msk.msra.mxu1 %vm3819_vm2, %v3842_v11  ;;  %3427 = vmatmul.mubr.msk.f32.gmra.mrb[2].mxu0 %vm249_vm3, %v3937_v47  ;;  %v233_v16 = vsel %vm221_vm4, %v231_v5, %v232_v6  ;;  %v3999_v18 = vunpack.c.l.bf16 %v3019_v2  ;;  %v4001_v19 = vunpack.c.h.bf16 %v3019_v2  ;;  %v234_v11 = vrot.slane %v3983_v10, 1  ;;  %v3016_v62 = vld [vmem:[%s3895_s5 + $0x34] sm:$0x3]  ;;  %v3018_v63 = vld [vmem:[%s3895_s5 + $0x3c] sm:$0x3] }
  0x1e   : > { %3298 = vmatprep.mubr.msk.f32.mxu1 %vm249_vm3, %v230_v9  ;;  %3429 = vmatprep.mubr.msk.f32.mxu0 %vm249_vm3, %v3967_v0  ;;  %v235_v21 = vrot.slane %v3985_v12, 1  ;;  %v237_v22 = vrot.slane %v3987_v13, 1  ;;  %v4010_v23 = vunpack.c.l.bf16 %v183_v8  ;;  %v238_v24 = vrot.slane %v3997_v17, 1  ;;  %v3020_v6 = vld [vmem:[%s3895_s5 + $0x44] sm:$0x3] }
  0x1f   : > { %v4013_v28 = vunpack.c.l.bf16 %v184_v14  ;;  %v4015_v29 = vunpack.c.h.bf16 %v183_v8  ;;  %v4017_v30 = vunpack.c.l.bf16 %v186_v15  ;;  %3561 = vmatprep.subr.msk.bf16.mxu1 %vm3819_vm2, %v3897_v25  ;;  %v4027_v43 = vunpack.c.l.bf16 %v3008_v20 }
  0x20   : > { %3299 = vmatmul.mubr.msk.f32.gmra.mrb[2].mxu1 %vm249_vm3, %v233_v16  ;;  %v236_v41 = vsel %vm221_vm4, %v234_v11, %v235_v21  ;;  %v240_v42 = vrot.slane %v4010_v23, 1  ;;  %v1664_v48 = vrot.slane %v3920_v37, 1  ;;  %v239_v50 = vsel %vm221_vm4, %v237_v22, %v238_v24  ;;  %v3022_v22 = vld [vmem:[%s3895_s5 + $0x4c] sm:$0x3] }
  0x21   : > { %3430 = vmatmul.mubr.msk.f32.gmra.mrb[4].mxu0 %vm249_vm3, %v3975_v7  ;;  %3301 = vmatprep.mubr.msk.f32.mxu1 %vm249_vm3, %v236_v41  ;;  %v241_v51 = vrot.slane %v4013_v28, 1  ;;  %v243_v52 = vrot.slane %v4015_v29, 1  ;;  %v244_v55 = vrot.slane %v4017_v30, 1  ;;  %v1665_v56 = vrot.slane %v4027_v43, 1 }
  0x22   : > { %3432 = vmatprep.mubr.msk.f32.mxu0 %vm249_vm3, %v3999_v18  ;;  %v4041_v59 = vunpack.c.l.bf16 %v3010_v31  ;;  %v1667_v60 = vrot.slane %v3922_v38, 1  ;;  %v4044_v61 = vunpack.c.l.bf16 %v3012_v32  ;;  %v1670_v4 = vrot.slane %v3935_v46, 1 }
  0x23   : > { %v242_v1 = vsel %vm221_vm4, %v240_v42, %v241_v51  ;;  %v245_v2 = vsel %vm221_vm4, %v243_v52, %v244_v55  ;;  %v4051_v5 = vunpack.c.l.bf16 %v3014_v49  ;;  %v1666_v8 = vsel %vm221_vm4, %v1664_v48, %v1665_v56 }
  0x24   : > { %3302 = vmatmul.mubr.msk.f32.gmra.mrb[4].mxu1 %vm249_vm3, %v239_v50  ;;  %v1668_v9 = vrot.slane %v4041_v59, 1  ;;  %v1671_v14 = vrot.slane %v4044_v61, 1  ;;  %v1673_v15 = vrot.slane %v3937_v47, 1  ;;  %v4063_v20 = vunpack.c.l.bf16 %v3016_v62 }
  0x25   : > { %3433 = vmatmul.mubr.msk.f32.gmra.mrb[6].mxu0 %vm249_vm3, %v4001_v19  ;;  %3304 = vmatprep.mubr.msk.f32.mxu1 %vm249_vm3, %v242_v1  ;;  %v1674_v16 = vrot.slane %v4051_v5, 1  ;;  %v1676_v11 = vrot.slane %v3967_v0, 1  ;;  %v4066_v21 = vunpack.c.l.bf16 %v3018_v63  ;;  %v1679_v32 = vrot.slane %v3975_v7, 1 }
  0x26   : > { %3439 = vmatprep.mubr.msk.f32.mxu0 %vm249_vm3, %v1666_v8  ;;  %v1669_v24 = vsel %vm221_vm4, %v1667_v60, %v1668_v9  ;;  %v1672_v31 = vsel %vm221_vm4, %v1670_v4, %v1671_v14  ;;  %v4073_v41 = vunpack.c.l.bf16 %v3020_v6  ;;  %v1677_v48 = vrot.slane %v4063_v20, 1 }
  0x27   : > { %v1675_v42 = vsel %vm221_vm4, %v1673_v15, %v1674_v16  ;;  %v1680_v49 = vrot.slane %v4066_v21, 1  ;;  %v1682_v50 = vrot.slane %v3999_v18, 1  ;;  %v4081_v52 = vunpack.c.l.bf16 %v3022_v22 }
  0x28   : > { %3305 = vmatmul.mubr.msk.f32.gmra.mrb[6].mxu1 %vm249_vm3, %v245_v2  ;;  %v1683_v51 = vrot.slane %v4073_v41, 1  ;;  %v1685_v55 = vrot.slane %v4001_v19, 1  ;;  %v1823_v56 = vrot.slane %v3920_v37, 2  ;;  %v1678_v60 = vsel %vm221_vm4, %v1676_v11, %v1677_v48 }
  0x29   : > { %3440 = vmatmul.mubr.msk.f32.vlgmr.msra.gmra.mrb[0].mxu0 %vm249_vm3, %v1669_v24  ;;  %3311 = vmatprep.mubr.msk.f32.mxu1 %vm249_vm3, %v3924_v39  ;;  %v1681_v62 = vsel %vm221_vm4, %v1679_v32, %v1680_v49  ;;  %v1824_v63 = vrot.slane %v4027_v43, 2  ;;  %v1826_v1 = vrot.slane %v3922_v38, 2  ;;  %v1686_v4 = vrot.slane %v4081_v52, 1 }
  0x2a   : > { %3442 = vmatprep.mubr.msk.f32.mxu0 %vm249_vm3, %v1672_v31  ;;  %3612 = vmatpush3.bf16.msk.msra.mxu0 %vm3819_vm2, %v3899_v26  ;;  %v1684_v2 = vsel %vm221_vm4, %v1682_v50, %v1683_v51  ;;  %v1827_v6 = vrot.slane %v4041_v59, 2  ;;  %v500_v8 = vrot.slane %v3924_v39, 2  ;;  %v501_v14 = vrot.slane %v3926_v40, 2 }
  0x2b   : > { %v1825_v9 = vsel %vm499_vm5, %v1823_v56, %v1824_v63  ;;  %3615 = vmatprep.subr.msk.bf16.mxu0 %vm3819_vm2, %v3912_v33  ;;  %v503_v15 = vrot.slane %v3931_v44, 2  ;;  %v504_v26 = vrot.slane %v3933_v45, 2  ;;  %v1687_v16 = vsel %vm221_vm4, %v1685_v55, %v1686_v4 }
  0x2c   : > { %3312 = vmatmul.mubr.msk.f32.vlgmr.msra.gmra.mrb[0].mxu1 %vm249_vm3, %v3931_v44  ;;  %v4111_v11 = vsel %vm499_vm5, %v1826_v1, %v1827_v6  ;;  %v1829_v22 = vrot.slane %v3935_v46, 2  ;;  %v1830_v24 = vrot.slane %v4044_v61, 2  ;;  %v502_v31 = vsel %vm499_vm5, %v500_v8, %v501_v14 }
  0x2d   : > { %3564 = vmatpush3.bf16.msk.msra.mxu1 %vm3819_vm2, %v3897_v25  ;;  %3443 = vmatmul.mubr.msk.f32.gmra.mrb[2].mxu0 %vm249_vm3, %v1675_v42  ;;  %v4121_v32 = vsel %vm499_vm5, %v503_v15, %v504_v26  ;;  %v1832_v48 = vrot.slane %v3937_v47, 2  ;;  %v1833_v49 = vrot.slane %v4051_v5, 2  ;;  %v506_v25 = vrot.slane %v3946_v53, 2 }
  0x2e   : > { %3314 = vmatprep.mubr.msk.f32.mxu1 %vm249_vm3, %v3946_v53  ;;  %3445 = vmatprep.mubr.msk.f32.mxu0 %vm249_vm3, %v1678_v60  ;;  %v1831_v50 = vsel %vm499_vm5, %v1829_v22, %v1830_v24  ;;  %v507_v42 = vrot.slane %v3948_v54, 2  ;;  %v509_v51 = vrot.slane %v3954_v57, 2  ;;  %v510_v56 = vrot.slane %v3956_v58, 2 }
  0x2f   : > { %3567 = vmatprep.subr.msk.bf16.mxu1 %vm3819_vm2, %v3901_v27  ;;  %v4136_v55 = vsel %vm499_vm5, %v1832_v48, %v1833_v49  ;;  %v1835_v63 = vrot.slane %v3967_v0, 2  ;;  %v1836_v60 = vrot.slane %v4063_v20, 2  ;;  %v1838_v4 = vrot.slane %v3975_v7, 2 }
  0x30   : > { %3315 = vmatmul.mubr.msk.f32.gmra.mrb[2].mxu1 %vm249_vm3, %v3954_v57  ;;  %v4144_v1 = vsel %vm499_vm5, %v506_v25, %v507_v42  ;;  %v1839_v6 = vrot.slane %v4066_v21, 2  ;;  %v512_v8 = vrot.slane %v3983_v10, 2  ;;  %v4153_v14 = vsel %vm499_vm5, %v509_v51, %v510_v56 }
  0x31   : > { %3446 = vmatmul.mubr.msk.f32.gmra.mrb[4].mxu0 %vm249_vm3, %v1681_v62  ;;  %3317 = vmatprep.mubr.msk.f32.mxu1 %vm249_vm3, %v3983_v10  ;;  %v4156_v15 = vsel %vm499_vm5, %v1835_v63, %v1836_v60  ;;  %v513_v26 = vrot.slane %v3985_v12, 2  ;;  %v515_v22 = vrot.slane %v3987_v13, 2  ;;  %v516_v62 = vrot.slane %v3997_v17, 2 }
  0x32   : > { %3448 = vmatprep.mubr.msk.f32.mxu0 %vm249_vm3, %v1684_v2  ;;  %v4162_v24 = vsel %vm499_vm5, %v1838_v4, %v1839_v6  ;;  %v1841_v48 = vrot.slane %v3999_v18, 2  ;;  %v1842_v49 = vrot.slane %v4073_v41, 2  ;;  %v1844_v42 = vrot.slane %v4001_v19, 2 }
  0x33   : > { %v4168_v25 = vsel %vm499_vm5, %v512_v8, %v513_v26  ;;  %v1845_v51 = vrot.slane %v4081_v52, 2  ;;  %v518_v56 = vrot.slane %v4010_v23, 2  ;;  %v4176_v2 = vsel %vm499_vm5, %v515_v22, %v516_v62 }
  0x34   : > { %3318 = vmatmul.mubr.msk.f32.gmra.mrb[4].mxu1 %vm249_vm3, %v3987_v13  ;;  %v4179_v63 = vsel %vm499_vm5, %v1841_v48, %v1842_v49  ;;  %v519_v60 = vrot.slane %v4013_v28, 2  ;;  %v521_v4 = vrot.slane %v4015_v29, 2  ;;  %v522_v8 = vrot.slane %v4017_v30, 2 }
  0x35   : > { %3449 = vmatmul.mubr.msk.f32.gmra.mrb[6].mxu0 %vm249_vm3, %v1687_v16  ;;  %3320 = vmatprep.mubr.msk.f32.mxu1 %vm249_vm3, %v4010_v23  ;;  %v4187_v6 = vsel %vm499_vm5, %v1844_v42, %v1845_v51  ;;  %v1982_v26 = vrot.slane %v3920_v37, 3  ;;  %v1983_v22 = vrot.slane %v4027_v43, 3  ;;  %v1985_v48 = vrot.slane %v3922_v38, 3 }
  0x36   : > { %3455 = vmatprep.mubr.msk.f32.mxu0 %vm249_vm3, %v1825_v9  ;;  %v4194_v62 = vsel %vm499_vm5, %v518_v56, %v519_v60  ;;  %v1986_v16 = vrot.slane %v4041_v59, 3  ;;  %v660_v49 = vrot.slane %v3924_v39, 3  ;;  %v4200_v42 = vsel %vm499_vm5, %v521_v4, %v522_v8  ;;  %v3071_v8 = vld [vmem:[%s3895_s5 + $0x28] ss:$8 sps:$4 sm:$0xff]  }
  0x37   : > { %v4203_v51 = vsel %vm659_vm6, %v1982_v26, %v1983_v22  ;;  %v661_v37 = vrot.slane %v3926_v40, 3  ;;  %v663_v43 = vrot.slane %v3931_v44, 3  ;;  %v664_v38 = vrot.slane %v3933_v45, 3  ;;  %v2951_v26 = vld [vmem:[%s3895_s5 + $0x18] ss:$8 sps:$4 sm:$0xff]  }
  0x38   : > { %3321 = vmatmul.mubr.msk.f32.gmra.mrb[6].mxu1 %vm249_vm3, %v4015_v29  ;;  %v4210_v9 = vsel %vm659_vm6, %v1985_v48, %v1986_v16  ;;  %v1988_v39 = vrot.slane %v3935_v46, 3  ;;  %v1989_v59 = vrot.slane %v4044_v61, 3  ;;  %v1991_v44 = vrot.slane %v3937_v47, 3  ;;  %v2955_v16 = vld [vmem:[%s3895_s5 + $0x28] ss:$8 sps:$4 sm:$0xff]  }
  0x39   : > { %3456 = vmatmul.mubr.msk.f32.vlgmr.msra.gmra.mrb[0].mxu0 %vm249_vm3, %v4111_v11  ;;  %3327 = vmatprep.mubr.msk.f32.mxu1 %vm249_vm3, %v502_v31  ;;  %v4219_v40 = vsel %vm659_vm6, %v660_v49, %v661_v37  ;;  %v1992_v56 = vrot.slane %v4051_v5, 3  ;;  %v666_v60 = vrot.slane %v3946_v53, 3  ;;  %v4229_v45 = vsel %vm659_vm6, %v663_v43, %v664_v38  ;;  %v3079_v37 = vld [vmem:[%s3895_s5 + $0x48] ss:$8 sps:$4 sm:$0xff]   ;;  %v2959_v43 = vld [vmem:[%s3895_s5 + $0x38] ss:$8 sps:$4 sm:$0xff]  }
  0x3a   : > { %3458 = vmatprep.mubr.msk.f32.mxu0 %vm249_vm3, %v1831_v50  ;;  %3618 = vmatpush3.bf16.msk.msra.mxu0 %vm3819_vm2, %v3912_v33  ;;  %v4232_v46 = vsel %vm659_vm6, %v1988_v39, %v1989_v59  ;;  %v667_v61 = vrot.slane %v3948_v54, 3  ;;  %v669_v47 = vrot.slane %v3954_v57, 3  ;;  %v670_v33 = vrot.slane %v3956_v58, 3 }
  0x3b   : > { %3621 = vmatprep.subr.msk.bf16.mxu0 %vm3819_vm2, %v3916_v35  ;;  %v4240_v53 = vsel %vm659_vm6, %v1991_v44, %v1992_v56  ;;  %v1994_v5 = vrot.slane %v3967_v0, 3  ;;  %v1995_v11 = vrot.slane %v4063_v20, 3  ;;  %v1997_v57 = vrot.slane %v3975_v7, 3  ;;  %v3068_v44 = vld [vmem:[%s3895_s5 + $0x1c] sm:$0x3] }
  0x3c   : > { %3328 = vmatmul.mubr.msk.f32.vlgmr.msra.gmra.mrb[0].mxu1 %vm249_vm3, %v4121_v32  ;;  %v4248_v54 = vsel %vm659_vm6, %v666_v60, %v667_v61  ;;  %v1998_v31 = vrot.slane %v4066_v21, 3  ;;  %v672_v50 = vrot.slane %v3983_v10, 3  ;;  %v4259_v58 = vsel %vm659_vm6, %v669_v47, %v670_v33  ;;  %v3067_v21 = vld [vmem:[%s3895_s5 + $0x18] ss:$8 sps:$4 sm:$0xff]   ;;  %v3070_v56 = vld [vmem:[%s3895_s5 + $0x24] sm:$0x3] }
  0x3d   : > { %3570 = vmatpush3.bf16.msk.msra.mxu1 %vm3819_vm2, %v3901_v27  ;;  %3459 = vmatmul.mubr.msk.f32.gmra.mrb[2].mxu0 %vm249_vm3, %v4136_v55  ;;  %v4262_v0 = vsel %vm659_vm6, %v1994_v5, %v1995_v11  ;;  %v673_v7 = vrot.slane %v3985_v12, 3  ;;  %v675_v20 = vrot.slane %v3987_v13, 3  ;;  %v676_v10 = vrot.slane %v3997_v17, 3  ;;  %v2947_v55 = vld [vmem:[%s3895_s5 + $0x8] ss:$8 sps:$4 sm:$0xff]   ;;  %v2985_v11 = vld [vmem:[%s4891_s1 + $0x60] sm:$0xff] }
  0x3e   : > { %3330 = vmatprep.mubr.msk.f32.mxu1 %vm249_vm3, %v4144_v1  ;;  %3461 = vmatprep.mubr.msk.f32.mxu0 %vm249_vm3, %v4156_v15  ;;  %v4272_v27 = vsel %vm659_vm6, %v1997_v57, %v1998_v31  ;;  %v2000_v32 = vrot.slane %v3999_v18, 3  ;;  %v2001_v12 = vrot.slane %v4073_v41, 3  ;;  %v2003_v1 = vrot.slane %v4001_v19, 3  ;;  %v3094_v18 = vld [vmem:[%s4891_s1 + $0xd0] sm:$0xff]  ;;  %v3095_v41 = vld [vmem:[%s4891_s1 + $0xd8] sm:$0xf] }
  0x3f   : > { %3573 = vmatprep.subr.msk.bf16.mxu1 %vm3819_vm2, %v3914_v34  ;;  %v4282_v13 = vsel %vm659_vm6, %v672_v50, %v673_v7  ;;  %v2004_v15 = vrot.slane %v4081_v52, 3  ;;  %v678_v17 = vrot.slane %v4010_v23, 3  ;;  %v4296_v4 = vsel %vm659_vm6, %v675_v20, %v676_v10  ;;  %v2948_v5 = vld [vmem:[%s3895_s5 + $0xc] sm:$0x3]  ;;  %v2986_v57 = vld [vmem:[%s4891_s1 + $0x68] sm:$0xf] }
  0x40   : > { %3331 = vmatmul.mubr.msk.f32.gmra.mrb[2].mxu1 %vm249_vm3, %v4153_v14  ;;  %v4299_v19 = vsel %vm659_vm6, %v2000_v32, %v2001_v12  ;;  %v679_v23 = vrot.slane %v4013_v28, 3  ;;  %v681_v52 = vrot.slane %v4015_v29, 3  ;;  %v682_v22 = vrot.slane %v4017_v30, 3  ;;  %v3075_v29 = vld [vmem:[%s3895_s5 + $0x38] ss:$8 sps:$4 sm:$0xff]  }
  0x41   : > { %3462 = vmatmul.mubr.msk.f32.gmra.mrb[4].mxu0 %vm249_vm3, %v4162_v24  ;;  %3333 = vmatprep.mubr.msk.f32.mxu1 %vm249_vm3, %v4168_v25  ;;  %v4310_v14 = vsel %vm659_vm6, %v2003_v1, %v2004_v15  ;;  %v4313_v48 = vunpack.c.l.bf16 %v3067_v21  ;;  %v4315_v28 = vunpack.c.h.bf16 %v3067_v21  ;;  %v4324_v25 = vunpack.c.l.bf16 %v2947_v55  ;;  %v3105_v20 = vld [vmem:[%s4891_s1 + $0xe0] sm:$0xff]  ;;  %v2950_v21 = vld [vmem:[%s3895_s5 + $0x14] sm:$0x3] }
  0x42   : > { %3464 = vmatprep.mubr.msk.f32.mxu0 %vm249_vm3, %v4179_v63  ;;  %v4322_v24 = vsel %vm659_vm6, %v678_v17, %v679_v23  ;;  %v4326_v49 = vpack.c.bf16 %v3095_v41, %v3094_v18  ;;  %v4328_v30 = vunpack.c.h.bf16 %v2947_v55  ;;  %v4333_v38 = vsel %vm659_vm6, %v681_v52, %v682_v22  ;;  %v3072_v55 = vld [vmem:[%s3895_s5 + $0x2c] sm:$0x3] }
  0x43   : > { %v4335_v39 = vunpack.c.l.bf16 %v3071_v8  ;;  %v4337_v59 = vunpack.c.h.bf16 %v3071_v8  ;;  %v4339_v63 = vunpack.c.l.bf16 %v2951_v26  ;;  %v4345_v60 = vunpack.c.h.bf16 %v2951_v26  ;;  %v2952_v26 = vld [vmem:[%s3895_s5 + $0x1c] sm:$0x3] }
  0x44   : > { %3334 = vmatmul.mubr.msk.f32.gmra.mrb[4].mxu1 %vm249_vm3, %v4176_v2  ;;  %v4347_v61 = vunpack.c.l.bf16 %v3075_v29  ;;  %v4349_v47 = vunpack.c.h.bf16 %v3075_v29  ;;  %v4351_v33 = vunpack.c.l.bf16 %v2955_v16  ;;  %v4364_v2 = vunpack.c.h.bf16 %v2955_v16 }
  0x45   : > { %3465 = vmatmul.mubr.msk.f32.gmra.mrb[6].mxu0 %vm249_vm3, %v4187_v6  ;;  %3336 = vmatprep.mubr.msk.f32.mxu1 %vm249_vm3, %v4194_v62  ;;  %v4366_v31 = vunpack.c.l.bf16 %v3079_v37  ;;  %v4368_v50 = vunpack.c.h.bf16 %v3079_v37  ;;  %v4370_v7 = vunpack.c.l.bf16 %v2959_v43  ;;  %v3106_v6 = vld [vmem:[%s4891_s1 + $0xe8] sm:$0xf]  ;;  %v4381_v62 = vunpack.c.h.bf16 %v2959_v43  ;;  %v2954_v37 = vld [vmem:[%s3895_s5 + $0x24] sm:$0x3] }
  0x46   : > { %3471 = vmatprep.mubr.msk.f32.mxu0 %vm249_vm3, %v4203_v51  ;;  %v4383_v10 = vunpack.c.l.bf16 %v3068_v44  ;;  %v2325_v32 = vrot.slane %v4313_v48, 1  ;;  %v4386_v12 = vunpack.c.l.bf16 %v3070_v56  ;;  %v2328_v1 = vrot.slane %v4315_v28, 1  ;;  %v3074_v51 = vld [vmem:[%s3895_s5 + $0x34] sm:$0x3]  ;;  %v3076_v56 = vld [vmem:[%s3895_s5 + $0x3c] sm:$0x3] }
  0x47   : > { %v4390_v15 = vunpack.c.l.bf16 %v2948_v5  ;;  %v1003_v17 = vrot.slane %v4324_v25, 1  ;;  %v4393_v18 = vpack.c.bf16 %v2986_v57, %v2985_v11  ;;  %v4400_v52 = vpack.c.bf16 %v3106_v6, %v3105_v20  ;;  %v3078_v57 = vld [vmem:[%s3895_s5 + $0x44] sm:$0x3] }
  0x48   : > { %3337 = vmatmul.mubr.msk.f32.gmra.mrb[6].mxu1 %vm249_vm3, %v4200_v42  ;;  %v2326_v41 = vrot.slane %v4383_v10, 1  ;;  %v2329_v23 = vrot.slane %v4386_v12, 1  ;;  %v4402_v8 = vunpack.c.l.bf16 %v2950_v21  ;;  %v1006_v42 = vrot.slane %v4328_v30, 1 }
  0x49   : > { %3472 = vmatmul.mubr.msk.f32.vlgmr.msra.gmra.mrb[0].mxu0 %vm249_vm3, %v4210_v9  ;;  %3343 = vmatprep.mubr.msk.f32.mxu1 %vm249_vm3, %v4219_v40  ;;  %v1004_v22 = vrot.slane %v4390_v15, 1  ;;  %v4411_v29 = vunpack.c.l.bf16 %v3072_v55  ;;  %v2331_v16 = vrot.slane %v4335_v39, 1  ;;  %v4427_v44 = vunpack.c.l.bf16 %v3074_v51  ;;  %v2956_v55 = vld [vmem:[%s3895_s5 + $0x2c] sm:$0x3] }
  0x4a   : > { %3474 = vmatprep.mubr.msk.f32.mxu0 %vm249_vm3, %v4232_v46  ;;  %3624 = vmatpush3.bf16.msk.msra.mxu0 %vm3819_vm2, %v3916_v35  ;;  %v4421_v9 = vsel %vm221_vm4, %v2325_v32, %v2326_v41  ;;  %v4424_v40 = vsel %vm221_vm4, %v2328_v1, %v2329_v23  ;;  %v1007_v43 = vrot.slane %v4402_v8, 1  ;;  %v2334_v5 = vrot.slane %v4337_v59, 1  ;;  %v2958_v41 = vld [vmem:[%s3895_s5 + $0x34] sm:$0x3] }
  0x4b   : > { %3627 = vmatprep.subr.msk.bf16.mxu0 %vm3819_vm2, %v4326_v49  ;;  %v4434_v46 = vsel %vm221_vm4, %v1003_v17, %v1004_v22  ;;  %v2332_v35 = vrot.slane %v4411_v29, 1  ;;  %v4438_v11 = vunpack.c.l.bf16 %v2952_v26  ;;  %v2335_v6 = vrot.slane %v4427_v44, 1  ;;  %v3080_v22 = vld [vmem:[%s3895_s5 + $0x4c] sm:$0x3] }
  0x4c   : > { %3344 = vmatmul.mubr.msk.f32.vlgmr.msra.gmra.mrb[0].mxu1 %vm249_vm3, %v4229_v45  ;;  %v4444_v20 = vsel %vm221_vm4, %v1006_v42, %v1007_v43  ;;  %v1009_v21 = vrot.slane %v4339_v63, 1  ;;  %v4448_v32 = vunpack.c.l.bf16 %v2954_v37  ;;  %v1012_v17 = vrot.slane %v4345_v60, 1  ;;  %v3082_v37 = vld [vmem:[%s3895_s5 + $0x54] sm:$0x3] }
  0x4d   : > { %3576 = vmatpush3.bf16.msk.msra.mxu1 %vm3819_vm2, %v3914_v34  ;;  %3475 = vmatmul.mubr.msk.f32.gmra.mrb[2].mxu0 %vm249_vm3, %v4240_v53  ;;  %v4457_v45 = vsel %vm221_vm4, %v2331_v16, %v2332_v35  ;;  %v1010_v1 = vrot.slane %v4438_v11, 1  ;;  %v4461_v51 = vunpack.c.l.bf16 %v3076_v56  ;;  %v4469_v34 = vsel %vm221_vm4, %v2334_v5, %v2335_v6 }
  0x4e   : > { %3346 = vmatprep.mubr.msk.f32.mxu1 %vm249_vm3, %v4248_v54  ;;  %3477 = vmatprep.mubr.msk.f32.mxu0 %vm249_vm3, %v4262_v0  ;;  %v1013_v53 = vrot.slane %v4448_v32, 1  ;;  %v2337_v23 = vrot.slane %v4347_v61, 1  ;;  %v4473_v26 = vunpack.c.l.bf16 %v3078_v57  ;;  %v2340_v42 = vrot.slane %v4349_v47, 1  ;;  %v2960_v57 = vld [vmem:[%s3895_s5 + $0x3c] sm:$0x3] }
  0x4f   : > { %3579 = vmatprep.subr.msk.bf16.mxu1 %vm3819_vm2, %v3918_v36  ;;  %v4480_v54 = vsel %vm221_vm4, %v1009_v21, %v1010_v1  ;;  %v2338_v0 = vrot.slane %v4461_v51, 1  ;;  %v4484_v16 = vunpack.c.l.bf16 %v2956_v55  ;;  %v1015_v35 = vrot.slane %v4351_v33, 1  ;;  %v2962_v1 = vld [vmem:[%s3895_s5 + $0x44] sm:$0x3] }
  0x50   : > { %3347 = vmatmul.mubr.msk.f32.gmra.mrb[2].mxu1 %vm249_vm3, %v4259_v58  ;;  %v4490_v43 = vsel %vm221_vm4, %v1012_v17, %v1013_v53  ;;  %v2341_v56 = vrot.slane %v4473_v26, 1  ;;  %v4494_v5 = vunpack.c.l.bf16 %v2958_v41  ;;  %v1018_v21 = vrot.slane %v4364_v2, 1 }
  0x51   : > { %4896 = vst [vmem:[#allocation2_spill] sm:$0xff] %v4490_v43  ;;  %3478 = vmatmul.mubr.msk.f32.gmra.mrb[4].mxu0 %vm249_vm3, %v4272_v27  ;;  %3349 = vmatprep.mubr.msk.f32.mxu1 %vm249_vm3, %v4282_v13  ;;  %v4502_v6 = vsel %vm221_vm4, %v2337_v23, %v2338_v0  ;;  %v1016_v58 = vrot.slane %v4484_v16, 1  ;;  %v4506_v55 = vunpack.c.l.bf16 %v3080_v22  ;;  %v2343_v13 = vrot.slane %v4366_v31, 1 }
  0x52   : > { %4897 = vst [vmem:[#allocation3_spill] sm:$0xff] %v4502_v6  ;;  %3480 = vmatprep.mubr.msk.f32.mxu0 %vm249_vm3, %v4299_v19  ;;  %v4512_v17 = vsel %vm221_vm4, %v2340_v42, %v2341_v56  ;;  %v1019_v27 = vrot.slane %v4494_v5, 1  ;;  %v4516_v41 = vunpack.c.l.bf16 %v3082_v37  ;;  %v2346_v22 = vrot.slane %v4368_v50, 1 }
  0x53   : > { %4898 = vst [vmem:[#allocation4_spill] sm:$0xff] %v4512_v17  ;;  %v4519_v53 = vsel %vm221_vm4, %v1015_v35, %v1016_v58  ;;  %v2344_v23 = vrot.slane %v4506_v55, 1  ;;  %v4523_v0 = vunpack.c.l.bf16 %v2960_v57  ;;  %v1021_v37 = vrot.slane %v4370_v7, 1  ;;  %v2996_v35 = vld [vmem:[%s4891_s1 + $0x70] sm:$0xff]  ;;  %v2997_v57 = vld [vmem:[%s4891_s1 + $0x78] sm:$0xf] }
  0x54   : > { %4899 = vst [vmem:[#allocation5_spill] sm:$0xff] %v4519_v53  ;;  %3350 = vmatmul.mubr.msk.f32.gmra.mrb[4].mxu1 %vm249_vm3, %v4296_v4  ;;  %v4528_v19 = vsel %vm221_vm4, %v1018_v21, %v1019_v27  ;;  %v2347_v42 = vrot.slane %v4516_v41, 1  ;;  %v4532_v56 = vunpack.c.l.bf16 %v2962_v1  ;;  %v1024_v21 = vrot.slane %v4381_v62, 1  ;;  %v3116_v27 = vld [vmem:[%s4891_s1 + $0xf0] sm:$0xff] }
  0x55   : > { %4900 = vst [vmem:[#allocation6_spill] sm:$0xff] %v4528_v19  ;;  %3481 = vmatmul.mubr.msk.f32.gmra.mrb[6].mxu0 %vm249_vm3, %v4310_v14  ;;  %3352 = vmatprep.mubr.msk.f32.mxu1 %vm249_vm3, %v4322_v24  ;;  %v4545_v4 = vsel %vm221_vm4, %v2343_v13, %v2344_v23  ;;  %v1022_v58 = vrot.slane %v4523_v0, 1  ;;  %v2484_v1 = vrot.slane %v4313_v48, 2  ;;  %v3117_v14 = vld [vmem:[%s4891_s1 + $0xf8] sm:$0xf]  ;;  %v2485_v23 = vrot.slane %v4383_v10, 2 }
  0x56   : > { %4901 = vst [vmem:[#allocation7_spill] sm:$0xff] %v4545_v4  ;;  %3487 = vmatprep.mubr.msk.f32.mxu0 %vm249_vm3, %v4313_v48  ;;  %v4559_v24 = vsel %vm221_vm4, %v2346_v22, %v2347_v42  ;;  %v1025_v13 = vrot.slane %v4532_v56, 1  ;;  %v2487_v19 = vrot.slane %v4315_v28, 2  ;;  %v2488_v53 = vrot.slane %v4386_v12, 2 }
  0x57   : > { %4902 = vst [vmem:[#allocation8_spill] sm:$0xff] %v4559_v24  ;;  %v4565_v4 = vsel %vm221_vm4, %v1021_v37, %v1022_v58  ;;  %v1162_v17 = vrot.slane %v4324_v25, 2  ;;  %v1163_v43 = vrot.slane %v4390_v15, 2  ;;  %v4576_v42 = vsel %vm499_vm5, %v2484_v1, %v2485_v23 }
  0x58   : > { %3353 = vmatmul.mubr.msk.f32.gmra.mrb[6].mxu1 %vm249_vm3, %v4333_v38  ;;  %v4573_v22 = vsel %vm221_vm4, %v1024_v21, %v1025_v13  ;;  %v4578_v24 = vpack.c.bf16 %v2997_v57, %v2996_v35  ;;  %v4580_v6 = vpack.c.bf16 %v3117_v14, %v3116_v27  ;;  %v4587_v37 = vsel %vm499_vm5, %v2487_v19, %v2488_v53 }
  0x59   : > { %3488 = vmatmul.mubr.msk.f32.vlgmr.msra.gmra.mrb[0].mxu0 %vm249_vm3, %v4315_v28  ;;  %3359 = vmatprep.mubr.msk.f32.mxu1 %vm249_vm3, %v4324_v25  ;;  %v4590_v38 = vsel %vm499_vm5, %v1162_v17, %v1163_v43  ;;  %v1165_v58 = vrot.slane %v4328_v30, 2  ;;  %v1166_v21 = vrot.slane %v4402_v8, 2  ;;  %v2490_v35 = vrot.slane %v4335_v39, 2 }
  0x5a   : > { %3490 = vmatprep.mubr.msk.f32.mxu0 %vm249_vm3, %v4335_v39  ;;  %3630 = vmatpush3.bf16.msk.msra.mxu0 %vm3819_vm2, %v4326_v49  ;;  %v2491_v57 = vrot.slane %v4411_v29, 2  ;;  %v2493_v53 = vrot.slane %v4337_v59, 2  ;;  %v2494_v43 = vrot.slane %v4427_v44, 2  ;;  %v1168_v19 = vrot.slane %v4339_v63, 2 }
  0x5b   : > { %3633 = vmatprep.subr.msk.bf16.mxu0 %vm3819_vm2, %v4400_v52  ;;  %v4607_v17 = vsel %vm499_vm5, %v1165_v58, %v1166_v21  ;;  %v1169_v1 = vrot.slane %v4438_v11, 2  ;;  %v1171_v49 = vrot.slane %v4345_v60, 2  ;;  %v1172_v13 = vrot.slane %v4448_v32, 2 }
  0x5c   : > { %4903 = vst [vmem:[#allocation9_spill] sm:$0xff] %v4607_v17  ;;  %3360 = vmatmul.mubr.msk.f32.vlgmr.msra.gmra.mrb[0].mxu1 %vm249_vm3, %v4328_v30  ;;  %v4615_v27 = vsel %vm499_vm5, %v2490_v35, %v2491_v57  ;;  %v4618_v14 = vsel %vm499_vm5, %v2493_v53, %v2494_v43  ;;  %v2496_v23 = vrot.slane %v4347_v61, 2  ;;  %v2497_v21 = vrot.slane %v4461_v51, 2 }
  0x5d   : > { %4904 = vst [vmem:[#allocation10_spill] sm:$0xff] %v4615_v27  ;;  %4905 = vst [vmem:[#allocation11_spill] sm:$0xff] %v4618_v14  ;;  %3582 = vmatpush3.bf16.msk.msra.mxu1 %vm3819_vm2, %v3918_v36  ;;  %3491 = vmatmul.mubr.msk.f32.gmra.mrb[2].mxu0 %vm249_vm3, %v4337_v59  ;;  %v4628_v58 = vsel %vm499_vm5, %v1168_v19, %v1169_v1  ;;  %v2499_v35 = vrot.slane %v4349_v47, 2  ;;  %v2500_v57 = vrot.slane %v4473_v26, 2  ;;  %v1174_v53 = vrot.slane %v4351_v33, 2 }
  0x5e   : > { %4906 = vst [vmem:[#allocation12_spill] sm:$0xff] %v4628_v58  ;;  %3362 = vmatprep.mubr.msk.f32.mxu1 %vm249_vm3, %v4339_v63  ;;  %3493 = vmatprep.mubr.msk.f32.mxu0 %vm249_vm3, %v4347_v61  ;;  %v4638_v36 = vsel %vm499_vm5, %v1171_v49, %v1172_v13  ;;  %v1175_v43 = vrot.slane %v4484_v16, 2  ;;  %v1177_v19 = vrot.slane %v4364_v2, 2  ;;  %v4647_v1 = vsel %vm499_vm5, %v2496_v23, %v2497_v21 }
  0x5f   : > { %4907 = vst [vmem:[#allocation13_spill] sm:$0xff] %v4638_v36  ;;  %3585 = vmatprep.subr.msk.bf16.mxu1 %vm3819_vm2, %v4393_v18  ;;  %4908 = vst [vmem:[#allocation14_spill] sm:$0xff] %v4647_v1  ;;  %v4650_v58 = vsel %vm499_vm5, %v2499_v35, %v2500_v57  ;;  %v1178_v14 = vrot.slane %v4494_v5, 2  ;;  %v2502_v49 = vrot.slane %v4366_v31, 2  ;;  %v2503_v36 = vrot.slane %v4506_v55, 2 }
  0x60   : > { %4909 = vst [vmem:[#allocation15_spill] sm:$0xff] %v4650_v58  ;;  %3363 = vmatmul.mubr.msk.f32.gmra.mrb[2].mxu1 %vm249_vm3, %v4345_v60  ;;  %v4657_v13 = vsel %vm499_vm5, %v1174_v53, %v1175_v43  ;;  %v2505_v17 = vrot.slane %v4368_v50, 2  ;;  %v2506_v23 = vrot.slane %v4516_v41, 2  ;;  %v1180_v35 = vrot.slane %v4370_v7, 2 }
  0x61   : > { %4910 = vst [vmem:[#allocation16_spill] sm:$0xff] %v4657_v13  ;;  %3494 = vmatmul.mubr.msk.f32.gmra.mrb[4].mxu0 %vm249_vm3, %v4349_v47  ;;  %3365 = vmatprep.mubr.msk.f32.mxu1 %vm249_vm3, %v4351_v33  ;;  %v4667_v21 = vsel %vm499_vm5, %v1177_v19, %v1178_v14  ;;  %v1181_v57 = vrot.slane %v4523_v0, 2  ;;  %v1183_v53 = vrot.slane %v4381_v62, 2  ;;  %v4675_v43 = vsel %vm499_vm5, %v2502_v49, %v2503_v36 }
  0x62   : > { %4911 = vst [vmem:[#allocation17_spill] sm:$0xff] %v4667_v21  ;;  %3496 = vmatprep.mubr.msk.f32.mxu0 %vm249_vm3, %v4366_v31  ;;  %v4678_v13 = vsel %vm499_vm5, %v2505_v17, %v2506_v23  ;;  %v1184_v58 = vrot.slane %v4532_v56, 2  ;;  %v2643_v14 = vrot.slane %v4313_v48, 3  ;;  %v2644_v21 = vrot.slane %v4383_v10, 3 }
  0x63   : > { %v4683_v19 = vsel %vm499_vm5, %v1180_v35, %v1181_v57  ;;  %v2646_v1 = vrot.slane %v4315_v28, 3  ;;  %v2647_v27 = vrot.slane %v4386_v12, 3  ;;  %v1321_v17 = vrot.slane %v4324_v25, 3  ;;  %v4916_v57 = vld [vmem:[#allocation7_spill] sm:$0xff] }
  0x64   : > { %3366 = vmatmul.mubr.msk.f32.gmra.mrb[4].mxu1 %vm249_vm3, %v4364_v2  ;;  %v4691_v36 = vsel %vm499_vm5, %v1183_v53, %v1184_v58  ;;  %v1322_v49 = vrot.slane %v4390_v15, 3  ;;  %v1324_v48 = vrot.slane %v4328_v30, 3  ;;  %v4701_v28 = vsel %vm659_vm6, %v2643_v14, %v2644_v21  ;;  %v4918_v53 = vld [vmem:[#allocation8_spill] sm:$0xff]  ;;  %v4919_v14 = vld [vmem:[#allocation10_spill] sm:$0xff] }
  0x65   : > { %3497 = vmatmul.mubr.msk.f32.gmra.mrb[6].mxu0 %vm249_vm3, %v4368_v50  ;;  %3368 = vmatprep.mubr.msk.f32.mxu1 %vm249_vm3, %v4370_v7  ;;  %v4704_v10 = vsel %vm659_vm6, %v2646_v1, %v2647_v27  ;;  %v1325_v12 = vrot.slane %v4402_v8, 3  ;;  %v2649_v25 = vrot.slane %v4335_v39, 3  ;;  %v2650_v15 = vrot.slane %v4411_v29, 3 }
  0x66   : > { %3503 = vmatprep.mubr.msk.f32.mxu0 %vm249_vm3, %v4421_v9  ;;  %v4711_v30 = vsel %vm659_vm6, %v1321_v17, %v1322_v49  ;;  %v2652_v58 = vrot.slane %v4337_v59, 3  ;;  %v2653_v23 = vrot.slane %v4427_v44, 3  ;;  %v1327_v27 = vrot.slane %v4339_v63, 3 }
  0x67   : > { %v4717_v21 = vsel %vm659_vm6, %v1324_v48, %v1325_v12  ;;  %v1328_v8 = vrot.slane %v4438_v11, 3  ;;  %v1330_v39 = vrot.slane %v4345_v60, 3  ;;  %v4725_v9 = vsel %vm659_vm6, %v2649_v25, %v2650_v15 }
  0x68   : > { %3369 = vmatmul.mubr.msk.f32.gmra.mrb[6].mxu1 %vm249_vm3, %v4381_v62  ;;  %v4728_v29 = vsel %vm659_vm6, %v2652_v58, %v2653_v23  ;;  %v1331_v59 = vrot.slane %v4448_v32, 3  ;;  %v2655_v44 = vrot.slane %v4347_v61, 3  ;;  %v2656_v60 = vrot.slane %v4461_v51, 3  ;;  %v4926_v17 = vld [vmem:[#allocation16_spill] sm:$0xff] }
  0x69   : > { %3504 = vmatmul.mubr.msk.f32.vlgmr.msra.gmra.mrb[0].mxu0 %vm249_vm3, %v4424_v40  ;;  %3375 = vmatprep.mubr.msk.f32.mxu1 %vm249_vm3, %v4434_v46  ;;  %v4737_v63 = vsel %vm659_vm6, %v1327_v27, %v1328_v8  ;;  %v2658_v11 = vrot.slane %v4349_v47, 3  ;;  %v2659_v1 = vrot.slane %v4473_v26, 3  ;;  %v1333_v40 = vrot.slane %v4351_v33, 3  ;;  %v4927_v3 = vld [vmem:[#allocation17_spill] sm:$0xff] }
  0x6a   : > { %3506 = vmatprep.mubr.msk.f32.mxu0 %vm249_vm3, %v4457_v45  ;;  %3636 = vmatpush3.bf16.msk.msra.mxu0 %vm3819_vm2, %v4400_v52  ;;  %v1332_v61 = vsel %vm659_vm6, %v1330_v39, %v1331_v59  ;;  %v1334_v46 = vrot.slane %v4484_v16, 3  ;;  %v1336_v32 = vrot.slane %v4364_v2, 3  ;;  %v2657_v47 = vsel %vm659_vm6, %v2655_v44, %v2656_v60 }
  0x6b   : > { %3639 = vmatprep.subr.msk.bf16.mxu0 %vm3819_vm2, %v4580_v6  ;;  %v2660_v45 = vsel %vm659_vm6, %v2658_v11, %v2659_v1  ;;  %v1337_v51 = vrot.slane %v4494_v5, 3  ;;  %v2661_v52 = vrot.slane %v4366_v31, 3  ;;  %v2662_v26 = vrot.slane %v4506_v55, 3 }
  0x6c   : > { %3376 = vmatmul.mubr.msk.f32.vlgmr.msra.gmra.mrb[0].mxu1 %vm249_vm3, %v4444_v20  ;;  %v1335_v33 = vsel %vm659_vm6, %v1333_v40, %v1334_v46  ;;  %v2664_v2 = vrot.slane %v4368_v50, 3  ;;  %v2665_v16 = vrot.slane %v4516_v41, 3  ;;  %v1339_v5 = vrot.slane %v4370_v7, 3  ;;  %v4912_v50 = vld [vmem:[#allocation3_spill] sm:$0xff]  ;;  %v4913_v41 = vld [vmem:[#allocation2_spill] sm:$0xff] }
  0x6d   : > { %3588 = vmatpush3.bf16.msk.msra.mxu1 %vm3819_vm2, %v4393_v18  ;;  %3507 = vmatmul.mubr.msk.f32.gmra.mrb[2].mxu0 %vm249_vm3, %v4469_v34  ;;  %v1338_v31 = vsel %vm659_vm6, %v1336_v32, %v1337_v51  ;;  %v1340_v20 = vrot.slane %v4523_v0, 3  ;;  %v1342_v35 = vrot.slane %v4381_v62, 3  ;;  %v2663_v55 = vsel %vm659_vm6, %v2661_v52, %v2662_v26  ;;  %v4915_v0 = vld [vmem:[#allocation5_spill] sm:$0xff] }
  0x6e   : > { %3378 = vmatprep.mubr.msk.f32.mxu1 %vm249_vm3, %v4480_v54  ;;  %3509 = vmatprep.mubr.msk.f32.mxu0 %vm249_vm3, %v4912_v50  ;;  %v2666_v18 = vsel %vm659_vm6, %v2664_v2, %v2665_v16  ;;  %v1343_v34 = vrot.slane %v4532_v56, 3  ;;  %v4914_v54 = vld [vmem:[#allocation4_spill] sm:$0xff]  ;;  %v4917_v56 = vld [vmem:[#allocation6_spill] sm:$0xff] }
  0x6f   : > { %3591 = vmatprep.subr.msk.bf16.mxu1 %vm3819_vm2, %v4578_v24  ;;  %v1341_v7 = vsel %vm659_vm6, %v1339_v5, %v1340_v20 }
  0x70   : > { %3379 = vmatmul.mubr.msk.f32.gmra.mrb[2].mxu1 %vm249_vm3, %v4913_v41  ;;  %v1344_v62 = vsel %vm659_vm6, %v1342_v35, %v1343_v34 }
  0x71   : > { %3510 = vmatmul.mubr.msk.f32.gmra.mrb[4].mxu0 %vm249_vm3, %v4914_v54  ;;  %3381 = vmatprep.mubr.msk.f32.mxu1 %vm249_vm3, %v4915_v0 }
  0x72   : > { %3512 = vmatprep.mubr.msk.f32.mxu0 %vm249_vm3, %v4916_v57 }
  0x74   : > { %3382 = vmatmul.mubr.msk.f32.gmra.mrb[4].mxu1 %vm249_vm3, %v4917_v56 }
  0x75   : > { %3513 = vmatmul.mubr.msk.f32.gmra.mrb[6].mxu0 %vm249_vm3, %v4918_v53  ;;  %3384 = vmatprep.mubr.msk.f32.mxu1 %vm249_vm3, %v4565_v4  ;;  %v4920_v4 = vld [vmem:[#allocation9_spill] sm:$0xff] }
  0x76   : > { %3519 = vmatprep.mubr.msk.f32.mxu0 %vm249_vm3, %v4576_v42  ;;  %v4922_v42 = vld [vmem:[#allocation12_spill] sm:$0xff] }
  0x78   : > { %3385 = vmatmul.mubr.msk.f32.gmra.mrb[6].mxu1 %vm249_vm3, %v4573_v22  ;;  %v4921_v22 = vld [vmem:[#allocation11_spill] sm:$0xff] }
  0x79   : > { %3520 = vmatmul.mubr.msk.f32.vlgmr.msra.gmra.mrb[0].mxu0 %vm249_vm3, %v4587_v37  ;;  %3391 = vmatprep.mubr.msk.f32.mxu1 %vm249_vm3, %v4590_v38  ;;  %v4923_v37 = vld [vmem:[#allocation14_spill] sm:$0xff]  ;;  %v4924_v38 = vld [vmem:[#allocation13_spill] sm:$0xff] }
  0x7a   : > { %3522 = vmatprep.mubr.msk.f32.mxu0 %vm249_vm3, %v4919_v14  ;;  %3642 = vmatpush3.bf16.msk.msra.mxu0 %vm3819_vm2, %v4580_v6  ;;  %v4925_v6 = vld [vmem:[#allocation15_spill] sm:$0xff] }
  0x7c   : > { %3392 = vmatmul.mubr.msk.f32.vlgmr.msra.gmra.mrb[0].mxu1 %vm249_vm3, %v4920_v4 }
  0x7d   : > { %3594 = vmatpush3.bf16.msk.msra.mxu1 %vm3819_vm2, %v4578_v24  ;;  %3523 = vmatmul.mubr.msk.f32.gmra.mrb[2].mxu0 %vm249_vm3, %v4921_v22 }
  0x7e   : > { %3394 = vmatprep.mubr.msk.f32.mxu1 %vm249_vm3, %v4922_v42  ;;  %3525 = vmatprep.mubr.msk.f32.mxu0 %vm249_vm3, %v4923_v37 }
  0x80   : > { %3395 = vmatmul.mubr.msk.f32.gmra.mrb[2].mxu1 %vm249_vm3, %v4924_v38 }
  0x81   : > { %3526 = vmatmul.mubr.msk.f32.gmra.mrb[4].mxu0 %vm249_vm3, %v4925_v6  ;;  %3397 = vmatprep.mubr.msk.f32.mxu1 %vm249_vm3, %v4926_v17 }
  0x82   : > { %3528 = vmatprep.mubr.msk.f32.mxu0 %vm249_vm3, %v4675_v43 }
  0x84   : > { %3398 = vmatmul.mubr.msk.f32.gmra.mrb[4].mxu1 %vm249_vm3, %v4927_v3 }
  0x85   : > { %3529 = vmatmul.mubr.msk.f32.gmra.mrb[6].mxu0 %vm249_vm3, %v4678_v13  ;;  %3400 = vmatprep.mubr.msk.f32.mxu1 %vm249_vm3, %v4683_v19  ;;  %v3127_v19 = vld [vmem:[%s4892_s2] ss:$0 sm:$0xff] }
  0x86   : > { %3535 = vmatprep.mubr.msk.f32.mxu0 %vm249_vm3, %v4701_v28 }
  0x88   : > { %3401 = vmatmul.mubr.msk.f32.gmra.mrb[6].mxu1 %vm249_vm3, %v4691_v36 }
  0x89   : > { %3536 = vmatmul.mubr.msk.f32.vlgmr.msra.gmra.mrb[0].mxu0 %vm249_vm3, %v4704_v10  ;;  %3407 = vmatprep.mubr.msk.f32.mxu1 %vm249_vm3, %v4711_v30 }
  0x8a   : > { %3538 = vmatprep.mubr.msk.f32.mxu0 %vm249_vm3, %v4725_v9 }
  0x8c   : > { %3408 = vmatmul.mubr.msk.f32.vlgmr.msra.gmra.mrb[0].mxu1 %vm249_vm3, %v4717_v21 }
  0x8d   : > { %3539 = vmatmul.mubr.msk.f32.gmra.mrb[2].mxu0 %vm249_vm3, %v4728_v29  ;;  %3410 = vmatprep.mubr.msk.f32.mxu1 %vm249_vm3, %v4737_v63 }
  0x8e   : > { %3541 = vmatprep.mubr.msk.f32.mxu0 %vm249_vm3, %v2657_v47 }
  0x90   : > { %3411 = vmatmul.mubr.msk.f32.gmra.mrb[2].mxu1 %vm249_vm3, %v1332_v61 }
  0x91   : > { %3542 = vmatmul.mubr.msk.f32.gmra.mrb[4].mxu0 %vm249_vm3, %v2660_v45  ;;  %3413 = vmatprep.mubr.msk.f32.mxu1 %vm249_vm3, %v1335_v33 }
  0x92   : > { %3544 = vmatprep.mubr.msk.f32.mxu0 %vm249_vm3, %v2663_v55 }
  0x94   : > { %3414 = vmatmul.mubr.msk.f32.gmra.mrb[4].mxu1 %vm249_vm3, %v1338_v31 }
  0x95   : > { %3545 = vmatmul.mubr.msk.f32.gmra.mrb[6].mxu0 %vm249_vm3, %v2666_v18  ;;  %3416 = vmatprep.mubr.msk.f32.mxu1 %vm249_vm3, %v1341_v7 }
  0x98   : > { %3417 = vmatmul.mubr.msk.f32.gmra.mrb[6].mxu1 %vm249_vm3, %v1344_v62 }
 0x15c   : > { %v3537_v24 = vpop.f32.mrb[0].mxu0 }
 0x15d   : > { %v2755_v13 = vpop.f32.mrb[1].mxu0 }
 0x15f   : > { %v3409_v43 = vpop.f32.mrb[0].mxu1 }
 0x160   : > { %v3643_v36 = vadd.f32 %v3537_v24, %v3409_v43  ;;  %v1433_v49 = vpop.f32.mrb[1].mxu1  ;;  %v3540_v48 = vpop.f32.mrb[2].mxu0 }
 0x161   : > { %v3644_v28 = vadd.f32 %v2755_v13, %v1433_v49  ;;  %v2765_v10 = vpop.f32.mrb[3].mxu0 }
 0x162   : > { %v2810_v12 = vadd.f32 %v3643_v36, %v3127_v19 }
 0x163   : > { %v2809_v25 = vadd.f32 %v3644_v28, %v3127_v19  ;;  %v3412_v30 = vpop.f32.mrb[2].mxu1 }
 0x164   : > { %v2818_v15 = vmax.f32 %v2810_v12, 0.0  ;;  %v3645_v58 = vadd.f32 %v3540_v48, %v3412_v30  ;;  %v1443_v23 = vpop.f32.mrb[3].mxu1  ;;  %v3543_v21 = vpop.f32.mrb[4].mxu0 }
 0x165   : > { %v2817_v27 = vmax.f32 %v2809_v25, 0.0  ;;  %v3646_v8 = vadd.f32 %v2765_v10, %v1443_v23  ;;  %v2775_v39 = vpop.f32.mrb[5].mxu0 }
 0x166   : > { %v2826_v9 = vpack.c.bf16 %v2818_v15, %v2818_v15  ;;  %v2812_v29 = vadd.f32 %v3645_v58, %v3127_v19 }
 0x167   : > { %v2825_v59 = vpack.c.bf16 %v2817_v27, %v2817_v27  ;;  %v2811_v44 = vadd.f32 %v3646_v8, %v3127_v19  ;;  %v3415_v63 = vpop.f32.mrb[4].mxu1 }
 0x168   : > { %2835 = vst.msk [vmem:[%s4869_s10 + $0x4] sm:$0xf] %vm2833_vm7, %v2826_v9  ;;  %v2820_v60 = vmax.f32 %v2812_v29, 0.0  ;;  %v3647_v11 = vadd.f32 %v3543_v21, %v3415_v63  ;;  %v1453_v1 = vpop.f32.mrb[5].mxu1  ;;  %v3546_v61 = vpop.f32.mrb[6].mxu0 }
 0x169   : > { %2834 = vst.msk [vmem:[%s4869_s10] sm:$0xf] %vm2833_vm7, %v2825_v59  ;;  %v2819_v40 = vmax.f32 %v2811_v44, 0.0  ;;  %v3648_v46 = vadd.f32 %v2775_v39, %v1453_v1  ;;  %v2785_v32 = vpop.f32.mrb[7].mxu0 }
 0x16a   : > { %v2828_v47 = vpack.c.bf16 %v2820_v60, %v2820_v60  ;;  %v2814_v45 = vadd.f32 %v3647_v11, %v3127_v19 }
 0x16b   : > { %v2827_v51 = vpack.c.bf16 %v2819_v40, %v2819_v40  ;;  %v2813_v52 = vadd.f32 %v3648_v46, %v3127_v19  ;;  %v3418_v33 = vpop.f32.mrb[6].mxu1 }
 0x16c   : > { %2837 = vst.msk [vmem:[%s4869_s10 + $0xc] sm:$0xf] %vm2833_vm7, %v2828_v47  ;;  %v2822_v26 = vmax.f32 %v2814_v45, 0.0  ;;  %v3649_v2 = vadd.f32 %v3546_v61, %v3418_v33  ;;  %v1463_v16 = vpop.f32.mrb[7].mxu1 }
 0x16d   : > { %2836 = vst.msk [vmem:[%s4869_s10 + $0x8] sm:$0xf] %vm2833_vm7, %v2827_v51  ;;  %v2821_v31 = vmax.f32 %v2813_v52, 0.0  ;;  %v3650_v5 = vadd.f32 %v2785_v32, %v1463_v16 }
 0x16e   : > { %v2830_v20 = vpack.c.bf16 %v2822_v26, %v2822_v26  ;;  %v2816_v35 = vadd.f32 %v3649_v2, %v3127_v19 }
 0x16f   : > { %v2829_v50 = vpack.c.bf16 %v2821_v31, %v2821_v31  ;;  %v2815_v55 = vadd.f32 %v3650_v5, %v3127_v19 }
 0x170   : > { %2839 = vst.msk [vmem:[%s4869_s10 + $0x14] sm:$0xf] %vm2833_vm7, %v2830_v20  ;;  %v2824_v18 = vmax.f32 %v2816_v35, 0.0 }
 0x171   : > { %2838 = vst.msk [vmem:[%s4869_s10 + $0x10] sm:$0xf] %vm2833_vm7, %v2829_v50  ;;  %v2823_v34 = vmax.f32 %v2815_v55, 0.0 }
 0x172   : > { %v2832_v7 = vpack.c.bf16 %v2824_v18, %v2824_v18 }
 0x173   : > { %v2831_v41 = vpack.c.bf16 %v2823_v34, %v2823_v34 }
 0x174   : > { %2841 = vst.msk [vmem:[%s4869_s10 + $0x1c] sm:$0xf] %vm2833_vm7, %v2832_v7 }
 0x175   : > { %2840 = vst.msk [vmem:[%s4869_s10 + $0x18] sm:$0xf] %vm2833_vm7, %v2831_v41 }
 0x176 PF: > { %s13_s12 = sadd.s32 1, %s3779_s12  }
 0x177   : > { %p10_p4 = scmp.ge.s32.totalorder %s13_s12, 4  }
 0x179   :  { %12 = sbr.rel (!%p10_p4) target bundleno = 1 (0x1), region = 80 }

// kernel: forward.23
= control target key start
LH: loop header
LB: loop body
LE: loop exit
PB: predicated region body
PF: predicated region fallthrough
CT: control target
= control target key end

     0   :  { %vm119_vm0 = vcmask 523264   ;;  %s995_s1 = inlined_call_operand.vmem [shape: bf16[64,128], index: 1, kind: input, shape index: {}]   ;;  %s996_s4 = inlined_call_operand.vmem [shape: bf16[64,128], index: 4, kind: input, shape index: {}]   ;;  %s997_s0 = inlined_call_operand.vmem [shape: bf16[128,64], index: 0, kind: input, shape index: {}]   ;;  %s998_s3 = inlined_call_operand.vmem [shape: bf16[128,64], index: 3, kind: input, shape index: {}]   ;;  %s999_s2 = inlined_call_operand.vmem [shape: f32[1,128], index: 2, kind: input, shape index: {}]   ;;  %s1000_s5 = inlined_call_operand.vmem [shape: f32[1,128], index: 5, kind: input, shape index: {}]   ;;  %s1001_s6 = inlined_call_operand.vmem [shape: bf16[128,128], index: 6, kind: output, shape index: {}]  }
   0x1   :  { %v782_v0 = vld [vmem:[%s995_s1] sm:$0xff]   ;;  %v784_v2 = vld [vmem:[%s995_s1 + $0x8] sm:$0xff]   ;;  %v786_v4 = vld [vmem:[%s995_s1 + $0x10] sm:$0xff]  }
   0x2   :  { %v783_v1 = vld [vmem:[%s996_s4] sm:$0xff]   ;;  %734 = vmatprep.subr.bf16.mxu0 %v782_v0  ;;  %v785_v3 = vld [vmem:[%s996_s4 + $0x8] sm:$0xff]   ;;  %v787_v5 = vld [vmem:[%s996_s4 + $0x10] sm:$0xff]  }
   0x3   :  { %735 = vmatpush3.bf16.msra.mxu0 %v782_v0  ;;  %758 = vmatprep.subr.bf16.mxu1 %v783_v1  ;;  %v788_v6 = vld [vmem:[%s995_s1 + $0x18] sm:$0xff]   ;;  %v790_v7 = vld [vmem:[%s997_s0] sm:$0xff]   ;;  %v791_v10 = vld [vmem:[%s997_s0 + $0x8] sm:$0xff]  }
   0x4   :  { %759 = vmatpush3.bf16.msra.mxu1 %v783_v1  ;;  %736 = vmatprep.subr.bf16.mxu0 %v784_v2  ;;  %v789_v8 = vld [vmem:[%s996_s4 + $0x18] sm:$0xff]   ;;  %v792_v9 = vld [vmem:[%s998_s3] sm:$0xff]   ;;  %v793_v11 = vld [vmem:[%s998_s3 + $0x8] sm:$0xff]  }
   0x5   :  { %760 = vmatprep.subr.bf16.mxu1 %v785_v3  ;;  %742 = vmatprep.mubr.msk.bf16.mxu0 %vm119_vm0, %v790_v7  ;;  %v794_v12 = vld [vmem:[%s997_s0 + $0x10] sm:$0xff]   ;;  %v795_v14 = vld [vmem:[%s997_s0 + $0x18] sm:$0xff]   ;;  %v798_v16 = vld [vmem:[%s997_s0 + $0x20] sm:$0xff]  }
   0x6   :  { %766 = vmatprep.mubr.msk.bf16.mxu1 %vm119_vm0, %v792_v9  ;;  %v796_v13 = vld [vmem:[%s998_s3 + $0x10] sm:$0xff]   ;;  %v797_v15 = vld [vmem:[%s998_s3 + $0x18] sm:$0xff]   ;;  %v800_v17 = vld [vmem:[%s998_s3 + $0x20] sm:$0xff]  }
   0x7   :  { %737 = vmatpush3.bf16.msra.mxu0 %v784_v2  ;;  %v799_v18 = vld [vmem:[%s997_s0 + $0x28] sm:$0xff]   ;;  %v802_v20 = vld [vmem:[%s997_s0 + $0x30] sm:$0xff]   ;;  %v803_v22 = vld [vmem:[%s997_s0 + $0x38] sm:$0xff]  }
   0x8   :  { %761 = vmatpush3.bf16.msra.mxu1 %v785_v3  ;;  %738 = vmatprep.subr.bf16.mxu0 %v786_v4  ;;  %v801_v19 = vld [vmem:[%s998_s3 + $0x28] sm:$0xff]   ;;  %v804_v21 = vld [vmem:[%s998_s3 + $0x30] sm:$0xff]   ;;  %v805_v23 = vld [vmem:[%s998_s3 + $0x38] sm:$0xff]  }
   0x9   :  { %762 = vmatprep.subr.bf16.mxu1 %v787_v5  ;;  %v932_v24 = vld [vmem:[%s999_s2] ss:$0 sm:$0xff] }
   0xa   :  { %v941_v41 = vld [vmem:[%s1000_s5] ss:$0 sm:$0xff] }
   0xb   :  { %739 = vmatpush3.bf16.msra.mxu0 %v786_v4 }
   0xc   :  { %763 = vmatpush3.bf16.msra.mxu1 %v787_v5  ;;  %740 = vmatprep.subr.bf16.mxu0 %v788_v6 }
   0xd   :  { %764 = vmatprep.subr.bf16.mxu1 %v789_v8 }
   0xf   :  { %741 = vmatpush3.bf16.msra.mxu0 %v788_v6 }
  0x10   :  { %765 = vmatpush3.bf16.msra.mxu1 %v789_v8 }
  0x12   :  { %743 = vmatmul.mubr.msk.bf16.vlgmr.msra.gmra.mrb[0].mxu0 %vm119_vm0, %v791_v10 }
  0x13   :  { %767 = vmatmul.mubr.msk.bf16.vlgmr.msra.gmra.mrb[0].mxu1 %vm119_vm0, %v793_v11  ;;  %746 = vmatprep.mubr.msk.bf16.mxu0 %vm119_vm0, %v794_v12 }
  0x14   :  { %770 = vmatprep.mubr.msk.bf16.mxu1 %vm119_vm0, %v796_v13 }
  0x1a   :  { %747 = vmatmul.mubr.msk.bf16.gmra.mrb[4].mxu0 %vm119_vm0, %v795_v14 }
  0x1b   :  { %771 = vmatmul.mubr.msk.bf16.gmra.mrb[4].mxu1 %vm119_vm0, %v797_v15  ;;  %750 = vmatprep.mubr.msk.bf16.mxu0 %vm119_vm0, %v798_v16 }
  0x1c   :  { %774 = vmatprep.mubr.msk.bf16.mxu1 %vm119_vm0, %v800_v17 }
  0x22   :  { %751 = vmatmul.mubr.msk.bf16.gmra.mrb[8].mxu0 %vm119_vm0, %v799_v18 }
  0x23   :  { %775 = vmatmul.mubr.msk.bf16.gmra.mrb[8].mxu1 %vm119_vm0, %v801_v19  ;;  %754 = vmatprep.mubr.msk.bf16.mxu0 %vm119_vm0, %v802_v20 }
  0x24   :  { %778 = vmatprep.mubr.msk.bf16.mxu1 %vm119_vm0, %v804_v21 }
  0x2a   :  { %755 = vmatmul.mubr.msk.bf16.gmra.mrb[12].mxu0 %vm119_vm0, %v803_v22 }
  0x2b   :  { %779 = vmatmul.mubr.msk.bf16.gmra.mrb[12].mxu1 %vm119_vm0, %v805_v23 }
  0xe5   :  { %v744_v25 = vpop.f32.mrb[0].mxu0 }
  0xe6   :  { %v187_v26 = vadd.f32 %v744_v25, %v932_v24  ;;  %v178_v27 = vpop.f32.mrb[1].mxu0  ;;  %v768_v28 = vpop.f32.mrb[0].mxu1 }
  0xe7   :  { %v179_v29 = vadd.f32 %v932_v24, %v178_v27  ;;  %v745_v30 = vpop.f32.mrb[2].mxu0  ;;  %v403_v31 = vpop.f32.mrb[1].mxu1 }
  0xe8   :  { %v243_v32 = vmax.f32 %v187_v26, 0.0  ;;  %v190_v33 = vadd.f32 %v745_v30, %v932_v24  ;;  %v181_v34 = vpop.f32.mrb[3].mxu0  ;;  %v769_v35 = vpop.f32.mrb[2].mxu1 }
  0xe9   :  { %v241_v36 = vmax.f32 %v179_v29, 0.0  ;;  %v182_v37 = vadd.f32 %v932_v24, %v181_v34  ;;  %v406_v38 = vpop.f32.mrb[3].mxu1 }
  0xea   :  { %v468_v39 = vadd.f32 %v768_v28, %v243_v32  ;;  %v244_v40 = vmax.f32 %v190_v33, 0.0 }
  0xeb   :  { %v466_v42 = vadd.f32 %v403_v31, %v241_v36  ;;  %v242_v43 = vmax.f32 %v182_v37, 0.0 }
  0xec   :  { %v469_v44 = vadd.f32 %v769_v35, %v244_v40  ;;  %v491_v47 = vadd.f32 %v941_v41, %v468_v39 }
  0xed   :  { %v467_v45 = vadd.f32 %v406_v38, %v242_v43  ;;  %v748_v46 = vpop.f32.mrb[4].mxu0  ;;  %v489_v52 = vadd.f32 %v941_v41, %v466_v42 }
  0xee   :  { %v492_v48 = vadd.f32 %v941_v41, %v469_v44  ;;  %v203_v49 = vadd.f32 %v748_v46, %v932_v24  ;;  %v194_v50 = vpop.f32.mrb[5].mxu0  ;;  %v772_v51 = vpop.f32.mrb[4].mxu1 }
  0xef   :  { %v490_v53 = vadd.f32 %v941_v41, %v467_v45  ;;  %v195_v54 = vadd.f32 %v932_v24, %v194_v50  ;;  %v749_v55 = vpop.f32.mrb[6].mxu0  ;;  %v419_v56 = vpop.f32.mrb[5].mxu1 }
  0xf0   :  { %v671_v57 = vpack.c.bf16 %v492_v48, %v491_v47  ;;  %v247_v58 = vmax.f32 %v203_v49, 0.0  ;;  %v206_v59 = vadd.f32 %v749_v55, %v932_v24  ;;  %v197_v60 = vpop.f32.mrb[7].mxu0  ;;  %v773_v61 = vpop.f32.mrb[6].mxu1 }
  0xf1   :  { %v666_v62 = vpack.c.bf16 %v490_v53, %v489_v52  ;;  %v245_v63 = vmax.f32 %v195_v54, 0.0  ;;  %v198_v0 = vadd.f32 %v932_v24, %v197_v60  ;;  %v422_v1 = vpop.f32.mrb[7].mxu1 }
  0xf2   :  { %703 = vst [vmem:[%s1001_s6 + $0x8] sm:$0xff] %v671_v57   ;;  %v472_v2 = vadd.f32 %v772_v51, %v247_v58  ;;  %v248_v3 = vmax.f32 %v206_v59, 0.0 }
  0xf3   :  { %667 = vst [vmem:[%s1001_s6] sm:$0xff] %v666_v62   ;;  %v470_v4 = vadd.f32 %v419_v56, %v245_v63  ;;  %v246_v5 = vmax.f32 %v198_v0, 0.0 }
  0xf4   :  { %v473_v6 = vadd.f32 %v773_v61, %v248_v3  ;;  %v495_v9 = vadd.f32 %v941_v41, %v472_v2 }
  0xf5   :  { %v471_v7 = vadd.f32 %v422_v1, %v246_v5  ;;  %v752_v8 = vpop.f32.mrb[8].mxu0  ;;  %v493_v14 = vadd.f32 %v941_v41, %v470_v4 }
  0xf6   :  { %v496_v10 = vadd.f32 %v941_v41, %v473_v6  ;;  %v219_v11 = vadd.f32 %v752_v8, %v932_v24  ;;  %v210_v12 = vpop.f32.mrb[9].mxu0  ;;  %v776_v13 = vpop.f32.mrb[8].mxu1 }
  0xf7   :  { %v494_v15 = vadd.f32 %v941_v41, %v471_v7  ;;  %v211_v16 = vadd.f32 %v932_v24, %v210_v12  ;;  %v753_v17 = vpop.f32.mrb[10].mxu0  ;;  %v435_v18 = vpop.f32.mrb[9].mxu1 }
  0xf8   :  { %v681_v19 = vpack.c.bf16 %v496_v10, %v495_v9  ;;  %v251_v20 = vmax.f32 %v219_v11, 0.0  ;;  %v222_v21 = vadd.f32 %v753_v17, %v932_v24  ;;  %v213_v22 = vpop.f32.mrb[11].mxu0  ;;  %v777_v23 = vpop.f32.mrb[10].mxu1 }
  0xf9   :  { %v676_v25 = vpack.c.bf16 %v494_v15, %v493_v14  ;;  %v249_v26 = vmax.f32 %v211_v16, 0.0  ;;  %v214_v27 = vadd.f32 %v932_v24, %v213_v22  ;;  %v438_v28 = vpop.f32.mrb[11].mxu1 }
  0xfa   :  { %705 = vst [vmem:[%s1001_s6 + $0x18] sm:$0xff] %v681_v19   ;;  %v476_v29 = vadd.f32 %v776_v13, %v251_v20  ;;  %v252_v30 = vmax.f32 %v222_v21, 0.0 }
  0xfb   :  { %704 = vst [vmem:[%s1001_s6 + $0x10] sm:$0xff] %v676_v25   ;;  %v474_v31 = vadd.f32 %v435_v18, %v249_v26  ;;  %v250_v32 = vmax.f32 %v214_v27, 0.0 }
  0xfc   :  { %v477_v33 = vadd.f32 %v777_v23, %v252_v30  ;;  %v499_v36 = vadd.f32 %v941_v41, %v476_v29 }
  0xfd   :  { %v475_v34 = vadd.f32 %v438_v28, %v250_v32  ;;  %v756_v35 = vpop.f32.mrb[12].mxu0  ;;  %v497_v42 = vadd.f32 %v941_v41, %v474_v31 }
  0xfe   :  { %v500_v37 = vadd.f32 %v941_v41, %v477_v33  ;;  %v235_v38 = vadd.f32 %v756_v35, %v932_v24  ;;  %v226_v39 = vpop.f32.mrb[13].mxu0  ;;  %v780_v40 = vpop.f32.mrb[12].mxu1 }
  0xff   :  { %v498_v43 = vadd.f32 %v941_v41, %v475_v34  ;;  %v227_v44 = vadd.f32 %v932_v24, %v226_v39  ;;  %v757_v45 = vpop.f32.mrb[14].mxu0  ;;  %v451_v46 = vpop.f32.mrb[13].mxu1 }
 0x100   :  { %v691_v47 = vpack.c.bf16 %v500_v37, %v499_v36  ;;  %v255_v48 = vmax.f32 %v235_v38, 0.0  ;;  %v238_v49 = vadd.f32 %v757_v45, %v932_v24  ;;  %v229_v50 = vpop.f32.mrb[15].mxu0  ;;  %v781_v51 = vpop.f32.mrb[14].mxu1 }
 0x101   :  { %v686_v52 = vpack.c.bf16 %v498_v43, %v497_v42  ;;  %v253_v53 = vmax.f32 %v227_v44, 0.0  ;;  %v230_v54 = vadd.f32 %v932_v24, %v229_v50  ;;  %v454_v55 = vpop.f32.mrb[15].mxu1 }
 0x102   :  { %707 = vst [vmem:[%s1001_s6 + $0x28] sm:$0xff] %v691_v47   ;;  %v480_v56 = vadd.f32 %v780_v40, %v255_v48  ;;  %v256_v57 = vmax.f32 %v238_v49, 0.0 }
 0x103   :  { %706 = vst [vmem:[%s1001_s6 + $0x20] sm:$0xff] %v686_v52   ;;  %v478_v58 = vadd.f32 %v451_v46, %v253_v53  ;;  %v254_v59 = vmax.f32 %v230_v54, 0.0 }
 0x104   :  { %v481_v60 = vadd.f32 %v781_v51, %v256_v57  ;;  %v503_v62 = vadd.f32 %v941_v41, %v480_v56 }
 0x105   :  { %v479_v61 = vadd.f32 %v454_v55, %v254_v59  ;;  %v501_v24 = vadd.f32 %v941_v41, %v478_v58 }
 0x106   :  { %v504_v63 = vadd.f32 %v941_v41, %v481_v60 }
 0x107   :  { %v502_v0 = vadd.f32 %v941_v41, %v479_v61 }
 0x108   :  { %v701_v1 = vpack.c.bf16 %v504_v63, %v503_v62 }
 0x109   :  { %v696_v2 = vpack.c.bf16 %v502_v0, %v501_v24 }
 0x10a   :  { %709 = vst [vmem:[%s1001_s6 + $0x38] sm:$0xff] %v701_v1  }
 0x10b   :  { %708 = vst [vmem:[%s1001_s6 + $0x30] sm:$0xff] %v696_v2  }

// kernel: forward.22
= control target key start
LH: loop header
LB: loop body
LE: loop exit
PB: predicated region body
PF: predicated region fallthrough
CT: control target
= control target key end

     0   :  { %s2613_s12 = smov 0   ;;  %s3321_s0 = inlined_call_operand.vmem [shape: bf16[2,10,10,64], index: 0, kind: input, shape index: {}]   ;;  %s3322_s1 = inlined_call_operand.vmem [shape: f32[9,64,64], index: 1, kind: input, shape index: {}]   ;;  %s3323_s2 = inlined_call_operand.vmem [shape: f32[1,64], index: 2, kind: input, shape index: {}]   ;;  %s3324_s3 = inlined_call_operand.vmem [shape: bf16[2,8,8,64], index: 3, kind: output, shape index: {}]  }
   0x1 LB: > { %s1784_s13 = sadd.s32 4294967295, %s2591_s12   ;;  %p1788_p0 = scmp.ge.s32.totalorder %s2591_s12, 1  ;;  %s2591_s12 = sphi %s2613_s12, %s13_s12  }
   0x2   : > { %p137_p1 = scmp.lt.s32.totalorder %s2591_s12, 3 }
   0x4   : > { %p138_p2 = pnand %p1788_p0, %p137_p1 }
   0x5   : > { %v1792_v0 = vld [vmem:[%s3322_s1 + $0x40] sm:$0xff] (!%p138_p2)  ;;  %v1793_v1 = vld [vmem:[%s3322_s1 + $0x48] sm:$0xff] (!%p138_p2)  ;;  %p161_p3 = scmp.lt.s32.totalorder (!%p138_p2), %s1784_s13, 1  ;;  %v1794_v5 = vld [vmem:[%s3322_s1 + $0x50] sm:$0xff] (!%p138_p2)  ;;  %vm227_vm0 = vcmask (!%p138_p2), 1046528   ;;  %vm261_vm1 = vcmask (!%p138_p2), 523264  }
   0x6   : > { %141 = sbr.rel (%p138_p2) target bundleno = 320 (0x140), region = 32  ;;  %v1864_v2 = vld [vmem:[%s3322_s1 + $0x100] sm:$0xff] (!%p138_p2)  ;;  %v2360_v3 = vpack.c.bf16 (!%p138_p2), %v1793_v1, %v1792_v0  ;;  %v1865_v4 = vld [vmem:[%s3322_s1 + $0x108] sm:$0xff] (!%p138_p2)  ;;  %v1795_v6 = vld [vmem:[%s3322_s1 + $0x58] sm:$0xff] (!%p138_p2)  ;;  %vm504_vm2 = vcmask (!%p138_p2), 1045504   ;;  %vm1720_vm3 = vcmask (!%p138_p2), 519168  }
   0x7   : > { %v2424_v7 = vpack.c.bf16 (!%p138_p2), %v1865_v4, %v1864_v2  ;;  %v2364_v8 = vpack.c.bf16 (!%p138_p2), %v1795_v6, %v1794_v5  ;;  %v1866_v9 = vld [vmem:[%s3322_s1 + $0x110] sm:$0xff] (!%p138_p2)  ;;  %v1867_v10 = vld [vmem:[%s3322_s1 + $0x118] sm:$0xff] (!%p138_p2)  ;;  %v1796_v11 = vld [vmem:[%s3322_s1 + $0x60] sm:$0xff] (!%p138_p2) }
   0x8   : > { %2361 = vmatprep.subr.bf16.mxu1 (!%p138_p2), %v2360_v3  ;;  %v2428_v12 = vpack.c.bf16 (!%p138_p2), %v1867_v10, %v1866_v9  ;;  %v1797_v13 = vld [vmem:[%s3322_s1 + $0x68] sm:$0xff] (!%p138_p2)  ;;  %v1868_v14 = vld [vmem:[%s3322_s1 + $0x120] sm:$0xff] (!%p138_p2)  ;;  %v1798_v16 = vld [vmem:[%s3322_s1 + $0x70] sm:$0xff] (!%p138_p2) }
   0x9   : > { %v1869_v15 = vld [vmem:[%s3322_s1 + $0x128] sm:$0xff] (!%p138_p2)  ;;  %2425 = vmatprep.subr.bf16.mxu0 (!%p138_p2), %v2424_v7  ;;  %2363 = vmatpush3.bf16.msra.mxu1 (!%p138_p2), %v2360_v3  ;;  %v1799_v17 = vld [vmem:[%s3322_s1 + $0x78] sm:$0xff] (!%p138_p2)  ;;  %v1870_v18 = vld [vmem:[%s3322_s1 + $0x130] sm:$0xff] (!%p138_p2)  ;;  %v2368_v19 = vpack.c.bf16 (!%p138_p2), %v1797_v13, %v1796_v11 }
   0xa   : > { %2427 = vmatpush3.bf16.msra.mxu0 (!%p138_p2), %v2424_v7  ;;  %2365 = vmatprep.subr.bf16.mxu1 (!%p138_p2), %v2364_v8  ;;  %v1871_v20 = vld [vmem:[%s3322_s1 + $0x138] sm:$0xff] (!%p138_p2)  ;;  %v2432_v21 = vpack.c.bf16 (!%p138_p2), %v1869_v15, %v1868_v14  ;;  %v203_v22 = vld [vmem:[%s3322_s1] sm:$0xff] (!%p138_p2)  ;;  %v204_v23 = vld [vmem:[%s3322_s1 + $0x8] sm:$0xff] (!%p138_p2)  ;;  %v2683_v24 = vpack.c.bf16 (!%p138_p2), %v1799_v17, %v1798_v16 }
   0xb   : > { %2429 = vmatprep.subr.bf16.mxu0 (!%p138_p2), %v2428_v12  ;;  %v2685_v25 = vpack.c.bf16 (!%p138_p2), %v1871_v20, %v1870_v18  ;;  %v1880_v29 = vld [vmem:[%s3322_s1 + $0x140] sm:$0xff] (!%p138_p2)  ;;  %v1881_v30 = vld [vmem:[%s3322_s1 + $0x148] sm:$0xff] (!%p138_p2)  ;;  %v2376_v52 = vpack.c.bf16 (!%p138_p2), %v204_v23, %v203_v22  ;;  %v205_v59 = vld [vmem:[%s3322_s1 + $0x10] sm:$0xff] (!%p138_p2) }
   0xc   : > { %v2440_v58 = vpack.c.bf16 (!%p138_p2), %v1881_v30, %v1880_v29  ;;  %v206_v60 = vld [vmem:[%s3322_s1 + $0x18] sm:$0xff] (!%p138_p2)  ;;  %v1882_v2 = vld [vmem:[%s3322_s1 + $0x150] sm:$0xff] (!%p138_p2)  ;;  %v208_v29 = vld [vmem:[%s3322_s1 + $0x28] sm:$0xff] (!%p138_p2) }
   0xd   : > { %s3332_s13 = smov (!%p161_p3, %s1784_s13), 1  ;;  %2367 = vmatpush3.bf16.msra.mxu1 %v2364_v8  ;;  %v1883_v7 = vld [vmem:[%s3322_s1 + $0x158] sm:$0xff]  ;;  %v2782_v13 = vpack.c.bf16 %v206_v60, %v205_v59 }
   0xe   : > { %s2576_s19 = smul.u32 80, %s3332_s13  ;;  %2431 = vmatpush3.bf16.msra.mxu0 %v2428_v12  ;;  %2369 = vmatprep.subr.bf16.mxu1 %v2368_v19  ;;  %v2444_v22 = vpack.c.bf16 %v1883_v7, %v1882_v2  ;;  %s1963_s17 = sshll.u32 %s3332_s13, 5 }
   0xf   : > { %2433 = vmatprep.subr.bf16.mxu0 %v2432_v21  ;;  %s3300_s20 = scalar_lea.vmem %s3324_s3, %s1963_s17 }
  0x10   : > { %s2675_s24 = scalar_lea.vmem %s3321_s0, %s2576_s19 }
  0x11   : > { %v171_v26 = vld [vmem:[%s2675_s24] ss:$8 sps:$4 sm:$0xff]   ;;  %v2689_v27 = vld [vmem:[%s2675_s24 + $0x4] sm:$0x1]  ;;  %v2692_v28 = vld [vmem:[%s2675_s24 + $0xc] sm:$0x1]  ;;  %2371 = vmatpush3.bf16.msra.mxu1 %v2368_v19 }
  0x12   : > { %v2700_v31 = vunpack.c.l.bf16 %v171_v26  ;;  %v188_v32 = vunpack.c.l.bf16 %v2689_v27  ;;  %v2703_v33 = vunpack.c.h.bf16 %v171_v26  ;;  %v685_v34 = vunpack.c.l.bf16 %v2692_v28  ;;  %v173_v35 = vld [vmem:[%s2675_s24 + $0x8] ss:$8 sps:$4 sm:$0xff]   ;;  %v2708_v36 = vld [vmem:[%s2675_s24 + $0xc] sm:$0x1]  ;;  %v2711_v37 = vld [vmem:[%s2675_s24 + $0x14] sm:$0x1]  ;;  %2435 = vmatpush3.bf16.msra.mxu0 %v2432_v21  ;;  %2373 = vmatprep.subr.bf16.mxu1 %v2683_v24 }
  0x13   : > { %v2713_v38 = vunpack.c.l.bf16 %v173_v35  ;;  %v190_v39 = vunpack.c.l.bf16 %v2708_v36  ;;  %v2716_v40 = vunpack.c.h.bf16 %v173_v35  ;;  %v687_v41 = vunpack.c.l.bf16 %v2711_v37  ;;  %v175_v42 = vld [vmem:[%s2675_s24 + $0x10] ss:$8 sps:$4 sm:$0xff]   ;;  %v2721_v43 = vld [vmem:[%s2675_s24 + $0x14] sm:$0x1]  ;;  %v2724_v44 = vld [vmem:[%s2675_s24 + $0x1c] sm:$0x1]  ;;  %2437 = vmatprep.subr.bf16.mxu0 %v2685_v25 }
  0x14   : > { %v228_v45 = vrot.slane %v2700_v31, 1  ;;  %v229_v46 = vrot.slane %v188_v32, 1  ;;  %v854_v47 = vrot.slane %v2703_v33, 1  ;;  %v855_v48 = vrot.slane %v685_v34, 1  ;;  %v177_v49 = vld [vmem:[%s2675_s24 + $0x18] ss:$8 sps:$4 sm:$0xff]  }
  0x15   : > { %v231_v50 = vrot.slane %v2713_v38, 1  ;;  %v232_v51 = vrot.slane %v190_v39, 1  ;;  %v857_v53 = vrot.slane %v2716_v40, 1  ;;  %v2738_v54 = vld [vmem:[%s2675_s24 + $0x1c] sm:$0x1]  ;;  %v858_v57 = vrot.slane %v687_v41, 1  ;;  %2375 = vmatpush3.bf16.msra.mxu1 %v2683_v24 }
  0x16   : > { %v230_v55 = vsel %vm227_vm0, %v228_v45, %v229_v46  ;;  %v856_v56 = vsel %vm227_vm0, %v854_v47, %v855_v48  ;;  %v2752_v62 = vunpack.c.l.bf16 %v175_v42  ;;  %v192_v63 = vunpack.c.l.bf16 %v2721_v43  ;;  %v2758_v1 = vld [vmem:[%s2675_s24 + $0x24] sm:$0x1]  ;;  %v179_v8 = vld [vmem:[%s2675_s24 + $0x20] ss:$8 sps:$4 sm:$0xff]   ;;  %v2785_v14 = vld [vmem:[%s2675_s24 + $0x2c] sm:$0x1]  ;;  %2439 = vmatpush3.bf16.msra.mxu0 %v2685_v25  ;;  %2377 = vmatprep.subr.bf16.mxu1 %v2376_v52 }
  0x17   : > { %v233_v61 = vsel %vm227_vm0, %v231_v50, %v232_v51  ;;  %v2755_v0 = vunpack.c.h.bf16 %v175_v42  ;;  %2124 = vmatprep.mubr.msk.f32.mxu1 %vm261_vm1, %v230_v55  ;;  %v859_v3 = vsel %vm227_vm0, %v857_v53, %v858_v57  ;;  %v689_v4 = vunpack.c.l.bf16 %v2724_v44  ;;  %v2775_v9 = vld [vmem:[%s2675_s24 + $0x24] sm:$0x1]  ;;  %2236 = vmatprep.mubr.msk.f32.mxu0 %vm261_vm1, %v856_v56  ;;  %v181_v19 = vld [vmem:[%s2675_s24 + $0x28] ss:$8 sps:$4 sm:$0xff]   ;;  %v2802_v24 = vld [vmem:[%s2675_s24 + $0x2c] sm:$0x1] }
  0x18   : > { %v2767_v5 = vunpack.c.l.bf16 %v177_v49  ;;  %v194_v6 = vunpack.c.l.bf16 %v2738_v54  ;;  %v234_v10 = vrot.slane %v2752_v62, 1  ;;  %v235_v11 = vrot.slane %v192_v63, 1  ;;  %v207_v26 = vld [vmem:[%s3322_s1 + $0x20] sm:$0xff]  ;;  %2441 = vmatprep.subr.bf16.mxu0 %v2440_v58  ;;  %2125 = vmatmul.mubr.msk.f32.vlgmr.msra.gmra.mrb[0].mxu1 %vm261_vm1, %v233_v61  ;;  %v1885_v57 = vld [vmem:[%s3322_s1 + $0x168] sm:$0xff]  ;;  %v183_v59 = vld [vmem:[%s2675_s24 + $0x30] ss:$8 sps:$4 sm:$0xff]  }
  0x19   : > { %v860_v12 = vrot.slane %v2755_v0, 1  ;;  %v861_v15 = vrot.slane %v689_v4, 1  ;;  %v2793_v18 = vunpack.c.h.bf16 %v177_v49  ;;  %v691_v21 = vunpack.c.l.bf16 %v2758_v1  ;;  %v2822_v49 = vld [vmem:[%s2675_s24 + $0x34] sm:$0x1]  ;;  %2237 = vmatmul.mubr.msk.f32.vlgmr.msra.gmra.mrb[0].mxu0 %vm261_vm1, %v859_v3  ;;  %2379 = vmatpush3.bf16.msra.mxu1 %v2376_v52  ;;  %v1884_v56 = vld [vmem:[%s3322_s1 + $0x160] sm:$0xff]  ;;  %v1819_v28 = vld [vmem:[%s3322_s1 + $0x98] sm:$0xff] }
  0x1a   : > { %v237_v16 = vrot.slane %v2767_v5, 1  ;;  %v238_v17 = vrot.slane %v194_v6, 1  ;;  %v236_v20 = vsel %vm227_vm0, %v234_v10, %v235_v11  ;;  %v2799_v23 = vunpack.c.l.bf16 %v179_v8  ;;  %2443 = vmatpush3.bf16.msra.mxu0 %v2440_v58  ;;  %v2845_v3 = vld [vmem:[%s2675_s24 + $0x34] sm:$0x1]  ;;  %v2848_v7 = vld [vmem:[%s2675_s24 + $0x3c] sm:$0x1]  ;;  %2381 = vmatprep.subr.bf16.mxu1 %v2782_v13 }
  0x1b   : > { %v862_v25 = vsel %vm227_vm0, %v860_v12, %v861_v15  ;;  %v863_v35 = vrot.slane %v2793_v18, 1  ;;  %v196_v42 = vunpack.c.l.bf16 %v2775_v9  ;;  %v864_v45 = vrot.slane %v691_v21, 1  ;;  %2127 = vmatprep.mubr.msk.f32.mxu1 %vm261_vm1, %v236_v20  ;;  %v185_v12 = vld [vmem:[%s2675_s24 + $0x38] ss:$8 sps:$4 sm:$0xff]   ;;  %v2859_v15 = vld [vmem:[%s2675_s24 + $0x3c] sm:$0x1]  ;;  %2445 = vmatprep.subr.bf16.mxu0 %v2444_v22 }
  0x1c   : > { %v239_v30 = vsel %vm227_vm0, %v237_v16, %v238_v17  ;;  %v240_v46 = vrot.slane %v2799_v23, 1  ;;  %v2818_v47 = vunpack.c.h.bf16 %v179_v8  ;;  %v693_v48 = vunpack.c.l.bf16 %v2785_v14  ;;  %2239 = vmatprep.mubr.msk.f32.mxu0 %vm261_vm1, %v862_v25 }
  0x1d   : > { %v241_v50 = vrot.slane %v196_v42, 1  ;;  %v2827_v51 = vunpack.c.l.bf16 %v181_v19  ;;  %v3325_v53 = vunpack.c.l.bf16 %v2802_v24  ;;  %v2384_v55 = vpack.c.bf16 %v208_v29, %v207_v26  ;;  %2128 = vmatmul.mubr.msk.f32.gmra.mrb[2].mxu1 %vm261_vm1, %v239_v30  ;;  %v209_v26 = vld [vmem:[%s3322_s1 + $0x30] sm:$0xff]  ;;  %v210_v29 = vld [vmem:[%s3322_s1 + $0x38] sm:$0xff] }
  0x1e   : > { %v865_v52 = vsel %vm227_vm0, %v863_v35, %v864_v45  ;;  %v866_v60 = vrot.slane %v2818_v47, 1  ;;  %v867_v61 = vrot.slane %v693_v48, 1  ;;  %v2842_v2 = vunpack.c.h.bf16 %v181_v19  ;;  %2383 = vmatpush3.bf16.msra.mxu1 %v2782_v13  ;;  %2447 = vmatpush3.bf16.msra.mxu0 %v2444_v22  ;;  %v1887_v22 = vld [vmem:[%s3322_s1 + $0x178] sm:$0xff] }
  0x1f   : > { %v242_v58 = vsel %vm227_vm0, %v240_v46, %v241_v50  ;;  %v243_v8 = vrot.slane %v2827_v51, 1  ;;  %v244_v10 = vrot.slane %v3325_v53, 1  ;;  %v695_v11 = vunpack.c.l.bf16 %v2822_v49  ;;  %2240 = vmatmul.mubr.msk.f32.gmra.mrb[2].mxu0 %vm261_vm1, %v865_v52  ;;  %v1886_v52 = vld [vmem:[%s3322_s1 + $0x170] sm:$0xff]  ;;  %2385 = vmatprep.subr.bf16.mxu1 %v2384_v55 }
  0x20   : > { %v868_v16 = vsel %vm227_vm0, %v866_v60, %v867_v61  ;;  %v869_v17 = vrot.slane %v2842_v2, 1  ;;  %v2448_v19 = vpack.c.bf16 %v1885_v57, %v1884_v56  ;;  %v2864_v20 = vunpack.c.l.bf16 %v183_v59  ;;  %2130 = vmatprep.mubr.msk.f32.mxu1 %vm261_vm1, %v242_v58  ;;  %v2887_v57 = vld [vmem:[%s2675_s24 + $0x44] sm:$0x1] }
  0x21   : > { %v245_v25 = vsel %vm227_vm0, %v243_v8, %v244_v10  ;;  %v870_v30 = vrot.slane %v695_v11, 1  ;;  %v3327_v35 = vunpack.c.l.bf16 %v2845_v3  ;;  %v2878_v45 = vunpack.c.h.bf16 %v183_v59  ;;  %2242 = vmatprep.mubr.msk.f32.mxu0 %vm261_vm1, %v868_v16 }
  0x22   : > { %v246_v46 = vrot.slane %v2864_v20, 1  ;;  %v697_v50 = vunpack.c.l.bf16 %v2848_v7  ;;  %v2883_v56 = vunpack.c.l.bf16 %v185_v12  ;;  %v3326_v13 = vunpack.c.l.bf16 %v2859_v15  ;;  %2131 = vmatmul.mubr.msk.f32.gmra.mrb[4].mxu1 %vm261_vm1, %v245_v25  ;;  %2449 = vmatprep.subr.bf16.mxu0 %v2448_v19 }
  0x23   : > { %v871_v59 = vsel %vm227_vm0, %v869_v17, %v870_v30  ;;  %v247_v60 = vrot.slane %v3327_v35, 1  ;;  %v872_v61 = vrot.slane %v2878_v45, 1  ;;  %v2388_v58 = vpack.c.bf16 %v210_v29, %v209_v26  ;;  %v1816_v17 = vld [vmem:[%s3322_s1 + $0x80] sm:$0xff]  ;;  %v1817_v26 = vld [vmem:[%s3322_s1 + $0x88] sm:$0xff]  ;;  %2387 = vmatpush3.bf16.msra.mxu1 %v2384_v55  ;;  %2451 = vmatpush3.bf16.msra.mxu0 %v2448_v19 }
  0x24   : > { %v873_v8 = vrot.slane %v697_v50, 1  ;;  %v249_v10 = vrot.slane %v2883_v56, 1  ;;  %v250_v16 = vrot.slane %v3326_v13, 1  ;;  %v2906_v53 = vunpack.c.h.bf16 %v185_v12  ;;  %2243 = vmatmul.mubr.msk.f32.gmra.mrb[4].mxu0 %vm261_vm1, %v871_v59  ;;  %v1912_v12 = vld [vmem:[%s3322_s1 + $0x180] sm:$0xff]  ;;  %v1913_v35 = vld [vmem:[%s3322_s1 + $0x188] sm:$0xff] }
  0x25   : > { %v248_v29 = vsel %vm227_vm0, %v246_v46, %v247_v60  ;;  %v699_v25 = vunpack.c.l.bf16 %v2887_v57  ;;  %v2452_v30 = vpack.c.bf16 %v1887_v22, %v1886_v52  ;;  %v1016_v13 = vrot.slane %v2703_v33, 2  ;;  %2389 = vmatprep.subr.bf16.mxu1 %v2388_v58 }
  0x26   : > { %2133 = vmatprep.mubr.msk.f32.mxu1 %vm261_vm1, %v248_v29  ;;  %v874_v55 = vsel %vm227_vm0, %v872_v61, %v873_v8  ;;  %v251_v46 = vsel %vm227_vm0, %v249_v10, %v250_v16  ;;  %v875_v59 = vrot.slane %v2906_v53, 1  ;;  %v1017_v52 = vrot.slane %v685_v34, 2  ;;  %v1818_v61 = vld [vmem:[%s3322_s1 + $0x90] sm:$0xff] }
  0x27   : > { %v1020_v22 = vrot.slane %v687_v41, 2  ;;  %2245 = vmatprep.mubr.msk.f32.mxu0 %vm261_vm1, %v874_v55  ;;  %v876_v19 = vrot.slane %v699_v25, 1  ;;  %v2392_v60 = vpack.c.bf16 %v1817_v26, %v1816_v17  ;;  %v1019_v29 = vrot.slane %v2716_v40, 2  ;;  %2134 = vmatmul.mubr.msk.f32.gmra.mrb[6].mxu1 %vm261_vm1, %v251_v46  ;;  %v1914_v16 = vld [vmem:[%s3322_s1 + $0x190] sm:$0xff]  ;;  %v1820_v17 = vld [vmem:[%s3322_s1 + $0xa0] sm:$0xff]  ;;  %v1821_v26 = vld [vmem:[%s3322_s1 + $0xa8] sm:$0xff] }
  0x28   : > { %2453 = vmatprep.subr.bf16.mxu0 %v2452_v30  ;;  %v1018_v34 = vsel %vm504_vm2, %v1016_v13, %v1017_v52  ;;  %v2456_v37 = vpack.c.bf16 %v1913_v35, %v1912_v12  ;;  %v1022_v41 = vrot.slane %v2755_v0, 2  ;;  %v1023_v8 = vrot.slane %v689_v4, 2  ;;  %2391 = vmatpush3.bf16.msra.mxu1 %v2388_v58  ;;  %v1915_v13 = vld [vmem:[%s3322_s1 + $0x198] sm:$0xff]  ;;  %v1917_v46 = vld [vmem:[%s3322_s1 + $0x1a8] sm:$0xff] }
  0x29   : > { %v877_v10 = vsel %vm227_vm0, %v875_v59, %v876_v19  ;;  %2152 = vmatprep.mubr.msk.f32.mxu1 %vm261_vm1, %v2700_v31  ;;  %2393 = vmatprep.subr.bf16.mxu1 %v2392_v60  ;;  %v2396_v35 = vpack.c.bf16 %v1819_v28, %v1818_v61  ;;  %v1021_v44 = vsel %vm504_vm2, %v1019_v29, %v1020_v22  ;;  %v1025_v4 = vrot.slane %v2793_v18, 2  ;;  %v1822_v22 = vld [vmem:[%s3322_s1 + $0xb0] sm:$0xff]  ;;  %v1823_v19 = vld [vmem:[%s3322_s1 + $0xb8] sm:$0xff] }
  0x2a   : > { %2246 = vmatmul.mubr.msk.f32.gmra.mrb[6].mxu0 %vm261_vm1, %v877_v10  ;;  %v1026_v58 = vrot.slane %v691_v21, 2  ;;  %v2460_v12 = vpack.c.bf16 %v1915_v13, %v1914_v16  ;;  %v1028_v55 = vrot.slane %v2818_v47, 2  ;;  %v1029_v1 = vrot.slane %v693_v48, 2  ;;  %v1916_v21 = vld [vmem:[%s3322_s1 + $0x1a0] sm:$0xff]  ;;  %v1919_v28 = vld [vmem:[%s3322_s1 + $0x1b8] sm:$0xff] }
  0x2b   : > { %2455 = vmatpush3.bf16.msra.mxu0 %v2452_v30  ;;  %2264 = vmatprep.mubr.msk.f32.mxu0 %vm261_vm1, %v1018_v34  ;;  %v1024_v30 = vsel %vm504_vm2, %v1022_v41, %v1023_v8  ;;  %v2400_v59 = vpack.c.bf16 %v1821_v26, %v1820_v17  ;;  %v1031_v48 = vrot.slane %v2842_v2, 2  ;;  %v1032_v52 = vrot.slane %v695_v11, 2  ;;  %v1918_v11 = vld [vmem:[%s3322_s1 + $0x1b0] sm:$0xff]  ;;  %v1848_v10 = vld [vmem:[%s3322_s1 + $0xc0] sm:$0xff]  ;;  %v1851_v26 = vld [vmem:[%s3322_s1 + $0xd8] sm:$0xff] }
  0x2c   : > { %2153 = vmatmul.mubr.msk.f32.vlgmr.msra.gmra.mrb[0].mxu1 %vm261_vm1, %v2713_v38  ;;  %2457 = vmatprep.subr.bf16.mxu0 %v2456_v37  ;;  %v1027_v14 = vsel %vm504_vm2, %v1025_v4, %v1026_v58  ;;  %v2464_v29 = vpack.c.bf16 %v1917_v46, %v1916_v21  ;;  %v1034_v61 = vrot.slane %v2878_v45, 2  ;;  %v1035_v49 = vrot.slane %v697_v50, 2  ;;  %v1896_v16 = vld [vmem:[%s2675_s24 + $0x10] ss:$8 sps:$4 sm:$0xff]   ;;  %v1928_v13 = vld [vmem:[%s3322_s1 + $0x1c0] sm:$0xff] }
  0x2d   : > { %2395 = vmatpush3.bf16.msra.mxu1 %v2392_v60  ;;  %2155 = vmatprep.mubr.msk.f32.mxu1 %vm261_vm1, %v2752_v62  ;;  %v1030_v60 = vsel %vm504_vm2, %v1028_v55, %v1029_v1  ;;  %v2404_v34 = vpack.c.bf16 %v1823_v19, %v1822_v22  ;;  %v505_v7 = vrot.slane %v2700_v31, 2  ;;  %v506_v50 = vrot.slane %v188_v32, 2  ;;  %v1849_v31 = vld [vmem:[%s3322_s1 + $0xc8] sm:$0xff]  ;;  %v1850_v17 = vld [vmem:[%s3322_s1 + $0xd0] sm:$0xff]  ;;  %v1931_v1 = vld [vmem:[%s3322_s1 + $0x1d8] sm:$0xff] }
  0x2e   : > { %2265 = vmatmul.mubr.msk.f32.vlgmr.msra.gmra.mrb[0].mxu0 %vm261_vm1, %v1021_v44  ;;  %2397 = vmatprep.subr.bf16.mxu1 %v2396_v35  ;;  %v1037_v41 = vrot.slane %v2906_v53, 2  ;;  %v1038_v8 = vrot.slane %v699_v25, 2  ;;  %v1036_v27 = vsel %vm504_vm2, %v1034_v61, %v1035_v49  ;;  %v2468_v32 = vpack.c.bf16 %v1919_v28, %v1918_v11  ;;  %v1930_v55 = vld [vmem:[%s3322_s1 + $0x1d0] sm:$0xff]  ;;  %v1933_v61 = vld [vmem:[%s3322_s1 + $0x1e8] sm:$0xff] }
  0x2f   : > { %2459 = vmatpush3.bf16.msra.mxu0 %v2456_v37  ;;  %2267 = vmatprep.mubr.msk.f32.mxu0 %vm261_vm1, %v1024_v30  ;;  %v1033_v37 = vsel %vm504_vm2, %v1031_v48, %v1032_v52  ;;  %v509_v57 = vrot.slane %v190_v39, 2  ;;  %v508_v25 = vrot.slane %v2713_v38, 2  ;;  %v507_v36 = vsel %vm504_vm2, %v505_v7, %v506_v50  ;;  %v1904_v19 = vld [vmem:[%s2675_s24 + $0x30] ss:$8 sps:$4 sm:$0xff]   ;;  %v3110_v50 = vld [vmem:[%s2675_s24 + $0x4c] sm:$0x1] }
  0x30   : > { %2156 = vmatmul.mubr.msk.f32.gmra.mrb[2].mxu1 %vm261_vm1, %v2767_v5  ;;  %2461 = vmatprep.subr.bf16.mxu0 %v2460_v12  ;;  %v2408_v39 = vpack.c.bf16 %v1849_v31, %v1848_v10  ;;  %v511_v44 = vrot.slane %v2752_v62, 2  ;;  %v512_v38 = vrot.slane %v192_v63, 2  ;;  %v1039_v4 = vsel %vm504_vm2, %v1037_v41, %v1038_v8  ;;  %v1900_v62 = vld [vmem:[%s2675_s24 + $0x20] ss:$8 sps:$4 sm:$0xff]  }
  0x31   : > { %2399 = vmatpush3.bf16.msra.mxu1 %v2396_v35  ;;  %2158 = vmatprep.mubr.msk.f32.mxu1 %vm261_vm1, %v2799_v23  ;;  %v1929_v35 = vld [vmem:[%s3322_s1 + $0x1c8] sm:$0xff]  ;;  %v3045_v58 = vunpack.c.l.bf16 %v1896_v16  ;;  %v514_v63 = vrot.slane %v2767_v5, 2  ;;  %v515_v30 = vrot.slane %v194_v6, 2  ;;  %v517_v5 = vrot.slane %v2799_v23, 2 }
  0x32   : > { %2268 = vmatmul.mubr.msk.f32.gmra.mrb[2].mxu0 %vm261_vm1, %v1027_v14  ;;  %2401 = vmatprep.subr.bf16.mxu1 %v2400_v59  ;;  %v2472_v43 = vpack.c.bf16 %v1929_v35, %v1928_v13  ;;  %v518_v54 = vrot.slane %v196_v42, 2  ;;  %v3071_v6 = vunpack.c.h.bf16 %v1896_v16  ;;  %v513_v21 = vsel %vm504_vm2, %v511_v44, %v512_v38  ;;  %v1853_v23 = vld [vmem:[%s3322_s1 + $0xe8] sm:$0xff]  ;;  %v3086_v42 = vld [vmem:[%s2675_s24 + $0x44] sm:$0x1]  ;;  %v1934_v16 = vld [vmem:[%s3322_s1 + $0x1f0] sm:$0xff] }
  0x33   : > { %2463 = vmatpush3.bf16.msra.mxu0 %v2460_v12  ;;  %2270 = vmatprep.mubr.msk.f32.mxu0 %vm261_vm1, %v1030_v60  ;;  %v510_v12 = vsel %vm504_vm2, %v508_v25, %v509_v57  ;;  %v2412_v46 = vpack.c.bf16 %v1851_v26, %v1850_v17  ;;  %v1908_v14 = vld [vmem:[%s2675_s24 + $0x40] ss:$8 sps:$4 sm:$0xff]   ;;  %v3083_v9 = vunpack.c.l.bf16 %v1900_v62  ;;  %v516_v48 = vsel %vm504_vm2, %v514_v63, %v515_v30  ;;  %v1935_v57 = vld [vmem:[%s3322_s1 + $0x1f8] sm:$0xff] }
  0x34   : > { %2159 = vmatmul.mubr.msk.f32.gmra.mrb[4].mxu1 %vm261_vm1, %v2827_v51  ;;  %2465 = vmatprep.subr.bf16.mxu0 %v2464_v29  ;;  %v3090_v52 = vunpack.c.h.bf16 %v1900_v62  ;;  %v2476_v22 = vpack.c.bf16 %v1931_v1, %v1930_v55  ;;  %v520_v60 = vrot.slane %v2827_v51, 2  ;;  %v519_v49 = vsel %vm504_vm2, %v517_v5, %v518_v54  ;;  %v3107_v51 = vld [vmem:[%s2675_s24 + $0x14] sm:$0x1]  ;;  %v3140_v13 = vld [vmem:[%s2675_s24 + $0x1c] sm:$0x1]  ;;  %v1944_v55 = vld [vmem:[%s3322_s1 + $0x200] sm:$0xff] }
  0x35   : > { %2403 = vmatpush3.bf16.msra.mxu1 %v2400_v59  ;;  %2161 = vmatprep.mubr.msk.f32.mxu1 %vm261_vm1, %v2864_v20  ;;  %v1852_v59 = vld [vmem:[%s3322_s1 + $0xe0] sm:$0xff]  ;;  %v3328_v11 = vunpack.c.l.bf16 %v2802_v24  ;;  %v3104_v7 = vunpack.c.l.bf16 %v1908_v14  ;;  %v3329_v41 = vunpack.c.l.bf16 %v2845_v3  ;;  %v3117_v10 = vunpack.c.h.bf16 %v1908_v14  ;;  %v1855_v3 = vld [vmem:[%s3322_s1 + $0xf8] sm:$0xff]  ;;  %v1945_v1 = vld [vmem:[%s3322_s1 + $0x208] sm:$0xff] }
  0x36   : > { %2271 = vmatmul.mubr.msk.f32.gmra.mrb[4].mxu0 %vm261_vm1, %v1033_v37  ;;  %2405 = vmatprep.subr.bf16.mxu1 %v2404_v34  ;;  %v523_v37 = vrot.slane %v2864_v20, 2  ;;  %v1208_v24 = vunpack.c.l.bf16 %v3086_v42  ;;  %v3122_v31 = vunpack.c.l.bf16 %v1904_v19  ;;  %v1196_v25 = vunpack.c.l.bf16 %v3107_v51  ;;  %v1905_v14 = vld [vmem:[%s2675_s24 + $0x34] sm:$0x1] }
  0x37   : > { %2467 = vmatpush3.bf16.msra.mxu0 %v2464_v29  ;;  %2273 = vmatprep.mubr.msk.f32.mxu0 %vm261_vm1, %v1036_v27  ;;  %v1932_v29 = vld [vmem:[%s3322_s1 + $0x1e0] sm:$0xff]  ;;  %v521_v28 = vrot.slane %v3328_v11, 2  ;;  %v524_v8 = vrot.slane %v3329_v41, 2  ;;  %v1383_v20 = vrot.slane %v3104_v7, 1  ;;  %v3148_v38 = vunpack.c.h.bf16 %v1904_v19 }
  0x38   : > { %2162 = vmatmul.mubr.msk.f32.gmra.mrb[6].mxu1 %vm261_vm1, %v2883_v56  ;;  %2469 = vmatprep.subr.bf16.mxu0 %v2468_v32  ;;  %v2480_v27 = vpack.c.bf16 %v1933_v61, %v1932_v29  ;;  %v1384_v35 = vrot.slane %v1208_v24, 1  ;;  %v3330_v17 = vunpack.c.l.bf16 %v2859_v15  ;;  %v2484_v15 = vpack.c.bf16 %v1935_v57, %v1934_v16  ;;  %v1946_v29 = vld [vmem:[%s3322_s1 + $0x210] sm:$0xff]  ;;  %v1947_v61 = vld [vmem:[%s3322_s1 + $0x218] sm:$0xff] }
  0x39   : > { %2407 = vmatpush3.bf16.msra.mxu1 %v2404_v34  ;;  %2180 = vmatprep.mubr.msk.f32.mxu1 %vm261_vm1, %v507_v36  ;;  %v2416_v34 = vpack.c.bf16 %v1853_v23, %v1852_v59  ;;  %v1210_v36 = vunpack.c.l.bf16 %v3110_v50  ;;  %v522_v44 = vsel %vm504_vm2, %v520_v60, %v521_v28  ;;  %v525_v62 = vsel %vm504_vm2, %v523_v37, %v524_v8  ;;  %v1907_v37 = vld [vmem:[%s2675_s24 + $0x3c] sm:$0x1] }
  0x3a   : > { %2274 = vmatmul.mubr.msk.f32.gmra.mrb[6].mxu0 %vm261_vm1, %v1039_v4  ;;  %2409 = vmatprep.subr.bf16.mxu1 %v2408_v39  ;;  %v526_v4 = vrot.slane %v2883_v56, 2  ;;  %v527_v26 = vrot.slane %v3330_v17, 2  ;;  %v3160_v30 = vsel %vm227_vm0, %v1383_v20, %v1384_v35  ;;  %v1198_v56 = vunpack.c.l.bf16 %v3140_v13  ;;  %v1949_v20 = vld [vmem:[%s3322_s1 + $0x228] sm:$0xff]  ;;  %v1950_v17 = vld [vmem:[%s3322_s1 + $0x230] sm:$0xff] }
  0x3b   : > { %2471 = vmatpush3.bf16.msra.mxu0 %v2468_v32  ;;  %2292 = vmatprep.mubr.msk.f32.mxu0 %vm261_vm1, %v3045_v58  ;;  %v1854_v32 = vld [vmem:[%s3322_s1 + $0xf0] sm:$0xff]  ;;  %v1365_v5 = vrot.slane %v3045_v58, 1  ;;  %v1366_v54 = vrot.slane %v1196_v25, 1  ;;  %v1371_v11 = vrot.slane %v3083_v9, 1  ;;  %v2492_v41 = vpack.c.bf16 %v1947_v61, %v1946_v29 }
  0x3c   : > { %2181 = vmatmul.mubr.msk.f32.vlgmr.msra.gmra.mrb[0].mxu1 %vm261_vm1, %v510_v12  ;;  %2473 = vmatprep.subr.bf16.mxu0 %v2472_v43  ;;  %v2420_v63 = vpack.c.bf16 %v1855_v3, %v1854_v32  ;;  %v1387_v12 = vrot.slane %v1210_v36, 1  ;;  %v528_v23 = vsel %vm504_vm2, %v526_v4, %v527_v26  ;;  %v1369_v19 = vrot.slane %v1198_v56, 1 }
  0x3d   : > { %2411 = vmatpush3.bf16.msra.mxu1 %v2408_v39  ;;  %2183 = vmatprep.mubr.msk.f32.mxu1 %vm261_vm1, %v513_v21  ;;  %v1386_v39 = vrot.slane %v3117_v10, 1  ;;  %v1206_v3 = vunpack.c.l.bf16 %v1907_v37  ;;  %v1377_v57 = vrot.slane %v3122_v31, 1  ;;  %v1530_v51 = vrot.slane %v3071_v6, 2 }
  0x3e   : > { %2293 = vmatmul.mubr.msk.f32.vlgmr.msra.gmra.mrb[0].mxu0 %vm261_vm1, %v3071_v6  ;;  %2413 = vmatprep.subr.bf16.mxu1 %v2412_v46  ;;  %v1549_v13 = vrot.slane %v1210_v36, 2 }
  0x3f   : > { %2475 = vmatpush3.bf16.msra.mxu0 %v2472_v43  ;;  %2295 = vmatprep.mubr.msk.f32.mxu0 %vm261_vm1, %v3083_v9  ;;  %v3154_v43 = vld [vmem:[%s2675_s24 + $0x24] sm:$0x1]  ;;  %v3182_v59 = vsel %vm227_vm0, %v1386_v39, %v1387_v12  ;;  %v1381_v4 = vrot.slane %v1206_v3, 1 }
  0x40   : > { %2184 = vmatmul.mubr.msk.f32.gmra.mrb[2].mxu1 %vm261_vm1, %v516_v48  ;;  %2477 = vmatprep.subr.bf16.mxu0 %v2476_v22  ;;  %v1200_v21 = vunpack.c.l.bf16 %v3154_v43  ;;  %v2488_v48 = vpack.c.bf16 %v1945_v1, %v1944_v55  ;;  %v1542_v55 = vrot.slane %v3148_v38, 2  ;;  %v1543_v1 = vrot.slane %v1206_v3, 2 }
  0x41   : > { %2415 = vmatpush3.bf16.msra.mxu1 %v2412_v46  ;;  %2186 = vmatprep.mubr.msk.f32.mxu1 %vm261_vm1, %v519_v49  ;;  %v3179_v46 = vld [vmem:[%s2675_s24 + $0x2c] sm:$0x1]  ;;  %v1367_v49 = vsel %vm227_vm0, %v1365_v5, %v1366_v54 }
  0x42   : > { %2296 = vmatmul.mubr.msk.f32.gmra.mrb[2].mxu0 %vm261_vm1, %v3090_v52  ;;  %2417 = vmatprep.subr.bf16.mxu1 %v2416_v34  ;;  %v1202_v60 = vunpack.c.l.bf16 %v3179_v46  ;;  %v1372_v28 = vrot.slane %v1200_v21, 1  ;;  %v1534_v42 = vrot.slane %v1200_v21, 2 }
  0x43   : > { %2479 = vmatpush3.bf16.msra.mxu0 %v2476_v22  ;;  %2298 = vmatprep.mubr.msk.f32.mxu0 %vm261_vm1, %v3122_v31  ;;  %v1368_v22 = vrot.slane %v3071_v6, 1  ;;  %v1548_v6 = vrot.slane %v3117_v10, 2 }
  0x44   : > { %2187 = vmatmul.mubr.msk.f32.gmra.mrb[4].mxu1 %vm261_vm1, %v522_v44  ;;  %2481 = vmatprep.subr.bf16.mxu0 %v2480_v27  ;;  %v1375_v32 = vrot.slane %v1202_v60, 1  ;;  %v1373_v16 = vsel %vm227_vm0, %v1371_v11, %v1372_v28  ;;  %v1537_v43 = vrot.slane %v1202_v60, 2 }
  0x45   : > { %2419 = vmatpush3.bf16.msra.mxu1 %v2416_v34  ;;  %2189 = vmatprep.mubr.msk.f32.mxu1 %vm261_vm1, %v525_v62  ;;  %v1204_v34 = vunpack.c.l.bf16 %v1905_v14  ;;  %v1370_v8 = vsel %vm227_vm0, %v1368_v22, %v1369_v19 }
  0x46   : > { %2299 = vmatmul.mubr.msk.f32.gmra.mrb[4].mxu0 %vm261_vm1, %v3148_v38  ;;  %2421 = vmatprep.subr.bf16.mxu1 %v2420_v63 }
  0x47   : > { %2483 = vmatpush3.bf16.msra.mxu0 %v2480_v27  ;;  %2301 = vmatprep.mubr.msk.f32.mxu0 %vm261_vm1, %v3104_v7  ;;  %v1374_v27 = vrot.slane %v3090_v52, 1  ;;  %v1378_v35 = vrot.slane %v1204_v34, 1  ;;  %v1540_v12 = vrot.slane %v1204_v34, 2 }
  0x48   : > { %2190 = vmatmul.mubr.msk.f32.gmra.mrb[6].mxu1 %vm261_vm1, %v528_v23  ;;  %2485 = vmatprep.subr.bf16.mxu0 %v2484_v15 }
  0x49   : > { %2423 = vmatpush3.bf16.msra.mxu1 %v2420_v63  ;;  %2208 = vmatprep.mubr.msk.f32.mxu1 %vm261_vm1, %v2703_v33  ;;  %v1948_v33 = vld [vmem:[%s3322_s1 + $0x220] sm:$0xff]  ;;  %v1376_v44 = vsel %vm227_vm0, %v1374_v27, %v1375_v32  ;;  %v1379_v26 = vsel %vm227_vm0, %v1377_v57, %v1378_v35  ;;  %v1539_v63 = vrot.slane %v3122_v31, 2 }
  0x4a   : > { %2302 = vmatmul.mubr.msk.f32.gmra.mrb[6].mxu0 %vm261_vm1, %v3117_v10  ;;  %2504 = vmatprep.subr.bf16.mxu1 %v2488_v48  ;;  %v2496_v39 = vpack.c.bf16 %v1949_v20, %v1948_v33  ;;  %v1550_v10 = vsel %vm504_vm2, %v1548_v6, %v1549_v13 }
  0x4b   : > { %2487 = vmatpush3.bf16.msra.mxu0 %v2484_v15  ;;  %2320 = vmatprep.mubr.msk.f32.mxu0 %vm261_vm1, %v1367_v49  ;;  %v1541_v31 = vsel %vm504_vm2, %v1539_v63, %v1540_v12  ;;  %v1960_v49 = vld [vmem:[%s3323_s2] ss:$0 sm:$0xff] }
  0x4c   : > { %2209 = vmatmul.mubr.msk.f32.vlgmr.msra.gmra.mrb[0].mxu1 %vm261_vm1, %v2716_v40  ;;  %2489 = vmatprep.subr.bf16.mxu0 %v2488_v48  ;;  %v1380_v40 = vrot.slane %v3148_v38, 1  ;;  %v1536_v38 = vrot.slane %v3090_v52, 2 }
  0x4d   : > { %2508 = vmatpush3.bf16.msra.mxu1 %v2488_v48  ;;  %2211 = vmatprep.mubr.msk.f32.mxu1 %vm261_vm1, %v2755_v0  ;;  %v1951_v0 = vld [vmem:[%s3322_s1 + $0x238] sm:$0xff] }
  0x4e   : > { %2321 = vmatmul.mubr.msk.f32.vlgmr.msra.gmra.mrb[0].mxu0 %vm261_vm1, %v1370_v8  ;;  %2505 = vmatprep.subr.bf16.mxu1 %v2492_v41  ;;  %v2500_v62 = vpack.c.bf16 %v1951_v0, %v1950_v17  ;;  %v1382_v15 = vsel %vm227_vm0, %v1380_v40, %v1381_v4  ;;  %v1538_v36 = vsel %vm504_vm2, %v1536_v38, %v1537_v43 }
  0x4f   : > { %2491 = vmatpush3.bf16.msra.mxu0 %v2488_v48  ;;  %2323 = vmatprep.mubr.msk.f32.mxu0 %vm261_vm1, %v1373_v16 }
  0x50   : > { %2212 = vmatmul.mubr.msk.f32.gmra.mrb[2].mxu1 %vm261_vm1, %v2793_v18  ;;  %2493 = vmatprep.subr.bf16.mxu0 %v2492_v41  ;;  %v1527_v18 = vrot.slane %v3045_v58, 2  ;;  %v1546_v58 = vrot.slane %v1208_v24, 2  ;;  %v1544_v24 = vsel %vm504_vm2, %v1542_v55, %v1543_v1 }
  0x51   : > { %2509 = vmatpush3.bf16.msra.mxu1 %v2492_v41  ;;  %2214 = vmatprep.mubr.msk.f32.mxu1 %vm261_vm1, %v2818_v47  ;;  %v1528_v47 = vrot.slane %v1196_v25, 2  ;;  %v1531_v25 = vrot.slane %v1198_v56, 2 }
  0x52   : > { %2324 = vmatmul.mubr.msk.f32.gmra.mrb[2].mxu0 %vm261_vm1, %v1376_v44  ;;  %2506 = vmatprep.subr.bf16.mxu1 %v2496_v39 }
  0x53   : > { %2495 = vmatpush3.bf16.msra.mxu0 %v2492_v41  ;;  %2326 = vmatprep.mubr.msk.f32.mxu0 %vm261_vm1, %v1379_v26 }
  0x54   : > { %2215 = vmatmul.mubr.msk.f32.gmra.mrb[4].mxu1 %vm261_vm1, %v2842_v2  ;;  %2497 = vmatprep.subr.bf16.mxu0 %v2496_v39  ;;  %v1545_v2 = vrot.slane %v3104_v7, 2  ;;  %v1533_v7 = vrot.slane %v3083_v9, 2  ;;  %v1532_v9 = vsel %vm504_vm2, %v1530_v51, %v1531_v25 }
  0x55   : > { %2510 = vmatpush3.bf16.msra.mxu1 %v2496_v39  ;;  %2217 = vmatprep.mubr.msk.f32.mxu1 %vm261_vm1, %v2878_v45  ;;  %v1529_v45 = vsel %vm504_vm2, %v1527_v18, %v1528_v47 }
  0x56   : > { %2327 = vmatmul.mubr.msk.f32.gmra.mrb[4].mxu0 %vm261_vm1, %v1382_v15  ;;  %2507 = vmatprep.subr.bf16.mxu1 %v2500_v62  ;;  %v1535_v50 = vsel %vm504_vm2, %v1533_v7, %v1534_v42 }
  0x57   : > { %2499 = vmatpush3.bf16.msra.mxu0 %v2496_v39  ;;  %2329 = vmatprep.mubr.msk.f32.mxu0 %vm261_vm1, %v3160_v30 }
  0x58   : > { %2218 = vmatmul.mubr.msk.f32.gmra.mrb[6].mxu1 %vm261_vm1, %v2906_v53  ;;  %2501 = vmatprep.subr.bf16.mxu0 %v2500_v62  ;;  %v1547_v53 = vsel %vm504_vm2, %v1545_v2, %v1546_v58 }
  0x59   : > { %2511 = vmatpush3.bf16.msra.mxu1 %v2500_v62  ;;  %2354 = vmatprep.mubr.msk.f32.mxu1 %vm261_vm1, %v1541_v31 }
  0x5a   : > { %2330 = vmatmul.mubr.msk.f32.gmra.mrb[6].mxu0 %vm261_vm1, %v3182_v59 }
  0x5b   : > { %2503 = vmatpush3.bf16.msra.mxu0 %v2500_v62  ;;  %2348 = vmatprep.mubr.msk.f32.mxu0 %vm261_vm1, %v1529_v45 }
  0x5c   : > { %2355 = vmatmul.mubr.msk.f32.vlgmr.msra.gmra.mrb[8].mxu1 %vm261_vm1, %v1544_v24 }
  0x5d   : > { %2357 = vmatprep.mubr.msk.f32.mxu1 %vm261_vm1, %v1547_v53 }
  0x5e   : > { %2349 = vmatmul.mubr.msk.f32.vlgmr.msra.gmra.mrb[0].mxu0 %vm261_vm1, %v1532_v9 }
  0x5f   : > { %2351 = vmatprep.mubr.msk.f32.mxu0 %vm261_vm1, %v1535_v50 }
  0x60   : > { %2358 = vmatmul.mubr.msk.f32.gmra.mrb[10].mxu1 %vm261_vm1, %v1550_v10 }
  0x62   : > { %2352 = vmatmul.mubr.msk.f32.gmra.mrb[2].mxu0 %vm261_vm1, %v1538_v36 }
 0x11f   : > { %v2210_v52 = vpop.f32.mrb[0].mxu1 }
 0x120   : > { %v799_v30 = vpop.f32.mrb[1].mxu1 }
 0x123   : > { %v2213_v56 = vpop.f32.mrb[2].mxu1 }
 0x124   : > { %v809_v5 = vpop.f32.mrb[3].mxu1 }
 0x127   : > { %v2216_v54 = vpop.f32.mrb[4].mxu1 }
 0x128   : > { %v819_v21 = vpop.f32.mrb[5].mxu1 }
 0x129   : > { %v2328_v46 = vpop.f32.mrb[4].mxu0 }
 0x12a   : > { %v2516_v59 = vadd.f32 %v2328_v46, %v2216_v54  ;;  %v1500_v23 = vpop.f32.mrb[5].mxu0 }
 0x12b   : > { %v2518_v14 = vadd.f32 %v1500_v23, %v819_v21  ;;  %v2219_v48 = vpop.f32.mrb[6].mxu1 }
 0x12c   : > { %v829_v22 = vpop.f32.mrb[7].mxu1 }
 0x12d   : > { %v2331_v19 = vpop.f32.mrb[6].mxu0 }
 0x12e   : > { %v2520_v60 = vadd.f32 %v2331_v19, %v2219_v48  ;;  %v1510_v29 = vpop.f32.mrb[7].mxu0 }
 0x12f   : > { %v2522_v61 = vadd.f32 %v1510_v29, %v829_v22  ;;  %v2356_v11 = vpop.f32.mrb[8].mxu1 }
 0x130   : > { %v2517_v28 = vadd.f32 %v2516_v59, %v2356_v11  ;;  %v1662_v34 = vpop.f32.mrb[9].mxu1 }
 0x131   : > { %v2350_v37 = vpop.f32.mrb[0].mxu0  ;;  %v2519_v41 = vadd.f32 %v2518_v14, %v1662_v34 }
 0x132   : > { %v2512_v8 = vadd.f32 %v2350_v37, %v2210_v52  ;;  %v1701_v27 = vadd.f32 %v2517_v28, %v1960_v49  ;;  %v1642_v32 = vpop.f32.mrb[1].mxu0 }
 0x133   : > { %v2513_v3 = vadd.f32 %v1642_v32, %v799_v30  ;;  %v1700_v33 = vadd.f32 %v2519_v41, %v1960_v49  ;;  %v2359_v20 = vpop.f32.mrb[10].mxu1 }
 0x134   : > { %v1697_v16 = vadd.f32 %v2512_v8, %v1960_v49  ;;  %v1709_v57 = vmax.f32 %v1701_v27, 0.0  ;;  %v2521_v35 = vadd.f32 %v2520_v60, %v2359_v20  ;;  %v1672_v39 = vpop.f32.mrb[11].mxu1 }
 0x135   : > { %v1696_v44 = vadd.f32 %v2513_v3, %v1960_v49  ;;  %v1708_v40 = vmax.f32 %v1700_v33, 0.0  ;;  %v2353_v4 = vpop.f32.mrb[2].mxu0  ;;  %v2523_v17 = vadd.f32 %v2522_v61, %v1672_v39 }
 0x136   : > { %v1705_v0 = vmax.f32 %v1697_v16, 0.0  ;;  %v1717_v26 = vpack.c.bf16 %v1709_v57, %v1709_v57  ;;  %v2514_v62 = vadd.f32 %v2353_v4, %v2213_v56  ;;  %v1703_v63 = vadd.f32 %v2521_v35, %v1960_v49  ;;  %v1652_v12 = vpop.f32.mrb[3].mxu0 }
 0x137   : > { %v1704_v15 = vmax.f32 %v1696_v44, 0.0  ;;  %v1716_v18 = vpack.c.bf16 %v1708_v40, %v1708_v40  ;;  %v2515_v47 = vadd.f32 %v1652_v12, %v809_v5  ;;  %v1702_v55 = vadd.f32 %v2523_v17, %v1960_v49 }
 0x138   : > { %v1713_v1 = vpack.c.bf16 %v1705_v0, %v1705_v0  ;;  %1726 = vst.msk [vmem:[%s3300_s20 + $0x14] sm:$0xf] %vm1720_vm3, %v1717_v26  ;;  %v1699_v31 = vadd.f32 %v2514_v62, %v1960_v49  ;;  %v1711_v2 = vmax.f32 %v1703_v63, 0.0 }
 0x139   : > { %v1712_v58 = vpack.c.bf16 %v1704_v15, %v1704_v15  ;;  %1725 = vst.msk [vmem:[%s3300_s20 + $0x10] sm:$0xf] %vm1720_vm3, %v1716_v18  ;;  %v1698_v51 = vadd.f32 %v2515_v47, %v1960_v49  ;;  %v1710_v25 = vmax.f32 %v1702_v55, 0.0 }
 0x13a   : > { %1722 = vst.msk [vmem:[%s3300_s20 + $0x4] sm:$0xf] %vm1720_vm3, %v1713_v1  ;;  %v1707_v45 = vmax.f32 %v1699_v31, 0.0  ;;  %v1719_v7 = vpack.c.bf16 %v1711_v2, %v1711_v2 }
 0x13b   : > { %1721 = vst.msk [vmem:[%s3300_s20] sm:$0xf] %vm1720_vm3, %v1712_v58  ;;  %v1706_v42 = vmax.f32 %v1698_v51, 0.0  ;;  %v1718_v24 = vpack.c.bf16 %v1710_v25, %v1710_v25 }
 0x13c   : > { %v1715_v6 = vpack.c.bf16 %v1707_v45, %v1707_v45  ;;  %1728 = vst.msk [vmem:[%s3300_s20 + $0x1c] sm:$0xf] %vm1720_vm3, %v1719_v7 }
 0x13d   : > { %v1714_v13 = vpack.c.bf16 %v1706_v42, %v1706_v42  ;;  %1727 = vst.msk [vmem:[%s3300_s20 + $0x18] sm:$0xf] %vm1720_vm3, %v1718_v24 }
 0x13e   : > { %1724 = vst.msk [vmem:[%s3300_s20 + $0xc] sm:$0xf] %vm1720_vm3, %v1715_v6 }
 0x13f   : > { %1723 = vst.msk [vmem:[%s3300_s20 + $0x8] sm:$0xf] %vm1720_vm3, %v1714_v13 }
 0x140 PF: > { %s13_s12 = sadd.s32 1, %s2591_s12  }
 0x141   : > { %p10_p4 = scmp.ge.s32.totalorder %s13_s12, 4  }
 0x143   :  { %12 = sbr.rel (!%p10_p4) target bundleno = 1 (0x1), region = 72 }

// kernel: forward.24
= control target key start
LH: loop header
LB: loop body
LE: loop exit
PB: predicated region body
PF: predicated region fallthrough
CT: control target
= control target key end

     0   :  { %s243_s6 = smov 0   ;;  %s260_s0 = inlined_call_operand.vmem [shape: bf16[2,4,2,4,256], index: 0, kind: input, shape index: {}]   ;;  %s261_s1 = inlined_call_operand.vmem [shape: bf16[2,4,4,128], index: 1, kind: output, shape index: {}]  }
   0x1 LB: > { %s204_s7 = sadd.s32 4294967295, %s231_s6   ;;  %p208_p0 = scmp.ge.s32.totalorder %s231_s6, 1  ;;  %s231_s6 = sphi %s243_s6, %s11_s6  }
   0x2   : > { %p87_p1 = scmp.lt.s32.totalorder %s231_s6, 3 }
   0x4   : > { %p88_p2 = pnand %p208_p0, %p87_p1 }
   0x5   : > { %p107_p3 = scmp.lt.s32.totalorder (!%p88_p2), %s204_s7, 1 }
   0x6   : > { %91 = sbr.rel (%p88_p2) target bundleno = 26 (0x1a), region = 24 }
   0xd   : > { %s263_s7 = smov (!%p107_p3, %s204_s7), 1 }
   0xe   : > { %s215_s8 = sshll.u32 %s263_s7, 5  ;;  %s216_s12 = sshll.u32 %s263_s7, 3 }
   0xf   : > { %s111_s11 = scalar_lea.vmem %s260_s0, %s215_s8  ;;  %s116_s15 = scalar_lea.vmem %s261_s1, %s216_s12 }
  0x10   : > { %v117_v0 = vld [vmem:[%s111_s11] sm:$0xf]  ;;  %v118_v1 = vld [vmem:[%s111_s11 + $0x4] sm:$0xf]  ;;  %v119_v2 = vld [vmem:[%s111_s11 + $0x8] sm:$0xf] }
  0x11   : > { %v125_v3 = vmax.bf16 %v118_v1, %v117_v0  ;;  %v120_v4 = vld [vmem:[%s111_s11 + $0xc] sm:$0xf]  ;;  %v121_v5 = vld [vmem:[%s111_s11 + $0x10] sm:$0xf]  ;;  %v122_v6 = vld [vmem:[%s111_s11 + $0x14] sm:$0xf] }
  0x12   : > { %v126_v7 = vmax.bf16 %v120_v4, %v119_v2  ;;  %v127_v8 = vmax.bf16 %v122_v6, %v121_v5  ;;  %v123_v9 = vld [vmem:[%s111_s11 + $0x18] sm:$0xf]  ;;  %v124_v10 = vld [vmem:[%s111_s11 + $0x1c] sm:$0xf] }
  0x13   : > { %v133_v11 = vrot.slane %v125_v3, 2  ;;  %v128_v12 = vmax.bf16 %v124_v10, %v123_v9 }
  0x14   : > { %v134_v13 = vrot.slane %v126_v7, 2  ;;  %v135_v14 = vrot.slane %v127_v8, 2 }
  0x15   : > { %v141_v15 = vmax.bf16 %v133_v11, %v125_v3  ;;  %v136_v16 = vrot.slane %v128_v12, 2 }
  0x16   : > { %v142_v17 = vmax.bf16 %v134_v13, %v126_v7  ;;  %v143_v18 = vmax.bf16 %v135_v14, %v127_v8 }
  0x17   : > { %145 = vst [vmem:[%s116_s15] sm:$0x3] %v141_v15  ;;  %v144_v19 = vmax.bf16 %v136_v16, %v128_v12 }
  0x18   : > { %146 = vst [vmem:[%s116_s15 + $0x2] sm:$0x3] %v142_v17  ;;  %147 = vst [vmem:[%s116_s15 + $0x4] sm:$0x3] %v143_v18 }
  0x19   : > { %148 = vst [vmem:[%s116_s15 + $0x6] sm:$0x3] %v144_v19 }
  0x1a PF: > { %s11_s6 = sadd.s32 1, %s231_s6  }
  0x1b   : > { %p8_p4 = scmp.ge.s32.totalorder %s11_s6, 4  }
  0x1d   :  { %10 = sbr.rel (!%p8_p4) target bundleno = 1 (0x1), region = 54 }

// kernel: forward.25
= control target key start
LH: loop header
LB: loop body
LE: loop exit
PB: predicated region body
PF: predicated region fallthrough
CT: control target
= control target key end

     0   :  { %vm171_vm0 = vcmask 519168   ;;  %s304_s1 = inlined_call_operand.vmem [shape: bf16[128,64], index: 1, kind: input, shape index: {}]   ;;  %s305_s0 = inlined_call_operand.vmem [shape: bf16[32,128], index: 0, kind: input, shape index: {}]   ;;  %s306_s2 = inlined_call_operand.vmem [shape: f32[1,64], index: 2, kind: input, shape index: {}]   ;;  %s307_s3 = inlined_call_operand.vmem [shape: bf16[32,64], index: 3, kind: output, shape index: {}]  }
   0x1   :  { %v229_v0 = vld [vmem:[%s304_s1] sm:$0xff]   ;;  %v230_v1 = vld [vmem:[%s304_s1 + $0x8] sm:$0xff]   ;;  %v231_v2 = vld [vmem:[%s304_s1 + $0x10] sm:$0xff]  }
   0x2   :  { %209 = vmatprep.subr.bf16.mxu0 %v229_v0  ;;  %v232_v3 = vld [vmem:[%s304_s1 + $0x18] sm:$0xff]   ;;  %v237_v4 = vld [vmem:[%s305_s0] sm:$0xff]   ;;  %v234_v6 = vld [vmem:[%s304_s1 + $0x28] sm:$0xff]  }
   0x3   :  { %210 = vmatpush3.bf16.msra.mxu0 %v229_v0  ;;  %225 = vmatprep.mubr.bf16.mxu0 %v237_v4  ;;  %v233_v5 = vld [vmem:[%s304_s1 + $0x20] sm:$0xff]   ;;  %v235_v7 = vld [vmem:[%s304_s1 + $0x30] sm:$0xff]   ;;  %v236_v8 = vld [vmem:[%s304_s1 + $0x38] sm:$0xff]  }
   0x4   :  { %211 = vmatprep.subr.bf16.mxu0 %v230_v1  ;;  %v238_v9 = vld [vmem:[%s305_s0 + $0x8] sm:$0xff]   ;;  %v180_v10 = vld [vmem:[%s306_s2] ss:$0 sm:$0xff] }
   0x7   :  { %212 = vmatpush3.bf16.msra.mxu0 %v230_v1 }
   0x8   :  { %213 = vmatprep.subr.bf16.mxu0 %v231_v2 }
   0xb   :  { %214 = vmatpush3.bf16.msra.mxu0 %v231_v2 }
   0xc   :  { %215 = vmatprep.subr.bf16.mxu0 %v232_v3 }
   0xf   :  { %216 = vmatpush3.bf16.msra.mxu0 %v232_v3 }
  0x10   :  { %217 = vmatprep.subr.bf16.mxu0 %v233_v5 }
  0x13   :  { %218 = vmatpush3.bf16.msra.mxu0 %v233_v5 }
  0x14   :  { %219 = vmatprep.subr.bf16.mxu0 %v234_v6 }
  0x17   :  { %220 = vmatpush3.bf16.msra.mxu0 %v234_v6 }
  0x18   :  { %221 = vmatprep.subr.bf16.mxu0 %v235_v7 }
  0x1b   :  { %222 = vmatpush3.bf16.msra.mxu0 %v235_v7 }
  0x1c   :  { %223 = vmatprep.subr.bf16.mxu0 %v236_v8 }
  0x1f   :  { %224 = vmatpush3.bf16.msra.mxu0 %v236_v8 }
  0x22   :  { %226 = vmatmul.mubr.bf16.vlgmr.msra.gmra.mrb[0].mxu0 %v238_v9 }
  0xf5   :  { %v227_v11 = vpop.f32.mrb[0].mxu0 }
  0xf6   :  { %v145_v12 = vadd.f32 %v227_v11, %v180_v10  ;;  %v136_v13 = vpop.f32.mrb[1].mxu0 }
  0xf7   :  { %v137_v14 = vadd.f32 %v180_v10, %v136_v13  ;;  %v228_v15 = vpop.f32.mrb[2].mxu0 }
  0xf8   :  { %v153_v16 = vmax.f32 %v145_v12, 0.0  ;;  %v148_v17 = vadd.f32 %v228_v15, %v180_v10  ;;  %v139_v18 = vpop.f32.mrb[3].mxu0 }
  0xf9   :  { %v151_v19 = vmax.f32 %v137_v14, 0.0  ;;  %v140_v20 = vadd.f32 %v180_v10, %v139_v18 }
  0xfa   :  { %v197_v21 = vpack.c.bf16 %v153_v16, %v153_v16  ;;  %v154_v22 = vmax.f32 %v148_v17, 0.0 }
  0xfb   :  { %v195_v23 = vpack.c.bf16 %v151_v19, %v151_v19  ;;  %v152_v24 = vmax.f32 %v140_v20, 0.0 }
  0xfc   :  { %174 = vst.msk [vmem:[%s307_s3 + $0x8] sm:$0xf] %vm171_vm0, %v197_v21  ;;  %v198_v25 = vpack.c.bf16 %v154_v22, %v154_v22 }
  0xfd   :  { %172 = vst.msk [vmem:[%s307_s3] sm:$0xf] %vm171_vm0, %v195_v23  ;;  %v196_v26 = vpack.c.bf16 %v152_v24, %v152_v24 }
  0xfe   :  { %175 = vst.msk [vmem:[%s307_s3 + $0xc] sm:$0xf] %vm171_vm0, %v198_v25 }
  0xff   :  { %173 = vst.msk [vmem:[%s307_s3 + $0x4] sm:$0xf] %vm171_vm0, %v196_v26 }

// kernel: forward.27
= control target key start
LH: loop header
LB: loop body
LE: loop exit
PB: predicated region body
PF: predicated region fallthrough
CT: control target
= control target key end

     0   :  { %vm71_vm0 = vcmask 523264   ;;  %s286_s1 = inlined_call_operand.vmem [shape: bf16[64,128], index: 1, kind: input, shape index: {}]   ;;  %s287_s0 = inlined_call_operand.vmem [shape: bf16[32,64], index: 0, kind: input, shape index: {}]   ;;  %s288_s2 = inlined_call_operand.vmem [shape: f32[1,128], index: 2, kind: input, shape index: {}]   ;;  %s289_s3 = inlined_call_operand.vmem [shape: bf16[32,128], index: 3, kind: input, shape index: {}]   ;;  %s290_s4 = inlined_call_operand.vmem [shape: bf16[32,128], index: 4, kind: output, shape index: {}]  }
   0x1   :  { %v222_v0 = vld [vmem:[%s286_s1] sm:$0xff]   ;;  %v223_v1 = vld [vmem:[%s286_s1 + $0x8] sm:$0xff]   ;;  %v224_v2 = vld [vmem:[%s286_s1 + $0x10] sm:$0xff]  }
   0x2   :  { %210 = vmatprep.subr.bf16.mxu0 %v222_v0  ;;  %v226_v3 = vld [vmem:[%s287_s0] sm:$0xff]   ;;  %v225_v4 = vld [vmem:[%s286_s1 + $0x18] sm:$0xff]   ;;  %v227_v5 = vld [vmem:[%s287_s0 + $0x8] sm:$0xff]  }
   0x3   :  { %211 = vmatpush3.bf16.msra.mxu0 %v222_v0  ;;  %218 = vmatprep.mubr.msk.bf16.mxu0 %vm71_vm0, %v226_v3  ;;  %v167_v6 = vld [vmem:[%s288_s2] ss:$0 sm:$0xff]  ;;  %v202_v8 = vld [vmem:[%s289_s3 + $0x8] sm:$0xff]  }
   0x4   :  { %212 = vmatprep.subr.bf16.mxu0 %v223_v1  ;;  %v185_v11 = vld [vmem:[%s289_s3] sm:$0xff]   ;;  %v190_v15 = vunpack.c.l.bf16 %v202_v8  ;;  %v191_v17 = vunpack.c.h.bf16 %v202_v8 }
   0x5   :  { %v186_v20 = vunpack.c.l.bf16 %v185_v11  ;;  %v187_v22 = vunpack.c.h.bf16 %v185_v11 }
   0x7   :  { %213 = vmatpush3.bf16.msra.mxu0 %v223_v1 }
   0x8   :  { %214 = vmatprep.subr.bf16.mxu0 %v224_v2 }
   0xb   :  { %215 = vmatpush3.bf16.msra.mxu0 %v224_v2 }
   0xc   :  { %216 = vmatprep.subr.bf16.mxu0 %v225_v4 }
   0xf   :  { %217 = vmatpush3.bf16.msra.mxu0 %v225_v4 }
  0x12   :  { %219 = vmatmul.mubr.msk.bf16.vlgmr.msra.gmra.mrb[0].mxu0 %vm71_vm0, %v227_v5 }
  0xe5   :  { %v220_v7 = vpop.f32.mrb[0].mxu0 }
  0xe6   :  { %v121_v9 = vadd.f32 %v220_v7, %v167_v6  ;;  %v112_v10 = vpop.f32.mrb[1].mxu0 }
  0xe7   :  { %v113_v12 = vadd.f32 %v167_v6, %v112_v10  ;;  %v221_v13 = vpop.f32.mrb[2].mxu0 }
  0xe8   :  { %v129_v14 = vmax.f32 %v121_v9, 0.0  ;;  %v124_v16 = vadd.f32 %v221_v13, %v167_v6  ;;  %v115_v18 = vpop.f32.mrb[3].mxu0 }
  0xe9   :  { %v127_v19 = vmax.f32 %v113_v12, 0.0  ;;  %v116_v21 = vadd.f32 %v167_v6, %v115_v18 }
  0xea   :  { %v130_v23 = vmax.f32 %v124_v16, 0.0  ;;  %v141_v25 = vadd.f32 %v190_v15, %v129_v14 }
  0xeb   :  { %v128_v24 = vmax.f32 %v116_v21, 0.0  ;;  %v139_v27 = vadd.f32 %v186_v20, %v127_v19 }
  0xec   :  { %v142_v26 = vadd.f32 %v191_v17, %v130_v23 }
  0xed   :  { %v140_v28 = vadd.f32 %v187_v22, %v128_v24 }
  0xee   :  { %v200_v29 = vpack.c.bf16 %v142_v26, %v141_v25 }
  0xef   :  { %v195_v30 = vpack.c.bf16 %v140_v28, %v139_v27 }
  0xf0   :  { %203 = vst [vmem:[%s290_s4 + $0x8] sm:$0xff] %v200_v29  }
  0xf1   :  { %196 = vst [vmem:[%s290_s4] sm:$0xff] %v195_v30  }

// kernel: forward.28
= control target key start
LH: loop header
LB: loop body
LE: loop exit
PB: predicated region body
PF: predicated region fallthrough
CT: control target
= control target key end

     0   :  { %vm171_vm0 = vcmask 125952   ;;  %s304_s1 = inlined_call_operand.vmem [shape: bf16[128,16], index: 1, kind: input, shape index: {}]   ;;  %s305_s0 = inlined_call_operand.vmem [shape: bf16[32,128], index: 0, kind: input, shape index: {}]   ;;  %s306_s2 = inlined_call_operand.vmem [shape: f32[1,16], index: 2, kind: input, shape index: {}]   ;;  %s307_s3 = inlined_call_operand.vmem [shape: bf16[32,16], index: 3, kind: output, shape index: {}]  }
   0x1   :  { %v229_v0 = vld [vmem:[%s304_s1] sm:$0xff]   ;;  %v230_v1 = vld [vmem:[%s304_s1 + $0x8] sm:$0xff]   ;;  %v231_v2 = vld [vmem:[%s304_s1 + $0x10] sm:$0xff]  }
   0x2   :  { %209 = vmatprep.subr.bf16.mxu0 %v229_v0  ;;  %v232_v3 = vld [vmem:[%s304_s1 + $0x18] sm:$0xff]   ;;  %v237_v4 = vld [vmem:[%s305_s0] sm:$0xff]   ;;  %v234_v6 = vld [vmem:[%s304_s1 + $0x28] sm:$0xff]  }
   0x3   :  { %210 = vmatpush3.bf16.msra.mxu0 %v229_v0  ;;  %225 = vmatprep.mubr.bf16.mxu0 %v237_v4  ;;  %v233_v5 = vld [vmem:[%s304_s1 + $0x20] sm:$0xff]   ;;  %v235_v7 = vld [vmem:[%s304_s1 + $0x30] sm:$0xff]   ;;  %v236_v8 = vld [vmem:[%s304_s1 + $0x38] sm:$0xff]  }
   0x4   :  { %211 = vmatprep.subr.bf16.mxu0 %v230_v1  ;;  %v238_v9 = vld [vmem:[%s305_s0 + $0x8] sm:$0xff]   ;;  %v180_v10 = vld [vmem:[%s306_s2] ss:$0 sm:$0xff] }
   0x7   :  { %212 = vmatpush3.bf16.msra.mxu0 %v230_v1 }
   0x8   :  { %213 = vmatprep.subr.bf16.mxu0 %v231_v2 }
   0xb   :  { %214 = vmatpush3.bf16.msra.mxu0 %v231_v2 }
   0xc   :  { %215 = vmatprep.subr.bf16.mxu0 %v232_v3 }
   0xf   :  { %216 = vmatpush3.bf16.msra.mxu0 %v232_v3 }
  0x10   :  { %217 = vmatprep.subr.bf16.mxu0 %v233_v5 }
  0x13   :  { %218 = vmatpush3.bf16.msra.mxu0 %v233_v5 }
  0x14   :  { %219 = vmatprep.subr.bf16.mxu0 %v234_v6 }
  0x17   :  { %220 = vmatpush3.bf16.msra.mxu0 %v234_v6 }
  0x18   :  { %221 = vmatprep.subr.bf16.mxu0 %v235_v7 }
  0x1b   :  { %222 = vmatpush3.bf16.msra.mxu0 %v235_v7 }
  0x1c   :  { %223 = vmatprep.subr.bf16.mxu0 %v236_v8 }
  0x1f   :  { %224 = vmatpush3.bf16.msra.mxu0 %v236_v8 }
  0x22   :  { %226 = vmatmul.mubr.bf16.vlgmr.msra.gmra.mrb[0].mxu0 %v238_v9 }
  0xf5   :  { %v227_v11 = vpop.f32.mrb[0].mxu0 }
  0xf6   :  { %v145_v12 = vadd.f32 %v227_v11, %v180_v10  ;;  %v136_v13 = vpop.f32.mrb[1].mxu0 }
  0xf7   :  { %v137_v14 = vadd.f32 %v180_v10, %v136_v13  ;;  %v228_v15 = vpop.f32.mrb[2].mxu0 }
  0xf8   :  { %v153_v16 = vmax.f32 %v145_v12, 0.0  ;;  %v148_v17 = vadd.f32 %v228_v15, %v180_v10  ;;  %v139_v18 = vpop.f32.mrb[3].mxu0 }
  0xf9   :  { %v151_v19 = vmax.f32 %v137_v14, 0.0  ;;  %v140_v20 = vadd.f32 %v180_v10, %v139_v18 }
  0xfa   :  { %v197_v21 = vpack.c.bf16 %v153_v16, %v153_v16  ;;  %v154_v22 = vmax.f32 %v148_v17, 0.0 }
  0xfb   :  { %v195_v23 = vpack.c.bf16 %v151_v19, %v151_v19  ;;  %v152_v24 = vmax.f32 %v140_v20, 0.0 }
  0xfc   :  { %174 = vst.msk [vmem:[%s307_s3 + $0x8] sm:$0xf] %vm171_vm0, %v197_v21  ;;  %v198_v25 = vpack.c.bf16 %v154_v22, %v154_v22 }
  0xfd   :  { %172 = vst.msk [vmem:[%s307_s3] sm:$0xf] %vm171_vm0, %v195_v23  ;;  %v196_v26 = vpack.c.bf16 %v152_v24, %v152_v24 }
  0xfe   :  { %175 = vst.msk [vmem:[%s307_s3 + $0xc] sm:$0xf] %vm171_vm0, %v198_v25 }
  0xff   :  { %173 = vst.msk [vmem:[%s307_s3 + $0x4] sm:$0xf] %vm171_vm0, %v196_v26 }

// kernel: forward.26
= control target key start
LH: loop header
LB: loop body
LE: loop exit
PB: predicated region body
PF: predicated region fallthrough
CT: control target
= control target key end

     0   :  { %s1999_s12 = smov 0   ;;  %s2453_s0 = inlined_call_operand.vmem [shape: bf16[2,6,10,64], index: 0, kind: input, shape index: {}]   ;;  %s2454_s1 = inlined_call_operand.vmem [shape: f32[9,64,64], index: 1, kind: input, shape index: {}]   ;;  %s2455_s2 = inlined_call_operand.vmem [shape: f32[1,64], index: 2, kind: input, shape index: {}]   ;;  %s2456_s3 = inlined_call_operand.vmem [shape: bf16[2,4,8,64], index: 3, kind: output, shape index: {}]  }
   0x1 LB: > { %s1344_s13 = sadd.s32 4294967295, %s1977_s12   ;;  %p1348_p0 = scmp.ge.s32.totalorder %s1977_s12, 1  ;;  %s1977_s12 = sphi %s1999_s12, %s13_s12  }
   0x2   : > { %p137_p1 = scmp.lt.s32.totalorder %s1977_s12, 3 }
   0x4   : > { %p138_p2 = pnand %p1348_p0, %p137_p1 }
   0x5   : > { %v1352_v0 = vld [vmem:[%s2454_s1 + $0x40] sm:$0xff] (!%p138_p2)  ;;  %v1353_v1 = vld [vmem:[%s2454_s1 + $0x48] sm:$0xff] (!%p138_p2)  ;;  %p161_p3 = scmp.lt.s32.totalorder (!%p138_p2), %s1344_s13, 1  ;;  %v1354_v5 = vld [vmem:[%s2454_s1 + $0x50] sm:$0xff] (!%p138_p2)  ;;  %vm203_vm0 = vcmask (!%p138_p2), 1046528   ;;  %vm225_vm1 = vcmask (!%p138_p2), 523264  }
   0x6   : > { %141 = sbr.rel (%p138_p2) target bundleno = 312 (0x138), region = 32  ;;  %v1400_v2 = vld [vmem:[%s2454_s1 + $0x100] sm:$0xff] (!%p138_p2)  ;;  %v1778_v3 = vpack.c.bf16 (!%p138_p2), %v1353_v1, %v1352_v0  ;;  %v1401_v4 = vld [vmem:[%s2454_s1 + $0x108] sm:$0xff] (!%p138_p2)  ;;  %v1355_v6 = vld [vmem:[%s2454_s1 + $0x58] sm:$0xff] (!%p138_p2)  ;;  %vm412_vm2 = vcmask (!%p138_p2), 1045504   ;;  %vm1284_vm3 = vcmask (!%p138_p2), 519168  }
   0x7   : > { %v1842_v7 = vpack.c.bf16 (!%p138_p2), %v1401_v4, %v1400_v2  ;;  %v1782_v8 = vpack.c.bf16 (!%p138_p2), %v1355_v6, %v1354_v5  ;;  %v1402_v9 = vld [vmem:[%s2454_s1 + $0x110] sm:$0xff] (!%p138_p2)  ;;  %v1403_v10 = vld [vmem:[%s2454_s1 + $0x118] sm:$0xff] (!%p138_p2)  ;;  %v1356_v11 = vld [vmem:[%s2454_s1 + $0x60] sm:$0xff] (!%p138_p2) }
   0x8   : > { %1779 = vmatprep.subr.bf16.mxu1 (!%p138_p2), %v1778_v3  ;;  %v1846_v12 = vpack.c.bf16 (!%p138_p2), %v1403_v10, %v1402_v9  ;;  %v1357_v13 = vld [vmem:[%s2454_s1 + $0x68] sm:$0xff] (!%p138_p2)  ;;  %v1404_v14 = vld [vmem:[%s2454_s1 + $0x120] sm:$0xff] (!%p138_p2)  ;;  %v1358_v16 = vld [vmem:[%s2454_s1 + $0x70] sm:$0xff] (!%p138_p2) }
   0x9   : > { %v1405_v15 = vld [vmem:[%s2454_s1 + $0x128] sm:$0xff] (!%p138_p2)  ;;  %1843 = vmatprep.subr.bf16.mxu0 (!%p138_p2), %v1842_v7  ;;  %1781 = vmatpush3.bf16.msra.mxu1 (!%p138_p2), %v1778_v3  ;;  %v1359_v17 = vld [vmem:[%s2454_s1 + $0x78] sm:$0xff] (!%p138_p2)  ;;  %v1406_v18 = vld [vmem:[%s2454_s1 + $0x130] sm:$0xff] (!%p138_p2)  ;;  %v1786_v19 = vpack.c.bf16 (!%p138_p2), %v1357_v13, %v1356_v11 }
   0xa   : > { %1845 = vmatpush3.bf16.msra.mxu0 (!%p138_p2), %v1842_v7  ;;  %1783 = vmatprep.subr.bf16.mxu1 (!%p138_p2), %v1782_v8  ;;  %v1407_v20 = vld [vmem:[%s2454_s1 + $0x138] sm:$0xff] (!%p138_p2)  ;;  %v1850_v21 = vpack.c.bf16 (!%p138_p2), %v1405_v15, %v1404_v14  ;;  %v1790_v22 = vpack.c.bf16 (!%p138_p2), %v1359_v17, %v1358_v16  ;;  %v187_v34 = vld [vmem:[%s2454_s1] sm:$0xff] (!%p138_p2)  ;;  %v188_v41 = vld [vmem:[%s2454_s1 + $0x8] sm:$0xff] (!%p138_p2) }
   0xb   : > { %1847 = vmatprep.subr.bf16.mxu0 (!%p138_p2), %v1846_v12  ;;  %v2063_v23 = vpack.c.bf16 (!%p138_p2), %v1407_v20, %v1406_v18  ;;  %v1412_v44 = vld [vmem:[%s2454_s1 + $0x140] sm:$0xff] (!%p138_p2)  ;;  %v1413_v45 = vld [vmem:[%s2454_s1 + $0x148] sm:$0xff] (!%p138_p2)  ;;  %v189_v48 = vld [vmem:[%s2454_s1 + $0x10] sm:$0xff] (!%p138_p2)  ;;  %v1794_v56 = vpack.c.bf16 (!%p138_p2), %v188_v41, %v187_v34 }
   0xc   : > { %v190_v49 = vld [vmem:[%s2454_s1 + $0x18] sm:$0xff] (!%p138_p2)  ;;  %v1858_v59 = vpack.c.bf16 (!%p138_p2), %v1413_v45, %v1412_v44  ;;  %v1414_v61 = vld [vmem:[%s2454_s1 + $0x150] sm:$0xff] (!%p138_p2)  ;;  %v191_v16 = vld [vmem:[%s2454_s1 + $0x20] sm:$0xff] (!%p138_p2) }
   0xd   : > { %s2458_s13 = smov (!%p161_p3, %s1344_s13), 1  ;;  %1785 = vmatpush3.bf16.msra.mxu1 %v1782_v8  ;;  %v1798_v0 = vpack.c.bf16 %v190_v49, %v189_v48  ;;  %v1415_v1 = vld [vmem:[%s2454_s1 + $0x158] sm:$0xff]  ;;  %v192_v17 = vld [vmem:[%s2454_s1 + $0x28] sm:$0xff]  ;;  %v1416_v20 = vld [vmem:[%s2454_s1 + $0x160] sm:$0xff] }
   0xe   : > { %s1962_s19 = smul.u32 48, %s2458_s13  ;;  %1849 = vmatpush3.bf16.msra.mxu0 %v1846_v12  ;;  %1787 = vmatprep.subr.bf16.mxu1 %v1786_v19  ;;  %v1862_v15 = vpack.c.bf16 %v1415_v1, %v1414_v61  ;;  %v1802_v41 = vpack.c.bf16 %v192_v17, %v191_v16  ;;  %v193_v44 = vld [vmem:[%s2454_s1 + $0x30] sm:$0xff]  ;;  %v194_v45 = vld [vmem:[%s2454_s1 + $0x38] sm:$0xff]  ;;  %v1368_v49 = vld [vmem:[%s2454_s1 + $0x80] sm:$0xff]  ;;  %s1471_s17 = sshll.u32 %s2458_s13, 4 }
   0xf   : > { %1851 = vmatprep.subr.bf16.mxu0 %v1850_v21  ;;  %v1371_v61 = vld [vmem:[%s2454_s1 + $0x98] sm:$0xff]  ;;  %s170_s20 = scalar_lea.vmem %s2456_s3, %s1471_s17 }
  0x10   : > { %s2061_s24 = scalar_lea.vmem %s2453_s0, %s1962_s19 }
  0x11   : > { %v171_v24 = vld [vmem:[%s2061_s24] ss:$8 sps:$4 sm:$0xff]   ;;  %v2067_v25 = vld [vmem:[%s2061_s24 + $0x4] sm:$0x1]  ;;  %v2070_v26 = vld [vmem:[%s2061_s24 + $0xc] sm:$0x1]  ;;  %1789 = vmatpush3.bf16.msra.mxu1 %v1786_v19 }
  0x12   : > { %v2072_v27 = vunpack.c.l.bf16 %v171_v24  ;;  %v180_v28 = vunpack.c.l.bf16 %v2067_v25  ;;  %v2075_v29 = vunpack.c.h.bf16 %v171_v24  ;;  %v541_v30 = vunpack.c.l.bf16 %v2070_v26  ;;  %v173_v31 = vld [vmem:[%s2061_s24 + $0x8] ss:$8 sps:$4 sm:$0xff]   ;;  %v2080_v32 = vld [vmem:[%s2061_s24 + $0xc] sm:$0x1]  ;;  %v2083_v33 = vld [vmem:[%s2061_s24 + $0x14] sm:$0x1]  ;;  %1853 = vmatpush3.bf16.msra.mxu0 %v1850_v21  ;;  %1791 = vmatprep.subr.bf16.mxu1 %v1790_v22 }
  0x13   : > { %v2088_v35 = vunpack.c.l.bf16 %v173_v31  ;;  %v182_v36 = vunpack.c.l.bf16 %v2080_v32  ;;  %v2091_v37 = vunpack.c.h.bf16 %v173_v31  ;;  %v543_v38 = vunpack.c.l.bf16 %v2083_v33  ;;  %v175_v54 = vld [vmem:[%s2061_s24 + $0x10] ss:$8 sps:$4 sm:$0xff]   ;;  %v2125_v55 = vld [vmem:[%s2061_s24 + $0x14] sm:$0x1]  ;;  %v2130_v58 = vld [vmem:[%s2061_s24 + $0x1c] sm:$0x1]  ;;  %1855 = vmatprep.subr.bf16.mxu0 %v2063_v23 }
  0x14   : > { %v204_v39 = vrot.slane %v2072_v27, 1  ;;  %v205_v40 = vrot.slane %v180_v28, 1  ;;  %v662_v42 = vrot.slane %v2075_v29, 1  ;;  %v663_v43 = vrot.slane %v541_v30, 1  ;;  %v177_v63 = vld [vmem:[%s2061_s24 + $0x18] ss:$8 sps:$4 sm:$0xff]  }
  0x15   : > { %v207_v46 = vrot.slane %v2088_v35, 1  ;;  %v208_v47 = vrot.slane %v182_v36, 1  ;;  %v665_v52 = vrot.slane %v2091_v37, 1  ;;  %v666_v53 = vrot.slane %v543_v38, 1  ;;  %v2149_v5 = vld [vmem:[%s2061_s24 + $0x1c] sm:$0x1]  ;;  %1793 = vmatpush3.bf16.msra.mxu1 %v1790_v22 }
  0x16   : > { %v206_v50 = vsel %vm203_vm0, %v204_v39, %v205_v40  ;;  %v664_v51 = vsel %vm203_vm0, %v662_v42, %v663_v43  ;;  %v2127_v57 = vunpack.c.l.bf16 %v175_v54  ;;  %v184_v62 = vunpack.c.l.bf16 %v2125_v55  ;;  %v2152_v6 = vld [vmem:[%s2061_s24 + $0x24] sm:$0x1]  ;;  %1857 = vmatpush3.bf16.msra.mxu0 %v2063_v23  ;;  %1795 = vmatprep.subr.bf16.mxu1 %v1794_v56  ;;  %v1417_v21 = vld [vmem:[%s2454_s1 + $0x168] sm:$0xff]  ;;  %v1418_v26 = vld [vmem:[%s2454_s1 + $0x170] sm:$0xff] }
  0x17   : > { %1596 = vmatprep.mubr.msk.f32.mxu1 %vm225_vm1, %v206_v50  ;;  %v209_v60 = vsel %vm203_vm0, %v207_v46, %v208_v47  ;;  %1684 = vmatprep.mubr.msk.f32.mxu0 %vm225_vm1, %v664_v51  ;;  %v2145_v3 = vunpack.c.h.bf16 %v175_v54  ;;  %v545_v4 = vunpack.c.l.bf16 %v2130_v58  ;;  %v667_v7 = vsel %vm203_vm0, %v665_v52, %v666_v53  ;;  %v1369_v50 = vld [vmem:[%s2454_s1 + $0x88] sm:$0xff]  ;;  %v1432_v51 = vld [vmem:[%s2454_s1 + $0x180] sm:$0xff]  ;;  %v1434_v33 = vld [vmem:[%s2454_s1 + $0x190] sm:$0xff] }
  0x18   : > { %v210_v2 = vrot.slane %v2127_v57, 1  ;;  %v211_v8 = vrot.slane %v184_v62, 1  ;;  %v2157_v9 = vunpack.c.l.bf16 %v177_v63  ;;  %v186_v10 = vunpack.c.l.bf16 %v2149_v5  ;;  %1859 = vmatprep.subr.bf16.mxu0 %v1858_v59  ;;  %1597 = vmatmul.mubr.msk.f32.vlgmr.msra.gmra.mrb[0].mxu1 %vm225_vm1, %v209_v60  ;;  %v1433_v52 = vld [vmem:[%s2454_s1 + $0x188] sm:$0xff]  ;;  %v1370_v60 = vld [vmem:[%s2454_s1 + $0x90] sm:$0xff]  ;;  %v1391_v32 = vld [vmem:[%s2454_s1 + $0xd8] sm:$0xff] }
  0x19   : > { %v668_v11 = vrot.slane %v2145_v3, 1  ;;  %v669_v12 = vrot.slane %v545_v4, 1  ;;  %v2164_v13 = vunpack.c.h.bf16 %v177_v63  ;;  %v547_v14 = vunpack.c.l.bf16 %v2152_v6  ;;  %1797 = vmatpush3.bf16.msra.mxu1 %v1794_v56  ;;  %1685 = vmatmul.mubr.msk.f32.vlgmr.msra.gmra.mrb[0].mxu0 %vm225_vm1, %v667_v7  ;;  %v1373_v58 = vld [vmem:[%s2454_s1 + $0xa8] sm:$0xff]  ;;  %v1424_v17 = vld [vmem:[%s2061_s24 + $0x10] ss:$8 sps:$4 sm:$0xff]   ;;  %v1392_v55 = vld [vmem:[%s2454_s1 + $0xe0] sm:$0xff] }
  0x1a   : > { %v213_v18 = vrot.slane %v2157_v9, 1  ;;  %v214_v19 = vrot.slane %v186_v10, 1  ;;  %v212_v22 = vsel %vm203_vm0, %v210_v2, %v211_v8  ;;  %v780_v39 = vrot.slane %v2075_v29, 2  ;;  %1861 = vmatpush3.bf16.msra.mxu0 %v1858_v59  ;;  %1799 = vmatprep.subr.bf16.mxu1 %v1798_v0  ;;  %v1437_v6 = vld [vmem:[%s2454_s1 + $0x1a8] sm:$0xff]  ;;  %v1374_v25 = vld [vmem:[%s2454_s1 + $0xb0] sm:$0xff] }
  0x1b   : > { %v671_v23 = vrot.slane %v2164_v13, 1  ;;  %v672_v24 = vrot.slane %v547_v14, 1  ;;  %v670_v31 = vsel %vm203_vm0, %v668_v11, %v669_v12  ;;  %v781_v40 = vrot.slane %v541_v30, 2  ;;  %1863 = vmatprep.subr.bf16.mxu0 %v1862_v15  ;;  %1599 = vmatprep.mubr.msk.f32.mxu1 %vm225_vm1, %v212_v22  ;;  %v1419_v30 = vld [vmem:[%s2454_s1 + $0x178] sm:$0xff]  ;;  %v1372_v12 = vld [vmem:[%s2454_s1 + $0xa0] sm:$0xff]  ;;  %v1449_v5 = vld [vmem:[%s2454_s1 + $0x1e8] sm:$0xff] }
  0x1c   : > { %v215_v34 = vsel %vm203_vm0, %v213_v18, %v214_v19  ;;  %v1866_v43 = vpack.c.bf16 %v1417_v21, %v1416_v20  ;;  %1687 = vmatprep.mubr.msk.f32.mxu0 %vm225_vm1, %v670_v31  ;;  %v1806_v47 = vpack.c.bf16 %v194_v45, %v193_v44  ;;  %v1870_v48 = vpack.c.bf16 %v1419_v30, %v1418_v26  ;;  %v1439_v21 = vld [vmem:[%s2454_s1 + $0x1b8] sm:$0xff]  ;;  %v2309_v45 = vld [vmem:[%s2061_s24 + $0x14] sm:$0x1] }
  0x1d   : > { %v673_v42 = vsel %vm203_vm0, %v671_v23, %v672_v24  ;;  %1600 = vmatmul.mubr.msk.f32.gmra.mrb[2].mxu1 %vm225_vm1, %v215_v34  ;;  %v782_v46 = vsel %vm412_vm2, %v780_v39, %v781_v40  ;;  %v784_v53 = vrot.slane %v543_v38, 2  ;;  %v1810_v54 = vpack.c.bf16 %v1369_v50, %v1368_v49  ;;  %v1435_v38 = vld [vmem:[%s2454_s1 + $0x198] sm:$0xff]  ;;  %v1388_v34 = vld [vmem:[%s2454_s1 + $0xc0] sm:$0xff]  ;;  %v1389_v39 = vld [vmem:[%s2454_s1 + $0xc8] sm:$0xff] }
  0x1e   : > { %1801 = vmatpush3.bf16.msra.mxu1 %v1798_v0  ;;  %1688 = vmatmul.mubr.msk.f32.gmra.mrb[2].mxu0 %vm225_vm1, %v673_v42  ;;  %v783_v56 = vrot.slane %v2091_v37, 2  ;;  %v1874_v59 = vpack.c.bf16 %v1433_v52, %v1432_v51  ;;  %v786_v63 = vrot.slane %v2145_v3, 2  ;;  %v787_v0 = vrot.slane %v545_v4, 2  ;;  %v1436_v4 = vld [vmem:[%s2454_s1 + $0x1a0] sm:$0xff]  ;;  %v1390_v30 = vld [vmem:[%s2454_s1 + $0xd0] sm:$0xff] }
  0x1f   : > { %1865 = vmatpush3.bf16.msra.mxu0 %v1862_v15  ;;  %1803 = vmatprep.subr.bf16.mxu1 %v1802_v41  ;;  %v1814_v2 = vpack.c.bf16 %v1371_v61, %v1370_v60  ;;  %v789_v7 = vrot.slane %v2164_v13, 2  ;;  %v790_v8 = vrot.slane %v547_v14, 2  ;;  %v1878_v11 = vpack.c.bf16 %v1435_v38, %v1434_v33  ;;  %v1444_v40 = vld [vmem:[%s2454_s1 + $0x1c0] sm:$0xff] }
  0x20   : > { %1867 = vmatprep.subr.bf16.mxu0 %v1866_v43  ;;  %1618 = vmatprep.mubr.msk.f32.mxu1 %vm225_vm1, %v2072_v27  ;;  %v785_v1 = vsel %vm412_vm2, %v783_v56, %v784_v53  ;;  %v413_v14 = vrot.slane %v2072_v27, 2  ;;  %v414_v15 = vrot.slane %v180_v28, 2  ;;  %v788_v16 = vsel %vm412_vm2, %v786_v63, %v787_v0  ;;  %v1375_v27 = vld [vmem:[%s2454_s1 + $0xb8] sm:$0xff]  ;;  %v1438_v28 = vld [vmem:[%s2454_s1 + $0x1b0] sm:$0xff]  ;;  %v1428_v50 = vld [vmem:[%s2061_s24 + $0x20] ss:$8 sps:$4 sm:$0xff]  }
  0x21   : > { %1706 = vmatprep.mubr.msk.f32.mxu0 %vm225_vm1, %v782_v46  ;;  %v1818_v18 = vpack.c.bf16 %v1373_v58, %v1372_v12  ;;  %v791_v19 = vsel %vm412_vm2, %v789_v7, %v790_v8  ;;  %v1882_v20 = vpack.c.bf16 %v1437_v6, %v1436_v4  ;;  %v2287_v23 = vunpack.c.l.bf16 %v1424_v17  ;;  %v1447_v46 = vld [vmem:[%s2454_s1 + $0x1d8] sm:$0xff]  ;;  %v1394_v0 = vld [vmem:[%s2454_s1 + $0xf0] sm:$0xff]  ;;  %v1429_v12 = vld [vmem:[%s2061_s24 + $0x24] sm:$0x1] }
  0x22   : > { %1805 = vmatpush3.bf16.msra.mxu1 %v1802_v41  ;;  %v415_v22 = vsel %vm412_vm2, %v413_v14, %v414_v15  ;;  %v1822_v24 = vpack.c.bf16 %v1375_v27, %v1374_v25  ;;  %v1886_v31 = vpack.c.bf16 %v1439_v21, %v1438_v28  ;;  %v1445_v41 = vld [vmem:[%s2454_s1 + $0x1c8] sm:$0xff]  ;;  %v417_v42 = vrot.slane %v182_v36, 2  ;;  %v1450_v7 = vld [vmem:[%s2454_s1 + $0x1f0] sm:$0xff]  ;;  %v1451_v8 = vld [vmem:[%s2454_s1 + $0x1f8] sm:$0xff] }
  0x23   : > { %1869 = vmatpush3.bf16.msra.mxu0 %v1866_v43  ;;  %1807 = vmatprep.subr.bf16.mxu1 %v1806_v47  ;;  %v416_v43 = vrot.slane %v2088_v35, 2  ;;  %v1826_v44 = vpack.c.bf16 %v1389_v39, %v1388_v34  ;;  %v1890_v26 = vpack.c.bf16 %v1445_v41, %v1444_v40  ;;  %v2317_v36 = vunpack.c.h.bf16 %v1424_v17  ;;  %v1456_v14 = vld [vmem:[%s2454_s1 + $0x200] sm:$0xff]  ;;  %v1457_v15 = vld [vmem:[%s2454_s1 + $0x208] sm:$0xff]  ;;  %v1458_v28 = vld [vmem:[%s2454_s1 + $0x210] sm:$0xff] }
  0x24   : > { %1871 = vmatprep.subr.bf16.mxu0 %v1870_v48  ;;  %v422_v51 = vrot.slane %v2157_v9, 2  ;;  %v423_v52 = vrot.slane %v186_v10, 2  ;;  %v908_v53 = vunpack.c.l.bf16 %v2309_v45  ;;  %v2348_v10 = vunpack.c.l.bf16 %v1428_v50  ;;  %v1459_v21 = vld [vmem:[%s2454_s1 + $0x218] sm:$0xff]  ;;  %v1460_v39 = vld [vmem:[%s2454_s1 + $0x220] sm:$0xff]  ;;  %v1461_v40 = vld [vmem:[%s2454_s1 + $0x228] sm:$0xff] }
  0x25   : > { %v418_v49 = vsel %vm412_vm2, %v416_v43, %v417_v42  ;;  %v2353_v60 = vunpack.c.h.bf16 %v1428_v50  ;;  %v1029_v61 = vrot.slane %v2287_v23, 1  ;;  %v1902_v6 = vpack.c.bf16 %v1451_v8, %v1450_v7  ;;  %v1463_v45 = vld [vmem:[%s2454_s1 + $0x238] sm:$0xff] }
  0x26   : > { %1809 = vmatpush3.bf16.msra.mxu1 %v1806_v47  ;;  %v419_v47 = vrot.slane %v2127_v57, 2  ;;  %v1030_v33 = vrot.slane %v908_v53, 1  ;;  %v912_v17 = vunpack.c.l.bf16 %v1429_v12  ;;  %v1035_v25 = vrot.slane %v2348_v10, 1 }
  0x27   : > { %1873 = vmatpush3.bf16.msra.mxu0 %v1870_v48  ;;  %1811 = vmatprep.subr.bf16.mxu1 %v1810_v54  ;;  %v420_v48 = vrot.slane %v184_v62, 2  ;;  %v1448_v62 = vld [vmem:[%s2454_s1 + $0x1e0] sm:$0xff]  ;;  %v1910_v34 = vpack.c.bf16 %v1459_v21, %v1458_v28  ;;  %v1147_v42 = vrot.slane %v2287_v23, 2  ;;  %v1148_v43 = vrot.slane %v908_v53, 2 }
  0x28   : > { %1875 = vmatprep.subr.bf16.mxu0 %v1874_v59  ;;  %v1898_v63 = vpack.c.bf16 %v1449_v5, %v1448_v62  ;;  %v1036_v27 = vrot.slane %v912_v17, 1  ;;  %v1468_v62 = vld [vmem:[%s2455_s2] ss:$0 sm:$0xff] }
  0x29   : > { %1619 = vmatmul.mubr.msk.f32.vlgmr.msra.gmra.mrb[0].mxu1 %vm225_vm1, %v2088_v35  ;;  %v1446_v35 = vld [vmem:[%s2454_s1 + $0x1d0] sm:$0xff] }
  0x2a   : > { %1813 = vmatpush3.bf16.msra.mxu1 %v1810_v54  ;;  %1707 = vmatmul.mubr.msk.f32.vlgmr.msra.gmra.mrb[0].mxu0 %vm225_vm1, %v785_v1  ;;  %v1830_v54 = vpack.c.bf16 %v1391_v32, %v1390_v30  ;;  %v1894_v56 = vpack.c.bf16 %v1447_v46, %v1446_v35  ;;  %v1395_v1 = vld [vmem:[%s2454_s1 + $0xf8] sm:$0xff]  ;;  %v1037_v41 = vsel %vm203_vm0, %v1035_v25, %v1036_v27  ;;  %v1156_v46 = vrot.slane %v2353_v60, 2 }
  0x2b   : > { %1877 = vmatpush3.bf16.msra.mxu0 %v1874_v59  ;;  %1815 = vmatprep.subr.bf16.mxu1 %v1814_v2  ;;  %v424_v59 = vsel %vm412_vm2, %v422_v51, %v423_v52  ;;  %v1838_v58 = vpack.c.bf16 %v1395_v1, %v1394_v0 }
  0x2c   : > { %1879 = vmatprep.subr.bf16.mxu0 %v1878_v11  ;;  %1621 = vmatprep.mubr.msk.f32.mxu1 %vm225_vm1, %v2127_v57  ;;  %v1393_v57 = vld [vmem:[%s2454_s1 + $0xe8] sm:$0xff] }
  0x2d   : > { %1709 = vmatprep.mubr.msk.f32.mxu0 %vm225_vm1, %v788_v16  ;;  %1622 = vmatmul.mubr.msk.f32.gmra.mrb[2].mxu1 %vm225_vm1, %v2157_v9  ;;  %v421_v9 = vsel %vm412_vm2, %v419_v47, %v420_v48  ;;  %v1834_v38 = vpack.c.bf16 %v1393_v57, %v1392_v55  ;;  %v1431_v16 = vld [vmem:[%s2061_s24 + $0x2c] sm:$0x1] }
  0x2e   : > { %1817 = vmatpush3.bf16.msra.mxu1 %v1814_v2  ;;  %1710 = vmatmul.mubr.msk.f32.gmra.mrb[2].mxu0 %vm225_vm1, %v791_v19  ;;  %v2366_v2 = vld [vmem:[%s2061_s24 + $0x1c] sm:$0x1]  ;;  %v1906_v19 = vpack.c.bf16 %v1457_v15, %v1456_v14 }
  0x2f   : > { %1881 = vmatpush3.bf16.msra.mxu0 %v1878_v11  ;;  %1819 = vmatprep.subr.bf16.mxu1 %v1818_v18  ;;  %v1031_v11 = vsel %vm203_vm0, %v1029_v61, %v1030_v33  ;;  %v910_v4 = vunpack.c.l.bf16 %v2366_v2 }
  0x30   : > { %1883 = vmatprep.subr.bf16.mxu0 %v1882_v20  ;;  %1640 = vmatprep.mubr.msk.f32.mxu1 %vm225_vm1, %v415_v22 }
  0x31   : > { %1728 = vmatprep.mubr.msk.f32.mxu0 %vm225_vm1, %v2287_v23  ;;  %v1462_v23 = vld [vmem:[%s2454_s1 + $0x230] sm:$0xff]  ;;  %v1151_v48 = vrot.slane %v910_v4, 2 }
  0x32   : > { %1821 = vmatpush3.bf16.msra.mxu1 %v1818_v18  ;;  %v1032_v18 = vrot.slane %v2317_v36, 1  ;;  %v1918_v35 = vpack.c.bf16 %v1463_v45, %v1462_v23 }
  0x33   : > { %1885 = vmatpush3.bf16.msra.mxu0 %v1882_v20  ;;  %1823 = vmatprep.subr.bf16.mxu1 %v1822_v24  ;;  %v914_v20 = vunpack.c.l.bf16 %v1431_v16 }
  0x34   : > { %1887 = vmatprep.subr.bf16.mxu0 %v1886_v31 }
  0x35   : > { %v1157_v47 = vrot.slane %v914_v20, 2 }
  0x36   : > { %1825 = vmatpush3.bf16.msra.mxu1 %v1822_v24  ;;  %v1038_v24 = vrot.slane %v2353_v60, 1 }
  0x37   : > { %1889 = vmatpush3.bf16.msra.mxu0 %v1886_v31  ;;  %1827 = vmatprep.subr.bf16.mxu1 %v1826_v44  ;;  %v1039_v31 = vrot.slane %v914_v20, 1 }
  0x38   : > { %1891 = vmatprep.subr.bf16.mxu0 %v1890_v26 }
  0x39   : > { %1641 = vmatmul.mubr.msk.f32.vlgmr.msra.gmra.mrb[0].mxu1 %vm225_vm1, %v418_v49  ;;  %v1040_v30 = vsel %vm203_vm0, %v1038_v24, %v1039_v31  ;;  %v1158_v49 = vsel %vm412_vm2, %v1156_v46, %v1157_v47 }
  0x3a   : > { %1829 = vmatpush3.bf16.msra.mxu1 %v1826_v44  ;;  %1729 = vmatmul.mubr.msk.f32.vlgmr.msra.gmra.mrb[0].mxu0 %vm225_vm1, %v2317_v36  ;;  %v1153_v44 = vrot.slane %v2348_v10, 2 }
  0x3b   : > { %1893 = vmatpush3.bf16.msra.mxu0 %v1890_v26  ;;  %1831 = vmatprep.subr.bf16.mxu1 %v1830_v54  ;;  %v1154_v26 = vrot.slane %v912_v17, 2 }
  0x3c   : > { %1895 = vmatprep.subr.bf16.mxu0 %v1894_v56  ;;  %1643 = vmatprep.mubr.msk.f32.mxu1 %vm225_vm1, %v421_v9 }
  0x3d   : > { %1731 = vmatprep.mubr.msk.f32.mxu0 %vm225_vm1, %v2348_v10  ;;  %1644 = vmatmul.mubr.msk.f32.gmra.mrb[2].mxu1 %vm225_vm1, %v424_v59  ;;  %v1155_v32 = vsel %vm412_vm2, %v1153_v44, %v1154_v26 }
  0x3e   : > { %1833 = vmatpush3.bf16.msra.mxu1 %v1830_v54  ;;  %1732 = vmatmul.mubr.msk.f32.gmra.mrb[2].mxu0 %vm225_vm1, %v2353_v60 }
  0x3f   : > { %1897 = vmatpush3.bf16.msra.mxu0 %v1894_v56  ;;  %1835 = vmatprep.subr.bf16.mxu1 %v1834_v38 }
  0x40   : > { %1899 = vmatprep.subr.bf16.mxu0 %v1898_v63  ;;  %1662 = vmatprep.mubr.msk.f32.mxu1 %vm225_vm1, %v2075_v29  ;;  %v1033_v29 = vrot.slane %v910_v4, 1 }
  0x41   : > { %1750 = vmatprep.mubr.msk.f32.mxu0 %vm225_vm1, %v1031_v11 }
  0x42   : > { %1837 = vmatpush3.bf16.msra.mxu1 %v1834_v38  ;;  %v1034_v22 = vsel %vm203_vm0, %v1032_v18, %v1033_v29 }
  0x43   : > { %1901 = vmatpush3.bf16.msra.mxu0 %v1898_v63  ;;  %1839 = vmatprep.subr.bf16.mxu1 %v1838_v58 }
  0x44   : > { %1903 = vmatprep.subr.bf16.mxu0 %v1902_v6 }
  0x46   : > { %1841 = vmatpush3.bf16.msra.mxu1 %v1838_v58 }
  0x47   : > { %1905 = vmatpush3.bf16.msra.mxu0 %v1902_v6  ;;  %1922 = vmatprep.subr.bf16.mxu1 %v1906_v19 }
  0x48   : > { %1907 = vmatprep.subr.bf16.mxu0 %v1906_v19 }
  0x49   : > { %1663 = vmatmul.mubr.msk.f32.vlgmr.msra.gmra.mrb[0].mxu1 %vm225_vm1, %v2091_v37  ;;  %v1914_v37 = vpack.c.bf16 %v1461_v40, %v1460_v39 }
  0x4a   : > { %1751 = vmatmul.mubr.msk.f32.vlgmr.msra.gmra.mrb[0].mxu0 %vm225_vm1, %v1034_v22  ;;  %1926 = vmatpush3.bf16.msra.mxu1 %v1906_v19 }
  0x4b   : > { %1909 = vmatpush3.bf16.msra.mxu0 %v1906_v19  ;;  %1665 = vmatprep.mubr.msk.f32.mxu1 %vm225_vm1, %v2145_v3  ;;  %v1149_v3 = vsel %vm412_vm2, %v1147_v42, %v1148_v43 }
  0x4c   : > { %1753 = vmatprep.mubr.msk.f32.mxu0 %vm225_vm1, %v1037_v41  ;;  %1911 = vmatprep.subr.bf16.mxu0 %v1910_v34 }
  0x4d   : > { %1666 = vmatmul.mubr.msk.f32.gmra.mrb[2].mxu1 %vm225_vm1, %v2164_v13  ;;  %1923 = vmatprep.subr.bf16.mxu1 %v1910_v34  ;;  %v1150_v13 = vrot.slane %v2317_v36, 2 }
  0x4e   : > { %1754 = vmatmul.mubr.msk.f32.gmra.mrb[2].mxu0 %vm225_vm1, %v1040_v30  ;;  %1927 = vmatpush3.bf16.msra.mxu1 %v1910_v34 }
  0x4f   : > { %1913 = vmatpush3.bf16.msra.mxu0 %v1910_v34  ;;  %1924 = vmatprep.subr.bf16.mxu1 %v1914_v37  ;;  %v1152_v50 = vsel %vm412_vm2, %v1150_v13, %v1151_v48 }
  0x50   : > { %1915 = vmatprep.subr.bf16.mxu0 %v1914_v37  ;;  %1772 = vmatprep.mubr.msk.f32.mxu0 %vm225_vm1, %v1149_v3 }
  0x51   : > { %1775 = vmatprep.mubr.msk.f32.mxu1 %vm225_vm1, %v1155_v32 }
  0x52   : > { %1928 = vmatpush3.bf16.msra.mxu1 %v1914_v37 }
  0x53   : > { %1917 = vmatpush3.bf16.msra.mxu0 %v1914_v37  ;;  %1925 = vmatprep.subr.bf16.mxu1 %v1918_v35 }
  0x54   : > { %1919 = vmatprep.subr.bf16.mxu0 %v1918_v35 }
  0x56   : > { %1929 = vmatpush3.bf16.msra.mxu1 %v1918_v35 }
  0x57   : > { %1921 = vmatpush3.bf16.msra.mxu0 %v1918_v35 }
  0x59   : > { %1776 = vmatmul.mubr.msk.f32.vlgmr.msra.gmra.mrb[4].mxu1 %vm225_vm1, %v1158_v49 }
  0x5a   : > { %1773 = vmatmul.mubr.msk.f32.vlgmr.msra.gmra.mrb[0].mxu0 %vm225_vm1, %v1152_v50 }
 0x11c   : > { %v1664_v51 = vpop.f32.mrb[0].mxu1 }
 0x11d   : > { %v635_v52 = vpop.f32.mrb[1].mxu1 }
 0x120   : > { %v1667_v53 = vpop.f32.mrb[2].mxu1 }
 0x121   : > { %v1755_v54 = vpop.f32.mrb[2].mxu0  ;;  %v645_v36 = vpop.f32.mrb[3].mxu1 }
 0x122   : > { %v1932_v56 = vadd.f32 %v1755_v54, %v1667_v53  ;;  %v1134_v55 = vpop.f32.mrb[3].mxu0 }
 0x123   : > { %v1934_v57 = vadd.f32 %v1134_v55, %v645_v36 }
 0x12c   : > { %v1777_v5 = vpop.f32.mrb[4].mxu1 }
 0x12d   : > { %v1774_v9 = vpop.f32.mrb[0].mxu0  ;;  %v1933_v10 = vadd.f32 %v1932_v56, %v1777_v5  ;;  %v1252_v59 = vpop.f32.mrb[5].mxu1 }
 0x12e   : > { %v1930_v60 = vadd.f32 %v1774_v9, %v1664_v51  ;;  %v1242_v61 = vpop.f32.mrb[1].mxu0  ;;  %v1935_v33 = vadd.f32 %v1934_v57, %v1252_v59 }
 0x12f   : > { %v1275_v38 = vadd.f32 %v1933_v10, %v1468_v62  ;;  %v1931_v63 = vadd.f32 %v1242_v61, %v635_v52 }
 0x130   : > { %v1273_v0 = vadd.f32 %v1930_v60, %v1468_v62  ;;  %v1274_v1 = vadd.f32 %v1935_v33, %v1468_v62 }
 0x131   : > { %v1279_v2 = vmax.f32 %v1275_v38, 0.0  ;;  %v1272_v7 = vadd.f32 %v1931_v63, %v1468_v62 }
 0x132   : > { %v1277_v8 = vmax.f32 %v1273_v0, 0.0  ;;  %v1278_v11 = vmax.f32 %v1274_v1, 0.0 }
 0x133   : > { %v1283_v12 = vpack.c.bf16 %v1279_v2, %v1279_v2  ;;  %v1276_v58 = vmax.f32 %v1272_v7, 0.0 }
 0x134   : > { %v1281_v4 = vpack.c.bf16 %v1277_v8, %v1277_v8  ;;  %v1282_v6 = vpack.c.bf16 %v1278_v11, %v1278_v11 }
 0x135   : > { %1288 = vst.msk [vmem:[%s170_s20 + $0xc] sm:$0xf] %vm1284_vm3, %v1283_v12  ;;  %v1280_v14 = vpack.c.bf16 %v1276_v58, %v1276_v58 }
 0x136   : > { %1286 = vst.msk [vmem:[%s170_s20 + $0x4] sm:$0xf] %vm1284_vm3, %v1281_v4  ;;  %1287 = vst.msk [vmem:[%s170_s20 + $0x8] sm:$0xf] %vm1284_vm3, %v1282_v6 }
 0x137   : > { %1285 = vst.msk [vmem:[%s170_s20] sm:$0xf] %vm1284_vm3, %v1280_v14 }
 0x138 PF: > { %s13_s12 = sadd.s32 1, %s1977_s12  }
 0x139   : > { %p10_p4 = scmp.ge.s32.totalorder %s13_s12, 4  }
 0x13b   :  { %12 = sbr.rel (!%p10_p4) target bundleno = 1 (0x1), region = 72 }

// kernel: forward.29
= control target key start
LH: loop header
LB: loop body
LE: loop exit
PB: predicated region body
PF: predicated region fallthrough
CT: control target
= control target key end

     0   :  { %s1621_s12 = smov 0   ;;  %s1885_s0 = inlined_call_operand.vmem [shape: bf16[2,6,10,16], index: 0, kind: input, shape index: {}]   ;;  %s1886_s1 = inlined_call_operand.vmem [shape: f32[9,16,16], index: 1, kind: input, shape index: {}]   ;;  %s1887_s2 = inlined_call_operand.vmem [shape: f32[1,16], index: 2, kind: input, shape index: {}]   ;;  %s1888_s3 = inlined_call_operand.vmem [shape: bf16[2,4,8,16], index: 3, kind: output, shape index: {}]  }
   0x1 LB: > { %s1290_s13 = sadd.s32 4294967295, %s1599_s12   ;;  %p1294_p0 = scmp.ge.s32.totalorder %s1599_s12, 1  ;;  %s1599_s12 = sphi %s1621_s12, %s13_s12  }
   0x2   : > { %p137_p1 = scmp.lt.s32.totalorder %s1599_s12, 3 }
   0x4   : > { %p138_p2 = pnand %p1294_p0, %p137_p1 }
   0x5   : > { %v1298_v0 = vld [vmem:[%s1886_s1 + $0x10] sm:$0xff] (!%p138_p2)  ;;  %v1299_v1 = vld [vmem:[%s1886_s1 + $0x18] sm:$0xff] (!%p138_p2)  ;;  %v1328_v2 = vld [vmem:[%s1886_s1 + $0x40] sm:$0xff] (!%p138_p2)  ;;  %p161_p3 = scmp.lt.s32.totalorder (!%p138_p2), %s1290_s13, 1  ;;  %vm197_vm0 = vcmask (!%p138_p2), 1046528   ;;  %vm213_vm1 = vcmask (!%p138_p2), 130048  }
   0x6   : > { %141 = sbr.rel (%p138_p2) target bundleno = 282 (0x11a), region = 32  ;;  %v1514_v3 = vpack.c.bf16 (!%p138_p2), %v1299_v1, %v1298_v0  ;;  %v1329_v4 = vld [vmem:[%s1886_s1 + $0x48] sm:$0xff] (!%p138_p2)  ;;  %v187_v5 = vld [vmem:[%s1886_s1] sm:$0xff] (!%p138_p2)  ;;  %v1334_v9 = vld [vmem:[%s1886_s1 + $0x50] sm:$0xff] (!%p138_p2)  ;;  %vm400_vm2 = vcmask (!%p138_p2), 1045504   ;;  %vm1230_vm3 = vcmask (!%p138_p2), 125952  }
   0x7   : > { %v188_v6 = vld [vmem:[%s1886_s1 + $0x8] sm:$0xff] (!%p138_p2)  ;;  %v1647_v7 = vpack.c.bf16 (!%p138_p2), %v1329_v4, %v1328_v2  ;;  %v1335_v10 = vld [vmem:[%s1886_s1 + $0x58] sm:$0xff] (!%p138_p2)  ;;  %v1308_v12 = vld [vmem:[%s1886_s1 + $0x20] sm:$0xff] (!%p138_p2) }
   0x8   : > { %v1518_v8 = vpack.c.bf16 (!%p138_p2), %v188_v6, %v187_v5  ;;  %1515 = vmatprep.subr.bf16.mxu1 (!%p138_p2), %v1514_v3  ;;  %v1657_v11 = vpack.c.bf16 (!%p138_p2), %v1335_v10, %v1334_v9  ;;  %v1309_v13 = vld [vmem:[%s1886_s1 + $0x28] sm:$0xff] (!%p138_p2)  ;;  %v1348_v14 = vld [vmem:[%s1886_s1 + $0x60] sm:$0xff] (!%p138_p2)  ;;  %v1323_v9 = vld [vmem:[%s1886_s1 + $0x38] sm:$0xff] (!%p138_p2) }
   0x9   : > { %1531 = vmatprep.subr.bf16.mxu0 (!%p138_p2), %v1647_v7  ;;  %1517 = vmatpush3.bf16.msra.mxu1 (!%p138_p2), %v1514_v3  ;;  %v1349_v15 = vld [vmem:[%s1886_s1 + $0x68] sm:$0xff] (!%p138_p2)  ;;  %v1685_v19 = vpack.c.bf16 (!%p138_p2), %v1309_v13, %v1308_v12  ;;  %v1354_v10 = vld [vmem:[%s1886_s1 + $0x70] sm:$0xff] (!%p138_p2) }
   0xa   : > { %1533 = vmatpush3.bf16.msra.mxu0 (!%p138_p2), %v1647_v7  ;;  %1519 = vmatprep.subr.bf16.mxu1 (!%p138_p2), %v1518_v8  ;;  %v1538_v41 = vpack.c.bf16 (!%p138_p2), %v1349_v15, %v1348_v14 }
   0xb   : > { %1535 = vmatprep.subr.bf16.mxu0 (!%p138_p2), %v1657_v11 }
   0xd   : > { %s1890_s13 = smov (!%p161_p3, %s1290_s13), 1 }
   0xe   : > { %s1584_s30 = smul.u32 48, %s1890_s13  ;;  %s1369_s4 = sshll.u32 %s1890_s13, 4 }
   0xf   : > { %s170_s7 = scalar_lea.vmem %s1888_s3, %s1369_s4 }
  0x10   : > { %s1671_s10 = scalar_lea.vmem %s1885_s0, %s1584_s30 }
  0x11   : > { %v171_v16 = vld [vmem:[%s1671_s10] ss:$8 sps:$4 sm:$0xff]   ;;  %v1682_v17 = vld [vmem:[%s1671_s10 + $0x4] sm:$0x1]  ;;  %v1315_v18 = vld [vmem:[%s1671_s10 + $0xc] sm:$0x1] }
  0x12   : > { %v1687_v20 = vunpack.c.l.bf16 %v171_v16  ;;  %v180_v21 = vunpack.c.l.bf16 %v1682_v17  ;;  %v1690_v22 = vunpack.c.h.bf16 %v171_v16  ;;  %v523_v23 = vunpack.c.l.bf16 %v1315_v18  ;;  %v173_v24 = vld [vmem:[%s1671_s10 + $0x8] ss:$8 sps:$4 sm:$0xff]   ;;  %v1694_v25 = vld [vmem:[%s1671_s10 + $0xc] sm:$0x1]  ;;  %v1317_v26 = vld [vmem:[%s1671_s10 + $0x14] sm:$0x1] }
  0x13   : > { %v1697_v27 = vunpack.c.l.bf16 %v173_v24  ;;  %v182_v28 = vunpack.c.l.bf16 %v1694_v25  ;;  %v1700_v29 = vunpack.c.h.bf16 %v173_v24  ;;  %v525_v30 = vunpack.c.l.bf16 %v1317_v26  ;;  %v175_v31 = vld [vmem:[%s1671_s10 + $0x10] ss:$8 sps:$4 sm:$0xff]   ;;  %v1704_v32 = vld [vmem:[%s1671_s10 + $0x14] sm:$0x1]  ;;  %v1711_v37 = vld [vmem:[%s1671_s10 + $0x1c] sm:$0x1] }
  0x14   : > { %v198_v33 = vrot.slane %v1687_v20, 1  ;;  %v199_v34 = vrot.slane %v180_v21, 1  ;;  %v638_v35 = vrot.slane %v1690_v22, 1  ;;  %v639_v36 = vrot.slane %v523_v23, 1  ;;  %v1318_v50 = vld [vmem:[%s1671_s10 + $0x18] ss:$8 sps:$4 sm:$0xff]  }
  0x15   : > { %v201_v38 = vrot.slane %v1697_v27, 1  ;;  %v202_v39 = vrot.slane %v182_v28, 1  ;;  %v641_v40 = vrot.slane %v1700_v29, 1  ;;  %v642_v44 = vrot.slane %v525_v30, 1  ;;  %v1730_v51 = vld [vmem:[%s1671_s10 + $0x1c] sm:$0x1] }
  0x16   : > { %v200_v42 = vsel %vm197_vm0, %v198_v33, %v199_v34  ;;  %v640_v43 = vsel %vm197_vm0, %v638_v35, %v639_v36  ;;  %v1719_v45 = vunpack.c.l.bf16 %v175_v31  ;;  %v184_v47 = vunpack.c.l.bf16 %v1704_v32  ;;  %v1737_v56 = vld [vmem:[%s1671_s10 + $0x24] sm:$0x1]  ;;  %v1340_v18 = vld [vmem:[%s1671_s10 + $0x10] ss:$8 sps:$4 sm:$0xff]   ;;  %v1343_v34 = vld [vmem:[%s1671_s10 + $0x1c] sm:$0x1] }
  0x17   : > { %1428 = vmatprep.mubr.msk.f32.mxu1 %vm213_vm1, %v200_v42  ;;  %1468 = vmatprep.mubr.msk.f32.mxu0 %vm213_vm1, %v640_v43  ;;  %v203_v46 = vsel %vm197_vm0, %v201_v38, %v202_v39  ;;  %v1725_v48 = vunpack.c.h.bf16 %v175_v31  ;;  %v186_v49 = vunpack.c.l.bf16 %v1711_v37  ;;  %v643_v52 = vsel %vm197_vm0, %v641_v40, %v642_v44  ;;  %v1344_v35 = vld [vmem:[%s1671_s10 + $0x20] ss:$8 sps:$4 sm:$0xff]   ;;  %v1345_v39 = vld [vmem:[%s1671_s10 + $0x24] sm:$0x1] }
  0x18   : > { %1429 = vmatmul.mubr.msk.f32.vlgmr.msra.gmra.mrb[0].mxu1 %vm213_vm1, %v203_v46  ;;  %v204_v53 = vrot.slane %v1719_v45, 1  ;;  %v750_v54 = vrot.slane %v1690_v22, 2  ;;  %v751_v55 = vrot.slane %v523_v23, 2  ;;  %1469 = vmatmul.mubr.msk.f32.vlgmr.msra.gmra.mrb[0].mxu0 %vm213_vm1, %v643_v52  ;;  %v205_v57 = vrot.slane %v184_v47, 1  ;;  %v1360_v36 = vld [vmem:[%s1886_s1 + $0x80] sm:$0xff]  ;;  %v1361_v38 = vld [vmem:[%s1886_s1 + $0x88] sm:$0xff] }
  0x19   : > { %1521 = vmatpush3.bf16.msra.mxu1 %v1518_v8  ;;  %v207_v58 = vrot.slane %v1725_v48, 1  ;;  %v208_v59 = vrot.slane %v186_v49, 1  ;;  %v753_v60 = vrot.slane %v1700_v29, 2  ;;  %1537 = vmatpush3.bf16.msra.mxu0 %v1657_v11  ;;  %v754_v62 = vrot.slane %v525_v30, 2  ;;  %v1322_v8 = vld [vmem:[%s1886_s1 + $0x30] sm:$0xff]  ;;  %v1355_v11 = vld [vmem:[%s1886_s1 + $0x78] sm:$0xff] }
  0x1a   : > { %1523 = vmatprep.subr.bf16.mxu1 %v1685_v19  ;;  %v752_v61 = vsel %vm400_vm2, %v750_v54, %v751_v55  ;;  %v1749_v63 = vunpack.c.l.bf16 %v1318_v50  ;;  %v527_v0 = vunpack.c.l.bf16 %v1730_v51  ;;  %v206_v1 = vsel %vm197_vm0, %v204_v53, %v205_v57  ;;  %1539 = vmatprep.subr.bf16.mxu0 %v1538_v41  ;;  %v1341_v30 = vld [vmem:[%s1671_s10 + $0x14] sm:$0x1]  ;;  %v1347_v46 = vld [vmem:[%s1671_s10 + $0x2c] sm:$0x1] }
  0x1b   : > { %v209_v2 = vsel %vm197_vm0, %v207_v58, %v208_v59  ;;  %1478 = vmatprep.mubr.msk.f32.mxu0 %vm213_vm1, %v752_v61  ;;  %v1755_v3 = vunpack.c.h.bf16 %v1318_v50  ;;  %v529_v4 = vunpack.c.l.bf16 %v1737_v56  ;;  %1431 = vmatprep.mubr.msk.f32.mxu1 %vm213_vm1, %v206_v1  ;;  %v755_v12 = vsel %vm400_vm2, %v753_v60, %v754_v62 }
  0x1c   : > { %v756_v5 = vrot.slane %v1749_v63, 2  ;;  %v757_v6 = vrot.slane %v527_v0, 2  ;;  %1432 = vmatmul.mubr.msk.f32.gmra.mrb[2].mxu1 %vm213_vm1, %v209_v2  ;;  %v401_v15 = vrot.slane %v1687_v20, 2  ;;  %v402_v16 = vrot.slane %v180_v21, 2 }
  0x1d   : > { %1438 = vmatprep.mubr.msk.f32.mxu1 %vm213_vm1, %v1687_v20  ;;  %v759_v13 = vrot.slane %v1755_v3, 2  ;;  %v760_v14 = vrot.slane %v529_v4, 2  ;;  %v1526_v24 = vpack.c.bf16 %v1323_v9, %v1322_v8  ;;  %v1542_v26 = vpack.c.bf16 %v1355_v11, %v1354_v10 }
  0x1e   : > { %v758_v23 = vsel %vm400_vm2, %v756_v5, %v757_v6  ;;  %v405_v31 = vrot.slane %v182_v28, 2  ;;  %v1794_v20 = vunpack.c.l.bf16 %v1340_v18  ;;  %v404_v21 = vrot.slane %v1697_v27, 2 }
  0x1f   : > { %v761_v17 = vsel %vm400_vm2, %v759_v13, %v760_v14  ;;  %v403_v33 = vsel %vm400_vm2, %v401_v15, %v402_v16  ;;  %v872_v25 = vunpack.c.l.bf16 %v1341_v30  ;;  %v408_v28 = vrot.slane %v184_v47, 2 }
  0x20   : > { %1439 = vmatmul.mubr.msk.f32.vlgmr.msra.gmra.mrb[0].mxu1 %vm213_vm1, %v1697_v27  ;;  %1479 = vmatmul.mubr.msk.f32.vlgmr.msra.gmra.mrb[0].mxu0 %vm213_vm1, %v755_v12  ;;  %v1809_v27 = vunpack.c.h.bf16 %v1340_v18  ;;  %v406_v32 = vsel %vm400_vm2, %v404_v21, %v405_v31  ;;  %v410_v40 = vrot.slane %v1725_v48, 2  ;;  %v874_v42 = vunpack.c.l.bf16 %v1343_v34  ;;  %v1366_v18 = vld [vmem:[%s1887_s2] ss:$0 sm:$0xff] }
  0x21   : > { %1525 = vmatpush3.bf16.msra.mxu1 %v1685_v19  ;;  %1541 = vmatpush3.bf16.msra.mxu0 %v1538_v41  ;;  %v407_v19 = vrot.slane %v1719_v45, 2  ;;  %v411_v41 = vrot.slane %v186_v49, 2  ;;  %v875_v43 = vunpack.c.l.bf16 %v1344_v35  ;;  %v987_v44 = vrot.slane %v1794_v20, 1 }
  0x22   : > { %1441 = vmatprep.mubr.msk.f32.mxu1 %vm213_vm1, %v1719_v45  ;;  %1481 = vmatprep.mubr.msk.f32.mxu0 %vm213_vm1, %v758_v23  ;;  %v988_v45 = vrot.slane %v872_v25, 1  ;;  %v1546_v50 = vpack.c.bf16 %v1361_v38, %v1360_v36  ;;  %v876_v52 = vunpack.c.l.bf16 %v1345_v39  ;;  %v877_v53 = vunpack.c.h.bf16 %v1344_v35 }
  0x23   : > { %1527 = vmatprep.subr.bf16.mxu1 %v1526_v24  ;;  %1543 = vmatprep.subr.bf16.mxu0 %v1542_v26  ;;  %v409_v47 = vsel %vm400_vm2, %v407_v19, %v408_v28  ;;  %v412_v37 = vsel %vm400_vm2, %v410_v40, %v411_v41  ;;  %v991_v49 = vrot.slane %v874_v42, 1  ;;  %v878_v54 = vunpack.c.l.bf16 %v1347_v46 }
  0x24   : > { %1442 = vmatmul.mubr.msk.f32.gmra.mrb[2].mxu1 %vm213_vm1, %v1725_v48  ;;  %1482 = vmatmul.mubr.msk.f32.gmra.mrb[2].mxu0 %vm213_vm1, %v761_v17  ;;  %v990_v48 = vrot.slane %v1809_v27, 1  ;;  %v989_v55 = vsel %vm197_vm0, %v987_v44, %v988_v45  ;;  %v993_v57 = vrot.slane %v875_v43, 1  ;;  %v994_v58 = vrot.slane %v876_v52, 1 }
  0x25   : > { %1448 = vmatprep.mubr.msk.f32.mxu1 %vm213_vm1, %v403_v33  ;;  %1488 = vmatprep.mubr.msk.f32.mxu0 %vm213_vm1, %v1794_v20  ;;  %v996_v60 = vrot.slane %v877_v53, 1  ;;  %v997_v61 = vrot.slane %v878_v54, 1  ;;  %v1099_v62 = vrot.slane %v1794_v20, 2  ;;  %v1100_v1 = vrot.slane %v872_v25, 2 }
  0x26   : > { %v992_v59 = vsel %vm197_vm0, %v990_v48, %v991_v49  ;;  %v644_v2 = vrot.slane %v1749_v63, 1  ;;  %v645_v5 = vrot.slane %v527_v0, 1  ;;  %v995_v6 = vsel %vm197_vm0, %v993_v57, %v994_v58 }
  0x27   : > { %v1102_v8 = vrot.slane %v1809_v27, 2  ;;  %v1103_v9 = vrot.slane %v874_v42, 2  ;;  %v1101_v51 = vsel %vm400_vm2, %v1099_v62, %v1100_v1  ;;  %v1106_v10 = vrot.slane %v876_v52, 2 }
  0x28   : > { %1449 = vmatmul.mubr.msk.f32.vlgmr.msra.gmra.mrb[0].mxu1 %vm213_vm1, %v406_v32  ;;  %1489 = vmatmul.mubr.msk.f32.vlgmr.msra.gmra.mrb[0].mxu0 %vm213_vm1, %v1809_v27  ;;  %v646_v0 = vsel %vm197_vm0, %v644_v2, %v645_v5  ;;  %v647_v11 = vrot.slane %v1755_v3, 1  ;;  %v1108_v12 = vrot.slane %v877_v53, 2  ;;  %v1109_v13 = vrot.slane %v878_v54, 2 }
  0x29   : > { %1529 = vmatpush3.bf16.msra.mxu1 %v1526_v24  ;;  %1545 = vmatpush3.bf16.msra.mxu0 %v1542_v26 }
  0x2a   : > { %1451 = vmatprep.mubr.msk.f32.mxu1 %vm213_vm1, %v409_v47  ;;  %1491 = vmatprep.mubr.msk.f32.mxu0 %vm213_vm1, %v875_v43 }
  0x2b   : > { %1550 = vmatprep.subr.bf16.mxu1 %v1647_v7  ;;  %1547 = vmatprep.subr.bf16.mxu0 %v1546_v50 }
  0x2c   : > { %1452 = vmatmul.mubr.msk.f32.gmra.mrb[2].mxu1 %vm213_vm1, %v412_v37  ;;  %1492 = vmatmul.mubr.msk.f32.gmra.mrb[2].mxu0 %vm213_vm1, %v877_v53 }
  0x2d   : > { %1458 = vmatprep.mubr.msk.f32.mxu1 %vm213_vm1, %v1690_v22  ;;  %1498 = vmatprep.mubr.msk.f32.mxu0 %vm213_vm1, %v989_v55  ;;  %v998_v22 = vsel %vm197_vm0, %v996_v60, %v997_v61 }
  0x30   : > { %1459 = vmatmul.mubr.msk.f32.vlgmr.msra.gmra.mrb[0].mxu1 %vm213_vm1, %v1700_v29  ;;  %1499 = vmatmul.mubr.msk.f32.vlgmr.msra.gmra.mrb[0].mxu0 %vm213_vm1, %v992_v59  ;;  %v1105_v29 = vrot.slane %v875_v43, 2 }
  0x31   : > { %1551 = vmatpush3.bf16.msra.mxu1 %v1647_v7  ;;  %1549 = vmatpush3.bf16.msra.mxu0 %v1546_v50  ;;  %v648_v7 = vrot.slane %v529_v4, 1  ;;  %v1110_v4 = vsel %vm400_vm2, %v1108_v12, %v1109_v13 }
  0x32   : > { %1461 = vmatprep.mubr.msk.f32.mxu1 %vm213_vm1, %v1749_v63  ;;  %1501 = vmatprep.mubr.msk.f32.mxu0 %vm213_vm1, %v995_v6  ;;  %v1104_v63 = vsel %vm400_vm2, %v1102_v8, %v1103_v9  ;;  %v1107_v14 = vsel %vm400_vm2, %v1105_v29, %v1106_v10 }
  0x33   : > { %v649_v56 = vsel %vm197_vm0, %v647_v11, %v648_v7 }
  0x34   : > { %1462 = vmatmul.mubr.msk.f32.gmra.mrb[2].mxu1 %vm213_vm1, %v1755_v3  ;;  %1502 = vmatmul.mubr.msk.f32.gmra.mrb[2].mxu0 %vm213_vm1, %v998_v22 }
  0x35   : > { %1508 = vmatprep.mubr.msk.f32.mxu0 %vm213_vm1, %v1101_v51  ;;  %1471 = vmatprep.mubr.msk.f32.mxu1 %vm213_vm1, %v646_v0 }
  0x38   : > { %1509 = vmatmul.mubr.msk.f32.vlgmr.msra.gmra.mrb[0].mxu0 %vm213_vm1, %v1104_v63 }
  0x39   : > { %1511 = vmatprep.mubr.msk.f32.mxu0 %vm213_vm1, %v1107_v14 }
  0x3c   : > { %1472 = vmatmul.mubr.msk.f32.vlgmr.msra.gmra.mrb[2].mxu1 %vm213_vm1, %v649_v56  ;;  %1512 = vmatmul.mubr.msk.f32.gmra.mrb[2].mxu0 %vm213_vm1, %v1110_v4 }
 0x103   : > { %v1460_v15 = vpop.f32.mrb[0].mxu1 }
 0x104   : > { %v611_v16 = vpop.f32.mrb[1].mxu1 }
 0x10b   : > { %v1510_v3 = vpop.f32.mrb[0].mxu0 }
 0x10c   : > { %v1552_v23 = vadd.f32 %v1510_v3, %v1460_v15  ;;  %v1188_v24 = vpop.f32.mrb[1].mxu0 }
 0x10d   : > { %v1553_v26 = vadd.f32 %v1188_v24, %v611_v16 }
 0x10e   : > { %v1219_v30 = vadd.f32 %v1552_v23, %v1366_v18 }
 0x10f   : > { %v1218_v31 = vadd.f32 %v1553_v26, %v1366_v18  ;;  %v1473_v17 = vpop.f32.mrb[2].mxu1  ;;  %v1513_v20 = vpop.f32.mrb[2].mxu0 }
 0x110   : > { %v1223_v21 = vmax.f32 %v1219_v30, 0.0  ;;  %v1554_v33 = vadd.f32 %v1513_v20, %v1473_v17  ;;  %v737_v25 = vpop.f32.mrb[3].mxu1  ;;  %v1198_v34 = vpop.f32.mrb[3].mxu0 }
 0x111   : > { %v1222_v19 = vmax.f32 %v1218_v31, 0.0  ;;  %v1555_v28 = vadd.f32 %v1198_v34, %v737_v25 }
 0x112   : > { %v1227_v35 = vpack.c.bf16 %v1223_v21, %v1223_v21  ;;  %v1221_v27 = vadd.f32 %v1554_v33, %v1366_v18 }
 0x113   : > { %v1226_v36 = vpack.c.bf16 %v1222_v19, %v1222_v19  ;;  %v1220_v38 = vadd.f32 %v1555_v28, %v1366_v18 }
 0x114   : > { %1232 = vst.msk [vmem:[%s170_s7 + $0x4] sm:$0xf] %vm1230_vm3, %v1227_v35  ;;  %v1225_v39 = vmax.f32 %v1221_v27, 0.0 }
 0x115   : > { %1231 = vst.msk [vmem:[%s170_s7] sm:$0xf] %vm1230_vm3, %v1226_v36  ;;  %v1224_v32 = vmax.f32 %v1220_v38, 0.0 }
 0x116   : > { %v1229_v40 = vpack.c.bf16 %v1225_v39, %v1225_v39 }
 0x117   : > { %v1228_v41 = vpack.c.bf16 %v1224_v32, %v1224_v32 }
 0x118   : > { %1234 = vst.msk [vmem:[%s170_s7 + $0xc] sm:$0xf] %vm1230_vm3, %v1229_v40 }
 0x119   : > { %1233 = vst.msk [vmem:[%s170_s7 + $0x8] sm:$0xf] %vm1230_vm3, %v1228_v41 }
 0x11a PF: > { %s13_s12 = sadd.s32 1, %s1599_s12  }
 0x11b   : > { %p10_p4 = scmp.ge.s32.totalorder %s13_s12, 4  }
 0x11d   :  { %12 = sbr.rel (!%p10_p4) target bundleno = 1 (0x1), region = 72 }

// kernel: forward.30
= control target key start
LH: loop header
LB: loop body
LE: loop exit
PB: predicated region body
PF: predicated region fallthrough
CT: control target
= control target key end

     0   :  { %vm53_vm0 = vcmask 130048   ;;  %vm273_vm1 = vcmask 257024   ;;  %s451_s4 = inlined_call_operand.vmem [shape: bf16[128,32], index: 4, kind: input, shape index: {}]   ;;  %s452_s1 = inlined_call_operand.vmem [shape: bf16[16,32], index: 1, kind: input, shape index: {}]   ;;  %s453_s0 = inlined_call_operand.vmem [shape: bf16[32,16], index: 0, kind: input, shape index: {}]   ;;  %s454_s3 = inlined_call_operand.vmem [shape: bf16[32,128], index: 3, kind: input, shape index: {}]   ;;  %s455_s2 = inlined_call_operand.vmem [shape: f32[1,32], index: 2, kind: input, shape index: {}]   ;;  %s456_s5 = inlined_call_operand.vmem [shape: f32[1,32], index: 5, kind: input, shape index: {}]   ;;  %s457_s6 = inlined_call_operand.vmem [shape: bf16[32,32], index: 6, kind: output, shape index: {}]  }
   0x1   :  { %v346_v0 = vld [vmem:[%s451_s4] sm:$0xff]   ;;  %v347_v1 = vld [vmem:[%s451_s4 + $0x8] sm:$0xff]   ;;  %v348_v2 = vld [vmem:[%s451_s4 + $0x10] sm:$0xff]  }
   0x2   :  { %326 = vmatprep.subr.bf16.mxu1 %v346_v0  ;;  %v352_v3 = vld [vmem:[%s452_s1] sm:$0xff]   ;;  %v349_v5 = vld [vmem:[%s451_s4 + $0x18] sm:$0xff]   ;;  %v355_v6 = vld [vmem:[%s453_s0 + $0x8] sm:$0xff]  }
   0x3   :  { %327 = vmatpush3.bf16.msra.mxu1 %v346_v0  ;;  %v353_v4 = vld [vmem:[%s453_s0] sm:$0xff]   ;;  %320 = vmatprep.subr.bf16.mxu0 %v352_v3  ;;  %v351_v9 = vld [vmem:[%s451_s4 + $0x28] sm:$0xff]   ;;  %v354_v10 = vld [vmem:[%s451_s4 + $0x30] sm:$0xff]  }
   0x4   :  { %328 = vmatprep.subr.bf16.mxu1 %v347_v1  ;;  %321 = vmatpush3.bf16.msra.mxu0 %v352_v3  ;;  %v357_v7 = vld [vmem:[%s454_s3] sm:$0xff]   ;;  %v356_v11 = vld [vmem:[%s451_s4 + $0x38] sm:$0xff]   ;;  %v358_v12 = vld [vmem:[%s454_s3 + $0x8] sm:$0xff]  }
   0x5   :  { %322 = vmatprep.mubr.msk.bf16.mxu0 %vm53_vm0, %v353_v4  ;;  %v350_v8 = vld [vmem:[%s451_s4 + $0x20] sm:$0xff]   ;;  %342 = vmatprep.mubr.bf16.mxu1 %v357_v7 }
   0x6   :  { %v282_v17 = vld [vmem:[%s455_s2] ss:$0 sm:$0xff] }
   0x7   :  { %329 = vmatpush3.bf16.msra.mxu1 %v347_v1  ;;  %323 = vmatmul.mubr.msk.bf16.vlgmr.msra.gmra.mrb[0].mxu0 %vm53_vm0, %v355_v6  ;;  %v298_v25 = vld [vmem:[%s456_s5] ss:$0 sm:$0xff] }
   0x8   :  { %330 = vmatprep.subr.bf16.mxu1 %v348_v2 }
   0xb   :  { %331 = vmatpush3.bf16.msra.mxu1 %v348_v2 }
   0xc   :  { %332 = vmatprep.subr.bf16.mxu1 %v349_v5 }
   0xf   :  { %333 = vmatpush3.bf16.msra.mxu1 %v349_v5 }
  0x10   :  { %334 = vmatprep.subr.bf16.mxu1 %v350_v8 }
  0x13   :  { %335 = vmatpush3.bf16.msra.mxu1 %v350_v8 }
  0x14   :  { %336 = vmatprep.subr.bf16.mxu1 %v351_v9 }
  0x17   :  { %337 = vmatpush3.bf16.msra.mxu1 %v351_v9 }
  0x18   :  { %338 = vmatprep.subr.bf16.mxu1 %v354_v10 }
  0x1b   :  { %339 = vmatpush3.bf16.msra.mxu1 %v354_v10 }
  0x1c   :  { %340 = vmatprep.subr.bf16.mxu1 %v356_v11 }
  0x1f   :  { %341 = vmatpush3.bf16.msra.mxu1 %v356_v11 }
  0x22   :  { %343 = vmatmul.mubr.bf16.vlgmr.msra.gmra.mrb[0].mxu1 %v358_v12 }
  0xda   :  { %v324_v13 = vpop.f32.mrb[0].mxu0 }
  0xdb   :  { %v94_v14 = vpop.f32.mrb[1].mxu0  ;;  %v103_v18 = vadd.f32 %v324_v13, %v282_v17 }
  0xdc   :  { %v325_v15 = vpop.f32.mrb[2].mxu0  ;;  %v95_v19 = vadd.f32 %v282_v17, %v94_v14 }
  0xdd   :  { %v97_v16 = vpop.f32.mrb[3].mxu0  ;;  %v111_v20 = vmax.f32 %v103_v18, 0.0  ;;  %v106_v21 = vadd.f32 %v325_v15, %v282_v17 }
  0xde   :  { %v109_v22 = vmax.f32 %v95_v19, 0.0  ;;  %v98_v23 = vadd.f32 %v282_v17, %v97_v16 }
  0xdf   :  { %v112_v26 = vmax.f32 %v106_v21, 0.0 }
  0xe0   :  { %v110_v29 = vmax.f32 %v98_v23, 0.0 }
  0xf5   :  { %v344_v24 = vpop.f32.mrb[0].mxu1 }
  0xf6   :  { %v244_v27 = vadd.f32 %v344_v24, %v111_v20  ;;  %v227_v28 = vpop.f32.mrb[1].mxu1 }
  0xf7   :  { %v242_v30 = vadd.f32 %v227_v28, %v109_v22  ;;  %v345_v31 = vpop.f32.mrb[2].mxu1 }
  0xf8   :  { %v255_v32 = vadd.f32 %v298_v25, %v244_v27  ;;  %v245_v33 = vadd.f32 %v345_v31, %v112_v26  ;;  %v230_v34 = vpop.f32.mrb[3].mxu1 }
  0xf9   :  { %v253_v35 = vadd.f32 %v298_v25, %v242_v30  ;;  %v243_v36 = vadd.f32 %v230_v34, %v110_v29 }
  0xfa   :  { %v305_v37 = vpack.c.bf16 %v255_v32, %v255_v32  ;;  %v256_v38 = vadd.f32 %v298_v25, %v245_v33 }
  0xfb   :  { %v303_v39 = vpack.c.bf16 %v253_v35, %v253_v35  ;;  %v254_v40 = vadd.f32 %v298_v25, %v243_v36 }
  0xfc   :  { %276 = vst.msk [vmem:[%s457_s6 + $0x8] sm:$0xf] %vm273_vm1, %v305_v37  ;;  %v306_v41 = vpack.c.bf16 %v256_v38, %v256_v38 }
  0xfd   :  { %274 = vst.msk [vmem:[%s457_s6] sm:$0xf] %vm273_vm1, %v303_v39  ;;  %v304_v42 = vpack.c.bf16 %v254_v40, %v254_v40 }
  0xfe   :  { %277 = vst.msk [vmem:[%s457_s6 + $0xc] sm:$0xf] %vm273_vm1, %v306_v41 }
  0xff   :  { %275 = vst.msk [vmem:[%s457_s6 + $0x4] sm:$0xf] %vm273_vm1, %v304_v42 }

// kernel: forward.31
= control target key start
LH: loop header
LB: loop body
LE: loop exit
PB: predicated region body
PF: predicated region fallthrough
CT: control target
= control target key end

     0   :  { %vm52_vm0 = vcmask 261120   ;;  %vm128_vm1 = vcmask 125952   ;;  %s215_s1 = inlined_call_operand.vmem [shape: bf16[32,16], index: 1, kind: input, shape index: {}]   ;;  %s216_s0 = inlined_call_operand.vmem [shape: bf16[32,32], index: 0, kind: input, shape index: {}]   ;;  %s217_s2 = inlined_call_operand.vmem [shape: f32[1,16], index: 2, kind: input, shape index: {}]   ;;  %s218_s3 = inlined_call_operand.vmem [shape: bf16[32,16], index: 3, kind: output, shape index: {}]  }
   0x1   :  { %v164_v0 = vld [vmem:[%s215_s1] sm:$0xff]   ;;  %v165_v1 = vld [vmem:[%s215_s1 + $0x8] sm:$0xff]  }
   0x2   :  { %156 = vmatprep.subr.bf16.mxu0 %v164_v0  ;;  %v166_v2 = vld [vmem:[%s216_s0] sm:$0xff]   ;;  %v167_v3 = vld [vmem:[%s216_s0 + $0x8] sm:$0xff]  }
   0x3   :  { %157 = vmatpush3.bf16.msra.mxu0 %v164_v0  ;;  %160 = vmatprep.mubr.msk.bf16.mxu0 %vm52_vm0, %v166_v2  ;;  %v137_v4 = vld [vmem:[%s217_s2] ss:$0 sm:$0xff] }
   0x4   :  { %158 = vmatprep.subr.bf16.mxu0 %v165_v1 }
   0x7   :  { %159 = vmatpush3.bf16.msra.mxu0 %v165_v1 }
   0xa   :  { %161 = vmatmul.mubr.msk.bf16.vlgmr.msra.gmra.mrb[0].mxu0 %vm52_vm0, %v167_v3 }
  0xdd   :  { %v162_v5 = vpop.f32.mrb[0].mxu0 }
  0xde   :  { %v102_v6 = vadd.f32 %v162_v5, %v137_v4  ;;  %v93_v7 = vpop.f32.mrb[1].mxu0 }
  0xdf   :  { %v94_v8 = vadd.f32 %v137_v4, %v93_v7  ;;  %v163_v9 = vpop.f32.mrb[2].mxu0 }
  0xe0   :  { %v110_v10 = vmax.f32 %v102_v6, 0.0  ;;  %v105_v11 = vadd.f32 %v163_v9, %v137_v4  ;;  %v96_v12 = vpop.f32.mrb[3].mxu0 }
  0xe1   :  { %v108_v13 = vmax.f32 %v94_v8, 0.0  ;;  %v97_v14 = vadd.f32 %v137_v4, %v96_v12 }
  0xe2   :  { %v150_v15 = vpack.c.bf16 %v110_v10, %v110_v10  ;;  %v111_v16 = vmax.f32 %v105_v11, 0.0 }
  0xe3   :  { %v148_v17 = vpack.c.bf16 %v108_v13, %v108_v13  ;;  %v109_v18 = vmax.f32 %v97_v14, 0.0 }
  0xe4   :  { %131 = vst.msk [vmem:[%s218_s3 + $0x8] sm:$0xf] %vm128_vm1, %v150_v15  ;;  %v151_v19 = vpack.c.bf16 %v111_v16, %v111_v16 }
  0xe5   :  { %129 = vst.msk [vmem:[%s218_s3] sm:$0xf] %vm128_vm1, %v148_v17  ;;  %v149_v20 = vpack.c.bf16 %v109_v18, %v109_v18 }
  0xe6   :  { %132 = vst.msk [vmem:[%s218_s3 + $0xc] sm:$0xf] %vm128_vm1, %v151_v19 }
  0xe7   :  { %130 = vst.msk [vmem:[%s218_s3 + $0x4] sm:$0xf] %vm128_vm1, %v149_v20 }

// kernel: forward.33
= control target key start
LH: loop header
LB: loop body
LE: loop exit
PB: predicated region body
PF: predicated region fallthrough
CT: control target
= control target key end

     0   :  { %vm47_vm0 = vcmask 130048   ;;  %vm135_vm1 = vcmask 257024   ;;  %s234_s1 = inlined_call_operand.vmem [shape: bf16[16,32], index: 1, kind: input, shape index: {}]   ;;  %s235_s0 = inlined_call_operand.vmem [shape: bf16[32,16], index: 0, kind: input, shape index: {}]   ;;  %s236_s2 = inlined_call_operand.vmem [shape: f32[1,32], index: 2, kind: input, shape index: {}]   ;;  %s237_s3 = inlined_call_operand.vmem [shape: bf16[32,32], index: 3, kind: input, shape index: {}]   ;;  %s238_s4 = inlined_call_operand.vmem [shape: bf16[32,32], index: 4, kind: output, shape index: {}]  }
   0x1   :  { %v176_v0 = vld [vmem:[%s234_s1] sm:$0xff]   ;;  %v178_v2 = vld [vmem:[%s235_s0 + $0x8] sm:$0xff]  }
   0x2   :  { %v177_v1 = vld [vmem:[%s235_s0] sm:$0xff]   ;;  %170 = vmatprep.subr.bf16.mxu0 %v176_v0  ;;  %v166_v4 = vld [vmem:[%s237_s3 + $0x8] sm:$0xff]  }
   0x3   :  { %171 = vmatpush3.bf16.msra.mxu0 %v176_v0  ;;  %172 = vmatprep.mubr.msk.bf16.mxu0 %vm47_vm0, %v177_v1  ;;  %v144_v3 = vld [vmem:[%s236_s2] ss:$0 sm:$0xff]  ;;  %v164_v8 = vunpack.c.l.bf16 %v166_v4  ;;  %v165_v15 = vunpack.c.h.bf16 %v166_v4 }
   0x4   :  { %v159_v5 = vld [vmem:[%s237_s3] sm:$0xff]  }
   0x5   :  { %v160_v11 = vunpack.c.l.bf16 %v159_v5  ;;  %v161_v19 = vunpack.c.h.bf16 %v159_v5 }
   0x6   :  { %173 = vmatmul.mubr.msk.bf16.vlgmr.msra.gmra.mrb[0].mxu0 %vm47_vm0, %v178_v2 }
  0xd9   :  { %v174_v6 = vpop.f32.mrb[0].mxu0 }
  0xda   :  { %v97_v7 = vadd.f32 %v174_v6, %v144_v3  ;;  %v88_v9 = vpop.f32.mrb[1].mxu0 }
  0xdb   :  { %v89_v10 = vadd.f32 %v144_v3, %v88_v9  ;;  %v175_v12 = vpop.f32.mrb[2].mxu0 }
  0xdc   :  { %v105_v13 = vmax.f32 %v97_v7, 0.0  ;;  %v100_v14 = vadd.f32 %v175_v12, %v144_v3  ;;  %v91_v16 = vpop.f32.mrb[3].mxu0 }
  0xdd   :  { %v103_v17 = vmax.f32 %v89_v10, 0.0  ;;  %v92_v18 = vadd.f32 %v144_v3, %v91_v16 }
  0xde   :  { %v117_v20 = vadd.f32 %v164_v8, %v105_v13  ;;  %v106_v21 = vmax.f32 %v100_v14, 0.0 }
  0xdf   :  { %v115_v22 = vadd.f32 %v160_v11, %v103_v17  ;;  %v104_v23 = vmax.f32 %v92_v18, 0.0 }
  0xe0   :  { %v156_v24 = vpack.c.bf16 %v117_v20, %v117_v20  ;;  %v118_v25 = vadd.f32 %v165_v15, %v106_v21 }
  0xe1   :  { %v154_v26 = vpack.c.bf16 %v115_v22, %v115_v22  ;;  %v116_v27 = vadd.f32 %v161_v19, %v104_v23 }
  0xe2   :  { %138 = vst.msk [vmem:[%s238_s4 + $0x8] sm:$0xf] %vm135_vm1, %v156_v24  ;;  %v157_v28 = vpack.c.bf16 %v118_v25, %v118_v25 }
  0xe3   :  { %136 = vst.msk [vmem:[%s238_s4] sm:$0xf] %vm135_vm1, %v154_v26  ;;  %v155_v29 = vpack.c.bf16 %v116_v27, %v116_v27 }
  0xe4   :  { %139 = vst.msk [vmem:[%s238_s4 + $0xc] sm:$0xf] %vm135_vm1, %v157_v28 }
  0xe5   :  { %137 = vst.msk [vmem:[%s238_s4 + $0x4] sm:$0xf] %vm135_vm1, %v155_v29 }

// kernel: forward.34
= control target key start
LH: loop header
LB: loop body
LE: loop exit
PB: predicated region body
PF: predicated region fallthrough
CT: control target
= control target key end

     0   :  { %vm60_vm0 = vcmask 261120   ;;  %vm136_vm1 = vcmask 257024   ;;  %vm219_vm2 = vcmask 64512   ;;  %s369_s1 = inlined_call_operand.vmem [shape: bf16[32,32], index: 1, kind: input, shape index: {}]   ;;  %s370_s0 = inlined_call_operand.vmem [shape: bf16[32,32], index: 0, kind: input, shape index: {}]   ;;  %s371_s3 = inlined_call_operand.vmem [shape: bf16[32,8], index: 3, kind: input, shape index: {}]   ;;  %s372_s2 = inlined_call_operand.vmem [shape: f32[1,32], index: 2, kind: input, shape index: {}]   ;;  %s373_s5 = inlined_call_operand.vmem [shape: bf16[32,32], index: 5, kind: output, shape index: {0}]   ;;  %s374_s4 = inlined_call_operand.vmem [shape: f32[1,8], index: 4, kind: input, shape index: {}]   ;;  %s375_s6 = inlined_call_operand.vmem [shape: f32[32,8], index: 6, kind: output, shape index: {1}]  }
   0x1   :  { %v276_v0 = vld [vmem:[%s369_s1] sm:$0xff]   ;;  %v277_v1 = vld [vmem:[%s369_s1 + $0x8] sm:$0xff]  }
   0x2   :  { %260 = vmatprep.subr.bf16.mxu0 %v276_v0  ;;  %v278_v2 = vld [vmem:[%s370_s0] sm:$0xff]   ;;  %v279_v3 = vld [vmem:[%s370_s0 + $0x8] sm:$0xff]  }
   0x3   :  { %261 = vmatpush3.bf16.msra.mxu0 %v276_v0  ;;  %264 = vmatprep.mubr.msk.bf16.mxu0 %vm60_vm0, %v278_v2  ;;  %v280_v4 = vld [vmem:[%s371_s3] sm:$0xff]   ;;  %v281_v5 = vld [vmem:[%s371_s3 + $0x8] sm:$0xff]  }
   0x4   :  { %262 = vmatprep.subr.bf16.mxu0 %v277_v1  ;;  %268 = vmatprep.subr.bf16.mxu1 %v280_v4  ;;  %v232_v6 = vld [vmem:[%s372_s2] ss:$0 sm:$0xff] }
   0x5   :  { %269 = vmatpush3.bf16.msra.mxu1 %v280_v4  ;;  %v243_v25 = vld [vmem:[%s374_s4] ss:$0 sm:$0xff] }
   0x6   :  { %270 = vmatprep.subr.bf16.mxu1 %v281_v5 }
   0x7   :  { %263 = vmatpush3.bf16.msra.mxu0 %v277_v1 }
   0x9   :  { %271 = vmatpush3.bf16.msra.mxu1 %v281_v5 }
   0xa   :  { %265 = vmatmul.mubr.msk.bf16.vlgmr.msra.gmra.mrb[0].mxu0 %vm60_vm0, %v279_v3 }
  0xdd   :  { %v266_v7 = vpop.f32.mrb[0].mxu0 }
  0xde   :  { %v110_v8 = vadd.f32 %v266_v7, %v232_v6  ;;  %v101_v9 = vpop.f32.mrb[1].mxu0 }
  0xdf   :  { %v102_v10 = vadd.f32 %v232_v6, %v101_v9  ;;  %v267_v11 = vpop.f32.mrb[2].mxu0 }
  0xe0   :  { %v118_v12 = vmax.f32 %v110_v8, 0.0  ;;  %v113_v13 = vadd.f32 %v267_v11, %v232_v6  ;;  %v104_v14 = vpop.f32.mrb[3].mxu0 }
  0xe1   :  { %v116_v15 = vmax.f32 %v102_v10, 0.0  ;;  %v105_v16 = vadd.f32 %v232_v6, %v104_v14 }
  0xe2   :  { %v250_v17 = vpack.c.bf16 %v118_v12, %v118_v12  ;;  %v119_v18 = vmax.f32 %v113_v13, 0.0 }
  0xe3   :  { %v248_v19 = vpack.c.bf16 %v116_v15, %v116_v15  ;;  %v117_v20 = vmax.f32 %v105_v16, 0.0 }
  0xe4   :  { %139 = vst.msk [vmem:[%s373_s5 + $0x8] sm:$0xf] %vm136_vm1, %v250_v17  ;;  %v121_v21 = vpack.c.bf16 %v119_v18, %v118_v12  ;;  %v251_v22 = vpack.c.bf16 %v119_v18, %v119_v18 }
  0xe5   :  { %137 = vst.msk [vmem:[%s373_s5] sm:$0xf] %vm136_vm1, %v248_v19  ;;  %v249_v23 = vpack.c.bf16 %v117_v20, %v117_v20  ;;  %v120_v24 = vpack.c.bf16 %v117_v20, %v116_v15 }
  0xe6   :  { %140 = vst.msk [vmem:[%s373_s5 + $0xc] sm:$0xf] %vm136_vm1, %v251_v22 }
  0xe7   :  { %138 = vst.msk [vmem:[%s373_s5 + $0x4] sm:$0xf] %vm136_vm1, %v249_v23  ;;  %272 = vmatprep.mubr.msk.bf16.mxu1 %vm60_vm0, %v120_v24 }
  0xe8   :  { %273 = vmatmul.mubr.msk.bf16.vlgmr.msra.gmra.mrb[0].mxu1 %vm60_vm0, %v121_v21 }
 0x1bb   :  { %v274_v26 = vpop.f32.mrb[0].mxu1 }
 0x1bc   :  { %v213_v27 = vadd.f32 %v274_v26, %v243_v25  ;;  %v204_v28 = vpop.f32.mrb[1].mxu1 }
 0x1bd   :  { %v205_v29 = vadd.f32 %v243_v25, %v204_v28  ;;  %v275_v30 = vpop.f32.mrb[2].mxu1 }
 0x1be   :  { %222 = vst.msk [vmem:[%s375_s6 + $0x10] sm:$0xff] %vm219_vm2, %v213_v27  ;;  %v216_v31 = vadd.f32 %v275_v30, %v243_v25  ;;  %v207_v32 = vpop.f32.mrb[3].mxu1 }
 0x1bf   :  { %220 = vst.msk [vmem:[%s375_s6] sm:$0xff] %vm219_vm2, %v205_v29  ;;  %v208_v33 = vadd.f32 %v243_v25, %v207_v32 }
 0x1c0   :  { %223 = vst.msk [vmem:[%s375_s6 + $0x18] sm:$0xff] %vm219_vm2, %v216_v31 }
 0x1c1   :  { %221 = vst.msk [vmem:[%s375_s6 + $0x8] sm:$0xff] %vm219_vm2, %v208_v33 }

// kernel: forward.39
= control target key start
LH: loop header
LB: loop body
LE: loop exit
PB: predicated region body
PF: predicated region fallthrough
CT: control target
= control target key end

     0   :  { %12 = vsyncpa [#allocation3], 0  ;;  %vm62_vm0 = vcmask 261120   ;;  %s455_s0 = inlined_call_operand.vmem [shape: bf16[32,32], index: 0, kind: input, shape index: {}]   ;;  %s456_s1 = inlined_call_operand.vmem [shape: bf16[32,32], index: 1, kind: input, shape index: {}]   ;;  %s457_s2 = inlined_call_operand.vmem [shape: f32[1,32], index: 2, kind: input, shape index: {}]   ;;  %s458_s3 = inlined_call_operand.vmem [shape: bf16[32,8], index: 3, kind: input, shape index: {}]   ;;  %s459_s4 = inlined_call_operand.vmem [shape: f32[1,8], index: 4, kind: input, shape index: {}]   ;;  %s460_s5 = inlined_call_operand.hbm [shape: bf16[32,32], index: 5, kind: output, shape index: {0}]   ;;  %s461_s6 = inlined_call_operand.hbm [shape: f32[32,8], index: 6, kind: output, shape index: {1}]  }
   0x1   :  { %v308_v0 = vld [vmem:[%s456_s1] sm:$0xff]   ;;  %v309_v1 = vld [vmem:[%s456_s1 + $0x8] sm:$0xff]  }
   0x2   :  { %286 = vmatprep.subr.bf16.mxu0 %v308_v0  ;;  %v310_v2 = vld [vmem:[%s455_s0] sm:$0xff]  }
   0x3   :  { %287 = vmatpush3.bf16.msra.mxu0 %v308_v0  ;;  %290 = vmatprep.mubr.msk.bf16.mxu0 %vm62_vm0, %v310_v2 }
   0x4   :  { %288 = vmatprep.subr.bf16.mxu0 %v309_v1 }
   0x5   :  { %13 = vsyncpa [#allocation5], 0  ;;  %v311_v3 = vld [vmem:[%s455_s0 + $0x8] sm:$0xff]   ;;  %v312_v4 = vld [vmem:[%s458_s3] sm:$0xff]   ;;  %vm138_vm1 = vcmask 257024   ;;  %s362_s0 = smov [#allocation2]  }
   0x6   :  { %294 = vmatprep.subr.bf16.mxu1 %v312_v4  ;;  %v313_v5 = vld [vmem:[%s458_s3 + $0x8] sm:$0xff]   ;;  %v258_v6 = vld [vmem:[%s457_s2] ss:$0 sm:$0xff]  ;;  %s231_s2 = sshll.u32 %s362_s0, 4  ;;  %s232_s2 = int_to_ptr.vmem [resolvable:$true] %s231_s2 }
   0x7   :  { %289 = vmatpush3.bf16.msra.mxu0 %v309_v1  ;;  %295 = vmatpush3.bf16.msra.mxu1 %v312_v4  ;;  %s314_s3 = scalar_lea.vmem %s232_s2, 256  ;;  %p319_p1 = scmp.lt.s32.totalorder %s232_s2, %s232_s2 }
   0x8   :  { %296 = vmatprep.subr.bf16.mxu1 %v313_v5  ;;  %p315_p0 = scmp.ne.s32.totalorder %s232_s2, %s314_s3  ;;  %p320_p2 = scmp.lt.s32.totalorder %s314_s3, %s314_s3 }
   0xa   :  { %291 = vmatmul.mubr.msk.bf16.vlgmr.msra.gmra.mrb[0].mxu0 %vm62_vm0, %v311_v3  ;;  %p321_p3 = por %p320_p2, %p319_p1 }
   0xb   :  { %297 = vmatpush3.bf16.msra.mxu1 %v313_v5 }
   0xc   :  { %p322_p4 = pnand %p321_p3, %p315_p0 }
  0xdd   :  { %v292_v7 = vpop.f32.mrb[0].mxu0 }
  0xde   :  { %v112_v8 = vadd.f32 %v292_v7, %v258_v6  ;;  %v103_v9 = vpop.f32.mrb[1].mxu0 }
  0xdf   :  { %v104_v10 = vadd.f32 %v258_v6, %v103_v9  ;;  %v293_v11 = vpop.f32.mrb[2].mxu0 }
  0xe0   :  { %v120_v12 = vmax.f32 %v112_v8, 0.0  ;;  %v115_v13 = vadd.f32 %v293_v11, %v258_v6  ;;  %v106_v14 = vpop.f32.mrb[3].mxu0 }
  0xe1   :  { %v118_v15 = vmax.f32 %v104_v10, 0.0  ;;  %v107_v16 = vadd.f32 %v258_v6, %v106_v14 }
  0xe2   :  { %v276_v17 = vpack.c.bf16 %v120_v12, %v120_v12  ;;  %v121_v18 = vmax.f32 %v115_v13, 0.0 }
  0xe3   :  { %v274_v19 = vpack.c.bf16 %v118_v15, %v118_v15  ;;  %v119_v20 = vmax.f32 %v107_v16, 0.0 }
  0xe4   :  { %141 = vst.msk [vmem:[#allocation2 + $0x8] sm:$0xf] %vm138_vm1, %v276_v17  ;;  %v123_v21 = vpack.c.bf16 %v121_v18, %v120_v12  ;;  %v277_v22 = vpack.c.bf16 %v121_v18, %v121_v18 }
  0xe5   :  { %139 = vst.msk [vmem:[#allocation2] sm:$0xf] %vm138_vm1, %v274_v19  ;;  %v275_v23 = vpack.c.bf16 %v119_v20, %v119_v20  ;;  %v122_v24 = vpack.c.bf16 %v119_v20, %v118_v15 }
  0xe6   :  { %142 = vst.msk [vmem:[#allocation2 + $0xc] sm:$0xf] %vm138_vm1, %v277_v22 }
  0xe7   :  { %140 = vst.msk [vmem:[#allocation2 + $0x4] sm:$0xf] %vm138_vm1, %v275_v23  ;;  %298 = vmatprep.mubr.msk.bf16.mxu1 %vm62_vm0, %v122_v24 }
  0xe8   :  { %299 = vmatmul.mubr.msk.bf16.vlgmr.msra.gmra.mrb[0].mxu1 %vm62_vm0, %v123_v21 }
  0xe9   :  { %325 = shalt.err (!%p322_p4)
}
  0xea   :  { %s326_s12 = scalar_lea.hbm %s460_s5, 256 }
  0xeb   :  { %p327_p5 = scmp.ne.s32.totalorder %s460_s5, %s326_s12  ;;  %p330_p6 = scmp.lt.u32.totalorder %s326_s12, %s460_s5 }
  0xed   :  { %p332_p7 = pnand %p330_p6, %p327_p5 }
  0xef   :  { %335 = shalt.err (!%p332_p7)
}
  0xf0   :  { %s363_s17 = smov 64   ;;  %s364_s18 = smov 4   ;;  %v269_v25 = vld [vmem:[%s459_s4] ss:$0 sm:$0xff]  ;;  %vm221_vm2 = vcmask 64512  }
  0xf1   :  { %237 = dma.vmem_to_hbm [thread:$0]  %s232_s2, 256, %s460_s5, [#allocation3], %s363_s17, %s363_s17, %s364_s18  }
  0xf2   :  { %s365_s23 = smov [#allocation4]  }
  0xf3   :  { %s243_s24 = sshll.u32 %s365_s23, 4  ;;  %s244_s24 = int_to_ptr.vmem [resolvable:$true] %s243_s24 }
  0xf4   :  { %s336_s5 = scalar_lea.vmem %s244_s24, 512  ;;  %p341_p9 = scmp.lt.s32.totalorder %s244_s24, %s244_s24 }
  0xf5   :  { %p337_p8 = scmp.ne.s32.totalorder %s244_s24, %s336_s5  ;;  %p342_p10 = scmp.lt.s32.totalorder %s336_s5, %s336_s5 }
  0xf7   :  { %p343_p11 = por %p342_p10, %p341_p9 }
  0xf9   :  { %p344_p12 = pnand %p343_p11, %p337_p8 }
 0x1bb   :  { %v300_v26 = vpop.f32.mrb[0].mxu1 }
 0x1bc   :  { %v215_v27 = vadd.f32 %v300_v26, %v269_v25  ;;  %v206_v28 = vpop.f32.mrb[1].mxu1 }
 0x1bd   :  { %v207_v29 = vadd.f32 %v269_v25, %v206_v28  ;;  %v301_v30 = vpop.f32.mrb[2].mxu1 }
 0x1be   :  { %224 = vst.msk [vmem:[#allocation4 + $0x10] sm:$0xff] %vm221_vm2, %v215_v27  ;;  %v218_v31 = vadd.f32 %v301_v30, %v269_v25  ;;  %v209_v32 = vpop.f32.mrb[3].mxu1 }
 0x1bf   :  { %222 = vst.msk [vmem:[#allocation4] sm:$0xff] %vm221_vm2, %v207_v29  ;;  %v210_v33 = vadd.f32 %v269_v25, %v209_v32 }
 0x1c0   :  { %225 = vst.msk [vmem:[#allocation4 + $0x18] sm:$0xff] %vm221_vm2, %v218_v31 }
 0x1c1   :  { %223 = vst.msk [vmem:[#allocation4 + $0x8] sm:$0xff] %vm221_vm2, %v210_v33 }
 0x1c2   :  { %347 = shalt.err (!%p344_p12)
}
 0x1c3   :  { %s348_s26 = scalar_lea.hbm %s461_s6, 512 }
 0x1c4   :  { %p349_p13 = scmp.ne.s32.totalorder %s461_s6, %s348_s26  ;;  %p352_p0 = scmp.lt.u32.totalorder %s348_s26, %s461_s6 }
 0x1c6   :  { %p354_p1 = pnand %p352_p0, %p349_p13 }
 0x1c8   :  { %357 = shalt.err (!%p354_p1)
}
 0x1c9   :  { %s366_s30 = smov 128   ;;  %s367_s7 = smov 8  }
 0x1ca   :  { %249 = dma.vmem_to_hbm [thread:$0]  %s244_s24, 512, %s461_s6, [#allocation5], %s366_s30, %s366_s30, %s367_s7  }
 0x1cb   :  { %358 = dma.done.wait [#allocation3], 256  }
 0x1cc   :  { %359 = vsyncadd [#allocation3], 4294967040 }
 0x1cd   :  { %360 = dma.done.wait [#allocation5], 512  }
 0x1ce   :  { %361 = vsyncadd [#allocation5], 4294966784 }
 0x1cf   :  { %256 = vsyncpa [#allocation3], 1 }
 0x1d0   :  { %257 = vsyncpa [#allocation5], 1 }

// kernel: forward.35
= control target key start
LH: loop header
LB: loop body
LE: loop exit
PB: predicated region body
PF: predicated region fallthrough
CT: control target
= control target key end

     0   :  { %vm50_vm0 = vcmask 1043456   ;;  %vm43_vm1 = vcmask 64512   ;;  %vm143_vm2 = vcmask 257024   ;;  %s261_s1 = inlined_call_operand.vmem [shape: bf16[8,32], index: 1, kind: input, shape index: {}]   ;;  %s262_s0 = inlined_call_operand.vmem [shape: bf16[32,8], index: 0, kind: input, shape index: {}]   ;;  %s263_s3 = inlined_call_operand.vmem [shape: bf16[32,32], index: 3, kind: input, shape index: {}]   ;;  %s264_s2 = inlined_call_operand.vmem [shape: f32[1,32], index: 2, kind: input, shape index: {}]   ;;  %s265_s4 = inlined_call_operand.vmem [shape: bf16[32,32], index: 4, kind: input, shape index: {}]   ;;  %s266_s5 = inlined_call_operand.vmem [shape: bf16[32,32], index: 5, kind: output, shape index: {}]  }
   0x1   :  { %v25_v0 = vld [vmem:[%s261_s1] sm:$0xf]  ;;  %v194_v3 = vld [vmem:[%s262_s0 + $0x8] sm:$0xff]  }
   0x2   :  { %192 = vmatprep.subr.msk.bf16.mxu0 %vm50_vm0, %v25_v0  ;;  %v52_v1 = vsel %vm50_vm0, %v25_v0, 0  ;;  %v193_v2 = vld [vmem:[%s262_s0] sm:$0xff]   ;;  %v181_v4 = vld [vmem:[%s263_s3 + $0x8] sm:$0xff]  }
   0x3   :  { %187 = vmatpush3.bf16.msra.mxu0 %v52_v1  ;;  %188 = vmatprep.mubr.msk.bf16.mxu0 %vm43_vm1, %v193_v2  ;;  %v166_v5 = vld [vmem:[%s263_s3] sm:$0xff]   ;;  %v182_v7 = vld [vmem:[%s265_s4 + $0x8] sm:$0xff]   ;;  %v171_v8 = vunpack.c.l.bf16 %v181_v4  ;;  %v172_v15 = vunpack.c.h.bf16 %v181_v4 }
   0x4   :  { %v152_v6 = vld [vmem:[%s264_s2] ss:$0 sm:$0xff]  ;;  %v167_v11 = vunpack.c.l.bf16 %v166_v5  ;;  %v179_v13 = vunpack.c.l.bf16 %v182_v7  ;;  %v168_v19 = vunpack.c.h.bf16 %v166_v5  ;;  %v180_v22 = vunpack.c.h.bf16 %v182_v7 }
   0x5   :  { %v174_v9 = vld [vmem:[%s265_s4] sm:$0xff]  }
   0x6   :  { %189 = vmatmul.mubr.msk.bf16.vlgmr.msra.gmra.mrb[0].mxu0 %vm43_vm1, %v194_v3  ;;  %v175_v17 = vunpack.c.l.bf16 %v174_v9  ;;  %v176_v26 = vunpack.c.h.bf16 %v174_v9 }
  0xd9   :  { %v190_v10 = vpop.f32.mrb[0].mxu0 }
  0xda   :  { %v97_v12 = vadd.f32 %v190_v10, %v152_v6  ;;  %v88_v14 = vpop.f32.mrb[1].mxu0 }
  0xdb   :  { %v89_v16 = vadd.f32 %v152_v6, %v88_v14  ;;  %v191_v18 = vpop.f32.mrb[2].mxu0 }
  0xdc   :  { %v113_v20 = vadd.f32 %v171_v8, %v97_v12  ;;  %v100_v21 = vadd.f32 %v191_v18, %v152_v6  ;;  %v91_v23 = vpop.f32.mrb[3].mxu0 }
  0xdd   :  { %v111_v24 = vadd.f32 %v167_v11, %v89_v16  ;;  %v92_v25 = vadd.f32 %v152_v6, %v91_v23 }
  0xde   :  { %v125_v27 = vadd.f32 %v179_v13, %v113_v20  ;;  %v114_v28 = vadd.f32 %v172_v15, %v100_v21 }
  0xdf   :  { %v123_v29 = vadd.f32 %v175_v17, %v111_v24  ;;  %v112_v30 = vadd.f32 %v168_v19, %v92_v25 }
  0xe0   :  { %v163_v31 = vpack.c.bf16 %v125_v27, %v125_v27  ;;  %v126_v32 = vadd.f32 %v180_v22, %v114_v28 }
  0xe1   :  { %v161_v33 = vpack.c.bf16 %v123_v29, %v123_v29  ;;  %v124_v34 = vadd.f32 %v176_v26, %v112_v30 }
  0xe2   :  { %146 = vst.msk [vmem:[%s266_s5 + $0x8] sm:$0xf] %vm143_vm2, %v163_v31  ;;  %v164_v35 = vpack.c.bf16 %v126_v32, %v126_v32 }
  0xe3   :  { %144 = vst.msk [vmem:[%s266_s5] sm:$0xf] %vm143_vm2, %v161_v33  ;;  %v162_v36 = vpack.c.bf16 %v124_v34, %v124_v34 }
  0xe4   :  { %147 = vst.msk [vmem:[%s266_s5 + $0xc] sm:$0xf] %vm143_vm2, %v164_v35 }
  0xe5   :  { %145 = vst.msk [vmem:[%s266_s5 + $0x4] sm:$0xf] %vm143_vm2, %v162_v36 }

</bundles_post_ra>
